<compile_context>
chip_gen: v5e
topology: v5e:2x2
jax: 0.10.0
libtpu: 0.0.40
codegen_flags: <defaults>
</compile_context>

<pallas_src>
import functools

import jax
import jax.numpy as jnp
from jax.experimental import pallas as pl
from jax.experimental.pallas import tpu as pltpu

LEAKY_SLOPE = 0.01   # nn.LeakyReLU() default negative_slope
RES_SCALE = 0.2
N_INNER = 5          # inner blocks per DenseResidualBlock
N_DRB = 3            # DenseResidualBlocks per RRDB


def _round_up(v, m):
    return -(-v // m) * m


# ---------------------------------------------------------------------------
# Fused RRDB kernel (one batch element per grid step)
# ---------------------------------------------------------------------------
def _rrdb_kernel(x_ref, mask_ref,
                 w123_ref, b123_ref, w4_ref, b4_ref,
                 out_ref,
                 cur_ref, skip_ref, cat_ref, patch_ref,
                 *, F, Wp, S_al, G, compute_dtype):
    """Whole RRDB forward for one image.

    Activation layout: (channels, L) f32 slabs.  The zero-padded spatial plane
    (Hp*Wp flattened row-major, halo 2 for the 5x5 conv) lives at lanes
    [G, G+S_al), where S_al = round_up(Hp*Wp, 128) so every hot store is a
    full-width, unmasked vst.  The lane-aligned guard bands around it are big
    enough that every conv tap is a static, in-bounds lane slice.
    """
    L = cur_ref.shape[1]
    mask = mask_ref[...]                 # (1, S_al): 1 at valid pixels else 0

    # ---- im2col into the shared patch matrix ------------------------------
    def build_taps(src_ref, cin, halo, row0):
        """(2*halo+1)^2 shifted copies of src's plane -> patch rows.

        One wide VMEM read per row-offset dh; the dw shifts are static value
        slices of that slab (lowered to cheap XLU lane shifts) instead of a
        separate unaligned load per tap.
        """
        r = row0
        for dh in range(-halo, halo + 1):
            base = G + dh * Wp
            wide = src_ref[0:cin, base - halo:base + S_al + halo]
            for dw in range(-halo, halo + 1):
                tap = wide[:, dw + halo:dw + halo + S_al]
                patch_ref[r:r + cin, :] = tap.astype(compute_dtype)
                r += cin

    # ---- per-image init ----------------------------------------------------
    x0 = x_ref[...]
    skip_ref[...] = x0                   # dense-block residual input
    cur_ref[...] = x0                    # running `inputs`
    # Only cat's guard bands need zeroing (its plane window is fully rewritten
    # by the masked conv store every inner block).  Done per image -- two tiny
    # aligned stores -- rather than once at program_id(0)==0, so a megacore
    # grid split (v7x) never sees uninitialised scratch.
    cat_ref[0:3 * F, 0:G] = jnp.zeros((3 * F, G), jnp.float32)
    cat_ref[0:3 * F, G + S_al:L] = jnp.zeros((3 * F, L - G - S_al), jnp.float32)

    # ---- 3 DRBs x 5 inner blocks ------------------------------------------
    def inner_block(k, carry):           # k = drb_index * N_INNER + i
        i = k % N_INNER

        # conv1(1x1) + conv2(3x3) + conv3(5x5), all reading `inputs`, fused
        # into ONE MXU pass over a shared 5x5 im2col patch (the smaller
        # kernels' weights were zero-padded onto the 25-tap grid).
        build_taps(cur_ref, F, 2, 0)                       # rows [0, 25F)
        acc = jnp.dot(w123_ref[k], patch_ref[0:25 * F, :],
                      preferred_element_type=jnp.float32)
        acc = acc + b123_ref[k]                            # (3F, 1) broadcast
        acc = jnp.where(acc >= 0, acc, acc * LEAKY_SLOPE)  # LeakyReLU
        cat_ref[0:3 * F, G:G + S_al] = acc * mask          # o1|o2|o3, halo->0

        # conv4(3x3) on cat([o1,o2,o3,inputs]): the `inputs` channels reuse
        # the 25-tap patch already built from cur (their weights are padded
        # onto that grid), so only 9 taps x 3F rows of o1..o3 are appended --
        # no cat[3F:4F] = cur copy and no rebuild of the `inputs` taps.
        build_taps(cat_ref, 3 * F, 1, 25 * F)              # rows [25F, 52F)
        acc4 = jnp.dot(w4_ref[k], patch_ref[...],
                       preferred_element_type=jnp.float32)
        acc4 = acc4 + b4_ref[k]
        # 5th inner block's conv4 has no activation (non_linearity = i != 4).
        slope4 = jnp.where(i == N_INNER - 1, 1.0, LEAKY_SLOPE)
        acc4 = jnp.where(acc4 >= 0, acc4, acc4 * slope4)
        cur_ref[0:F, G:G + S_al] = acc4 * mask

        @pl.when(i == N_INNER - 1)       # end of one DenseResidualBlock
        def _():
            skip_ref[...] = cur_ref[...] * RES_SCALE + skip_ref[...]
            cur_ref[...] = skip_ref[...]
        return carry

    jax.lax.fori_loop(0, N_DRB * N_INNER, inner_block, 0)

    # Outer RRDB residual.
    out_ref[...] = skip_ref[...] * RES_SCALE + x_ref[...]


# ---------------------------------------------------------------------------
# Wrapper: layout glue + pallas_call plumbing
# ---------------------------------------------------------------------------
def rrdb_pallas(x_nchw, packed):
    """x_nchw: (N, F, H, W) float32.  packed: fused matmul weights/biases."""
    W123, B123, W4, B4 = packed
    N, F, H, W = x_nchw.shape
    PAD = 2                                   # halo of the largest (5x5) conv
    Hp, Wp = H + 2 * PAD, W + 2 * PAD
    S = Hp * Wp
    S_al = _round_up(S, 128)                  # lane-dense plane width
    g_need = 2 * Wp + 2                       # max |tap offset| for K=5
    G = _round_up(g_need, 128)                # leading guard band (aligned)
    L = _round_up(G + S_al + g_need, 128)     # total slab width
    assert W123.shape[0] == N_DRB * N_INNER

    # NCHW -> zero-padded flat (N, F, L), plane at lanes [G, G+S).
    xpad = jnp.pad(x_nchw, ((0, 0), (0, 0), (PAD, PAD), (PAD, PAD)))
    xflat = jnp.pad(xpad.reshape(N, F, S), ((0, 0), (0, 0), (G, L - G - S)))

    # Valid-pixel mask over the lane-padded plane.
    row_ok = (jnp.arange(Hp) >= PAD) & (jnp.arange(Hp) < PAD + H)
    col_ok = (jnp.arange(Wp) >= PAD) & (jnp.arange(Wp) < PAD + W)
    mask = (row_ok[:, None] & col_ok[None, :]).astype(jnp.float32).reshape(1, S)
    mask = jnp.pad(mask, ((0, 0), (0, S_al - S)))

    kernel = functools.partial(_rrdb_kernel, F=F, Wp=Wp, S_al=S_al, G=G,
                               compute_dtype=W123.dtype)

    def const_spec(shape):
        # Whole-array block whose index never changes across the grid.
        # TODO(synk): at F=64 on v7x add pipeline_mode=pl.Buffered(1) so the
        # constant weight blocks are single- (not double-) buffered in VMEM.
        nd = len(shape)
        return pl.BlockSpec(shape, lambda n: (0,) * nd)

    out_flat = pl.pallas_call(
        kernel,
        out_shape=jax.ShapeDtypeStruct((N, F, L), jnp.float32),
        grid=(N,),
        in_specs=[
            pl.BlockSpec((None, F, L), lambda n: (n, 0, 0)),   # x (per image)
            const_spec(mask.shape),                            # halo mask
            const_spec(W123.shape), const_spec(B123.shape),    # fused conv1-3
            const_spec(W4.shape), const_spec(B4.shape),        # conv4
        ],
        out_specs=pl.BlockSpec((None, F, L), lambda n: (n, 0, 0)),
        scratch_shapes=[
            pltpu.VMEM((F, L), jnp.float32),          # cur  (running `inputs`)
            pltpu.VMEM((F, L), jnp.float32),          # skip (DRB residual)
            pltpu.VMEM((3 * F, L), jnp.float32),      # o1|o2|o3 slab
            pltpu.VMEM((52 * F, S_al), W123.dtype),   # shared im2col patch
        ],
        # TODO(synk): at realistic sizes (F=64, 64x64+ inputs) lane-chunk the
        # im2col patch (S_chunk ~1-2K) and set vmem_limit_bytes so the scratch
        # fits v7x's 64 MiB VMEM; at these test sizes the patch is <1 MB.
        compiler_params=pltpu.CompilerParams(
            dimension_semantics=("parallel",)),       # one image per TC on v7x
    )(xflat, mask, W123, B123, W4, B4)

    # Extract the valid interior and return NCHW.
    out = out_flat[:, :, G:G + S].reshape(N, F, Hp, Wp)
    return out[:, :, PAD:PAD + H, PAD:PAD + W]


rrdb_forward = jax.jit(rrdb_pallas)


# ---------------------------------------------------------------------------
# Parameters (PyTorch layout) + packing into the kernel's fused matmul layout
# ---------------------------------------------------------------------------
def init_raw_params(key, filters):
    """Synthetic weights in PyTorch layout: (Cout, Cin, K, K) and (Cout,)."""
    conv_defs = [(1, filters), (3, filters), (5, filters), (3, 4 * filters)]
    raw = []
    for _drb in range(N_DRB):
        drb = []
        for _i in range(N_INNER):
            convs = []
            for (k, cin) in conv_defs:
                key, kw_, kb_ = jax.random.split(key, 3)
                fan_in = cin * k * k
                w = jax.random.normal(kw_, (filters, cin, k, k),
                                      jnp.float32) / jnp.sqrt(fan_in)
                b = jax.random.normal(kb_, (filters,), jnp.float32) * 0.01
                convs.append((w, b))
            drb.append(convs)
        raw.append(drb)
    return raw


def pack_params(raw_params):
    """PyTorch (Cout,Cin,K,K)/(Cout,) weights -> the kernel's fused layout.

      W123: (15, 3F, 25F)  conv1/conv2/conv3 stacked on the output rows and
            zero-padded onto the shared 5x5 (25-tap) im2col grid of `inputs`.
      W4:   (15, F, 52F)   conv4; columns [0,25F) act on that same shared
            patch (its `inputs` channel group, zero-padded onto the 25 taps),
            columns [25F,52F) act on the 3x3-tap patch of [o1|o2|o3].

    Column order inside a tap group is the input-channel index, matching the
    row order build_taps() writes.  Weights are cast to bf16 (native MXU fast
    path; halves the dominant im2col traffic on v6e/v7x) when F is a multiple
    of 16 so every packed-dtype patch store stays tile-aligned; otherwise
    they stay f32 (also the right call for v5e's f32-only VPU).
    """
    F = raw_params[0][0][0][0].shape[0]
    compute_dtype = jnp.bfloat16 if F % 16 == 0 else jnp.float32

    def tap25(dh, dw):
        return (dh + 2) * 5 + (dw + 2)

    def tap9(dh, dw):
        return (dh + 1) * 3 + (dw + 1)

    W123, B123, W4, B4 = [], [], [], []
    for drb in raw_params:
        for (w1, b1), (w2, b2), (w3, b3), (w4, b4) in drb:
            wf = jnp.zeros((3 * F, 25 * F), jnp.float32)
            c0 = tap25(0, 0) * F                               # conv1 (1x1)
            wf = wf.at[0:F, c0:c0 + F].set(w1[:, :, 0, 0])
            for dh in range(-1, 2):                            # conv2 (3x3)
                for dw in range(-1, 2):
                    c0 = tap25(dh, dw) * F
                    wf = wf.at[F:2 * F, c0:c0 + F].set(w2[:, :, dh + 1, dw + 1])
            for dh in range(-2, 3):                            # conv3 (5x5)
                for dw in range(-2, 3):
                    c0 = tap25(dh, dw) * F
                    wf = wf.at[2 * F:3 * F, c0:c0 + F].set(
                        w3[:, :, dh + 2, dw + 2])
            W123.append(wf)
            B123.append(jnp.concatenate([b1, b2, b3]).reshape(3 * F, 1))

            w4f = jnp.zeros((F, 52 * F), jnp.float32)          # conv4 (3x3)
            for dh in range(-1, 2):
                for dw in range(-1, 2):
                    c0 = tap25(dh, dw) * F                     # `inputs` chans
                    w4f = w4f.at[:, c0:c0 + F].set(
                        w4[:, 3 * F:4 * F, dh + 1, dw + 1])
                    c1 = 25 * F + tap9(dh, dw) * 3 * F         # o1|o2|o3 chans
                    w4f = w4f.at[:, c1:c1 + 3 * F].set(
                        w4[:, 0:3 * F, dh + 1, dw + 1])
            W4.append(w4f)
            B4.append(b4.reshape(F, 1))

    return (jnp.stack(W123).astype(compute_dtype), jnp.stack(B123),
            jnp.stack(W4).astype(compute_dtype), jnp.stack(B4))


# ---------------------------------------------------------------------------
# Pure-JAX reference (mirrors the PyTorch module) for a correctness check
# ---------------------------------------------------------------------------
def _conv2d_ref(x, w, b, pad):
    y = jax.lax.conv_general_dilated(
        x, w, window_strides=(1, 1), padding=((pad, pad), (pad, pad)),
        dimension_numbers=("NCHW", "OIHW", "NCHW"),
        precision=jax.lax.Precision.HIGHEST)
    return y + b.reshape(1, -1, 1, 1)


def rrdb_reference(x, raw_params):
    lrelu = lambda v: jnp.where(v >= 0, v, LEAKY_SLOPE * v)
    y = x
    for drb in raw_params:
        inputs = y
        for i, ((w1, b1), (w2, b2), (w3, b3), (w4, b4)) in enumerate(drb):
            o1 = lrelu(_conv2d_ref(inputs, w1, b1, 0))
            o2 = lrelu(_conv2d_ref(inputs, w2, b2, 1))
            o3 = lrelu(_conv2d_ref(inputs, w3, b3, 2))
            cat = jnp.concatenate([o1, o2, o3, inputs], axis=1)
            out = _conv2d_ref(cat, w4, b4, 1)
            inputs = lrelu(out) if i != N_INNER - 1 else out
        y = inputs * RES_SCALE + y
    return y * RES_SCALE + x


# ---------------------------------------------------------------------------
if __name__ == "__main__":
    # Even batch keeps both v7x TensorCores busy; filters=16 exercises the
    # bf16 patch/weight path (F % 16 == 0) at a small size.
    batch, filters, spatial = 2, 16, 16
    key = jax.random.PRNGKey(0)
    k_x, k_p = jax.random.split(key)

    x = jax.random.normal(k_x, (batch, filters, spatial, spatial), jnp.float32)
    raw_params = init_raw_params(k_p, filters)
    packed = pack_params(raw_params)

    out = rrdb_forward(x, packed)
    out = jax.block_until_ready(out)
    assert out.shape == x.shape and out.dtype == x.dtype

    ref = jax.jit(rrdb_reference)(x, raw_params)
    ref = jax.block_until_ready(ref)
    # The reference runs at Precision.HIGHEST; the kernel feeds the MXU bf16
    # operands (the TPU default matmul path for f32 anyway) with f32
    # accumulation, hence the documented looser tolerance.
    max_err = float(jnp.max(jnp.abs(out - ref)))
    assert max_err < 5e-2, f"mismatch vs reference: max_err={max_err}"

    print("KERNEL_OK")
</pallas_src>

<mosaic_0001>
module attributes {stable_mosaic.version = 11 : i64} {
  func.func @_rrdb_kernel(%arg0: i32, %arg1: memref<1x16x768xf32, #tpu.memory_space<vmem>>, %arg2: memref<1x512xf32, #tpu.memory_space<vmem>>, %arg3: memref<15x48x400xbf16, #tpu.memory_space<vmem>>, %arg4: memref<15x48x1xf32, #tpu.memory_space<vmem>>, %arg5: memref<15x16x832xbf16, #tpu.memory_space<vmem>>, %arg6: memref<15x16x1xf32, #tpu.memory_space<vmem>>, %arg7: memref<1x16x768xf32, #tpu.memory_space<vmem>>, %arg8: memref<16x768xf32, #tpu.memory_space<vmem>>, %arg9: memref<16x768xf32, #tpu.memory_space<vmem>>, %arg10: memref<48x768xf32, #tpu.memory_space<vmem>>, %arg11: memref<832x512xbf16, #tpu.memory_space<vmem>>) attributes {dimension_semantics = [#tpu.dimension_semantics<parallel>], iteration_bounds = array<i64: 2>, scalar_prefetch = 0 : i64, scratch_operands = 4 : i64, tpu.core_type = #tpu.core_type<tc>, window_params = [{transform_indices = @transform_0, window_bounds = array<i64: 1, 16, 768>}, {pipeline_mode = #tpu.pipeline_mode<synchronous>, transform_indices = @transform_1, window_bounds = array<i64: 1, 512>}, {pipeline_mode = #tpu.pipeline_mode<synchronous>, transform_indices = @transform_2, window_bounds = array<i64: 15, 48, 400>}, {pipeline_mode = #tpu.pipeline_mode<synchronous>, transform_indices = @transform_3, window_bounds = array<i64: 15, 48, 1>}, {pipeline_mode = #tpu.pipeline_mode<synchronous>, transform_indices = @transform_4, window_bounds = array<i64: 15, 16, 832>}, {pipeline_mode = #tpu.pipeline_mode<synchronous>, transform_indices = @transform_5, window_bounds = array<i64: 15, 16, 1>}, {transform_indices = @transform_6, window_bounds = array<i64: 1, 16, 768>}]} {
    %c0 = arith.constant 0 : index
    %c0_0 = arith.constant 0 : index
    %0 = vector.load %arg2[%c0, %c0_0] : memref<1x512xf32, #tpu.memory_space<vmem>>, vector<1x512xf32>
    %c0_1 = arith.constant 0 : index
    %c0_2 = arith.constant 0 : index
    %c0_3 = arith.constant 0 : index
    %1 = vector.load %arg1[%c0_1, %c0_2, %c0_3] : memref<1x16x768xf32, #tpu.memory_space<vmem>>, vector<1x16x768xf32>
    %2 = vector.shape_cast %1 : vector<1x16x768xf32> to vector<16x768xf32>
    %c0_4 = arith.constant 0 : index
    %c0_5 = arith.constant 0 : index
    %3 = vector.load %arg9[%c0_4, %c0_5] : memref<16x768xf32, #tpu.memory_space<vmem>>, vector<16x768xf32>
    tpu.vector_store %arg9[%c0_4, %c0_5], %2 {strides = array<i32>} : memref<16x768xf32, #tpu.memory_space<vmem>>, vector<16x768xf32>,
    %c0_6 = arith.constant 0 : index
    %c0_7 = arith.constant 0 : index
    %4 = vector.load %arg8[%c0_6, %c0_7] : memref<16x768xf32, #tpu.memory_space<vmem>>, vector<16x768xf32>
    tpu.vector_store %arg8[%c0_6, %c0_7], %2 {strides = array<i32>} : memref<16x768xf32, #tpu.memory_space<vmem>>, vector<16x768xf32>,
    %cst = arith.constant 0.000000e+00 : f32
    %5 = vector.broadcast %cst : f32 to vector<48x128xf32>
    %c0_8 = arith.constant 0 : index
    %c0_9 = arith.constant 0 : index
    %6 = vector.load %arg10[%c0_8, %c0_9] : memref<48x768xf32, #tpu.memory_space<vmem>>, vector<48x128xf32>
    tpu.vector_store %arg10[%c0_8, %c0_9], %5 {strides = array<i32>} : memref<48x768xf32, #tpu.memory_space<vmem>>, vector<48x128xf32>,
    %cst_10 = arith.constant 0.000000e+00 : f32
    %7 = vector.broadcast %cst_10 : f32 to vector<48x128xf32>
    %c0_11 = arith.constant 0 : index
    %c640 = arith.constant 640 : index
    %8 = vector.load %arg10[%c0_11, %c640] : memref<48x768xf32, #tpu.memory_space<vmem>>, vector<48x128xf32>
    tpu.vector_store %arg10[%c0_11, %c640], %7 {strides = array<i32>} : memref<48x768xf32, #tpu.memory_space<vmem>>, vector<48x128xf32>,
    %c0_i32 = arith.constant 0 : i32
    %c15_i32 = arith.constant 15 : i32
    %9 = arith.addi %c0_i32, %c15_i32 : i32
    %c1_i32 = arith.constant 1 : i32
    scf.for %arg12 = %c0_i32 to %9 step %c1_i32  : i32 {
      %c5_i32 = arith.constant 5 : i32
      %c0_i32_22 = arith.constant 0 : i32
      %19 = arith.cmpi eq, %c5_i32, %c0_i32_22 : i32
      %c1_i32_23 = arith.constant 1 : i32
      %20 = arith.select %19, %c1_i32_23, %c5_i32 : i32
      %21 = arith.remsi %arg12, %20 : i32
      %c0_i32_24 = arith.constant 0 : i32
      %22 = arith.cmpi ne, %21, %c0_i32_24 : i32
      %c0_i32_25 = arith.constant 0 : i32
      %23 = arith.cmpi slt, %21, %c0_i32_25 : i32
      %c0_i32_26 = arith.constant 0 : i32
      %24 = arith.cmpi slt, %20, %c0_i32_26 : i32
      %25 = arith.xori %23, %24 : i1
      %26 = arith.andi %25, %22 : i1
      %27 = arith.addi %21, %20 : i32
      %28 = arith.select %26, %27, %21 : i32
      %c0_27 = arith.constant 0 : index
      %c86 = arith.constant 86 : index
      %29 = vector.load %arg8[%c0_27, %c86] : memref<16x768xf32, #tpu.memory_space<vmem>>, vector<16x516xf32>
      %30 = vector.extract_strided_slice %29 {offsets = [0, 0], sizes = [16, 512], strides = [1, 1]} : vector<16x516xf32> to vector<16x512xf32>
      %31 = arith.truncf %30 : vector<16x512xf32> to vector<16x512xbf16>
      %c0_28 = arith.constant 0 : index
      %c0_29 = arith.constant 0 : index
      %32 = vector.load %arg11[%c0_28, %c0_29] : memref<832x512xbf16, #tpu.memory_space<vmem>>, vector<16x512xbf16>
      tpu.vector_store %arg11[%c0_28, %c0_29], %31 {strides = array<i32>} : memref<832x512xbf16, #tpu.memory_space<vmem>>, vector<16x512xbf16>,
      %33 = vector.extract_strided_slice %29 {offsets = [0, 1], sizes = [16, 512], strides = [1, 1]} : vector<16x516xf32> to vector<16x512xf32>
      %34 = arith.truncf %33 : vector<16x512xf32> to vector<16x512xbf16>
      %c16 = arith.constant 16 : index
      %c0_30 = arith.constant 0 : index
      %35 = vector.load %arg11[%c16, %c0_30] : memref<832x512xbf16, #tpu.memory_space<vmem>>, vector<16x512xbf16>
      tpu.vector_store %arg11[%c16, %c0_30], %34 {strides = array<i32>} : memref<832x512xbf16, #tpu.memory_space<vmem>>, vector<16x512xbf16>,
      %36 = vector.extract_strided_slice %29 {offsets = [0, 2], sizes = [16, 512], strides = [1, 1]} : vector<16x516xf32> to vector<16x512xf32>
      %37 = arith.truncf %36 : vector<16x512xf32> to vector<16x512xbf16>
      %c32 = arith.constant 32 : index
      %c0_31 = arith.constant 0 : index
      %38 = vector.load %arg11[%c32, %c0_31] : memref<832x512xbf16, #tpu.memory_space<vmem>>, vector<16x512xbf16>
      tpu.vector_store %arg11[%c32, %c0_31], %37 {strides = array<i32>} : memref<832x512xbf16, #tpu.memory_space<vmem>>, vector<16x512xbf16>,
      %39 = vector.extract_strided_slice %29 {offsets = [0, 3], sizes = [16, 512], strides = [1, 1]} : vector<16x516xf32> to vector<16x512xf32>
      %40 = arith.truncf %39 : vector<16x512xf32> to vector<16x512xbf16>
      %c48 = arith.constant 48 : index
      %c0_32 = arith.constant 0 : index
      %41 = vector.load %arg11[%c48, %c0_32] : memref<832x512xbf16, #tpu.memory_space<vmem>>, vector<16x512xbf16>
      tpu.vector_store %arg11[%c48, %c0_32], %40 {strides = array<i32>} : memref<832x512xbf16, #tpu.memory_space<vmem>>, vector<16x512xbf16>,
      %42 = vector.extract_strided_slice %29 {offsets = [0, 4], sizes = [16, 512], strides = [1, 1]} : vector<16x516xf32> to vector<16x512xf32>
      %43 = arith.truncf %42 : vector<16x512xf32> to vector<16x512xbf16>
      %c64 = arith.constant 64 : index
      %c0_33 = arith.constant 0 : index
      %44 = vector.load %arg11[%c64, %c0_33] : memref<832x512xbf16, #tpu.memory_space<vmem>>, vector<16x512xbf16>
      tpu.vector_store %arg11[%c64, %c0_33], %43 {strides = array<i32>} : memref<832x512xbf16, #tpu.memory_space<vmem>>, vector<16x512xbf16>,
      %c0_34 = arith.constant 0 : index
      %c106 = arith.constant 106 : index
      %45 = vector.load %arg8[%c0_34, %c106] : memref<16x768xf32, #tpu.memory_space<vmem>>, vector<16x516xf32>
      %46 = vector.extract_strided_slice %45 {offsets = [0, 0], sizes = [16, 512], strides = [1, 1]} : vector<16x516xf32> to vector<16x512xf32>
      %47 = arith.truncf %46 : vector<16x512xf32> to vector<16x512xbf16>
      %c80 = arith.constant 80 : index
      %c0_35 = arith.constant 0 : index
      %48 = vector.load %arg11[%c80, %c0_35] : memref<832x512xbf16, #tpu.memory_space<vmem>>, vector<16x512xbf16>
      tpu.vector_store %arg11[%c80, %c0_35], %47 {strides = array<i32>} : memref<832x512xbf16, #tpu.memory_space<vmem>>, vector<16x512xbf16>,
      %49 = vector.extract_strided_slice %45 {offsets = [0, 1], sizes = [16, 512], strides = [1, 1]} : vector<16x516xf32> to vector<16x512xf32>
      %50 = arith.truncf %49 : vector<16x512xf32> to vector<16x512xbf16>
      %c96 = arith.constant 96 : index
      %c0_36 = arith.constant 0 : index
      %51 = vector.load %arg11[%c96, %c0_36] : memref<832x512xbf16, #tpu.memory_space<vmem>>, vector<16x512xbf16>
      tpu.vector_store %arg11[%c96, %c0_36], %50 {strides = array<i32>} : memref<832x512xbf16, #tpu.memory_space<vmem>>, vector<16x512xbf16>,
      %52 = vector.extract_strided_slice %45 {offsets = [0, 2], sizes = [16, 512], strides = [1, 1]} : vector<16x516xf32> to vector<16x512xf32>
      %53 = arith.truncf %52 : vector<16x512xf32> to vector<16x512xbf16>
      %c112 = arith.constant 112 : index
      %c0_37 = arith.constant 0 : index
      %54 = vector.load %arg11[%c112, %c0_37] : memref<832x512xbf16, #tpu.memory_space<vmem>>, vector<16x512xbf16>
      tpu.vector_store %arg11[%c112, %c0_37], %53 {strides = array<i32>} : memref<832x512xbf16, #tpu.memory_space<vmem>>, vector<16x512xbf16>,
      %55 = vector.extract_strided_slice %45 {offsets = [0, 3], sizes = [16, 512], strides = [1, 1]} : vector<16x516xf32> to vector<16x512xf32>
      %56 = arith.truncf %55 : vector<16x512xf32> to vector<16x512xbf16>
      %c128 = arith.constant 128 : index
      %c0_38 = arith.constant 0 : index
      %57 = vector.load %arg11[%c128, %c0_38] : memref<832x512xbf16, #tpu.memory_space<vmem>>, vector<16x512xbf16>
      tpu.vector_store %arg11[%c128, %c0_38], %56 {strides = array<i32>} : memref<832x512xbf16, #tpu.memory_space<vmem>>, vector<16x512xbf16>,
      %58 = vector.extract_strided_slice %45 {offsets = [0, 4], sizes = [16, 512], strides = [1, 1]} : vector<16x516xf32> to vector<16x512xf32>
      %59 = arith.truncf %58 : vector<16x512xf32> to vector<16x512xbf16>
      %c144 = arith.constant 144 : index
      %c0_39 = arith.constant 0 : index
      %60 = vector.load %arg11[%c144, %c0_39] : memref<832x512xbf16, #tpu.memory_space<vmem>>, vector<16x512xbf16>
      tpu.vector_store %arg11[%c144, %c0_39], %59 {strides = array<i32>} : memref<832x512xbf16, #tpu.memory_space<vmem>>, vector<16x512xbf16>,
      %c0_40 = arith.constant 0 : index
      %c126 = arith.constant 126 : index
      %61 = vector.load %arg8[%c0_40, %c126] : memref<16x768xf32, #tpu.memory_space<vmem>>, vector<16x516xf32>
      %62 = vector.extract_strided_slice %61 {offsets = [0, 0], sizes = [16, 512], strides = [1, 1]} : vector<16x516xf32> to vector<16x512xf32>
      %63 = arith.truncf %62 : vector<16x512xf32> to vector<16x512xbf16>
      %c160 = arith.constant 160 : index
      %c0_41 = arith.constant 0 : index
      %64 = vector.load %arg11[%c160, %c0_41] : memref<832x512xbf16, #tpu.memory_space<vmem>>, vector<16x512xbf16>
      tpu.vector_store %arg11[%c160, %c0_41], %63 {strides = array<i32>} : memref<832x512xbf16, #tpu.memory_space<vmem>>, vector<16x512xbf16>,
      %65 = vector.extract_strided_slice %61 {offsets = [0, 1], sizes = [16, 512], strides = [1, 1]} : vector<16x516xf32> to vector<16x512xf32>
      %66 = arith.truncf %65 : vector<16x512xf32> to vector<16x512xbf16>
      %c176 = arith.constant 176 : index
      %c0_42 = arith.constant 0 : index
      %67 = vector.load %arg11[%c176, %c0_42] : memref<832x512xbf16, #tpu.memory_space<vmem>>, vector<16x512xbf16>
      tpu.vector_store %arg11[%c176, %c0_42], %66 {strides = array<i32>} : memref<832x512xbf16, #tpu.memory_space<vmem>>, vector<16x512xbf16>,
      %68 = vector.extract_strided_slice %61 {offsets = [0, 2], sizes = [16, 512], strides = [1, 1]} : vector<16x516xf32> to vector<16x512xf32>
      %69 = arith.truncf %68 : vector<16x512xf32> to vector<16x512xbf16>
      %c192 = arith.constant 192 : index
      %c0_43 = arith.constant 0 : index
      %70 = vector.load %arg11[%c192, %c0_43] : memref<832x512xbf16, #tpu.memory_space<vmem>>, vector<16x512xbf16>
      tpu.vector_store %arg11[%c192, %c0_43], %69 {strides = array<i32>} : memref<832x512xbf16, #tpu.memory_space<vmem>>, vector<16x512xbf16>,
      %71 = vector.extract_strided_slice %61 {offsets = [0, 3], sizes = [16, 512], strides = [1, 1]} : vector<16x516xf32> to vector<16x512xf32>
      %72 = arith.truncf %71 : vector<16x512xf32> to vector<16x512xbf16>
      %c208 = arith.constant 208 : index
      %c0_44 = arith.constant 0 : index
      %73 = vector.load %arg11[%c208, %c0_44] : memref<832x512xbf16, #tpu.memory_space<vmem>>, vector<16x512xbf16>
      tpu.vector_store %arg11[%c208, %c0_44], %72 {strides = array<i32>} : memref<832x512xbf16, #tpu.memory_space<vmem>>, vector<16x512xbf16>,
      %74 = vector.extract_strided_slice %61 {offsets = [0, 4], sizes = [16, 512], strides = [1, 1]} : vector<16x516xf32> to vector<16x512xf32>
      %75 = arith.truncf %74 : vector<16x512xf32> to vector<16x512xbf16>
      %c224 = arith.constant 224 : index
      %c0_45 = arith.constant 0 : index
      %76 = vector.load %arg11[%c224, %c0_45] : memref<832x512xbf16, #tpu.memory_space<vmem>>, vector<16x512xbf16>
      tpu.vector_store %arg11[%c224, %c0_45], %75 {strides = array<i32>} : memref<832x512xbf16, #tpu.memory_space<vmem>>, vector<16x512xbf16>,
      %c0_46 = arith.constant 0 : index
      %c146 = arith.constant 146 : index
      %77 = vector.load %arg8[%c0_46, %c146] : memref<16x768xf32, #tpu.memory_space<vmem>>, vector<16x516xf32>
      %78 = vector.extract_strided_slice %77 {offsets = [0, 0], sizes = [16, 512], strides = [1, 1]} : vector<16x516xf32> to vector<16x512xf32>
      %79 = arith.truncf %78 : vector<16x512xf32> to vector<16x512xbf16>
      %c240 = arith.constant 240 : index
      %c0_47 = arith.constant 0 : index
      %80 = vector.load %arg11[%c240, %c0_47] : memref<832x512xbf16, #tpu.memory_space<vmem>>, vector<16x512xbf16>
      tpu.vector_store %arg11[%c240, %c0_47], %79 {strides = array<i32>} : memref<832x512xbf16, #tpu.memory_space<vmem>>, vector<16x512xbf16>,
      %81 = vector.extract_strided_slice %77 {offsets = [0, 1], sizes = [16, 512], strides = [1, 1]} : vector<16x516xf32> to vector<16x512xf32>
      %82 = arith.truncf %81 : vector<16x512xf32> to vector<16x512xbf16>
      %c256 = arith.constant 256 : index
      %c0_48 = arith.constant 0 : index
      %83 = vector.load %arg11[%c256, %c0_48] : memref<832x512xbf16, #tpu.memory_space<vmem>>, vector<16x512xbf16>
      tpu.vector_store %arg11[%c256, %c0_48], %82 {strides = array<i32>} : memref<832x512xbf16, #tpu.memory_space<vmem>>, vector<16x512xbf16>,
      %84 = vector.extract_strided_slice %77 {offsets = [0, 2], sizes = [16, 512], strides = [1, 1]} : vector<16x516xf32> to vector<16x512xf32>
      %85 = arith.truncf %84 : vector<16x512xf32> to vector<16x512xbf16>
      %c272 = arith.constant 272 : index
      %c0_49 = arith.constant 0 : index
      %86 = vector.load %arg11[%c272, %c0_49] : memref<832x512xbf16, #tpu.memory_space<vmem>>, vector<16x512xbf16>
      tpu.vector_store %arg11[%c272, %c0_49], %85 {strides = array<i32>} : memref<832x512xbf16, #tpu.memory_space<vmem>>, vector<16x512xbf16>,
      %87 = vector.extract_strided_slice %77 {offsets = [0, 3], sizes = [16, 512], strides = [1, 1]} : vector<16x516xf32> to vector<16x512xf32>
      %88 = arith.truncf %87 : vector<16x512xf32> to vector<16x512xbf16>
      %c288 = arith.constant 288 : index
      %c0_50 = arith.constant 0 : index
      %89 = vector.load %arg11[%c288, %c0_50] : memref<832x512xbf16, #tpu.memory_space<vmem>>, vector<16x512xbf16>
      tpu.vector_store %arg11[%c288, %c0_50], %88 {strides = array<i32>} : memref<832x512xbf16, #tpu.memory_space<vmem>>, vector<16x512xbf16>,
      %90 = vector.extract_strided_slice %77 {offsets = [0, 4], sizes = [16, 512], strides = [1, 1]} : vector<16x516xf32> to vector<16x512xf32>
      %91 = arith.truncf %90 : vector<16x512xf32> to vector<16x512xbf16>
      %c304 = arith.constant 304 : index
      %c0_51 = arith.constant 0 : index
      %92 = vector.load %arg11[%c304, %c0_51] : memref<832x512xbf16, #tpu.memory_space<vmem>>, vector<16x512xbf16>
      tpu.vector_store %arg11[%c304, %c0_51], %91 {strides = array<i32>} : memref<832x512xbf16, #tpu.memory_space<vmem>>, vector<16x512xbf16>,
      %c0_52 = arith.constant 0 : index
      %c166 = arith.constant 166 : index
      %93 = vector.load %arg8[%c0_52, %c166] : memref<16x768xf32, #tpu.memory_space<vmem>>, vector<16x516xf32>
      %94 = vector.extract_strided_slice %93 {offsets = [0, 0], sizes = [16, 512], strides = [1, 1]} : vector<16x516xf32> to vector<16x512xf32>
      %95 = arith.truncf %94 : vector<16x512xf32> to vector<16x512xbf16>
      %c320 = arith.constant 320 : index
      %c0_53 = arith.constant 0 : index
      %96 = vector.load %arg11[%c320, %c0_53] : memref<832x512xbf16, #tpu.memory_space<vmem>>, vector<16x512xbf16>
      tpu.vector_store %arg11[%c320, %c0_53], %95 {strides = array<i32>} : memref<832x512xbf16, #tpu.memory_space<vmem>>, vector<16x512xbf16>,
      %97 = vector.extract_strided_slice %93 {offsets = [0, 1], sizes = [16, 512], strides = [1, 1]} : vector<16x516xf32> to vector<16x512xf32>
      %98 = arith.truncf %97 : vector<16x512xf32> to vector<16x512xbf16>
      %c336 = arith.constant 336 : index
      %c0_54 = arith.constant 0 : index
      %99 = vector.load %arg11[%c336, %c0_54] : memref<832x512xbf16, #tpu.memory_space<vmem>>, vector<16x512xbf16>
      tpu.vector_store %arg11[%c336, %c0_54], %98 {strides = array<i32>} : memref<832x512xbf16, #tpu.memory_space<vmem>>, vector<16x512xbf16>,
      %100 = vector.extract_strided_slice %93 {offsets = [0, 2], sizes = [16, 512], strides = [1, 1]} : vector<16x516xf32> to vector<16x512xf32>
      %101 = arith.truncf %100 : vector<16x512xf32> to vector<16x512xbf16>
      %c352 = arith.constant 352 : index
      %c0_55 = arith.constant 0 : index
      %102 = vector.load %arg11[%c352, %c0_55] : memref<832x512xbf16, #tpu.memory_space<vmem>>, vector<16x512xbf16>
      tpu.vector_store %arg11[%c352, %c0_55], %101 {strides = array<i32>} : memref<832x512xbf16, #tpu.memory_space<vmem>>, vector<16x512xbf16>,
      %103 = vector.extract_strided_slice %93 {offsets = [0, 3], sizes = [16, 512], strides = [1, 1]} : vector<16x516xf32> to vector<16x512xf32>
      %104 = arith.truncf %103 : vector<16x512xf32> to vector<16x512xbf16>
      %c368 = arith.constant 368 : index
      %c0_56 = arith.constant 0 : index
      %105 = vector.load %arg11[%c368, %c0_56] : memref<832x512xbf16, #tpu.memory_space<vmem>>, vector<16x512xbf16>
      tpu.vector_store %arg11[%c368, %c0_56], %104 {strides = array<i32>} : memref<832x512xbf16, #tpu.memory_space<vmem>>, vector<16x512xbf16>,
      %106 = vector.extract_strided_slice %93 {offsets = [0, 4], sizes = [16, 512], strides = [1, 1]} : vector<16x516xf32> to vector<16x512xf32>
      %107 = arith.truncf %106 : vector<16x512xf32> to vector<16x512xbf16>
      %c384 = arith.constant 384 : index
      %c0_57 = arith.constant 0 : index
      %108 = vector.load %arg11[%c384, %c0_57] : memref<832x512xbf16, #tpu.memory_space<vmem>>, vector<16x512xbf16>
      tpu.vector_store %arg11[%c384, %c0_57], %107 {strides = array<i32>} : memref<832x512xbf16, #tpu.memory_space<vmem>>, vector<16x512xbf16>,
      %109 = arith.index_cast %arg12 : i32 to index
      %c0_58 = arith.constant 0 : index
      %c0_59 = arith.constant 0 : index
      %110 = vector.load %arg3[%109, %c0_58, %c0_59] : memref<15x48x400xbf16, #tpu.memory_space<vmem>>, vector<1x48x400xbf16>
      %111 = vector.shape_cast %110 : vector<1x48x400xbf16> to vector<48x400xbf16>
      %c0_60 = arith.constant 0 : index
      %c0_61 = arith.constant 0 : index
      %112 = vector.load %arg11[%c0_60, %c0_61] : memref<832x512xbf16, #tpu.memory_space<vmem>>, vector<400x512xbf16>
      %cst_62 = arith.constant dense<0.000000e+00> : vector<48x512xf32>
      %113 = tpu.matmul %111, %112, %cst_62 {dimension_numbers = #tpu.dot_dimension_numbers<[1], [0], [0], [1], [0, 0, 1, 1], [], []>} : vector<48x400xbf16>, vector<400x512xbf16>, vector<48x512xf32> -> vector<48x512xf32>
      %114 = arith.index_cast %arg12 : i32 to index
      %c0_63 = arith.constant 0 : index
      %c0_64 = arith.constant 0 : index
      %115 = vector.load %arg4[%114, %c0_63, %c0_64] : memref<15x48x1xf32, #tpu.memory_space<vmem>>, vector<1x48x1xf32>
      %116 = vector.shape_cast %115 : vector<1x48x1xf32> to vector<48x1xf32>
      %117 = vector.broadcast %116 : vector<48x1xf32> to vector<48x512xf32>
      %118 = arith.addf %113, %117 : vector<48x512xf32>
      %cst_65 = arith.constant 0.000000e+00 : f32
      %119 = vector.broadcast %cst_65 : f32 to vector<48x512xf32>
      %120 = arith.cmpf oge, %118, %119 : vector<48x512xf32>
      %cst_66 = arith.constant 0.00999999977 : f32
      %121 = vector.broadcast %cst_66 : f32 to vector<48x512xf32>
      %122 = arith.mulf %118, %121 : vector<48x512xf32>
      %123 = arith.select %120, %118, %122 : vector<48x512xi1>, vector<48x512xf32>
      %124 = vector.broadcast %0 : vector<1x512xf32> to vector<48x512xf32>
      %125 = arith.mulf %123, %124 : vector<48x512xf32>
      %c0_67 = arith.constant 0 : index
      %c128_68 = arith.constant 128 : index
      %126 = vector.load %arg10[%c0_67, %c128_68] : memref<48x768xf32, #tpu.memory_space<vmem>>, vector<48x512xf32>
      tpu.vector_store %arg10[%c0_67, %c128_68], %125 {strides = array<i32>} : memref<48x768xf32, #tpu.memory_space<vmem>>, vector<48x512xf32>,
      %c0_69 = arith.constant 0 : index
      %c107 = arith.constant 107 : index
      %127 = vector.load %arg10[%c0_69, %c107] : memref<48x768xf32, #tpu.memory_space<vmem>>, vector<48x514xf32>
      %128 = vector.extract_strided_slice %127 {offsets = [0, 0], sizes = [48, 512], strides = [1, 1]} : vector<48x514xf32> to vector<48x512xf32>
      %129 = arith.truncf %128 : vector<48x512xf32> to vector<48x512xbf16>
      %c400 = arith.constant 400 : index
      %c0_70 = arith.constant 0 : index
      %130 = vector.load %arg11[%c400, %c0_70] : memref<832x512xbf16, #tpu.memory_space<vmem>>, vector<48x512xbf16>
      tpu.vector_store %arg11[%c400, %c0_70], %129 {strides = array<i32>} : memref<832x512xbf16, #tpu.memory_space<vmem>>, vector<48x512xbf16>,
      %131 = vector.extract_strided_slice %127 {offsets = [0, 1], sizes = [48, 512], strides = [1, 1]} : vector<48x514xf32> to vector<48x512xf32>
      %132 = arith.truncf %131 : vector<48x512xf32> to vector<48x512xbf16>
      %c448 = arith.constant 448 : index
      %c0_71 = arith.constant 0 : index
      %133 = vector.load %arg11[%c448, %c0_71] : memref<832x512xbf16, #tpu.memory_space<vmem>>, vector<48x512xbf16>
      tpu.vector_store %arg11[%c448, %c0_71], %132 {strides = array<i32>} : memref<832x512xbf16, #tpu.memory_space<vmem>>, vector<48x512xbf16>,
      %134 = vector.extract_strided_slice %127 {offsets = [0, 2], sizes = [48, 512], strides = [1, 1]} : vector<48x514xf32> to vector<48x512xf32>
      %135 = arith.truncf %134 : vector<48x512xf32> to vector<48x512xbf16>
      %c496 = arith.constant 496 : index
      %c0_72 = arith.constant 0 : index
      %136 = vector.load %arg11[%c496, %c0_72] : memref<832x512xbf16, #tpu.memory_space<vmem>>, vector<48x512xbf16>
      tpu.vector_store %arg11[%c496, %c0_72], %135 {strides = array<i32>} : memref<832x512xbf16, #tpu.memory_space<vmem>>, vector<48x512xbf16>,
      %c0_73 = arith.constant 0 : index
      %c127 = arith.constant 127 : index
      %137 = vector.load %arg10[%c0_73, %c127] : memref<48x768xf32, #tpu.memory_space<vmem>>, vector<48x514xf32>
      %138 = vector.extract_strided_slice %137 {offsets = [0, 0], sizes = [48, 512], strides = [1, 1]} : vector<48x514xf32> to vector<48x512xf32>
      %139 = arith.truncf %138 : vector<48x512xf32> to vector<48x512xbf16>
      %c544 = arith.constant 544 : index
      %c0_74 = arith.constant 0 : index
      %140 = vector.load %arg11[%c544, %c0_74] : memref<832x512xbf16, #tpu.memory_space<vmem>>, vector<48x512xbf16>
      tpu.vector_store %arg11[%c544, %c0_74], %139 {strides = array<i32>} : memref<832x512xbf16, #tpu.memory_space<vmem>>, vector<48x512xbf16>,
      %141 = vector.extract_strided_slice %137 {offsets = [0, 1], sizes = [48, 512], strides = [1, 1]} : vector<48x514xf32> to vector<48x512xf32>
      %142 = arith.truncf %141 : vector<48x512xf32> to vector<48x512xbf16>
      %c592 = arith.constant 592 : index
      %c0_75 = arith.constant 0 : index
      %143 = vector.load %arg11[%c592, %c0_75] : memref<832x512xbf16, #tpu.memory_space<vmem>>, vector<48x512xbf16>
      tpu.vector_store %arg11[%c592, %c0_75], %142 {strides = array<i32>} : memref<832x512xbf16, #tpu.memory_space<vmem>>, vector<48x512xbf16>,
      %144 = vector.extract_strided_slice %137 {offsets = [0, 2], sizes = [48, 512], strides = [1, 1]} : vector<48x514xf32> to vector<48x512xf32>
      %145 = arith.truncf %144 : vector<48x512xf32> to vector<48x512xbf16>
      %c640_76 = arith.constant 640 : index
      %c0_77 = arith.constant 0 : index
      %146 = vector.load %arg11[%c640_76, %c0_77] : memref<832x512xbf16, #tpu.memory_space<vmem>>, vector<48x512xbf16>
      tpu.vector_store %arg11[%c640_76, %c0_77], %145 {strides = array<i32>} : memref<832x512xbf16, #tpu.memory_space<vmem>>, vector<48x512xbf16>,
      %c0_78 = arith.constant 0 : index
      %c147 = arith.constant 147 : index
      %147 = vector.load %arg10[%c0_78, %c147] : memref<48x768xf32, #tpu.memory_space<vmem>>, vector<48x514xf32>
      %148 = vector.extract_strided_slice %147 {offsets = [0, 0], sizes = [48, 512], strides = [1, 1]} : vector<48x514xf32> to vector<48x512xf32>
      %149 = arith.truncf %148 : vector<48x512xf32> to vector<48x512xbf16>
      %c688 = arith.constant 688 : index
      %c0_79 = arith.constant 0 : index
      %150 = vector.load %arg11[%c688, %c0_79] : memref<832x512xbf16, #tpu.memory_space<vmem>>, vector<48x512xbf16>
      tpu.vector_store %arg11[%c688, %c0_79], %149 {strides = array<i32>} : memref<832x512xbf16, #tpu.memory_space<vmem>>, vector<48x512xbf16>,
      %151 = vector.extract_strided_slice %147 {offsets = [0, 1], sizes = [48, 512], strides = [1, 1]} : vector<48x514xf32> to vector<48x512xf32>
      %152 = arith.truncf %151 : vector<48x512xf32> to vector<48x512xbf16>
      %c736 = arith.constant 736 : index
      %c0_80 = arith.constant 0 : index
      %153 = vector.load %arg11[%c736, %c0_80] : memref<832x512xbf16, #tpu.memory_space<vmem>>, vector<48x512xbf16>
      tpu.vector_store %arg11[%c736, %c0_80], %152 {strides = array<i32>} : memref<832x512xbf16, #tpu.memory_space<vmem>>, vector<48x512xbf16>,
      %154 = vector.extract_strided_slice %147 {offsets = [0, 2], sizes = [48, 512], strides = [1, 1]} : vector<48x514xf32> to vector<48x512xf32>
      %155 = arith.truncf %154 : vector<48x512xf32> to vector<48x512xbf16>
      %c784 = arith.constant 784 : index
      %c0_81 = arith.constant 0 : index
      %156 = vector.load %arg11[%c784, %c0_81] : memref<832x512xbf16, #tpu.memory_space<vmem>>, vector<48x512xbf16>
      tpu.vector_store %arg11[%c784, %c0_81], %155 {strides = array<i32>} : memref<832x512xbf16, #tpu.memory_space<vmem>>, vector<48x512xbf16>,
      %157 = arith.index_cast %arg12 : i32 to index
      %c0_82 = arith.constant 0 : index
      %c0_83 = arith.constant 0 : index
      %158 = vector.load %arg5[%157, %c0_82, %c0_83] : memref<15x16x832xbf16, #tpu.memory_space<vmem>>, vector<1x16x832xbf16>
      %159 = vector.shape_cast %158 : vector<1x16x832xbf16> to vector<16x832xbf16>
      %c0_84 = arith.constant 0 : index
      %c0_85 = arith.constant 0 : index
      %160 = vector.load %arg11[%c0_84, %c0_85] : memref<832x512xbf16, #tpu.memory_space<vmem>>, vector<832x512xbf16>
      %cst_86 = arith.constant dense<0.000000e+00> : vector<16x512xf32>
      %161 = tpu.matmul %159, %160, %cst_86 {dimension_numbers = #tpu.dot_dimension_numbers<[1], [0], [0], [1], [0, 0, 1, 1], [], []>} : vector<16x832xbf16>, vector<832x512xbf16>, vector<16x512xf32> -> vector<16x512xf32>
      %162 = arith.index_cast %arg12 : i32 to index
      %c0_87 = arith.constant 0 : index
      %c0_88 = arith.constant 0 : index
      %163 = vector.load %arg6[%162, %c0_87, %c0_88] : memref<15x16x1xf32, #tpu.memory_space<vmem>>, vector<1x16x1xf32>
      %164 = vector.shape_cast %163 : vector<1x16x1xf32> to vector<16x1xf32>
      %165 = vector.broadcast %164 : vector<16x1xf32> to vector<16x512xf32>
      %166 = arith.addf %161, %165 : vector<16x512xf32>
      %c4_i32 = arith.constant 4 : i32
      %167 = arith.cmpi eq, %28, %c4_i32 : i32
      %cst_89 = arith.constant 1.000000e+00 : f32
      %cst_90 = arith.constant 0.00999999977 : f32
      %168 = arith.select %167, %cst_89, %cst_90 : f32
      %cst_91 = arith.constant 0.000000e+00 : f32
      %169 = vector.broadcast %cst_91 : f32 to vector<16x512xf32>
      %170 = arith.cmpf oge, %166, %169 : vector<16x512xf32>
      %171 = vector.broadcast %168 : f32 to vector<16x512xf32>
      %172 = arith.mulf %166, %171 : vector<16x512xf32>
      %173 = arith.select %170, %166, %172 : vector<16x512xi1>, vector<16x512xf32>
      %174 = vector.broadcast %0 : vector<1x512xf32> to vector<16x512xf32>
      %175 = arith.mulf %173, %174 : vector<16x512xf32>
      %c0_92 = arith.constant 0 : index
      %c128_93 = arith.constant 128 : index
      %176 = vector.load %arg8[%c0_92, %c128_93] : memref<16x768xf32, #tpu.memory_space<vmem>>, vector<16x512xf32>
      tpu.vector_store %arg8[%c0_92, %c128_93], %175 {strides = array<i32>} : memref<16x768xf32, #tpu.memory_space<vmem>>, vector<16x512xf32>,
      %c4_i32_94 = arith.constant 4 : i32
      %177 = arith.cmpi eq, %28, %c4_i32_94 : i32
      %178 = arith.extui %177 : i1 to i32
      %c0_i32_95 = arith.constant 0 : i32
      %179 = arith.cmpi ne, %178, %c0_i32_95 : i32
      scf.if %179 {
        %c0_96 = arith.constant 0 : index
        %c0_97 = arith.constant 0 : index
        %180 = vector.load %arg8[%c0_96, %c0_97] : memref<16x768xf32, #tpu.memory_space<vmem>>, vector<16x768xf32>
        %cst_98 = arith.constant 2.000000e-01 : f32
        %181 = vector.broadcast %cst_98 : f32 to vector<16x768xf32>
        %182 = arith.mulf %180, %181 : vector<16x768xf32>
        %c0_99 = arith.constant 0 : index
        %c0_100 = arith.constant 0 : index
        %183 = vector.load %arg9[%c0_99, %c0_100] : memref<16x768xf32, #tpu.memory_space<vmem>>, vector<16x768xf32>
        %184 = arith.addf %182, %183 : vector<16x768xf32>
        %c0_101 = arith.constant 0 : index
        %c0_102 = arith.constant 0 : index
        %185 = vector.load %arg9[%c0_101, %c0_102] : memref<16x768xf32, #tpu.memory_space<vmem>>, vector<16x768xf32>
        tpu.vector_store %arg9[%c0_101, %c0_102], %184 {strides = array<i32>} : memref<16x768xf32, #tpu.memory_space<vmem>>, vector<16x768xf32>,
        %c0_103 = arith.constant 0 : index
        %c0_104 = arith.constant 0 : index
        %186 = vector.load %arg9[%c0_103, %c0_104] : memref<16x768xf32, #tpu.memory_space<vmem>>, vector<16x768xf32>
        %c0_105 = arith.constant 0 : index
        %c0_106 = arith.constant 0 : index
        %187 = vector.load %arg8[%c0_105, %c0_106] : memref<16x768xf32, #tpu.memory_space<vmem>>, vector<16x768xf32>
        tpu.vector_store %arg8[%c0_105, %c0_106], %186 {strides = array<i32>} : memref<16x768xf32, #tpu.memory_space<vmem>>, vector<16x768xf32>,
      } else {
      }
    }
    %c15_i32_12 = arith.constant 15 : i32
    %c0_13 = arith.constant 0 : index
    %c0_14 = arith.constant 0 : index
    %10 = vector.load %arg9[%c0_13, %c0_14] : memref<16x768xf32, #tpu.memory_space<vmem>>, vector<16x768xf32>
    %cst_15 = arith.constant 2.000000e-01 : f32
    %11 = vector.broadcast %cst_15 : f32 to vector<16x768xf32>
    %12 = arith.mulf %10, %11 : vector<16x768xf32>
    %c0_16 = arith.constant 0 : index
    %c0_17 = arith.constant 0 : index
    %c0_18 = arith.constant 0 : index
    %13 = vector.load %arg1[%c0_16, %c0_17, %c0_18] : memref<1x16x768xf32, #tpu.memory_space<vmem>>, vector<1x16x768xf32>
    %14 = vector.shape_cast %13 : vector<1x16x768xf32> to vector<16x768xf32>
    %15 = arith.addf %12, %14 : vector<16x768xf32>
    %c0_19 = arith.constant 0 : index
    %c0_20 = arith.constant 0 : index
    %c0_21 = arith.constant 0 : index
    %16 = vector.load %arg7[%c0_19, %c0_20, %c0_21] : memref<1x16x768xf32, #tpu.memory_space<vmem>>, vector<1x16x768xf32>
    %17 = vector.shape_cast %16 : vector<1x16x768xf32> to vector<16x768xf32>
    %18 = vector.shape_cast %15 : vector<16x768xf32> to vector<1x16x768xf32>
    tpu.vector_store %arg7[%c0_19, %c0_20, %c0_21], %18 {strides = array<i32>} : memref<1x16x768xf32, #tpu.memory_space<vmem>>, vector<1x16x768xf32>,
    return
  }
  func.func @transform_0(%arg0: i32) -> (i32, i32, i32) {
    %c0_i32 = arith.constant 0 : i32
    %c0_i32_0 = arith.constant 0 : i32
    %c0_i32_1 = arith.constant 0 : i32
    return %arg0, %c0_i32, %c0_i32_0 : i32, i32, i32
  }
  func.func @transform_1(%arg0: i32) -> (i32, i32) {
    %c0_i32 = arith.constant 0 : i32
    %c0_i32_0 = arith.constant 0 : i32
    %c0_i32_1 = arith.constant 0 : i32
    return %c0_i32, %c0_i32_0 : i32, i32
  }
  func.func @transform_2(%arg0: i32) -> (i32, i32, i32) {
    %c0_i32 = arith.constant 0 : i32
    %c0_i32_0 = arith.constant 0 : i32
    %c0_i32_1 = arith.constant 0 : i32
    %c0_i32_2 = arith.constant 0 : i32
    return %c0_i32, %c0_i32_0, %c0_i32_1 : i32, i32, i32
  }
  func.func @transform_3(%arg0: i32) -> (i32, i32, i32) {
    %c0_i32 = arith.constant 0 : i32
    %c0_i32_0 = arith.constant 0 : i32
    %c0_i32_1 = arith.constant 0 : i32
    %c0_i32_2 = arith.constant 0 : i32
    return %c0_i32, %c0_i32_0, %c0_i32_1 : i32, i32, i32
  }
  func.func @transform_4(%arg0: i32) -> (i32, i32, i32) {
    %c0_i32 = arith.constant 0 : i32
    %c0_i32_0 = arith.constant 0 : i32
    %c0_i32_1 = arith.constant 0 : i32
    %c0_i32_2 = arith.constant 0 : i32
    return %c0_i32, %c0_i32_0, %c0_i32_1 : i32, i32, i32
  }
  func.func @transform_5(%arg0: i32) -> (i32, i32, i32) {
    %c0_i32 = arith.constant 0 : i32
    %c0_i32_0 = arith.constant 0 : i32
    %c0_i32_1 = arith.constant 0 : i32
    %c0_i32_2 = arith.constant 0 : i32
    return %c0_i32, %c0_i32_0, %c0_i32_1 : i32, i32, i32
  }
  func.func @transform_6(%arg0: i32) -> (i32, i32, i32) {
    %c0_i32 = arith.constant 0 : i32
    %c0_i32_0 = arith.constant 0 : i32
    %c0_i32_1 = arith.constant 0 : i32
    return %arg0, %c0_i32, %c0_i32_0 : i32, i32, i32
  }
}

</mosaic_0001>

<bundles_post_ra>
// kernel: rrdb_pallas.1
= control target key start
LH: loop header
LB: loop body
LE: loop exit
PB: predicated region body
PF: predicated region fallthrough
CT: control target
= control target key end

     0   :  { %s7364_s21 = smov 0   ;;  %s9692_s0 = inlined_call_operand.vmem [shape: f32[2,16,768], index: 0, kind: input, shape index: {}]   ;;  %s9693_s1 = inlined_call_operand.vmem [shape: f32[1,512], index: 1, kind: input, shape index: {}]   ;;  %s9694_s2 = inlined_call_operand.vmem [shape: bf16[15,48,400], index: 2, kind: input, shape index: {}]   ;;  %s9695_s3 = inlined_call_operand.vmem [shape: f32[15,48,1], index: 3, kind: input, shape index: {}]   ;;  %s9696_s4 = inlined_call_operand.vmem [shape: bf16[15,16,832], index: 4, kind: input, shape index: {}]   ;;  %s9697_s5 = inlined_call_operand.vmem [shape: f32[15,16,1], index: 5, kind: input, shape index: {}]   ;;  %s9698_s6 = inlined_call_operand.vmem [shape: f32[2,16,768], index: 6, kind: output, shape index: {}]  }
   0x1 LB: > { %s5553_s22 = sadd.s32 4294967295, %s7297_s21   ;;  %p5557_p0 = scmp.ge.s32.totalorder %s7297_s21, 1  ;;  %s7297_s21 = sphi %s7364_s21, %s16_s21  }
   0x2   : > { %p212_p1 = scmp.lt.s32.totalorder %s7297_s21, 3 }
   0x4   : > { %p213_p2 = pnand %p5557_p0, %p212_p1 }
   0x6   : > { %216 = sbr.rel (%p213_p2) target bundleno = 1538 (0x602), region = 44 }
   0xb   : > { %p242_p3 = scmp.lt.s32.totalorder %s5553_s22, 1  ;;  %v7375_v0 = vld [vmem:[%s9693_s1] sm:$0xf]  ;;  %v7303_v1 = vmov 0.0   ;;  %s7399_s8 = smov 0  }
   0xc   : > { %9737 = vst [vmem:[#allocation6_spill] sm:$0xff] %v7375_v0 }
   0xd   : > { %290 = vst [vmem:[#allocation4 + $0x78] sm:$0xff] %v7303_v1  ;;  %s9799_s22 = smov (!%p242_p3, %s5553_s22), 1 }
   0xe   : > { %291 = vst [vmem:[#allocation4 + $0x58] sm:$0xff] %v7303_v1  ;;  %s7222_s25 = smul.u32 96, %s9799_s22 }
   0xf   : > { %292 = vst [vmem:[#allocation4 + $0x68] sm:$0xff] %v7303_v1 }
  0x10   : > { %293 = vst [vmem:[#allocation4 + $0x18] sm:$0xff] %v7303_v1  ;;  %s7380_s28 = scalar_lea.vmem %s9692_s0, %s7222_s25  ;;  %s7385_s7 = scalar_lea.vmem %s9698_s6, %s7222_s25 }
  0x11   : > { %294 = vst [vmem:[#allocation4 + $0xc0] sm:$0xff] %v7303_v1  ;;  %v254_v2 = vld [vmem:[%s7380_s28] sm:$0xff]  ;;  %v255_v3 = vld [vmem:[%s7380_s28 + $0x8] sm:$0xff]  ;;  %v256_v4 = vld [vmem:[%s7380_s28 + $0x10] sm:$0xff] }
  0x12   : > { %295 = vst [vmem:[#allocation4 + $0xe0] sm:$0xff] %v7303_v1  ;;  %v257_v5 = vld [vmem:[%s7380_s28 + $0x18] sm:$0xff]  ;;  %v258_v6 = vld [vmem:[%s7380_s28 + $0x20] sm:$0xff]  ;;  %v259_v7 = vld [vmem:[%s7380_s28 + $0x28] sm:$0xff] }
  0x13   : > { %296 = vst [vmem:[#allocation4 + $0x80] sm:$0xff] %v7303_v1  ;;  %v260_v8 = vld [vmem:[%s7380_s28 + $0x30] sm:$0xff]  ;;  %v261_v9 = vld [vmem:[%s7380_s28 + $0x38] sm:$0xff]  ;;  %v262_v10 = vld [vmem:[%s7380_s28 + $0x40] sm:$0xff] }
  0x14   : > { %266 = vst [vmem:[#allocation3 + $0x48] sm:$0xff] %v254_v2  ;;  %v263_v11 = vld [vmem:[%s7380_s28 + $0x48] sm:$0xff]  ;;  %v264_v12 = vld [vmem:[%s7380_s28 + $0x50] sm:$0xff]  ;;  %v265_v13 = vld [vmem:[%s7380_s28 + $0x58] sm:$0xff] }
  0x15   : > { %278 = vst [vmem:[#allocation2 + $0x30] sm:$0xff] %v254_v2 }
  0x16   : > { %267 = vst [vmem:[#allocation3] sm:$0xff] %v255_v3 }
  0x17   : > { %279 = vst [vmem:[#allocation2] sm:$0xff] %v255_v3 }
  0x18   : > { %268 = vst [vmem:[#allocation3 + $0x50] sm:$0xff] %v256_v4 }
  0x19   : > { %280 = vst [vmem:[#allocation2 + $0x58] sm:$0xff] %v256_v4 }
  0x1a   : > { %269 = vst [vmem:[#allocation3 + $0x30] sm:$0xff] %v257_v5 }
  0x1b   : > { %281 = vst [vmem:[#allocation2 + $0x18] sm:$0xff] %v257_v5 }
  0x1c   : > { %270 = vst [vmem:[#allocation3 + $0x8] sm:$0xff] %v258_v6 }
  0x1d   : > { %282 = vst [vmem:[#allocation2 + $0x50] sm:$0xff] %v258_v6 }
  0x1e   : > { %271 = vst [vmem:[#allocation3 + $0x20] sm:$0xff] %v259_v7 }
  0x1f   : > { %283 = vst [vmem:[#allocation2 + $0x20] sm:$0xff] %v259_v7 }
  0x20   : > { %272 = vst [vmem:[#allocation3 + $0x18] sm:$0xff] %v260_v8 }
  0x21   : > { %284 = vst [vmem:[#allocation2 + $0x8] sm:$0xff] %v260_v8 }
  0x22   : > { %273 = vst [vmem:[#allocation3 + $0x40] sm:$0xff] %v261_v9 }
  0x23   : > { %285 = vst [vmem:[#allocation2 + $0x38] sm:$0xff] %v261_v9 }
  0x24   : > { %274 = vst [vmem:[#allocation3 + $0x38] sm:$0xff] %v262_v10 }
  0x25   : > { %286 = vst [vmem:[#allocation2 + $0x28] sm:$0xff] %v262_v10 }
  0x26   : > { %275 = vst [vmem:[#allocation3 + $0x28] sm:$0xff] %v263_v11 }
  0x27   : > { %287 = vst [vmem:[#allocation2 + $0x48] sm:$0xff] %v263_v11 }
  0x28   : > { %276 = vst [vmem:[#allocation3 + $0x58] sm:$0xff] %v264_v12 }
  0x29   : > { %288 = vst [vmem:[#allocation2 + $0x10] sm:$0xff] %v264_v12 }
  0x2a   : > { %277 = vst [vmem:[#allocation3 + $0x10] sm:$0xff] %v265_v13 }
  0x2b   : > { %289 = vst [vmem:[#allocation2 + $0x40] sm:$0xff] %v265_v13 }
  0x2c   : > { %297 = vst [vmem:[#allocation4 + $0x30] sm:$0xff] %v7303_v1 }
  0x2d   : > { %298 = vst [vmem:[#allocation4 + $0xf0] sm:$0xff] %v7303_v1 }
  0x2e   : > { %299 = vst [vmem:[#allocation4 + $0x48] sm:$0xff] %v7303_v1 }
  0x2f   : > { %300 = vst [vmem:[#allocation4 + $0x110] sm:$0xff] %v7303_v1 }
  0x30   : > { %301 = vst [vmem:[#allocation4 + $0xb8] sm:$0xff] %v7303_v1 }
  0x31 LB: >> { %v9738_v0 = vld [vmem:[#allocation6_spill] sm:$0xff]  ;;  %v7404_v14 = vld [vmem:[#allocation2 + $0x28] sm:$0xff]  ;;  %v7408_v16 = vld [vmem:[#allocation2 + $0x50] sm:$0xff]  ;;  %s7304_s9 = smov 42   ;;  %s7305_s10 = smov 41   ;;  %vm361_vm0 = vcmask 1043456   ;;  %s7301_s8 = sphi %s7399_s8, %s307_s8  }
  0x32   : >> { %v7406_v15 = vld [vmem:[#allocation2 + $0x48] sm:$0xff]  ;;  %v7416_v18 = vpack.c.bf16 %v7408_v16, %v7408_v16  ;;  %v321_v19 = vld [vmem:[#allocation2 + $0x30] sm:$0xff]  ;;  %v7418_v20 = vld [vmem:[#allocation2] sm:$0xff]  ;;  %s7306_s11 = smov 40   ;;  %s7307_s12 = smov 39   ;;  %vm363_vm1 = vcmask 343040  }
  0x33   : >> { %v7412_v17 = vpack.c.bf16 %v7406_v15, %v7404_v14  ;;  %v7421_v21 = vpack.c.bf16 %v7418_v20, %v321_v19  ;;  %v7426_v22 = vld [vmem:[#allocation2 + $0x10] sm:$0xff]  ;;  %v326_v23 = vld [vmem:[#allocation2 + $0x8] sm:$0xff]  ;;  %v7428_v24 = vld [vmem:[#allocation2 + $0x38] sm:$0xff]  ;;  %s7308_s13 = smov 38   ;;  %s7309_s14 = smov 22   ;;  %vm398_vm2 = vcmask 334848  }
  0x34   : >> { %347 = vrot.lane.b32.xlu1 %v7416_v18, %s7304_s9  ;;  %v7430_v25 = vld [vmem:[#allocation2 + $0x58] sm:$0xff]  ;;  %v7436_v27 = vpack.c.bf16 %v7426_v22, %v7426_v22  ;;  %v7439_v28 = vpack.c.bf16 %v7428_v24, %v326_v23  ;;  %s7310_s15 = smov 21   ;;  %s7311_s16 = smov 20   ;;  %v7540_v10 = vpack.c.bf16 %v7404_v14, %v7428_v24  ;;  %vm433_vm3 = vcmask 326656  }
  0x35   : >> { %351 = vrot.lane.b32.xlu2 %v7412_v17, %s7304_s9  ;;  %343 = vrot.lane.b32.xlu0 %v7421_v21, %s7304_s9  ;;  %v7432_v26 = vld [vmem:[#allocation2 + $0x18] sm:$0xff]  ;;  %s7312_s17 = smov 19   ;;  %s7313_s18 = smov 18   ;;  %v7550_v23 = vpack.c.bf16 %v7430_v25, %v7418_v20  ;;  %vm468_vm4 = vcmask 318464   ;;  %vm503_vm5 = vcmask 310272   ;;  %vm560_vm6 = vcmask 179200  }
  0x36   : >> { %v7443_v29 = vpack.c.bf16 %v7432_v26, %v7430_v25  ;;  %v7546_v12 = vpack.c.bf16 %v7408_v16, %v7432_v26  ;;  %816 = vst [vmem:[#allocation5 + $0x190] sm:$0xff] %v7540_v10  ;;  %v7563_v25 = vpack.c.bf16 %v7426_v22, %v7406_v15  ;;  %s7314_s19 = smov 2   ;;  %s7315_s20 = smov 87   ;;  %vm595_vm7 = vcmask 171008  }
  0x37   : >> { %814 = vst [vmem:[#allocation5 + $0x180] sm:$0xff] %v7550_v23  ;;  %s7316_s22 = smov 110   ;;  %s7317_s23 = smov 88   ;;  %vm9705_vm8 = vcmask 162816   ;;  %vm9704_vm9 = vcmask 154624   ;;  %vm700_vm10 = vcmask 146432  }
  0x38   : >> { %815 = vst [vmem:[#allocation5 + $0x188] sm:$0xff] %v7546_v12  ;;  %s7318_s24 = smov 126   ;;  %s7319_s25 = smov 89   ;;  %vm759_vm11 = vcmask 15360   ;;  %vm1239_vm12 = vcmask 711680   ;;  %vm937_vm13 = vcmask 900096  }
  0x39   : >> { %817 = vst [vmem:[#allocation5 + $0x198] sm:$0xff] %v7563_v25  ;;  %s7320_s26 = smov 127   ;;  %s7321_s27 = smov 90   ;;  %vm1204_vm14 = vcmask 719872   ;;  %vm880_vm15 = vcmask 1031168  }
  0x3a   : >> { %s7322_s29 = smov 106   ;;  %s7323_s30 = smov 1  }
  0x3b   : >> { %p308_p4 = scmp.lt.s32.totalorder %s7301_s8, 0 }
  0x3c   : >> { %349 = vrot.lane.b32.xlu1 %v7439_v28, %s7304_s9 }
  0x3d   : >> { %353 = vrot.lane.b32.xlu2 %v7436_v27, %s7304_s9  ;;  %345 = vrot.lane.b32.xlu0 %v7443_v29, %s7304_s9  ;;  %s7324_s9 = smov 107  }
  0x44   : >> { %381 = vrot.lane.b32.xlu1 %v7443_v29, %s7305_s10 }
  0x45   : >> { %383 = vrot.lane.b32.xlu2 %v7416_v18, %s7305_s10  ;;  %379 = vrot.lane.b32.xlu0 %v7421_v21, %s7305_s10 }
  0x4c   : >> { %387 = vrot.lane.b32.xlu1 %v7412_v17, %s7305_s10 }
  0x4d   : >> { %389 = vrot.lane.b32.xlu2 %v7436_v27, %s7305_s10  ;;  %385 = vrot.lane.b32.xlu0 %v7439_v28, %s7305_s10  ;;  %s7325_s10 = smov 86  }
  0x54   : >> { %416 = vrot.lane.b32.xlu1 %v7443_v29, %s7306_s11 }
  0x55   : >> { %418 = vrot.lane.b32.xlu2 %v7416_v18, %s7306_s11  ;;  %414 = vrot.lane.b32.xlu0 %v7421_v21, %s7306_s11 }
  0x5c   : >> { %422 = vrot.lane.b32.xlu1 %v7412_v17, %s7306_s11 }
  0x5d   : >> { %424 = vrot.lane.b32.xlu2 %v7436_v27, %s7306_s11  ;;  %420 = vrot.lane.b32.xlu0 %v7439_v28, %s7306_s11  ;;  %s7326_s11 = smov 108  }
  0x64   : >> { %451 = vrot.lane.b32.xlu1 %v7443_v29, %s7307_s12 }
  0x65   : >> { %453 = vrot.lane.b32.xlu2 %v7416_v18, %s7307_s12  ;;  %449 = vrot.lane.b32.xlu0 %v7421_v21, %s7307_s12 }
  0x6c   : >> { %457 = vrot.lane.b32.xlu1 %v7412_v17, %s7307_s12 }
  0x6d   : >> { %459 = vrot.lane.b32.xlu2 %v7436_v27, %s7307_s12  ;;  %455 = vrot.lane.b32.xlu0 %v7439_v28, %s7307_s12  ;;  %s7327_s12 = smov 109  }
  0x74   : >> { %486 = vrot.lane.b32.xlu1 %v7443_v29, %s7308_s13 }
  0x75   : >> { %488 = vrot.lane.b32.xlu2 %v7416_v18, %s7308_s13  ;;  %484 = vrot.lane.b32.xlu0 %v7421_v21, %s7308_s13 }
  0x7c   : >> { %492 = vrot.lane.b32.xlu1 %v7412_v17, %s7308_s13 }
  0x7d   : >> { %494 = vrot.lane.b32.xlu2 %v7436_v27, %s7308_s13  ;;  %490 = vrot.lane.b32.xlu0 %v7439_v28, %s7308_s13  ;;  %s6893_s13 = smul.u32 96, %s7301_s8 }
  0x84   : >> { %543 = vrot.lane.b32.xlu1 %v7443_v29, %s7309_s14 }
  0x85   : >> { %545 = vrot.lane.b32.xlu2 %v7416_v18, %s7309_s14  ;;  %541 = vrot.lane.b32.xlu0 %v7421_v21, %s7309_s14 }
  0x8c   : >> { %549 = vrot.lane.b32.xlu1 %v7412_v17, %s7309_s14 }
  0x8d   : >> { %551 = vrot.lane.b32.xlu2 %v7436_v27, %s7309_s14  ;;  %547 = vrot.lane.b32.xlu0 %v7439_v28, %s7309_s14 }
  0x8f   : >> { %v352_v30 = vpop.permute.xlu2 %351 }
  0x90   : >> { %v359_v31 = vrot.slane %v352_v30, 4 }
  0x94   : >> { %578 = vrot.lane.b32.xlu1 %v7443_v29, %s7310_s15 }
  0x95   : >> { %580 = vrot.lane.b32.xlu2 %v7416_v18, %s7310_s15  ;;  %576 = vrot.lane.b32.xlu0 %v7421_v21, %s7310_s15 }
  0x97   : >> { %v354_v32 = vpop.permute.xlu2 %353 }
  0x98   : >> { %v360_v33 = vrot.slane %v354_v32, 4 }
  0x9a   : >> { %v369_v34 = vsel %vm361_vm0, %v359_v31, %v360_v33 }
  0x9b   : >> { %v370_v35 = vsel %vm363_vm1, %v352_v30, %v369_v34 }
  0x9c   : >> { %378 = vst [vmem:[#allocation5 + $0x18] sm:$0xff] %v370_v35  ;;  %584 = vrot.lane.b32.xlu1 %v7412_v17, %s7310_s15 }
  0x9d   : >> { %586 = vrot.lane.b32.xlu2 %v7436_v27, %s7310_s15  ;;  %582 = vrot.lane.b32.xlu0 %v7439_v28, %s7310_s15 }
  0x9f   : >> { %v384_v36 = vpop.permute.xlu2 %383 }
  0xa0   : >> { %v393_v53 = vrot.slane %v384_v36, 4 }
  0xa4   : >> { %613 = vrot.lane.b32.xlu1 %v7443_v29, %s7311_s16 }
  0xa5   : >> { %615 = vrot.lane.b32.xlu2 %v7416_v18, %s7311_s16  ;;  %611 = vrot.lane.b32.xlu0 %v7421_v21, %s7311_s16 }
  0xa6   : >> { %v348_v38 = vpop.permute.xlu1 %347 }
  0xa7   : >> { %v390_v37 = vpop.permute.xlu2 %389  ;;  %v344_v39 = vpop.permute.xlu0 %343  ;;  %v357_v40 = vrot.slane %v348_v38, 4 }
  0xa8   : >> { %v355_v45 = vrot.slane %v344_v39, 4  ;;  %v396_v63 = vrot.slane %v390_v37, 4 }
  0xac   : >> { %619 = vrot.lane.b32.xlu1 %v7412_v17, %s7311_s16 }
  0xad   : >> { %621 = vrot.lane.b32.xlu2 %v7436_v27, %s7311_s16  ;;  %617 = vrot.lane.b32.xlu0 %v7439_v28, %s7311_s16 }
  0xae   : >> { %v350_v42 = vpop.permute.xlu1 %349 }
  0xaf   : >> { %v7504_v41 = vpop.permute.xlu2 %418  ;;  %v358_v43 = vrot.slane %v350_v42, 4  ;;  %v346_v44 = vpop.permute.xlu0 %345 }
  0xb0   : >> { %v356_v46 = vrot.slane %v346_v44, 4  ;;  %v428_v11 = vrot.slane %v7504_v41, 4 }
  0xb1   : >> { %v367_v47 = vsel %vm361_vm0, %v358_v43, %v359_v31 }
  0xb2   : >> { %v368_v48 = vsel %vm363_vm1, %v350_v42, %v367_v47  ;;  %v362_v49 = vsel %vm361_vm0, %v355_v45, %v356_v46  ;;  %v365_v50 = vsel %vm361_vm0, %v356_v46, %v357_v40 }
  0xb3   : >> { %377 = vst [vmem:[#allocation5 + $0x10] sm:$0xff] %v368_v48  ;;  %v364_v51 = vsel %vm363_vm1, %v344_v39, %v362_v49  ;;  %v366_v52 = vsel %vm363_vm1, %v346_v44, %v365_v50  ;;  %vm1169_vm1 = vcmask 728064  }
  0xb4   : >> { %375 = vst [vmem:[#allocation5] sm:$0xff] %v364_v51  ;;  %648 = vrot.lane.b32.xlu1 %v7443_v29, %s7312_s17 }
  0xb5   : >> { %650 = vrot.lane.b32.xlu2 %v7416_v18, %s7312_s17  ;;  %376 = vst [vmem:[#allocation5 + $0x8] sm:$0xff] %v366_v52  ;;  %646 = vrot.lane.b32.xlu0 %v7421_v21, %s7312_s17 }
  0xb6   : >> { %v382_v55 = vpop.permute.xlu1 %381 }
  0xb7   : >> { %v7518_v54 = vpop.permute.xlu2 %424  ;;  %v392_v56 = vrot.slane %v382_v55, 4  ;;  %v380_v57 = vpop.permute.xlu0 %379 }
  0xb8   : >> { %v391_v58 = vrot.slane %v380_v57, 4  ;;  %v431_v32 = vrot.slane %v7518_v54, 4 }
  0xb9   : >> { %v400_v59 = vsel %vm361_vm0, %v392_v56, %v393_v53 }
  0xba   : >> { %v401_v60 = vsel %vm398_vm2, %v382_v55, %v400_v59  ;;  %v397_v61 = vsel %vm361_vm0, %v391_v58, %v392_v56 }
  0xbb   : >> { %411 = vst [vmem:[#allocation5 + $0x28] sm:$0xff] %v401_v60  ;;  %v399_v62 = vsel %vm398_vm2, %v380_v57, %v397_v61 }
  0xbc   : >> { %410 = vst [vmem:[#allocation5 + $0x20] sm:$0xff] %v399_v62  ;;  %654 = vrot.lane.b32.xlu1 %v7412_v17, %s7312_s17 }
  0xbd   : >> { %656 = vrot.lane.b32.xlu2 %v7436_v27, %s7312_s17  ;;  %652 = vrot.lane.b32.xlu0 %v7439_v28, %s7312_s17 }
  0xbe   : >> { %v388_v2 = vpop.permute.xlu1 %387 }
  0xbf   : >> { %v7530_v1 = vpop.permute.xlu2 %453  ;;  %v395_v3 = vrot.slane %v388_v2, 4  ;;  %v386_v4 = vpop.permute.xlu0 %385 }
  0xc0   : >> { %v394_v5 = vrot.slane %v386_v4, 4  ;;  %v463_v22 = vrot.slane %v7530_v1, 4 }
  0xc1   : >> { %v404_v6 = vsel %vm361_vm0, %v395_v3, %v396_v63 }
  0xc2   : >> { %v405_v7 = vsel %vm398_vm2, %v388_v2, %v404_v6  ;;  %v402_v8 = vsel %vm361_vm0, %v394_v5, %v395_v3 }
  0xc3   : >> { %413 = vst [vmem:[#allocation5 + $0x38] sm:$0xff] %v405_v7  ;;  %v403_v9 = vsel %vm398_vm2, %v386_v4, %v402_v8  ;;  %vm845_vm2 = vcmask 1039360  }
  0xc4   : >> { %412 = vst [vmem:[#allocation5 + $0x30] sm:$0xff] %v403_v9  ;;  %683 = vrot.lane.b32.xlu1 %v7443_v29, %s7313_s18 }
  0xc5   : >> { %685 = vrot.lane.b32.xlu2 %v7416_v18, %s7313_s18  ;;  %681 = vrot.lane.b32.xlu0 %v7421_v21, %s7313_s18 }
  0xc6   : >> { %v417_v19 = vpop.permute.xlu1 %416 }
  0xc7   : >> { %v460_v13 = vpop.permute.xlu2 %459  ;;  %v427_v30 = vrot.slane %v417_v19, 4  ;;  %v415_v31 = vpop.permute.xlu0 %414 }
  0xc8   : >> { %v426_v14 = vrot.slane %v415_v31, 4  ;;  %v466_v50 = vrot.slane %v460_v13, 4 }
  0xc9   : >> { %v435_v24 = vsel %vm361_vm0, %v427_v30, %v428_v11 }
  0xca   : >> { %v436_v16 = vsel %vm433_vm3, %v417_v19, %v435_v24  ;;  %v432_v26 = vsel %vm361_vm0, %v426_v14, %v427_v30 }
  0xcb   : >> { %446 = vst [vmem:[#allocation5 + $0x48] sm:$0xff] %v436_v16  ;;  %v434_v20 = vsel %vm433_vm3, %v415_v31, %v432_v26 }
  0xcc   : >> { %445 = vst [vmem:[#allocation5 + $0x40] sm:$0xff] %v434_v20  ;;  %689 = vrot.lane.b32.xlu1 %v7412_v17, %s7313_s18 }
  0xcd   : >> { %691 = vrot.lane.b32.xlu2 %v7436_v27, %s7313_s18  ;;  %687 = vrot.lane.b32.xlu0 %v7439_v28, %s7313_s18 }
  0xce   : >> { %v423_v34 = vpop.permute.xlu1 %422 }
  0xcf   : >> { %v489_v33 = vpop.permute.xlu2 %488  ;;  %v430_v35 = vrot.slane %v423_v34, 4  ;;  %v421_v36 = vpop.permute.xlu0 %420 }
  0xd0   : >> { %v429_v37 = vrot.slane %v421_v36, 4  ;;  %v498_v60 = vrot.slane %v489_v33, 4 }
  0xd1   : >> { %v439_v38 = vsel %vm361_vm0, %v430_v35, %v431_v32 }
  0xd2   : >> { %v440_v39 = vsel %vm433_vm3, %v423_v34, %v439_v38  ;;  %v437_v40 = vsel %vm361_vm0, %v429_v37, %v430_v35 }
  0xd3   : >> { %448 = vst [vmem:[#allocation5 + $0x58] sm:$0xff] %v440_v39  ;;  %v438_v15 = vsel %vm433_vm3, %v421_v36, %v437_v40  ;;  %vm1134_vm3 = vcmask 736256  }
  0xd4   : >> { %447 = vst [vmem:[#allocation5 + $0x50] sm:$0xff] %v438_v15  ;;  %742 = vrot.lane.b32.xlu1 %v7443_v29, %s7314_s19 }
  0xd5   : >> { %744 = vrot.lane.b32.xlu2 %v7416_v18, %s7314_s19  ;;  %740 = vrot.lane.b32.xlu0 %v7421_v21, %s7314_s19 }
  0xd6   : >> { %v452_v42 = vpop.permute.xlu1 %451 }
  0xd7   : >> { %v495_v41 = vpop.permute.xlu2 %494  ;;  %v462_v43 = vrot.slane %v452_v42, 4  ;;  %v450_v44 = vpop.permute.xlu0 %449 }
  0xd8   : >> { %v461_v45 = vrot.slane %v450_v44, 4  ;;  %v501_v7 = vrot.slane %v495_v41, 4 }
  0xd9   : >> { %v470_v46 = vsel %vm361_vm0, %v462_v43, %v463_v22 }
  0xda   : >> { %v471_v47 = vsel %vm468_vm4, %v452_v42, %v470_v46  ;;  %v467_v48 = vsel %vm361_vm0, %v461_v45, %v462_v43 }
  0xdb   : >> { %481 = vst [vmem:[#allocation5 + $0x68] sm:$0xff] %v471_v47  ;;  %v469_v49 = vsel %vm468_vm4, %v450_v44, %v467_v48 }
  0xdc   : >> { %480 = vst [vmem:[#allocation5 + $0x60] sm:$0xff] %v469_v49  ;;  %748 = vrot.lane.b32.xlu1 %v7412_v17, %s7314_s19 }
  0xdd   : >> { %750 = vrot.lane.b32.xlu2 %v7436_v27, %s7314_s19  ;;  %746 = vrot.lane.b32.xlu0 %v7439_v28, %s7314_s19  ;;  %s7988_s19 = scalar_lea.vmem %s9694_s2, %s6893_s13 }
  0xde   : >> { %v458_v52 = vpop.permute.xlu1 %457 }
  0xdf   : >> { %v546_v51 = vpop.permute.xlu2 %545  ;;  %v465_v53 = vrot.slane %v458_v52, 4  ;;  %v456_v54 = vpop.permute.xlu0 %455 }
  0xe0   : >> { %v464_v55 = vrot.slane %v456_v54, 4  ;;  %v555_v16 = vrot.slane %v546_v51, 4 }
  0xe1   : >> { %v474_v56 = vsel %vm361_vm0, %v465_v53, %v466_v50 }
  0xe2   : >> { %v475_v57 = vsel %vm468_vm4, %v458_v52, %v474_v56  ;;  %v472_v58 = vsel %vm361_vm0, %v464_v55, %v465_v53 }
  0xe3   : >> { %483 = vst [vmem:[#allocation5 + $0x78] sm:$0xff] %v475_v57  ;;  %v473_v59 = vsel %vm468_vm4, %v456_v54, %v472_v58  ;;  %vm1077_vm4 = vcmask 867328  }
  0xe4   : >> { %482 = vst [vmem:[#allocation5 + $0x70] sm:$0xff] %v473_v59  ;;  %1222 = vrot.lane.b32.xlu1 %v7546_v12, %s7315_s20 }
  0xe5   : >> { %1226 = vrot.lane.b32.xlu2 %v7540_v10, %s7315_s20  ;;  %1220 = vrot.lane.b32.xlu0 %v7550_v23, %s7315_s20 }
  0xe6   : >> { %v487_v62 = vpop.permute.xlu1 %486 }
  0xe7   : >> { %v552_v61 = vpop.permute.xlu2 %551  ;;  %v497_v63 = vrot.slane %v487_v62, 4  ;;  %v485_v1 = vpop.permute.xlu0 %484 }
  0xe8   : >> { %v496_v2 = vrot.slane %v485_v1, 4  ;;  %v558_v39 = vrot.slane %v552_v61, 4 }
  0xe9   : >> { %v505_v3 = vsel %vm361_vm0, %v497_v63, %v498_v60 }
  0xea   : >> { %v506_v4 = vsel %vm503_vm5, %v487_v62, %v505_v3  ;;  %v502_v5 = vsel %vm361_vm0, %v496_v2, %v497_v63 }
  0xeb   : >> { %516 = vst [vmem:[#allocation5 + $0x88] sm:$0xff] %v506_v4  ;;  %v504_v6 = vsel %vm503_vm5, %v485_v1, %v502_v5 }
  0xec   : >> { %515 = vst [vmem:[#allocation5 + $0x80] sm:$0xff] %v504_v6  ;;  %918 = vrot.lane.b32.xlu1 %v7550_v23, %s7316_s22 }
  0xed   : >> { %920 = vrot.lane.b32.xlu2 %v7546_v12, %s7316_s22  ;;  %1228 = vrot.lane.b32.xlu0 %v7563_v25, %s7315_s20 }
  0xee   : >> { %v493_v9 = vpop.permute.xlu1 %492 }
  0xef   : >> { %v581_v8 = vpop.permute.xlu2 %580  ;;  %v500_v11 = vrot.slane %v493_v9, 4  ;;  %v491_v13 = vpop.permute.xlu0 %490 }
  0xf0   : >> { %v499_v19 = vrot.slane %v491_v13, 4  ;;  %v590_v47 = vrot.slane %v581_v8, 4 }
  0xf1   : >> { %v509_v30 = vsel %vm361_vm0, %v500_v11, %v501_v7 }
  0xf2   : >> { %v510_v31 = vsel %vm503_vm5, %v493_v9, %v509_v30  ;;  %v507_v14 = vsel %vm361_vm0, %v499_v19, %v500_v11 }
  0xf3   : >> { %518 = vst [vmem:[#allocation5 + $0x98] sm:$0xff] %v510_v31  ;;  %v508_v24 = vsel %vm503_vm5, %v491_v13, %v507_v14  ;;  %vm794_vm5 = vcmask 7168  }
  0xf4   : >> { %517 = vst [vmem:[#allocation5 + $0x90] sm:$0xff] %v508_v24  ;;  %926 = vrot.lane.b32.xlu1 %v7563_v25, %s7316_s22 }
  0xf5   : >> { %1185 = vrot.lane.b32.xlu2 %v7550_v23, %s7317_s23  ;;  %924 = vrot.lane.b32.xlu0 %v7540_v10, %s7316_s22 }
  0xf6   : >> { %v544_v20 = vpop.permute.xlu1 %543 }
  0xf7   : >> { %v587_v26 = vpop.permute.xlu2 %586  ;;  %v554_v32 = vrot.slane %v544_v20, 4  ;;  %v542_v33 = vpop.permute.xlu0 %541 }
  0xf8   : >> { %v553_v34 = vrot.slane %v542_v33, 4  ;;  %v593_v57 = vrot.slane %v587_v26, 4 }
  0xf9   : >> { %v562_v35 = vsel %vm361_vm0, %v554_v32, %v555_v16 }
  0xfa   : >> { %v563_v36 = vsel %vm560_vm6, %v544_v20, %v562_v35  ;;  %v559_v37 = vsel %vm361_vm0, %v553_v34, %v554_v32 }
  0xfb   : >> { %573 = vst [vmem:[#allocation5 + $0xa8] sm:$0xff] %v563_v36  ;;  %v561_v38 = vsel %vm560_vm6, %v542_v33, %v559_v37 }
  0xfc   : >> { %572 = vst [vmem:[#allocation5 + $0xa0] sm:$0xff] %v561_v38  ;;  %1191 = vrot.lane.b32.xlu1 %v7540_v10, %s7317_s23 }
  0xfd   : >> { %1193 = vrot.lane.b32.xlu2 %v7563_v25, %s7317_s23  ;;  %1187 = vrot.lane.b32.xlu0 %v7546_v12, %s7317_s23 }
  0xfe   : >> { %v550_v15 = vpop.permute.xlu1 %549 }
  0xff   : >> { %v616_v40 = vpop.permute.xlu2 %615  ;;  %v557_v22 = vrot.slane %v550_v15, 4  ;;  %v548_v41 = vpop.permute.xlu0 %547 }
 0x100   : >> { %v556_v42 = vrot.slane %v548_v41, 4  ;;  %v625_v4 = vrot.slane %v616_v40, 4 }
 0x101   : >> { %v566_v43 = vsel %vm361_vm0, %v557_v22, %v558_v39 }
 0x102   : >> { %v567_v44 = vsel %vm560_vm6, %v550_v15, %v566_v43  ;;  %v564_v45 = vsel %vm361_vm0, %v556_v42, %v557_v22 }
 0x103   : >> { %575 = vst [vmem:[#allocation5 + $0xb8] sm:$0xff] %v567_v44  ;;  %v565_v46 = vsel %vm560_vm6, %v548_v41, %v564_v45  ;;  %vm1042_vm6 = vcmask 875520  }
 0x104   : >> { %574 = vst [vmem:[#allocation5 + $0xb0] sm:$0xff] %v565_v46  ;;  %863 = vrot.lane.b32.xlu1 %v7546_v12, %s7318_s24 }
 0x105   : >> { %867 = vrot.lane.b32.xlu2 %v7540_v10, %s7318_s24  ;;  %861 = vrot.lane.b32.xlu0 %v7550_v23, %s7318_s24 }
 0x106   : >> { %v579_v49 = vpop.permute.xlu1 %578 }
 0x107   : >> { %v622_v48 = vpop.permute.xlu2 %621  ;;  %v589_v50 = vrot.slane %v579_v49, 4  ;;  %v577_v51 = vpop.permute.xlu0 %576 }
 0x108   : >> { %v588_v52 = vrot.slane %v577_v51, 4  ;;  %v628_v31 = vrot.slane %v622_v48, 4 }
 0x109   : >> { %v597_v53 = vsel %vm361_vm0, %v589_v50, %v590_v47 }
 0x10a   : >> { %v598_v54 = vsel %vm595_vm7, %v579_v49, %v597_v53  ;;  %v594_v55 = vsel %vm361_vm0, %v588_v52, %v589_v50 }
 0x10b   : >> { %608 = vst [vmem:[#allocation5 + $0xc8] sm:$0xff] %v598_v54  ;;  %v596_v56 = vsel %vm595_vm7, %v577_v51, %v594_v55 }
 0x10c   : >> { %607 = vst [vmem:[#allocation5 + $0xc0] sm:$0xff] %v596_v56  ;;  %1150 = vrot.lane.b32.xlu1 %v7550_v23, %s7319_s25 }
 0x10d   : >> { %1152 = vrot.lane.b32.xlu2 %v7546_v12, %s7319_s25  ;;  %869 = vrot.lane.b32.xlu0 %v7563_v25, %s7318_s24 }
 0x10e   : >> { %v585_v59 = vpop.permute.xlu1 %584 }
 0x10f   : >> { %v651_v58 = vpop.permute.xlu2 %650  ;;  %v592_v60 = vrot.slane %v585_v59, 4  ;;  %v583_v61 = vpop.permute.xlu0 %582 }
 0x110   : >> { %v591_v62 = vrot.slane %v583_v61, 4  ;;  %v660_v36 = vrot.slane %v651_v58, 4 }
 0x111   : >> { %v601_v63 = vsel %vm361_vm0, %v592_v60, %v593_v57  ;;  %v6928_v57 = vld [vmem:[#allocation5 + $0xac] sm:$0xf0] }
 0x112   : >> { %v602_v1 = vsel %vm595_vm7, %v585_v59, %v601_v63  ;;  %v599_v2 = vsel %vm361_vm0, %v591_v62, %v592_v60 }
 0x113   : >> { %610 = vst [vmem:[#allocation5 + $0xd8] sm:$0xff] %v602_v1  ;;  %v600_v3 = vsel %vm595_vm7, %v583_v61, %v599_v2  ;;  %v5710_v53 = vld [vmem:[#allocation5 + $0xc0] sm:$0xf]  ;;  %v6924_v1 = vld [vmem:[#allocation5 + $0x8c] sm:$0xf0] }
 0x114   : >> { %609 = vst [vmem:[#allocation5 + $0xd0] sm:$0xff] %v600_v3  ;;  %1158 = vrot.lane.b32.xlu1 %v7563_v25, %s7319_s25  ;;  %v5694_v61 = vld [vmem:[#allocation5 + $0xa0] sm:$0xf] }
 0x115   : >> { %826 = vrot.lane.b32.xlu2 %v7550_v23, %s7320_s26  ;;  %1156 = vrot.lane.b32.xlu0 %v7540_v10, %s7319_s25  ;;  %v5695_v62 = vor.u32 %v6928_v57, %v5694_v61 }
 0x116   : >> { %v614_v6 = vpop.permute.xlu1 %613 }
 0x117   : >> { %v7653_v5 = vpop.permute.xlu2 %656  ;;  %v624_v7 = vrot.slane %v614_v6, 4  ;;  %v612_v8 = vpop.permute.xlu0 %611 }
 0x118   : >> { %v623_v9 = vrot.slane %v612_v8, 4  ;;  %v663_v47 = vrot.slane %v7653_v5, 4 }
 0x119   : >> { %v632_v11 = vsel %vm361_vm0, %v624_v7, %v625_v4 }
 0x11a   : >> { %v633_v13 = vsel %vm9705_vm8, %v614_v6, %v632_v11  ;;  %v629_v19 = vsel %vm361_vm0, %v623_v9, %v624_v7  ;;  %v5678_v6 = vld [vmem:[#allocation5 + $0x80] sm:$0xf]  ;;  %v6920_v9 = vld [vmem:[#allocation5 + $0x6c] sm:$0xf0] }
 0x11b   : >> { %643 = vst [vmem:[#allocation5 + $0xe8] sm:$0xff] %v633_v13  ;;  %v631_v30 = vsel %vm9705_vm8, %v612_v8, %v629_v19  ;;  %v6932_v48 = vld [vmem:[#allocation5 + $0xcc] sm:$0xf0] }
 0x11c   : >> { %642 = vst [vmem:[#allocation5 + $0xe0] sm:$0xff] %v631_v30  ;;  %832 = vrot.lane.b32.xlu1 %v7540_v10, %s7320_s26  ;;  %v5711_v55 = vor.u32 %v6932_v48, %v5710_v53  ;;  %v5662_v30 = vld [vmem:[#allocation5 + $0x60] sm:$0xf] }
 0x11d   : >> { %834 = vrot.lane.b32.xlu2 %v7563_v25, %s7320_s26  ;;  %828 = vrot.lane.b32.xlu0 %v7546_v12, %s7320_s26 }
 0x11e   : >> { %v620_v24 = vpop.permute.xlu1 %619 }
 0x11f   : >> { %v7665_v14 = vpop.permute.xlu2 %685  ;;  %v627_v16 = vrot.slane %v620_v24, 4  ;;  %v618_v26 = vpop.permute.xlu0 %617 }
 0x120   : >> { %v626_v20 = vrot.slane %v618_v26, 4  ;;  %v695_v63 = vrot.slane %v7665_v14, 4 }
 0x121   : >> { %v636_v32 = vsel %vm361_vm0, %v627_v16, %v628_v31  ;;  %v5663_v31 = vor.u32 %v6920_v9, %v5662_v30 }
 0x122   : >> { %v637_v33 = vsel %vm9705_vm8, %v620_v24, %v636_v32  ;;  %v634_v34 = vsel %vm361_vm0, %v626_v20, %v627_v16  ;;  %v6916_v24 = vld [vmem:[#allocation5 + $0x4c] sm:$0xf0] }
 0x123   : >> { %645 = vst [vmem:[#allocation5 + $0xf8] sm:$0xff] %v637_v33  ;;  %v635_v35 = vsel %vm9705_vm8, %v618_v26, %v634_v34  ;;  %v5726_v44 = vld [vmem:[#allocation5 + $0xe0] sm:$0xf]  ;;  %vm972_vm8 = vcmask 891904  }
 0x124   : >> { %644 = vst [vmem:[#allocation5 + $0xf0] sm:$0xff] %v635_v35  ;;  %1117 = vrot.lane.b32.xlu1 %v7546_v12, %s7321_s27  ;;  %v5646_v33 = vld [vmem:[#allocation5 + $0x40] sm:$0xf] }
 0x125   : >> { %1121 = vrot.lane.b32.xlu2 %v7540_v10, %s7321_s27  ;;  %1115 = vrot.lane.b32.xlu0 %v7550_v23, %s7321_s27  ;;  %v5647_v35 = vor.u32 %v6916_v24, %v5646_v33  ;;  %v900_v24 = vld [vmem:[#allocation2 + $0x20] sm:$0xff] }
 0x126   : >> { %v649_v38 = vpop.permute.xlu1 %648 }
 0x127   : >> { %v7677_v37 = vpop.permute.xlu2 %691  ;;  %v659_v39 = vrot.slane %v649_v38, 4  ;;  %v647_v40 = vpop.permute.xlu0 %646 }
 0x128   : >> { %v658_v15 = vrot.slane %v647_v40, 4  ;;  %v698_v14 = vrot.slane %v7677_v37, 4 }
 0x129   : >> { %v667_v22 = vsel %vm361_vm0, %v659_v39, %v660_v36  ;;  %v6912_v36 = vld [vmem:[#allocation5 + $0x2c] sm:$0xf0] }
 0x12a   : >> { %v668_v41 = vsel %vm9704_vm9, %v649_v38, %v667_v22  ;;  %v664_v42 = vsel %vm361_vm0, %v658_v15, %v659_v39  ;;  %v5630_v38 = vld [vmem:[#allocation5 + $0x20] sm:$0xf]  ;;  %v6908_v22 = vld [vmem:[#allocation5 + $0xc] sm:$0xf0] }
 0x12b   : >> { %678 = vst [vmem:[#allocation5 + $0x108] sm:$0xff] %v668_v41  ;;  %v666_v43 = vsel %vm9704_vm9, %v647_v40, %v664_v42  ;;  %v6936_v45 = vld [vmem:[#allocation5 + $0xec] sm:$0xf0]  ;;  %v5631_v39 = vor.u32 %v6912_v36, %v5630_v38  ;;  %v5614_v15 = vld [vmem:[#allocation5] sm:$0xf] }
 0x12c   : >> { %677 = vst [vmem:[#allocation5 + $0x100] sm:$0xff] %v666_v43  ;;  %1058 = vrot.lane.b32.xlu1 %v7550_v23, %s7322_s29  ;;  %v5727_v46 = vor.u32 %v6936_v45, %v5726_v44 }
 0x12d   : >> { %1060 = vrot.lane.b32.xlu2 %v7546_v12, %s7322_s29  ;;  %1123 = vrot.lane.b32.xlu0 %v7563_v25, %s7321_s27 }
 0x12e   : >> { %2010 = vmatpush.bf16.msra.mxu0 %v5727_v46  ;;  %v655_v50 = vpop.permute.xlu1 %654  ;;  %v5615_v46 = vor.u32 %v6908_v22, %v5614_v15 }
 0x12f   : >> { %v7690_v49 = vpop.permute.xlu2 %744  ;;  %v662_v51 = vrot.slane %v655_v50, 4  ;;  %v653_v52 = vpop.permute.xlu0 %652 }
 0x130   : >> { %v661_v54 = vrot.slane %v653_v52, 4  ;;  %v754_v40 = vrot.slane %v7690_v49, 4 }
 0x131   : >> { %v671_v56 = vsel %vm361_vm0, %v662_v51, %v663_v47 }
 0x132   : >> { %v672_v58 = vsel %vm9704_vm9, %v655_v50, %v671_v56  ;;  %v669_v59 = vsel %vm361_vm0, %v661_v54, %v662_v51  ;;  %2011 = vmatpush.bf16.msra.mxu0 %v5711_v55 }
 0x133   : >> { %680 = vst [vmem:[#allocation5 + $0x118] sm:$0xff] %v672_v58  ;;  %v670_v60 = vsel %vm9704_vm9, %v653_v52, %v669_v59  ;;  %vm2000_vm9 = vcmask 130048  }
 0x134   : >> { %679 = vst [vmem:[#allocation5 + $0x110] sm:$0xff] %v670_v60  ;;  %1066 = vrot.lane.b32.xlu1 %v7563_v25, %s7322_s29 }
 0x135   : >> { %775 = vrot.lane.b32.xlu2 %v7421_v21, %s7323_s30  ;;  %1064 = vrot.lane.b32.xlu0 %v7540_v10, %s7322_s29  ;;  %v5679_v21 = vor.u32 %v6924_v1, %v5678_v6 }
 0x136   : >> { %2012 = vmatpush.bf16.msra.mxu0 %v5695_v62  ;;  %v684_v3 = vpop.permute.xlu1 %683 }
 0x137   : >> { %v7703_v2 = vpop.permute.xlu2 %750  ;;  %v694_v4 = vrot.slane %v684_v3, 4  ;;  %v682_v5 = vpop.permute.xlu0 %681 }
 0x138   : >> { %v693_v7 = vrot.slane %v682_v5, 4  ;;  %v757_v51 = vrot.slane %v7703_v2, 4 }
 0x139   : >> { %v702_v8 = vsel %vm361_vm0, %v694_v4, %v695_v63 }
 0x13a   : >> { %v703_v11 = vsel %vm700_vm10, %v684_v3, %v702_v8  ;;  %v699_v13 = vsel %vm361_vm0, %v693_v7, %v694_v4  ;;  %2013 = vmatpush.bf16.msra.mxu0 %v5679_v21 }
 0x13b   : >> { %713 = vst [vmem:[#allocation5 + $0x128] sm:$0xff] %v703_v11  ;;  %v701_v19 = vsel %vm700_vm10, %v682_v5, %v699_v13 }
 0x13c   : >> { %712 = vst [vmem:[#allocation5 + $0x120] sm:$0xff] %v701_v19  ;;  %781 = vrot.lane.b32.xlu1 %v7439_v28, %s7323_s30 }
 0x13d   : >> { %783 = vrot.lane.b32.xlu2 %v7412_v17, %s7323_s30  ;;  %777 = vrot.lane.b32.xlu0 %v7443_v29, %s7323_s30 }
 0x13e   : >> { %2014 = vmatpush.bf16.msra.mxu0 %v5663_v31  ;;  %v690_v26 = vpop.permute.xlu1 %689 }
 0x13f   : >> { %v7716_v16 = vpop.permute.xlu2 %1226  ;;  %v697_v20 = vrot.slane %v690_v26, 4  ;;  %v688_v32 = vpop.permute.xlu0 %687 }
 0x140   : >> { %v696_v34 = vrot.slane %v688_v32, 4  ;;  %v1235_v6 = vrot.slane %v7716_v16, 4 }
 0x141   : >> { %v706_v17 = vsel %vm361_vm0, %v697_v20, %v698_v14  ;;  %v905_v14 = vld [vmem:[#allocation2 + $0x40] sm:$0xff] }
 0x142   : >> { %v707_v28 = vsel %vm700_vm10, %v690_v26, %v706_v17  ;;  %v704_v37 = vsel %vm361_vm0, %v696_v34, %v697_v20  ;;  %2015 = vmatpush.bf16.msra.mxu0 %v5647_v35  ;;  %v7796_v34 = vpack.c.bf16 %v905_v14, %v905_v14  ;;  %v7798_v35 = vpack.c.bf16 %v900_v24, %v900_v24 }
 0x143   : >> { %715 = vst [vmem:[#allocation5 + $0x138] sm:$0xff] %v707_v28  ;;  %v705_v29 = vsel %vm700_vm10, %v688_v32, %v704_v37  ;;  %vm1274_vm10 = vcmask 703488  }
 0x144   : >> { %714 = vst [vmem:[#allocation5 + $0x130] sm:$0xff] %v705_v29  ;;  %1025 = vrot.lane.b32.xlu1 %v7546_v12, %s7324_s9 }
 0x145   : >> { %1029 = vrot.lane.b32.xlu2 %v7540_v10, %s7324_s9  ;;  %1023 = vrot.lane.b32.xlu0 %v7550_v23, %s7324_s9 }
 0x146   : >> { %2016 = vmatpush.bf16.msra.mxu0 %v5631_v39  ;;  %v743_v42 = vpop.permute.xlu1 %742 }
 0x147   : >> { %v7729_v41 = vpop.permute.xlu2 %920  ;;  %v753_v43 = vrot.slane %v743_v42, 4  ;;  %v741_v44 = vpop.permute.xlu0 %740 }
 0x148   : >> { %v752_v45 = vrot.slane %v741_v44, 4  ;;  %v931_v5 = vrot.slane %v7729_v41, 4 }
 0x149   : >> { %v761_v47 = vsel %vm361_vm0, %v753_v43, %v754_v40 }
 0x14a   : >> { %v762_v48 = vsel %vm759_vm11, %v743_v42, %v761_v47  ;;  %v758_v49 = vsel %vm361_vm0, %v752_v45, %v753_v43  ;;  %2017 = vmatpush.bf16.msra.mxu0 %v5615_v46 }
 0x14b   : >> { %772 = vst [vmem:[#allocation5 + $0x148] sm:$0xff] %v762_v48  ;;  %v760_v50 = vsel %vm759_vm11, %v741_v44, %v758_v49 }
 0x14c   : >> { %771 = vst [vmem:[#allocation5 + $0x140] sm:$0xff] %v760_v50  ;;  %1255 = vrot.lane.b32.xlu1 %v7550_v23, %s7325_s10 }
 0x14d   : >> { %1257 = vrot.lane.b32.xlu2 %v7546_v12, %s7325_s10  ;;  %1031 = vrot.lane.b32.xlu0 %v7563_v25, %s7324_s9 }
 0x14e   : >> { %v749_v53 = vpop.permute.xlu1 %748 }
 0x14f   : >> { %v7742_v52 = vpop.permute.xlu2 %1185  ;;  %v756_v54 = vrot.slane %v749_v53, 4  ;;  %v747_v55 = vpop.permute.xlu0 %746 }
 0x150   : >> { %v755_v56 = vrot.slane %v747_v55, 4  ;;  %v1197_v37 = vrot.slane %v7742_v52, 4 }
 0x151   : >> { %v765_v57 = vsel %vm361_vm0, %v756_v54, %v757_v51 }
 0x152   : >> { %v766_v58 = vsel %vm759_vm11, %v749_v53, %v765_v57  ;;  %v763_v59 = vsel %vm361_vm0, %v755_v56, %v756_v54 }
 0x153   : >> { %774 = vst [vmem:[#allocation5 + $0x158] sm:$0xff] %v766_v58  ;;  %v764_v60 = vsel %vm759_vm11, %v747_v55, %v763_v59  ;;  %vm1007_vm11 = vcmask 883712  }
 0x154   : >> { %773 = vst [vmem:[#allocation5 + $0x150] sm:$0xff] %v764_v60  ;;  %1263 = vrot.lane.b32.xlu1 %v7563_v25, %s7325_s10 }
 0x155   : >> { %988 = vrot.lane.b32.xlu2 %v7550_v23, %s7326_s11  ;;  %1261 = vrot.lane.b32.xlu0 %v7540_v10, %s7325_s10 }
 0x156   : >> { %v7756_v62 = vpop.permute.xlu1 %1222 }
 0x157   : >> { %v7754_v61 = vpop.permute.xlu2 %1193  ;;  %v1233_v63 = vrot.slane %v7756_v62, 4  ;;  %v1221_v1 = vpop.permute.xlu0 %1220 }
 0x158   : >> { %v1232_v2 = vrot.slane %v1221_v1, 4  ;;  %v1201_v28 = vrot.slane %v7754_v61, 4 }
 0x15a   : >> { %v1238_v3 = vsel %vm361_vm0, %v1232_v2, %v1233_v63 }
 0x15b   : >> { %v1240_v4 = vsel %vm1239_vm12, %v1221_v1, %v1238_v3 }
 0x15c   : >> { %1251 = vst [vmem:[#allocation5 + $0x2e0] sm:$0xff] %v1240_v4  ;;  %994 = vrot.lane.b32.xlu1 %v7540_v10, %s7326_s11 }
 0x15d   : >> { %996 = vrot.lane.b32.xlu2 %v7563_v25, %s7326_s11  ;;  %990 = vrot.lane.b32.xlu0 %v7546_v12, %s7326_s11 }
 0x15e   : >> { %v919_v21 = vpop.permute.xlu1 %918 }
 0x15f   : >> { %v7771_v7 = vpop.permute.xlu2 %867  ;;  %v930_v8 = vrot.slane %v919_v21, 4  ;;  %v7773_v9 = vpop.permute.xlu0 %1228 }
 0x160   : >> { %v1236_v11 = vrot.slane %v7773_v9, 4  ;;  %v876_v1 = vrot.slane %v7771_v7, 4 }
 0x161   : >> { %v936_v13 = vsel %vm361_vm0, %v930_v8, %v931_v5 }
 0x162   : >> { %v938_v19 = vsel %vm937_vm13, %v919_v21, %v936_v13  ;;  %v1243_v30 = vsel %vm361_vm0, %v1235_v6, %v1236_v11 }
 0x163   : >> { %949 = vst [vmem:[#allocation5 + $0x1e0] sm:$0xff] %v938_v19  ;;  %v1244_v31 = vsel %vm1239_vm12, %v7716_v16, %v1243_v30 }
 0x164   : >> { %1253 = vst [vmem:[#allocation5 + $0x2f0] sm:$0xff] %v1244_v31  ;;  %955 = vrot.lane.b32.xlu1 %v7546_v12, %s7327_s12 }
 0x165   : >> { %959 = vrot.lane.b32.xlu2 %v7540_v10, %s7327_s12  ;;  %953 = vrot.lane.b32.xlu0 %v7550_v23, %s7327_s12  ;;  %v5982_v23 = vld [vmem:[#allocation5 + $0x2e0] sm:$0xf] }
 0x166   : >> { %v7793_v20 = vpop.permute.xlu1 %926 }
 0x167   : >> { %v7791_v26 = vpop.permute.xlu2 %1152  ;;  %v934_v32 = vrot.slane %v7793_v20, 4  ;;  %v925_v16 = vpop.permute.xlu0 %924 }
 0x168   : >> { %v933_v33 = vrot.slane %v925_v16, 4  ;;  %v1163_v60 = vrot.slane %v7791_v26, 4 }
 0x16a   : >> { %v941_v10 = vsel %vm361_vm0, %v933_v33, %v934_v32  ;;  %v5854_v43 = vld [vmem:[#allocation5 + $0x1e0] sm:$0xf]  ;;  %v6966_v44 = vld [vmem:[#allocation5 + $0x1e4] sm:$0xf] }
 0x16b   : >> { %v942_v12 = vsel %vm937_vm13, %v925_v16, %v941_v10  ;;  %v7000_v17 = vld [vmem:[#allocation5 + $0x2ec] sm:$0xf0] }
 0x16c   : >> { %951 = vst [vmem:[#allocation5 + $0x1f0] sm:$0xff] %v942_v12  ;;  %922 = vrot.lane.b32.xlu1 %v7798_v35, %s7316_s22  ;;  %v5983_v36 = vor.u32 %v7000_v17, %v5982_v23 }
 0x16d   : >> { %928 = vrot.lane.b32.xlu2 %v7796_v34, %s7316_s22  ;;  %961 = vrot.lane.b32.xlu0 %v7563_v25, %s7327_s12 }
 0x16e   : >> { %2058 = vmatpush.bf16.msra.mxu2 %v5983_v36  ;;  %v1192_v38 = vpop.permute.xlu1 %1191 }
 0x16f   : >> { %v7812_v29 = vpop.permute.xlu2 %826  ;;  %v1200_v39 = vrot.slane %v1192_v38, 4  ;;  %v7814_v40 = vpop.permute.xlu0 %1187 }
 0x170   : >> { %v1198_v15 = vrot.slane %v7814_v40, 4 }
 0x171   : >> { %v1208_v22 = vsel %vm361_vm0, %v1200_v39, %v1201_v28 }
 0x172   : >> { %v1209_v42 = vsel %vm1204_vm14, %v1192_v38, %v1208_v22  ;;  %v1203_v25 = vsel %vm361_vm0, %v1197_v37, %v1198_v15  ;;  %v838_v22 = vrot.slane %v7812_v29, 4 }
 0x173   : >> { %1218 = vst [vmem:[#allocation5 + $0x2d0] sm:$0xff] %v1209_v42  ;;  %v1205_v45 = vsel %vm1204_vm14, %v7742_v52, %v1203_v25  ;;  %v6968_v46 = vld [vmem:[#allocation5 + $0x1ec] sm:$0xf0]  ;;  %v5856_v47 = vld [vmem:[#allocation5 + $0x1f0] sm:$0xf0] }
 0x174   : >> { %1216 = vst [vmem:[#allocation5 + $0x2c0] sm:$0xff] %v1205_v45  ;;  %1230 = vrot.lane.b32.xlu1 %v7796_v34, %s7315_s20  ;;  %v5855_v48 = vor.u32 %v6968_v46, %v5854_v43  ;;  %v5859_v49 = vor.u32 %v6966_v44, %v5856_v47 }
 0x175   : >> { %865 = vrot.lane.b32.xlu2 %v7798_v35, %s7318_s24  ;;  %1224 = vrot.lane.b32.xlu0 %v7798_v35, %s7315_s20  ;;  %s1405_s20 = smul.u32 48, %s7301_s8 }
 0x176   : >> { %2034 = vmatpush.bf16.msra.mxu1 %v5855_v48  ;;  %2130 = vmatpush.bf16.msrb.mxu0 %v5859_v49  ;;  %v7834_v51 = vpop.permute.xlu1 %863 }
 0x177   : >> { %v7832_v50 = vpop.permute.xlu2 %834  ;;  %v874_v52 = vrot.slane %v7834_v51, 4  ;;  %v862_v53 = vpop.permute.xlu0 %861 }
 0x178   : >> { %v873_v54 = vrot.slane %v862_v53, 4  ;;  %v842_v39 = vrot.slane %v7832_v50, 4 }
 0x17a   : >> { %v879_v55 = vsel %vm361_vm0, %v873_v54, %v874_v52  ;;  %v6996_v56 = vld [vmem:[#allocation5 + $0x2cc] sm:$0xf0] }
 0x17b   : >> { %v881_v57 = vsel %vm880_vm15, %v862_v53, %v879_v55  ;;  %v5966_v58 = vld [vmem:[#allocation5 + $0x2c0] sm:$0xf] }
 0x17c   : >> { %892 = vst [vmem:[#allocation5 + $0x1c0] sm:$0xff] %v881_v57  ;;  %1189 = vrot.lane.b32.xlu1 %v7798_v35, %s7317_s23  ;;  %v5967_v59 = vor.u32 %v6996_v56, %v5966_v58 }
 0x17d   : >> { %1195 = vrot.lane.b32.xlu2 %v7796_v34, %s7317_s23  ;;  %871 = vrot.lane.b32.xlu0 %v7796_v34, %s7318_s24  ;;  %s8076_s24 = scalar_lea.vmem %s9695_s3, %s1405_s20 }
 0x17e   : >> { %2059 = vmatpush.bf16.msra.mxu2 %v5967_v59  ;;  %v1151_v3 = vpop.permute.xlu1 %1150 }
 0x17f   : >> { %v7849_v2 = vpop.permute.xlu2 %1121  ;;  %v1162_v4 = vrot.slane %v1151_v3, 4  ;;  %v7851_v6 = vpop.permute.xlu0 %869 }
 0x180   : >> { %v877_v21 = vrot.slane %v7851_v6, 4 }
 0x181   : >> { %v1168_v8 = vsel %vm361_vm0, %v1162_v4, %v1163_v60 }
 0x182   : >> { %v1170_v13 = vsel %vm1169_vm1, %v1151_v3, %v1168_v8  ;;  %v884_v19 = vsel %vm361_vm0, %v876_v1, %v877_v21  ;;  %v5806_v1 = vld [vmem:[#allocation5 + $0x180] sm:$0xf]  ;;  %v6956_v3 = vld [vmem:[#allocation5 + $0x18c] sm:$0xf0] }
 0x183   : >> { %1181 = vst [vmem:[#allocation5 + $0x2a0] sm:$0xff] %v1170_v13  ;;  %v885_v30 = vsel %vm880_vm15, %v7771_v7, %v884_v19  ;;  %v5838_v10 = vld [vmem:[#allocation5 + $0x1c0] sm:$0xf]  ;;  %v6962_v17 = vld [vmem:[#allocation5 + $0x1c4] sm:$0xf] }
 0x184   : >> { %894 = vst [vmem:[#allocation5 + $0x1d0] sm:$0xff] %v885_v30  ;;  %836 = vrot.lane.b32.xlu1 %v7796_v34, %s7320_s26  ;;  %v6954_v13 = vld [vmem:[#allocation5 + $0x184] sm:$0xf] }
 0x185   : >> { %1154 = vrot.lane.b32.xlu2 %v7798_v35, %s7319_s25  ;;  %830 = vrot.lane.b32.xlu0 %v7798_v35, %s7320_s26 }
 0x186   : >> { %v7871_v14 = vpop.permute.xlu1 %1158 }
 0x187   : >> { %v7869_v31 = vpop.permute.xlu2 %1060  ;;  %v1166_v24 = vrot.slane %v7871_v14, 4  ;;  %v1157_v16 = vpop.permute.xlu0 %1156 }
 0x188   : >> { %v1165_v33 = vrot.slane %v1157_v16, 4 }
 0x18a   : >> { %v1173_v7 = vsel %vm361_vm0, %v1165_v33, %v1166_v24  ;;  %v5950_v53 = vld [vmem:[#allocation5 + $0x2a0] sm:$0xf] }
 0x18b   : >> { %v1174_v12 = vsel %vm1169_vm1, %v1157_v16, %v1173_v7  ;;  %v6964_v23 = vld [vmem:[#allocation5 + $0x1cc] sm:$0xf0]  ;;  %v5840_v36 = vld [vmem:[#allocation5 + $0x1d0] sm:$0xf0] }
 0x18c   : >> { %1183 = vst [vmem:[#allocation5 + $0x2b0] sm:$0xff] %v1174_v12  ;;  %1119 = vrot.lane.b32.xlu1 %v7798_v35, %s7321_s27  ;;  %v5839_v37 = vor.u32 %v6964_v23, %v5838_v10  ;;  %v5843_v38 = vor.u32 %v6962_v17, %v5840_v36  ;;  %v5808_v16 = vld [vmem:[#allocation5 + $0x190] sm:$0xf0]  ;;  %v1071_v10 = vrot.slane %v7869_v31, 4  ;;  %v1130_v12 = vrot.slane %v7849_v2, 4 }
 0x18d   : >> { %1125 = vrot.lane.b32.xlu2 %v7796_v34, %s7321_s27  ;;  %1160 = vrot.lane.b32.xlu0 %v7796_v34, %s7319_s25  ;;  %v5807_v36 = vor.u32 %v6956_v3, %v5806_v1 }
 0x18e   : >> { %2035 = vmatpush.bf16.msra.mxu1 %v5839_v37  ;;  %2131 = vmatpush.bf16.msrb.mxu0 %v5843_v38  ;;  %v833_v25 = vpop.permute.xlu1 %832  ;;  %v5811_v37 = vor.u32 %v6954_v13, %v5808_v16 }
 0x18f   : >> { %v7886_v42 = vpop.permute.xlu2 %775  ;;  %v841_v43 = vrot.slane %v833_v25, 4  ;;  %v7888_v44 = vpop.permute.xlu0 %828 }
 0x190   : >> { %v839_v45 = vrot.slane %v7888_v44, 4 }
 0x191   : >> { %v849_v46 = vsel %vm361_vm0, %v841_v43, %v842_v39 }
 0x192   : >> { %v850_v47 = vsel %vm845_vm2, %v833_v25, %v849_v46  ;;  %v844_v48 = vsel %vm361_vm0, %v838_v22, %v839_v45 }
 0x193   : >> { %859 = vst [vmem:[#allocation5 + $0x1b0] sm:$0xff] %v850_v47  ;;  %v846_v49 = vsel %vm845_vm2, %v7812_v29, %v844_v48  ;;  %v6992_v54 = vld [vmem:[#allocation5 + $0x2ac] sm:$0xf0] }
 0x194   : >> { %857 = vst [vmem:[#allocation5 + $0x1a0] sm:$0xff] %v846_v49  ;;  %785 = vrot.lane.b32.xlu1 %v7436_v27, %s7323_s30  ;;  %v5951_v55 = vor.u32 %v6992_v54, %v5950_v53 }
 0x195   : >> { %1062 = vrot.lane.b32.xlu2 %v7798_v35, %s7322_s29  ;;  %779 = vrot.lane.b32.xlu0 %v7416_v18, %s7323_s30 }
 0x196   : >> { %2060 = vmatpush.bf16.msra.mxu2 %v5951_v55  ;;  %v7908_v57 = vpop.permute.xlu1 %1117 }
 0x197   : >> { %v7906_v56 = vpop.permute.xlu2 %783  ;;  %v1128_v29 = vrot.slane %v7908_v57, 4  ;;  %v1116_v58 = vpop.permute.xlu0 %1115 }
 0x198   : >> { %v1127_v59 = vrot.slane %v1116_v58, 4 }
 0x19a   : >> { %v1133_v27 = vsel %vm361_vm0, %v1127_v59, %v1128_v29  ;;  %v6960_v4 = vld [vmem:[#allocation5 + $0x1ac] sm:$0xf0]  ;;  %v5824_v8 = vld [vmem:[#allocation5 + $0x1b0] sm:$0xf0] }
 0x19b   : >> { %v1135_v18 = vsel %vm1134_vm3, %v1116_v58, %v1133_v27  ;;  %v5822_v19 = vld [vmem:[#allocation5 + $0x1a0] sm:$0xf]  ;;  %v6958_v30 = vld [vmem:[#allocation5 + $0x1a4] sm:$0xf] }
 0x19c   : >> { %1146 = vst [vmem:[#allocation5 + $0x280] sm:$0xff] %v1135_v18  ;;  %1027 = vrot.lane.b32.xlu1 %v7798_v35, %s7324_s9  ;;  %v5823_v33 = vor.u32 %v6960_v4, %v5822_v19  ;;  %v5827_v7 = vor.u32 %v6958_v30, %v5824_v8  ;;  %v9702_v4 = vrot.slane %v7906_v56, 4  ;;  %v787_v8 = vrot.slane %v7886_v42, 4 }
 0x19d   : >> { %1033 = vrot.lane.b32.xlu2 %v7796_v34, %s7324_s9  ;;  %1068 = vrot.lane.b32.xlu0 %v7796_v34, %s7322_s29  ;;  %s6025_s29 = sshll.u32 %s7301_s8, 4 }
 0x19e   : >> { %2036 = vmatpush.bf16.msra.mxu1 %v5823_v33  ;;  %2132 = vmatpush.bf16.msrb.mxu0 %v5827_v7  ;;  %v1059_v17 = vpop.permute.xlu1 %1058  ;;  %s9229_s14 = scalar_lea.vmem %s9697_s5, %s6025_s29 }
 0x19f   : >> { %v7923_v23 = vpop.permute.xlu2 %1029  ;;  %v1070_v38 = vrot.slane %v1059_v17, 4  ;;  %v7925_v22 = vpop.permute.xlu0 %1123 }
 0x1a0   : >> { %v1131_v25 = vrot.slane %v7925_v22, 4 }
 0x1a1   : >> { %v1076_v43 = vsel %vm361_vm0, %v1070_v38, %v1071_v10 }
 0x1a2   : >> { %v1078_v46 = vsel %vm1077_vm4, %v1059_v17, %v1076_v43  ;;  %v1138_v47 = vsel %vm361_vm0, %v1130_v12, %v1131_v25  ;;  %2037 = vmatpush.bf16.msra.mxu1 %v5807_v36  ;;  %2133 = vmatpush.bf16.msrb.mxu0 %v5811_v37 }
 0x1a3   : >> { %1089 = vst [vmem:[#allocation5 + $0x260] sm:$0xff] %v1078_v46  ;;  %v1139_v48 = vsel %vm1134_vm3, %v7849_v2, %v1138_v47  ;;  %v5934_v1 = vld [vmem:[#allocation5 + $0x280] sm:$0xf] }
 0x1a4   : >> { %1148 = vst [vmem:[#allocation5 + $0x290] sm:$0xff] %v1139_v48  ;;  %998 = vrot.lane.b32.xlu1 %v7796_v34, %s7326_s11 }
 0x1a5   : >> { %1259 = vrot.lane.b32.xlu2 %v7798_v35, %s7325_s10  ;;  %992 = vrot.lane.b32.xlu0 %v7798_v35, %s7326_s11 }
 0x1a6   : >> { %v7945_v53 = vpop.permute.xlu1 %1066 }
 0x1a7   : >> { %v7943_v49 = vpop.permute.xlu2 %1257  ;;  %v9699_v54 = vrot.slane %v7945_v53, 4  ;;  %v1065_v55 = vpop.permute.xlu0 %1064 }
 0x1a8   : >> { %v1073_v58 = vrot.slane %v1065_v55, 4 }
 0x1aa   : >> { %v1081_v2 = vsel %vm361_vm0, %v1073_v58, %v9699_v54  ;;  %v5918_v12 = vld [vmem:[#allocation5 + $0x260] sm:$0xf] }
 0x1ab   : >> { %v1082_v59 = vsel %vm1077_vm4, %v1065_v55, %v1081_v2  ;;  %v6988_v3 = vld [vmem:[#allocation5 + $0x28c] sm:$0xf0] }
 0x1ac   : >> { %1091 = vst [vmem:[#allocation5 + $0x270] sm:$0xff] %v1082_v59  ;;  %957 = vrot.lane.b32.xlu1 %v7798_v35, %s7327_s12  ;;  %v5935_v27 = vor.u32 %v6988_v3, %v5934_v1 }
 0x1ad   : >> { %963 = vrot.lane.b32.xlu2 %v7796_v34, %s7327_s12  ;;  %1265 = vrot.lane.b32.xlu0 %v7796_v34, %s7325_s10 }
 0x1ae   : >> { %2061 = vmatpush.bf16.msra.mxu2 %v5935_v27  ;;  %v782_v18 = vpop.permute.xlu1 %781  ;;  %v1268_v27 = vrot.slane %v7943_v49, 4 }
 0x1af   : >> { %v7960_v13 = vpop.permute.xlu2 %988  ;;  %v790_v19 = vrot.slane %v782_v18, 4  ;;  %v7962_v30 = vpop.permute.xlu0 %777 }
 0x1b0   : >> { %v9701_v16 = vrot.slane %v7962_v30, 4 }
 0x1b1   : >> { %v798_v35 = vsel %vm361_vm0, %v790_v19, %v9702_v4  ;;  %v1038_v19 = vrot.slane %v7923_v23, 4  ;;  %v6994_v4 = vld [vmem:[#allocation5 + $0x2c4] sm:$0xf] }
 0x1b2   : >> { %v799_v33 = vsel %vm794_vm5, %v782_v18, %v798_v35  ;;  %v793_v34 = vsel %vm361_vm0, %v787_v8, %v9701_v16  ;;  %v6948_v8 = vld [vmem:[#allocation5 + $0x14c] sm:$0xf0]  ;;  %v5776_v18 = vld [vmem:[#allocation5 + $0x150] sm:$0xf0] }
 0x1b3   : >> { %808 = vst [vmem:[#allocation5 + $0x170] sm:$0xff] %v799_v33  ;;  %v795_v7 = vsel %vm794_vm5, %v7886_v42, %v793_v34  ;;  %v6984_v17 = vld [vmem:[#allocation5 + $0x26c] sm:$0xf0]  ;;  %v5566_v34 = vld [vmem:[%s7988_s19] sm:$0xf] }
 0x1b4   : >> { %806 = vst [vmem:[#allocation5 + $0x160] sm:$0xff] %v795_v7  ;;  %v5919_v36 = vor.u32 %v6984_v17, %v5918_v12  ;;  %v6896_v7 = vld [vmem:[%s7988_s19 + $0xc] sm:$0xf0] }
 0x1b6   : >> { %2062 = vmatpush.bf16.msra.mxu2 %v5919_v36  ;;  %v7976_v38 = vpop.permute.xlu1 %1025  ;;  %v5774_v36 = vld [vmem:[#allocation5 + $0x140] sm:$0xf] }
 0x1b7   : >> { %v7974_v37 = vpop.permute.xlu2 %996  ;;  %v9700_v43 = vrot.slane %v7976_v38, 4  ;;  %v1024_v46 = vpop.permute.xlu0 %1023 }
 0x1b8   : >> { %v1035_v47 = vrot.slane %v1024_v46, 4 }
 0x1ba   : >> { %v1041_v48 = vsel %vm361_vm0, %v1035_v47, %v9700_v43  ;;  %v6952_v42 = vld [vmem:[#allocation5 + $0x16c] sm:$0xf0]  ;;  %v5792_v55 = vld [vmem:[#allocation5 + $0x170] sm:$0xf0]  ;;  %v7997_v47 = vor.u32 %v6896_v7, %v5566_v34  ;;  %v6942_v34 = vld [vmem:[#allocation5 + $0x124] sm:$0xf] }
 0x1bb   : >> { %v1043_v58 = vsel %vm1042_vm6, %v1024_v46, %v1041_v48  ;;  %v5790_v2 = vld [vmem:[#allocation5 + $0x160] sm:$0xf]  ;;  %v6950_v59 = vld [vmem:[#allocation5 + $0x164] sm:$0xf] }
 0x1bc   : >> { %1054 = vst [vmem:[#allocation5 + $0x240] sm:$0xff] %v1043_v58  ;;  %v5791_v1 = vor.u32 %v6952_v42, %v5790_v2  ;;  %v5795_v3 = vor.u32 %v6950_v59, %v5792_v55  ;;  %v6946_v46 = vld [vmem:[#allocation5 + $0x144] sm:$0xf]  ;;  %v5775_v42 = vor.u32 %v6948_v8, %v5774_v36  ;;  %v6944_v2 = vld [vmem:[#allocation5 + $0x12c] sm:$0xf0]  ;;  %2018 = vmatmul.bf16.vlgmr.msra.gmra.mxu0 %v7997_v47 }
 0x1bd   : >> { %v5779_v55 = vor.u32 %v6946_v46, %v5776_v18  ;;  %v5760_v59 = vld [vmem:[#allocation5 + $0x130] sm:$0xf0]  ;;  %v5758_v18 = vld [vmem:[#allocation5 + $0x120] sm:$0xf]  ;;  %v6940_v36 = vld [vmem:[#allocation5 + $0x10c] sm:$0xf0] }
 0x1be   : >> { %2038 = vmatpush.bf16.msra.mxu1 %v5791_v1  ;;  %2134 = vmatpush.bf16.msrb.mxu0 %v5795_v3  ;;  %v1256_v33 = vpop.permute.xlu1 %1255  ;;  %v5759_v7 = vor.u32 %v6944_v2, %v5758_v18  ;;  %v5744_v46 = vld [vmem:[#allocation5 + $0x110] sm:$0xf0] }
 0x1bf   : >> { %v7991_v35 = vpop.permute.xlu2 %959  ;;  %v1267_v12 = vrot.slane %v1256_v33, 4  ;;  %v7995_v17 = vpop.permute.xlu0 %1031 }
 0x1c0   : >> { %v1039_v48 = vrot.slane %v7995_v17, 4 }
 0x1c1   : >> { %v1273_v58 = vsel %vm361_vm0, %v1267_v12, %v1268_v27  ;;  %v5763_v12 = vor.u32 %v6942_v34, %v5760_v59  ;;  %v6998_v59 = vld [vmem:[#allocation5 + $0x2e4] sm:$0xf] }
 0x1c2   : >> { %v1275_v1 = vsel %vm1274_vm10, %v1256_v33, %v1273_v58  ;;  %v1046_v3 = vsel %vm361_vm0, %v1038_v19, %v1039_v48  ;;  %2039 = vmatpush.bf16.msra.mxu1 %v5775_v42  ;;  %2135 = vmatpush.bf16.msrb.mxu0 %v5779_v55  ;;  %v5984_v19 = vld [vmem:[#allocation5 + $0x2f0] sm:$0xf0]  ;;  %v6894_v42 = vld [vmem:[%s7988_s19 + $0x4] sm:$0xf] }
 0x1c3   : >> { %1286 = vst [vmem:[#allocation5 + $0x300] sm:$0xff] %v1275_v1  ;;  %v1047_v8 = vsel %vm1042_vm6, %v7923_v23, %v1046_v3  ;;  %v5568_v55 = vld [vmem:[%s7988_s19 + $0x10] sm:$0xf0]  ;;  %v5742_v23 = vld [vmem:[#allocation5 + $0x100] sm:$0xf]  ;;  %v5987_v34 = vor.u32 %v6998_v59, %v5984_v19 }
 0x1c4   : >> { %1056 = vst [vmem:[#allocation5 + $0x250] sm:$0xff] %v1047_v8  ;;  %v6938_v3 = vld [vmem:[#allocation5 + $0x104] sm:$0xf]  ;;  %v5743_v8 = vor.u32 %v6940_v36, %v5742_v23  ;;  %v5968_v36 = vld [vmem:[#allocation5 + $0x2d0] sm:$0xf0] }
 0x1c5   : >> { %v5747_v2 = vor.u32 %v6938_v3, %v5744_v46 }
 0x1c6   : >> { %2040 = vmatpush.bf16.msra.mxu1 %v5759_v7  ;;  %2136 = vmatpush.bf16.msrb.mxu0 %v5763_v12  ;;  %v8010_v58 = vpop.permute.xlu1 %1263  ;;  %v8018_v7 = vor.u32 %v6894_v42, %v5568_v55  ;;  %v5971_v42 = vor.u32 %v6994_v4, %v5968_v36  ;;  %v5952_v55 = vld [vmem:[#allocation5 + $0x2b0] sm:$0xf0] }
 0x1c7   : >> { %v929_v33 = vpop.permute.xlu2 %928  ;;  %v9703_v1 = vrot.slane %v8010_v58, 4  ;;  %v1262_v43 = vpop.permute.xlu0 %1261 }
 0x1c8   : >> { %v935_v54 = vrot.slane %v929_v33, 4  ;;  %v1270_v16 = vrot.slane %v1262_v43, 4 }
 0x1ca   : >> { %v943_v18 = vsel %vm361_vm0, %v934_v32, %v935_v54  ;;  %v1278_v33 = vsel %vm361_vm0, %v1270_v16, %v9703_v1  ;;  %2041 = vmatpush.bf16.msra.mxu1 %v5743_v8  ;;  %2137 = vmatpush.bf16.msrb.mxu0 %v5747_v2  ;;  %v5902_v32 = vld [vmem:[#allocation5 + $0x240] sm:$0xf]  ;;  %v1000_v16 = vrot.slane %v7960_v13, 4  ;;  %v6900_v2 = vld [vmem:[%s7988_s19 + $0x2c] sm:$0xf0] }
 0x1cb   : >> { %v944_v12 = vsel %vm937_vm13, %v7793_v20, %v943_v18  ;;  %v1279_v46 = vsel %vm1274_vm10, %v1262_v43, %v1278_v33  ;;  %v6980_v54 = vld [vmem:[#allocation5 + $0x24c] sm:$0xf0]  ;;  %v1004_v20 = vrot.slane %v7974_v37, 4  ;;  %v5582_v8 = vld [vmem:[%s7988_s19 + $0x20] sm:$0xf] }
 0x1cc   : >> { %952 = vst [vmem:[#allocation5 + $0x1f8] sm:$0xff] %v944_v12  ;;  %v5903_v19 = vor.u32 %v6980_v54, %v5902_v32  ;;  %v6990_v12 = vld [vmem:[#allocation5 + $0x2a4] sm:$0xf]  ;;  %v5728_v32 = vld [vmem:[#allocation5 + $0xf0] sm:$0xf0] }
 0x1cd   : >> { %1288 = vst [vmem:[#allocation5 + $0x310] sm:$0xff] %v1279_v46  ;;  %2042 = vmatmul.bf16.vlgmr.msra.gmra.mxu1 %v8018_v7  ;;  %v5955_v46 = vor.u32 %v6990_v12, %v5952_v55  ;;  %v5998_v55 = vld [vmem:[#allocation5 + $0x300] sm:$0xf] }
 0x1ce   : >> { %2154 = vmatpush.bf16.msrb.mxu1 %v5987_v34  ;;  %2063 = vmatpush.bf16.msra.mxu2 %v5903_v19  ;;  %v995_v3 = vpop.permute.xlu1 %994  ;;  %v8033_v34 = vor.u32 %v6900_v2, %v5582_v8  ;;  %v6895_v8 = vld [vmem:[%s7988_s19 + $0xc] sm:$0xf] }
 0x1cf   : >> { %v866_v23 = vpop.permute.xlu2 %865  ;;  %v1003_v43 = vrot.slane %v995_v3, 4  ;;  %v8031_v18 = vpop.permute.xlu0 %990 }
 0x1d0   : >> { %v875_v59 = vrot.slane %v866_v23, 4  ;;  %v9707_v4 = vrot.slane %v8031_v18, 4  ;;  %2023 = vmatmul.bf16.gmra.mxu0 %v8033_v34  ;;  %v5936_v23 = vld [vmem:[#allocation5 + $0x290] sm:$0xf0] }
 0x1d1   : >> { %v1011_v36 = vsel %vm361_vm0, %v1003_v43, %v1004_v20  ;;  %v6986_v43 = vld [vmem:[#allocation5 + $0x284] sm:$0xf] }
 0x1d2   : >> { %2155 = vmatpush.bf16.msrb.mxu1 %v5971_v42  ;;  %v882_v33 = vsel %vm361_vm0, %v874_v52, %v875_v59  ;;  %v1012_v19 = vsel %vm1007_vm11, %v995_v3, %v1011_v36  ;;  %v1006_v42 = vsel %vm361_vm0, %v1000_v16, %v9707_v4  ;;  %v5576_v52 = vld [vmem:[%s7988_s19 + $0x18] sm:$0xf0]  ;;  %v6934_v3 = vld [vmem:[#allocation5 + $0xe4] sm:$0xf]  ;;  %v5939_v16 = vor.u32 %v6986_v43, %v5936_v23  ;;  %v5712_v36 = vld [vmem:[#allocation5 + $0xd0] sm:$0xf0] }
 0x1d3   : >> { %v883_v54 = vsel %vm880_vm15, %v7834_v51, %v882_v33  ;;  %v1008_v2 = vsel %vm1007_vm11, %v7960_v13, %v1006_v42  ;;  %1021 = vst [vmem:[#allocation5 + $0x230] sm:$0xff] %v1012_v19  ;;  %v5731_v12 = vor.u32 %v6934_v3, %v5728_v32  ;;  %v8053_v33 = vor.u32 %v6895_v8, %v5576_v52  ;;  %v5584_v42 = vld [vmem:[%s7988_s19 + $0x30] sm:$0xf0]  ;;  %v6930_v23 = vld [vmem:[#allocation5 + $0xc4] sm:$0xf] }
 0x1d4   : >> { %893 = vst [vmem:[#allocation5 + $0x1c8] sm:$0xff] %v883_v54  ;;  %v7004_v59 = vld [vmem:[#allocation5 + $0x30c] sm:$0xf0]  ;;  %v5920_v54 = vld [vmem:[#allocation5 + $0x270] sm:$0xf0] }
 0x1d5   : >> { %v5999_v51 = vor.u32 %v7004_v59, %v5998_v55  ;;  %1019 = vst [vmem:[#allocation5 + $0x220] sm:$0xff] %v1008_v2  ;;  %v6982_v8 = vld [vmem:[#allocation5 + $0x264] sm:$0xf]  ;;  %v5715_v59 = vor.u32 %v6930_v23, %v5712_v36  ;;  %v5904_v36 = vld [vmem:[#allocation5 + $0x250] sm:$0xf0]  ;;  %v1408_v23 = vld [vmem:[%s8076_s24 + $0x8] sm:$0xff] }
 0x1d6   : >> { %2156 = vmatpush.bf16.msrb.mxu1 %v5955_v46  ;;  %v8055_v13 = vpop.permute.xlu1 %955  ;;  %v6898_v46 = vld [vmem:[%s7988_s19 + $0x24] sm:$0xf] }
 0x1d7   : >> { %2089 = vmatpush.bf16.msra.mxu3 %v5999_v51  ;;  %v1196_v1 = vpop.permute.xlu2 %1195  ;;  %v9706_v55 = vrot.slane %v8055_v13, 4  ;;  %v954_v2 = vpop.permute.xlu0 %953  ;;  %v5923_v51 = vor.u32 %v6982_v8, %v5920_v54  ;;  %v8066_v3 = vor.u32 %v6898_v46, %v5584_v42  ;;  %v6926_v54 = vld [vmem:[#allocation5 + $0xa4] sm:$0xf]  ;;  %v968_v8 = vrot.slane %v7991_v35, 4 }
 0x1d8   : >> { %v1202_v19 = vrot.slane %v1196_v1, 4  ;;  %v965_v32 = vrot.slane %v954_v2, 4 }
 0x1da   : >> { %2157 = vmatpush.bf16.msrb.mxu1 %v5939_v16  ;;  %v1210_v52 = vsel %vm361_vm0, %v1201_v28, %v1202_v19  ;;  %6012 = vmatmul.msk.bf16.vlgmr.msra.gmra.mxu3 %vm2000_vm9, %v8053_v33  ;;  %v971_v43 = vsel %vm361_vm0, %v965_v32, %v9706_v55  ;;  %v6976_v16 = vld [vmem:[#allocation5 + $0x22c] sm:$0xf0]  ;;  %v6978_v19 = vld [vmem:[#allocation5 + $0x244] sm:$0xf]  ;;  %v5680_v32 = vld [vmem:[#allocation5 + $0x90] sm:$0xf0] }
 0x1db   : >> { %2106 = vmatpush.bf16.msrb.mxu3 %v5731_v12  ;;  %v1211_v1 = vsel %vm1204_vm14, %v7754_v61, %v1210_v52  ;;  %v5696_v12 = vld [vmem:[#allocation5 + $0xb0] sm:$0xf0]  ;;  %v973_v28 = vsel %vm972_vm8, %v954_v2, %v971_v43  ;;  %v5598_v43 = vld [vmem:[%s7988_s19 + $0x40] sm:$0xf] }
 0x1dc   : >> { %1219 = vst [vmem:[#allocation5 + $0x2d8] sm:$0xff] %v1211_v1  ;;  %v5886_v61 = vld [vmem:[#allocation5 + $0x220] sm:$0xf]  ;;  %v5699_v42 = vor.u32 %v6926_v54, %v5696_v12  ;;  %v5888_v54 = vld [vmem:[#allocation5 + $0x230] sm:$0xf0] }
 0x1dd   : >> { %984 = vst [vmem:[#allocation5 + $0x200] sm:$0xff] %v973_v28  ;;  %v5887_v46 = vor.u32 %v6976_v16, %v5886_v61  ;;  %2047 = vmatmul.bf16.gmra.mxu1 %v8066_v3  ;;  %v1407_v1 = vld [vmem:[%s8076_s24] sm:$0xff]  ;;  %v6904_v28 = vld [vmem:[%s7988_s19 + $0x4c] sm:$0xf0] }
 0x1de   : >> { %2158 = vmatpush.bf16.msrb.mxu1 %v5923_v51  ;;  %v923_v52 = vpop.permute.xlu1 %922  ;;  %v7328_v51 = vmov 0   ;;  %v6974_v61 = vld [vmem:[#allocation5 + $0x224] sm:$0xf]  ;;  %v8087_v4 = vor.u32 %v6904_v28, %v5598_v43 }
 0x1df   : >> { %2107 = vmatpush.bf16.msrb.mxu3 %v5715_v59  ;;  %v1155_v2 = vpop.permute.xlu2 %1154  ;;  %v5907_v59 = vor.u32 %v6978_v19, %v5904_v36  ;;  %7267 = vset.pattern.permute.xlu1 %v7328_v51  ;;  %v932_v16 = vrot.slane %v923_v52, 4  ;;  %v8085_v12 = vpop.permute.xlu0 %961  ;;  %v6922_v19 = vld [vmem:[#allocation5 + $0x84] sm:$0xf]  ;;  %v5891_v43 = vor.u32 %v6974_v61, %v5888_v54  ;;  %v5600_v54 = vld [vmem:[%s7988_s19 + $0x50] sm:$0xf0] }
 0x1e0   : >> { %7266 = vset.pattern.permute.xlu0 %v7328_v51  ;;  %2064 = vmatpush.bf16.msra.mxu2 %v5887_v46  ;;  %v1164_v55 = vrot.slane %v1155_v2, 4  ;;  %v969_v36 = vrot.slane %v8085_v12, 4  ;;  %v5683_v2 = vor.u32 %v6922_v19, %v5680_v32  ;;  %v6902_v61 = vld [vmem:[%s7988_s19 + $0x44] sm:$0xf] }
 0x1e1   : >> { %1420 = vperm.xlu1 %7267, %v1408_v23   ;;  %1415 = vperm.xlu0 %7266, %v1407_v1  }
 0x1e2   : >> { %2159 = vmatpush.bf16.msrb.mxu1 %v5907_v59  ;;  %v1171_v46 = vsel %vm361_vm0, %v1163_v60, %v1164_v55  ;;  %2028 = vmatmul.bf16.gmra.mxu0 %v8087_v4  ;;  %v976_v23 = vsel %vm361_vm0, %v968_v8, %v969_v36  ;;  %v5664_v60 = vld [vmem:[#allocation5 + $0x70] sm:$0xf0]  ;;  %v6899_v55 = vld [vmem:[%s7988_s19 + $0x2c] sm:$0xf] }
 0x1e3   : >> { %2108 = vmatpush.bf16.msrb.mxu3 %v5699_v42  ;;  %v939_v42 = vsel %vm361_vm0, %v931_v5, %v932_v16  ;;  %v1172_v52 = vsel %vm1169_vm1, %v7791_v26, %v1171_v46  ;;  %v5592_v5 = vld [vmem:[%s7988_s19 + $0x38] sm:$0xf0]  ;;  %7268 = vset.pattern.permute.xlu2 %v7328_v51  ;;  %v977_v32 = vsel %vm972_vm8, %v7991_v35, %v976_v23  ;;  %v6918_v26 = vld [vmem:[#allocation5 + $0x64] sm:$0xf]  ;;  %v5648_v16 = vld [vmem:[#allocation5 + $0x50] sm:$0xf0] }
 0x1e4   : >> { %v940_v59 = vsel %vm937_vm13, %v7729_v41, %v939_v42  ;;  %1182 = vst [vmem:[#allocation5 + $0x2a8] sm:$0xff] %v1172_v52  ;;  %v5667_v41 = vor.u32 %v6918_v26, %v5664_v60  ;;  %v8108_v1 = vor.u32 %v6899_v55, %v5592_v5  ;;  %v6914_v42 = vld [vmem:[#allocation5 + $0x44] sm:$0xf]  ;;  %v5632_v23 = vld [vmem:[#allocation5 + $0x30] sm:$0xf0]  ;;  %v8122_v55 = vor.u32 %v6902_v61, %v5600_v54 }
 0x1e5   : >> { %950 = vst [vmem:[#allocation5 + $0x1e8] sm:$0xff] %v940_v59  ;;  %v5651_v59 = vor.u32 %v6914_v42, %v5648_v16  ;;  %v6897_v60 = vld [vmem:[%s7988_s19 + $0x14] sm:$0xf0] }
 0x1e6   : >> { %2160 = vmatpush.bf16.msrb.mxu1 %v5891_v43  ;;  %986 = vst [vmem:[#allocation5 + $0x210] sm:$0xff] %v977_v32  ;;  %v1231_v28 = vpop.permute.xlu1 %1230  ;;  %v5574_v43 = vld [vmem:[%s7988_s19 + $0x8] sm:$0xf]  ;;  %v6969_v26 = vld [vmem:[#allocation5 + $0x1f4] sm:$0xf0] }
 0x1e7   : >> { %2109 = vmatpush.bf16.msrb.mxu3 %v5683_v2  ;;  %v1126_v8 = vpop.permute.xlu2 %1125  ;;  %v1237_v19 = vrot.slane %v1231_v28, 4  ;;  %v1225_v46 = vpop.permute.xlu0 %1224  ;;  %v6970_v28 = vld [vmem:[#allocation5 + $0x204] sm:$0xf] }
 0x1e8   : >> { %v1132_v51 = vrot.slane %v1126_v8, 4  ;;  %v1234_v35 = vrot.slane %v1225_v46, 4  ;;  %v1410_v46 = vld [vmem:[%s8076_s24 + $0x18] sm:$0xff] }
 0x1e9   : >> { %v1245_v52 = vsel %vm361_vm0, %v1236_v11, %v1237_v19  ;;  %v5870_v11 = vld [vmem:[#allocation5 + $0x200] sm:$0xf]  ;;  %v6910_v19 = vld [vmem:[#allocation5 + $0x24] sm:$0xf]  ;;  %1430 = vperm.xlu1 %7267, %v1410_v46  }
 0x1ea   : >> { %v1140_v2 = vsel %vm361_vm0, %v1131_v25, %v1132_v51  ;;  %6013 = vmatmul.msk.bf16.gmra.mxu3 %vm2000_vm9, %v8108_v1  ;;  %v1246_v32 = vsel %vm1239_vm12, %v7773_v9, %v1245_v52  ;;  %v1241_v25 = vsel %vm361_vm0, %v1233_v63, %v1234_v35  ;;  %v7002_v63 = vld [vmem:[#allocation5 + $0x304] sm:$0xf]  ;;  %v8135_v52 = vor.u32 %v6897_v60, %v5574_v43 }
 0x1eb   : >> { %2110 = vmatpush.bf16.msrb.mxu3 %v5667_v41  ;;  %v1141_v5 = vsel %vm1134_vm3, %v7925_v22, %v1140_v2  ;;  %v6000_v41 = vld [vmem:[#allocation5 + $0x310] sm:$0xf0]  ;;  %v1242_v8 = vsel %vm1239_vm12, %v7756_v62, %v1241_v25  ;;  %1254 = vst [vmem:[#allocation5 + $0x2f8] sm:$0xff] %v1246_v32  ;;  %v5635_v2 = vor.u32 %v6910_v19, %v5632_v23  ;;  %v6906_v25 = vld [vmem:[#allocation5 + $0x4] sm:$0xf] }
 0x1ec   : >> { %1149 = vst [vmem:[#allocation5 + $0x298] sm:$0xff] %v1141_v5  ;;  %v5862_v16 = vld [vmem:[#allocation5 + $0x1e8] sm:$0xf]  ;;  %v6003_v62 = vor.u32 %v7002_v63, %v6000_v41 }
 0x1ed   : >> { %v6972_v22 = vld [vmem:[#allocation5 + $0x20c] sm:$0xf0]  ;;  %v5872_v61 = vld [vmem:[#allocation5 + $0x210] sm:$0xf0]  ;;  %v5863_v54 = vor.u32 %v6969_v26, %v5862_v16  ;;  %1252 = vst [vmem:[#allocation5 + $0x2e8] sm:$0xff] %v1242_v8  ;;  %2052 = vmatmul.bf16.gmra.mxu1 %v8122_v55 }
 0x1ee   : >> { %v5871_v9 = vor.u32 %v6972_v22, %v5870_v11  ;;  %v5875_v51 = vor.u32 %v6970_v28, %v5872_v61  ;;  %v1190_v42 = vpop.permute.xlu1 %1189  ;;  %v5616_v11 = vld [vmem:[#allocation5 + $0x10] sm:$0xf0]  ;;  %v6937_v8 = vld [vmem:[#allocation5 + $0xf4] sm:$0xf0]  ;;  %v6903_v22 = vld [vmem:[%s7988_s19 + $0x4c] sm:$0xf] }
 0x1ef   : >> { %2111 = vmatpush.bf16.msrb.mxu3 %v5651_v59  ;;  %2226 = vmatpush.bf16.msra.mxu0 %v5863_v54  ;;  %v1063_v35 = vpop.permute.xlu2 %1062  ;;  %v1199_v5 = vrot.slane %v1190_v42, 4  ;;  %v872_v32 = vpop.permute.xlu0 %871  ;;  %v5619_v16 = vor.u32 %v6906_v25, %v5616_v11  ;;  %v5718_v63 = vld [vmem:[#allocation5 + $0xc8] sm:$0xf] }
 0x1f0   : >> { %2065 = vmatpush.bf16.msra.mxu2 %v5871_v9  ;;  %2161 = vmatpush.bf16.msrb.mxu1 %v5875_v51  ;;  %v1072_v59 = vrot.slane %v1063_v35, 4  ;;  %v878_v26 = vrot.slane %v872_v32, 4  ;;  %v5608_v9 = vld [vmem:[%s7988_s19 + $0x58] sm:$0xf0] }
 0x1f1   : >> { %v1206_v43 = vsel %vm361_vm0, %v1198_v15, %v1199_v5  ;;  %v8156_v46 = vor.u32 %v6903_v22, %v5608_v9 }
 0x1f2   : >> { %v1079_v23 = vsel %vm361_vm0, %v1071_v10, %v1072_v59  ;;  %2138 = vmatmul.bf16.vlgmr.msrb.gmra.mxu0 %v8018_v7  ;;  %v1207_v41 = vsel %vm1204_vm14, %v7814_v40, %v1206_v43  ;;  %v886_v28 = vsel %vm361_vm0, %v877_v21, %v878_v26  ;;  %v5734_v10 = vld [vmem:[#allocation5 + $0xe8] sm:$0xf]  ;;  %v7001_v54 = vld [vmem:[#allocation5 + $0x2f4] sm:$0xf0] }
 0x1f3   : >> { %2112 = vmatpush.bf16.msrb.mxu3 %v5635_v2  ;;  %v1080_v60 = vsel %vm1077_vm4, %v7869_v31, %v1079_v23  ;;  %2066 = vmatmul.bf16.vlgmr.msra.gmra.mxu2 %v8135_v52  ;;  %v887_v15 = vsel %vm880_vm15, %v7851_v6, %v886_v28  ;;  %v5735_v61 = vor.u32 %v6937_v8, %v5734_v10  ;;  %v6933_v40 = vld [vmem:[#allocation5 + $0xd4] sm:$0xf0]  ;;  %v5702_v8 = vld [vmem:[#allocation5 + $0xa8] sm:$0xf] }
 0x1f4   : >> { %2185 = vmatpush.bf16.msrb.mxu2 %v6003_v62  ;;  %1090 = vst [vmem:[#allocation5 + $0x268] sm:$0xff] %v1080_v60  ;;  %v5990_v31 = vld [vmem:[#allocation5 + $0x2e8] sm:$0xf]  ;;  %v5719_v2 = vor.u32 %v6933_v40, %v5718_v63  ;;  %v6929_v59 = vld [vmem:[#allocation5 + $0xb4] sm:$0xf0] }
 0x1f5   : >> { %1217 = vst [vmem:[#allocation5 + $0x2c8] sm:$0xff] %v1207_v41  ;;  %v5991_v51 = vor.u32 %v7001_v54, %v5990_v31  ;;  %v5590_v23 = vld [vmem:[%s7988_s19 + $0x28] sm:$0xf]  ;;  %v6901_v43 = vld [vmem:[%s7988_s19 + $0x34] sm:$0xf0]  ;;  %v5703_v60 = vor.u32 %v6929_v59, %v5702_v8 }
 0x1f6   : >> { %895 = vst [vmem:[#allocation5 + $0x1d8] sm:$0xff] %v887_v15  ;;  %v837_v19 = vpop.permute.xlu1 %836  ;;  %v6997_v41 = vld [vmem:[#allocation5 + $0x2d4] sm:$0xf0]  ;;  %v5686_v15 = vld [vmem:[#allocation5 + $0x88] sm:$0xf] }
 0x1f7   : >> { %2113 = vmatpush.bf16.msrb.mxu3 %v5619_v16  ;;  %v1034_v21 = vpop.permute.xlu2 %1033  ;;  %2250 = vmatpush.bf16.msra.mxu1 %v5991_v51  ;;  %v843_v6 = vrot.slane %v837_v19, 4  ;;  %v831_v42 = vpop.permute.xlu0 %830  ;;  %v1412_v40 = vld [vmem:[%s8076_s24 + $0x28] sm:$0xff] }
 0x1f8   : >> { %v1040_v35 = vrot.slane %v1034_v21, 4  ;;  %v840_v62 = vrot.slane %v831_v42, 4  ;;  %v6921_v21 = vld [vmem:[#allocation5 + $0x74] sm:$0xf0]  ;;  %1440 = vperm.xlu0 %7266, %v1412_v40   ;;  %v5736_v40 = vld [vmem:[#allocation5 + $0xf8] sm:$0xf0] }
 0x1f9   : >> { %v851_v32 = vsel %vm361_vm0, %v842_v39, %v843_v6 }
 0x1fa   : >> { %v1048_v5 = vsel %vm361_vm0, %v1039_v48, %v1040_v35  ;;  %v852_v11 = vsel %vm845_vm2, %v7832_v50, %v851_v32  ;;  %v847_v26 = vsel %vm361_vm0, %v839_v45, %v840_v62  ;;  %6014 = vmatmul.msk.bf16.gmra.mxu3 %vm2000_vm9, %v8156_v46  ;;  %v6925_v48 = vld [vmem:[#allocation5 + $0x94] sm:$0xf0]  ;;  %v5846_v50 = vld [vmem:[#allocation5 + $0x1c8] sm:$0xf] }
 0x1fb   : >> { %2202 = vmatpush.bf16.msra.mxu3 %v5735_v61  ;;  %v1049_v25 = vsel %vm1042_vm6, %v7995_v17, %v1048_v5  ;;  %v848_v39 = vsel %vm845_vm2, %v7888_v44, %v847_v26  ;;  %860 = vst [vmem:[#allocation5 + $0x1b8] sm:$0xff] %v852_v11  ;;  %v8178_v61 = vor.u32 %v6901_v43, %v5590_v23  ;;  %v5814_v5 = vld [vmem:[#allocation5 + $0x188] sm:$0xf]  ;;  %v6957_v32 = vld [vmem:[#allocation5 + $0x194] sm:$0xf0] }
 0x1fc   : >> { %1057 = vst [vmem:[#allocation5 + $0x258] sm:$0xff] %v1049_v25  ;;  %v5974_v17 = vld [vmem:[#allocation5 + $0x2c8] sm:$0xf]  ;;  %v5687_v31 = vor.u32 %v6925_v48, %v5686_v15  ;;  %v5815_v43 = vor.u32 %v6957_v32, %v5814_v5 }
 0x1fd   : >> { %v6965_v28 = vld [vmem:[#allocation5 + $0x1d4] sm:$0xf0]  ;;  %v5975_v16 = vor.u32 %v6997_v41, %v5974_v17  ;;  %858 = vst [vmem:[#allocation5 + $0x1a8] sm:$0xff] %v848_v39  ;;  %2162 = vmatmul.bf16.vlgmr.msrb.gmra.mxu1 %v8135_v52  ;;  %v5654_v11 = vld [vmem:[#allocation5 + $0x48] sm:$0xf]  ;;  %v9739_v41 = vrot.slane %v7906_v56, 4 }
 0x1fe   : >> { %v5847_v45 = vor.u32 %v6965_v28, %v5846_v50  ;;  %v1120_v22 = vpop.permute.xlu1 %1119  ;;  %v5622_v15 = vld [vmem:[#allocation5 + $0x8] sm:$0xf] }
 0x1ff   : >> { %2203 = vmatpush.bf16.msra.mxu3 %v5719_v2  ;;  %2251 = vmatpush.bf16.msra.mxu1 %v5975_v16  ;;  %v1260_v10 = vpop.permute.xlu2 %1259  ;;  %v1129_v54 = vrot.slane %v1120_v22, 4  ;;  %v1161_v9 = vpop.permute.xlu0 %1160  ;;  %v6917_v2 = vld [vmem:[#allocation5 + $0x54] sm:$0xf0]  ;;  %v5638_v22 = vld [vmem:[#allocation5 + $0x28] sm:$0xf] }
 0x200   : >> { %2227 = vmatpush.bf16.msra.mxu0 %v5847_v45  ;;  %v1269_v44 = vrot.slane %v1260_v10, 4  ;;  %v1167_v51 = vrot.slane %v1161_v9, 4  ;;  %v5655_v23 = vor.u32 %v6917_v2, %v5654_v11  ;;  %v9740_v45 = vrot.slane %v7962_v30, 4  ;;  %v6905_v9 = vld [vmem:[%s7988_s19 + $0x54] sm:$0xf0] }
 0x201   : >> { %v1136_v63 = vsel %vm361_vm0, %v1128_v29, %v1129_v54  ;;  %v5606_v54 = vld [vmem:[%s7988_s19 + $0x48] sm:$0xf]  ;;  %v6931_v11 = vld [vmem:[#allocation5 + $0xcc] sm:$0xf] }
 0x202   : >> { %v1276_v19 = vsel %vm361_vm0, %v1268_v27, %v1269_v44  ;;  %2143 = vmatmul.bf16.gmra.mxu0 %v8066_v3  ;;  %v1137_v6 = vsel %vm1134_vm3, %v7908_v57, %v1136_v63  ;;  %v1175_v42 = vsel %vm361_vm0, %v1166_v24, %v1167_v51  ;;  %v5670_v27 = vld [vmem:[#allocation5 + $0x68] sm:$0xf]  ;;  %v6961_v59 = vld [vmem:[#allocation5 + $0x1b4] sm:$0xf0] }
 0x203   : >> { %2204 = vmatpush.bf16.msra.mxu3 %v5703_v60  ;;  %v1277_v35 = vsel %vm1274_vm10, %v7943_v49, %v1276_v19  ;;  %2071 = vmatmul.bf16.gmra.mxu2 %v8178_v61  ;;  %v1176_v29 = vsel %vm1169_vm1, %v7871_v14, %v1175_v42  ;;  %v5671_v62 = vor.u32 %v6921_v21, %v5670_v27  ;;  %v1409_v14 = vld [vmem:[%s8076_s24 + $0x10] sm:$0xff]  ;;  %v6913_v60 = vld [vmem:[#allocation5 + $0x34] sm:$0xf0]  ;;  %v6935_v42 = vld [vmem:[#allocation5 + $0xec] sm:$0xf] }
 0x204   : >> { %1287 = vst [vmem:[#allocation5 + $0x308] sm:$0xff] %v1277_v35  ;;  %v5830_v49 = vld [vmem:[#allocation5 + $0x1a8] sm:$0xf]  ;;  %1425 = vperm.xlu2 %7268, %v1409_v14   ;;  %v5639_v44 = vor.u32 %v6913_v60, %v5638_v22  ;;  %v6909_v21 = vld [vmem:[#allocation5 + $0x14] sm:$0xf0]  ;;  %v8218_v19 = vor.u32 %v6905_v9, %v5606_v54  ;;  %v5739_v2 = vor.u32 %v6935_v42, %v5736_v40  ;;  %v9743_v22 = vrot.slane %v8031_v18, 4 }
 0x205   : >> { %1147 = vst [vmem:[#allocation5 + $0x288] sm:$0xff] %v1137_v6  ;;  %v5831_v57 = vor.u32 %v6961_v59, %v5830_v49  ;;  %v5623_v6 = vor.u32 %v6909_v21, %v5622_v15  ;;  %v5720_v49 = vld [vmem:[#allocation5 + $0xd8] sm:$0xf0]  ;;  %v6967_v42 = vld [vmem:[#allocation5 + $0x1ec] sm:$0xf] }
 0x206   : >> { %1184 = vst [vmem:[#allocation5 + $0x2b8] sm:$0xff] %v1176_v29  ;;  %v786_v24 = vpop.permute.xlu1 %785  ;;  %v6989_v29 = vld [vmem:[#allocation5 + $0x294] sm:$0xf0]  ;;  %v5704_v14 = vld [vmem:[#allocation5 + $0xb8] sm:$0xf0] }
 0x207   : >> { %2205 = vmatpush.bf16.msra.mxu3 %v5687_v31  ;;  %v964_v25 = vpop.permute.xlu2 %963  ;;  %2228 = vmatpush.bf16.msra.mxu0 %v5831_v57  ;;  %v792_v8 = vrot.slane %v786_v24, 4  ;;  %v780_v48 = vpop.permute.xlu0 %779  ;;  %v9742_v57 = vrot.slane %v7945_v53, 4 }
 0x208   : >> { %v970_v26 = vrot.slane %v964_v25, 4  ;;  %v789_v39 = vrot.slane %v780_v48, 4 }
 0x209   : >> { %v800_v50 = vsel %vm361_vm0, %v9739_v41, %v792_v8  ;;  %v5723_v8 = vor.u32 %v6931_v11, %v5720_v49 }
 0x20a   : >> { %v978_v17 = vsel %vm361_vm0, %v969_v36, %v970_v26  ;;  %v801_v16 = vsel %vm794_vm5, %v7906_v56, %v800_v50  ;;  %v796_v10 = vsel %vm361_vm0, %v9740_v45, %v789_v39  ;;  %2114 = vmatmul.bf16.vlgmr.msrb.gmra.mxu3 %v7997_v47  ;;  %v6949_v39 = vld [vmem:[#allocation5 + $0x154] sm:$0xf0]  ;;  %v6927_v50 = vld [vmem:[#allocation5 + $0xac] sm:$0xf] }
 0x20b   : >> { %2206 = vmatpush.bf16.msra.mxu3 %v5671_v62  ;;  %v979_v28 = vsel %vm972_vm8, %v8085_v12, %v978_v17  ;;  %v797_v36 = vsel %vm794_vm5, %v7962_v30, %v796_v10  ;;  %2229 = vmatpush.bf16.msra.mxu0 %v5815_v43  ;;  %809 = vst [vmem:[#allocation5 + $0x178] sm:$0xff] %v801_v16  ;;  %v5958_v12 = vld [vmem:[#allocation5 + $0x2a8] sm:$0xf]  ;;  %v9741_v62 = vrot.slane %v7976_v38, 4 }
 0x20c   : >> { %987 = vst [vmem:[#allocation5 + $0x218] sm:$0xff] %v979_v28  ;;  %v5942_v63 = vld [vmem:[#allocation5 + $0x288] sm:$0xf]  ;;  %v5707_v16 = vor.u32 %v6927_v50, %v5704_v14  ;;  %v6959_v50 = vld [vmem:[#allocation5 + $0x1ac] sm:$0xf] }
 0x20d   : >> { %v6993_v31 = vld [vmem:[#allocation5 + $0x2b4] sm:$0xf0]  ;;  %807 = vst [vmem:[#allocation5 + $0x168] sm:$0xff] %v797_v36  ;;  %2167 = vmatmul.bf16.gmra.mxu1 %v8178_v61  ;;  %v5943_v5 = vor.u32 %v6989_v29, %v5942_v63  ;;  %v5782_v28 = vld [vmem:[#allocation5 + $0x148] sm:$0xf] }
 0x20e   : >> { %v5959_v56 = vor.u32 %v6993_v31, %v5958_v12  ;;  %v1028_v51 = vpop.permute.xlu1 %1027  ;;  %v5783_v45 = vor.u32 %v6949_v39, %v5782_v28  ;;  %v5688_v36 = vld [vmem:[#allocation5 + $0x98] sm:$0xf0]  ;;  %v6923_v12 = vld [vmem:[#allocation5 + $0x8c] sm:$0xf]  ;;  %v5766_v31 = vld [vmem:[#allocation5 + $0x128] sm:$0xf] }
 0x20f   : >> { %2207 = vmatpush.bf16.msra.mxu3 %v5655_v23  ;;  %v1037_v30 = vrot.slane %v1028_v51, 4  ;;  %v1069_v35 = vpop.permute.xlu0 %1068  ;;  %v1411_v23 = vld [vmem:[%s8076_s24 + $0x20] sm:$0xff]  ;;  %v5672_v63 = vld [vmem:[#allocation5 + $0x78] sm:$0xf0]  ;;  %v5750_v29 = vld [vmem:[#allocation5 + $0x108] sm:$0xf] }
 0x210   : >> { %2252 = vmatpush.bf16.msra.mxu1 %v5959_v56  ;;  %v1075_v27 = vrot.slane %v1069_v35, 4  ;;  %1435 = vperm.xlu2 %7268, %v1411_v23   ;;  %v5691_v56 = vor.u32 %v6923_v12, %v5688_v36  ;;  %v5832_v28 = vld [vmem:[#allocation5 + $0x1b8] sm:$0xf0] }
 0x211   : >> { %v1044_v59 = vsel %vm361_vm0, %v9741_v62, %v1037_v30  ;;  %v6941_v30 = vld [vmem:[#allocation5 + $0x114] sm:$0xf0]  ;;  %v5835_v36 = vor.u32 %v6959_v50, %v5832_v28  ;;  %v6939_v28 = vld [vmem:[#allocation5 + $0x10c] sm:$0xf] }
 0x212   : >> { %2148 = vmatmul.bf16.gmra.mxu0 %v8122_v55  ;;  %v1045_v32 = vsel %vm1042_vm6, %v7976_v38, %v1044_v59  ;;  %v1083_v25 = vsel %vm361_vm0, %v9742_v57, %v1075_v27  ;;  %v6953_v26 = vld [vmem:[#allocation5 + $0x174] sm:$0xf0]  ;;  %v9744_v59 = vrot.slane %v8055_v13, 4  ;;  %v5864_v57 = vld [vmem:[#allocation5 + $0x1f8] sm:$0xf0] }
 0x213   : >> { %2208 = vmatpush.bf16.msra.mxu3 %v5639_v44  ;;  %2076 = vmatmul.bf16.gmra.mxu2 %v8218_v19  ;;  %1055 = vst [vmem:[#allocation5 + $0x248] sm:$0xff] %v1045_v32  ;;  %v1084_v24 = vsel %vm1077_vm4, %v7945_v53, %v1083_v25  ;;  %v6945_v44 = vld [vmem:[#allocation5 + $0x134] sm:$0xf0]  ;;  %v5751_v32 = vor.u32 %v6941_v30, %v5750_v29 }
 0x214   : >> { %2253 = vmatpush.bf16.msra.mxu1 %v5943_v5  ;;  %1092 = vst [vmem:[#allocation5 + $0x278] sm:$0xff] %v1084_v24  ;;  %v5798_v48 = vld [vmem:[#allocation5 + $0x168] sm:$0xf]  ;;  %v5767_v40 = vor.u32 %v6945_v44, %v5766_v31  ;;  %v9745_v24 = vrot.slane %v8010_v58, 4  ;;  %v7003_v31 = vld [vmem:[#allocation5 + $0x30c] sm:$0xf] }
 0x215   : >> { %v5799_v43 = vor.u32 %v6953_v26, %v5798_v48  ;;  %v5867_v26 = vor.u32 %v6967_v42, %v5864_v57  ;;  %v5976_v42 = vld [vmem:[#allocation5 + $0x2d8] sm:$0xf0] }
 0x216   : >> { %v999_v38 = vpop.permute.xlu1 %998 }
 0x217   : >> { %2209 = vmatpush.bf16.msra.mxu3 %v5623_v6  ;;  %2230 = vmatpush.bf16.msra.mxu0 %v5799_v43  ;;  %v1005_v60 = vrot.slane %v999_v38, 4  ;;  %v993_v17 = vpop.permute.xlu0 %992  ;;  %v6981_v6 = vld [vmem:[#allocation5 + $0x254] sm:$0xf0]  ;;  %v5848_v38 = vld [vmem:[#allocation5 + $0x1d8] sm:$0xf0] }
 0x218   : >> { %v1002_v41 = vrot.slane %v993_v17, 4 }
 0x219   : >> { %v1013_v53 = vsel %vm361_vm0, %v1004_v20, %v1005_v60  ;;  %v5926_v20 = vld [vmem:[#allocation5 + $0x268] sm:$0xf]  ;;  %v6963_v60 = vld [vmem:[#allocation5 + $0x1cc] sm:$0xf] }
 0x21a   : >> { %v1014_v10 = vsel %vm1007_vm11, %v7974_v37, %v1013_v53  ;;  %v1009_v15 = vsel %vm361_vm0, %v9743_v22, %v1002_v41  ;;  %2119 = vmatmul.bf16.gmra.mxu3 %v8033_v34  ;;  %v5910_v51 = vld [vmem:[#allocation5 + $0x248] sm:$0xf]  ;;  %v5851_v17 = vor.u32 %v6963_v60, %v5848_v38  ;;  %v5640_v41 = vld [vmem:[#allocation5 + $0x38] sm:$0xf0]  ;;  %v6907_v53 = vld [vmem:[#allocation5 + $0xc] sm:$0xf] }
 0x21b   : >> { %2298 = vmatpush.bf16.msrb.mxu3 %v5739_v2  ;;  %1022 = vst [vmem:[#allocation5 + $0x238] sm:$0xff] %v1014_v10  ;;  %v1010_v54 = vsel %vm1007_vm11, %v8031_v18, %v1009_v15  ;;  %2231 = vmatpush.bf16.msra.mxu0 %v5783_v45  ;;  %v6985_v9 = vld [vmem:[#allocation5 + $0x274] sm:$0xf0]  ;;  %v6919_v2 = vld [vmem:[#allocation5 + $0x6c] sm:$0xf]  ;;  %v5911_v62 = vor.u32 %v6981_v6, %v5910_v51 }
 0x21c   : >> { %1020 = vst [vmem:[#allocation5 + $0x228] sm:$0xff] %v1010_v54  ;;  %v5927_v37 = vor.u32 %v6985_v9, %v5926_v20  ;;  %v5675_v49 = vor.u32 %v6919_v2, %v5672_v63  ;;  %v6955_v10 = vld [vmem:[#allocation5 + $0x18c] sm:$0xf]  ;;  %v5816_v22 = vld [vmem:[#allocation5 + $0x198] sm:$0xf0] }
 0x21d   : >> { %2172 = vmatmul.bf16.gmra.mxu1 %v8218_v19  ;;  %v6999_v15 = vld [vmem:[#allocation5 + $0x2ec] sm:$0xf]  ;;  %v6973_v54 = vld [vmem:[#allocation5 + $0x214] sm:$0xf0]  ;;  %v6006_v20 = vld [vmem:[#allocation5 + $0x308] sm:$0xf]  ;;  %v5819_v51 = vor.u32 %v6955_v10, %v5816_v22 }
 0x21e   : >> { %2254 = vmatpush.bf16.msra.mxu1 %v5927_v37  ;;  %v958_v21 = vpop.permute.xlu1 %957  ;;  %v5800_v6 = vld [vmem:[#allocation5 + $0x178] sm:$0xf0]  ;;  %v6152_v60 = vld [vmem:[#allocation5 + $0xc0] sm:$0xf] }
 0x21f   : >> { %2299 = vmatpush.bf16.msrb.mxu3 %v5723_v8  ;;  %2232 = vmatpush.bf16.msra.mxu0 %v5767_v40  ;;  %v967_v18 = vrot.slane %v958_v21, 4  ;;  %v1266_v35 = vpop.permute.xlu0 %1265  ;;  %v5656_v8 = vld [vmem:[#allocation5 + $0x58] sm:$0xf0] }
 0x220   : >> { %v1272_v27 = vrot.slane %v1266_v35, 4  ;;  %v6951_v35 = vld [vmem:[#allocation5 + $0x16c] sm:$0xf]  ;;  %v5960_v2 = vld [vmem:[#allocation5 + $0x2b8] sm:$0xf0] }
 0x221   : >> { %v974_v5 = vsel %vm361_vm0, %v9744_v59, %v967_v18  ;;  %v6995_v18 = vld [vmem:[#allocation5 + $0x2cc] sm:$0xf]  ;;  %v5803_v29 = vor.u32 %v6951_v35, %v5800_v6  ;;  %v6248_v6 = vld [vmem:[#allocation5 + $0x180] sm:$0xf] }
 0x222   : >> { %v975_v25 = vsel %vm972_vm8, %v8055_v13, %v974_v5  ;;  %v1280_v11 = vsel %vm361_vm0, %v9745_v24, %v1272_v27  ;;  %2255 = vmatpush.bf16.msra.mxu1 %v5911_v62  ;;  %v6977_v48 = vld [vmem:[#allocation5 + $0x234] sm:$0xf0]  ;;  %v6915_v13 = vld [vmem:[#allocation5 + $0x4c] sm:$0xf]  ;;  %v5979_v27 = vor.u32 %v6995_v18, %v5976_v42  ;;  %v5784_v62 = vld [vmem:[#allocation5 + $0x158] sm:$0xf0] }
 0x223   : >> { %2300 = vmatpush.bf16.msrb.mxu3 %v5707_v16  ;;  %6015 = vmatmul.msk.bf16.vlgmr.msrb.gmra.mxu2 %vm2000_vm9, %v8053_v33  ;;  %985 = vst [vmem:[#allocation5 + $0x208] sm:$0xff] %v975_v25  ;;  %v1281_v23 = vsel %vm1274_vm10, %v8010_v58, %v1280_v11  ;;  %v5894_v43 = vld [vmem:[#allocation5 + $0x228] sm:$0xf]  ;;  %v5659_v39 = vor.u32 %v6915_v13, %v5656_v8  ;;  %v6911_v58 = vld [vmem:[#allocation5 + $0x2c] sm:$0xf] }
 0x224   : >> { %2233 = vmatpush.bf16.msra.mxu0 %v5751_v32  ;;  %1289 = vst [vmem:[#allocation5 + $0x318] sm:$0xff] %v1281_v23  ;;  %v5895_v14 = vor.u32 %v6977_v48, %v5894_v43  ;;  %v5992_v16 = vld [vmem:[#allocation5 + $0x2f8] sm:$0xf0]  ;;  %v5643_v45 = vor.u32 %v6911_v58, %v5640_v41  ;;  %v6991_v59 = vld [vmem:[#allocation5 + $0x2ac] sm:$0xf] }
 0x225   : >> { %v5995_v21 = vor.u32 %v6999_v15, %v5992_v16  ;;  %v5963_v5 = vor.u32 %v6991_v59, %v5960_v2  ;;  %v6987_v32 = vld [vmem:[#allocation5 + $0x28c] sm:$0xf]  ;;  %v7044_v25 = vld [vmem:[#allocation5 + $0xec] sm:$0xf0]  ;;  %v5768_v24 = vld [vmem:[#allocation5 + $0x138] sm:$0xf0] }
 0x226   : >> { %2256 = vmatpush.bf16.msra.mxu1 %v5895_v14  ;;  %v5944_v11 = vld [vmem:[#allocation5 + $0x298] sm:$0xf0]  ;;  %v6943_v23 = vld [vmem:[#allocation5 + $0x12c] sm:$0xf]  ;;  %v7040_v13 = vld [vmem:[#allocation5 + $0xcc] sm:$0xf0] }
 0x227   : >> { %2301 = vmatpush.bf16.msrb.mxu3 %v5691_v56  ;;  %2234 = vmatmul.bf16.vlgmr.msra.gmra.mxu0 %v8018_v7  ;;  %v5624_v56 = vld [vmem:[#allocation5 + $0x18] sm:$0xf0]  ;;  %v5947_v8 = vor.u32 %v6987_v32, %v5944_v11  ;;  %v5771_v38 = vor.u32 %v6943_v23, %v5768_v24  ;;  %v7076_v41 = vld [vmem:[#allocation5 + $0x1ec] sm:$0xf0]  ;;  %v6153_v50 = vor.u32 %v7040_v13, %v6152_v60  ;;  %v6979_v58 = vld [vmem:[#allocation5 + $0x24c] sm:$0xf] }
 0x228   : >> { %2322 = vmatpush.bf16.msrb.mxu0 %v5867_v26  ;;  %v5627_v30 = vor.u32 %v6907_v53, %v5624_v56  ;;  %v6168_v26 = vld [vmem:[#allocation5 + $0xe0] sm:$0xf]  ;;  %v5928_v43 = vld [vmem:[#allocation5 + $0x278] sm:$0xf0]  ;;  %v7028_v18 = vld [vmem:[#allocation5 + $0x6c] sm:$0xf0] }
 0x229   : >> { %v6169_v48 = vor.u32 %v7044_v25, %v6168_v26  ;;  %v5752_v14 = vld [vmem:[#allocation5 + $0x118] sm:$0xf0]  ;;  %v6296_v16 = vld [vmem:[#allocation5 + $0x1e0] sm:$0xf]  ;;  %v7064_v42 = vld [vmem:[#allocation5 + $0x18c] sm:$0xf0] }
 0x22a   : >> { %2124 = vmatmul.bf16.gmra.mxu3 %v8087_v4  ;;  %v5878_v44 = vld [vmem:[#allocation5 + $0x208] sm:$0xf]  ;;  %v5755_v53 = vor.u32 %v6939_v28, %v5752_v14  ;;  %v6297_v22 = vor.u32 %v7076_v41, %v6296_v16  ;;  %v5912_v15 = vld [vmem:[#allocation5 + $0x258] sm:$0xf0]  ;;  %v6971_v35 = vld [vmem:[#allocation5 + $0x20c] sm:$0xf] }
 0x22b   : >> { %2302 = vmatpush.bf16.msrb.mxu3 %v5675_v49  ;;  %v5879_v9 = vor.u32 %v6973_v54, %v5878_v44  ;;  %v7005_v12 = vld [vmem:[#allocation5 + $0x314] sm:$0xf0]  ;;  %v6008_v37 = vld [vmem:[#allocation5 + $0x318] sm:$0xf0]  ;;  %v6947_v49 = vld [vmem:[#allocation5 + $0x14c] sm:$0xf]  ;;  %v5915_v44 = vor.u32 %v6979_v58, %v5912_v15 }
 0x22c   : >> { %2323 = vmatpush.bf16.msrb.mxu0 %v5851_v17  ;;  %v6007_v40 = vor.u32 %v7005_v12, %v6006_v20  ;;  %v6011_v63 = vor.u32 %v7003_v31, %v6008_v37  ;;  %v5787_v57 = vor.u32 %v6947_v49, %v5784_v62  ;;  %v7072_v54 = vld [vmem:[#allocation5 + $0x1cc] sm:$0xf0]  ;;  %v5896_v12 = vld [vmem:[#allocation5 + $0x238] sm:$0xf0]  ;;  %v6280_v31 = vld [vmem:[#allocation5 + $0x1c0] sm:$0xf] }
 0x22d   : >> { %2257 = vmatpush.bf16.msra.mxu1 %v5879_v9  ;;  %v6975_v9 = vld [vmem:[#allocation5 + $0x22c] sm:$0xf]  ;;  %v7032_v37 = vld [vmem:[#allocation5 + $0x8c] sm:$0xf0]  ;;  %v6281_v56 = vor.u32 %v7072_v54, %v6280_v31  ;;  %v6104_v62 = vld [vmem:[#allocation5 + $0x60] sm:$0xf] }
 0x22e   : >> { %2281 = vmatpush.bf16.msra.mxu2 %v6007_v40  ;;  %v6120_v40 = vld [vmem:[#allocation5 + $0x80] sm:$0xf]  ;;  %v6105_v32 = vor.u32 %v7028_v18, %v6104_v62  ;;  %v7024_v24 = vld [vmem:[#allocation5 + $0x4c] sm:$0xf0] }
 0x22f   : >> { %2303 = vmatpush.bf16.msrb.mxu3 %v5659_v39  ;;  %v6983_v39 = vld [vmem:[#allocation5 + $0x26c] sm:$0xf]  ;;  %v6408_v11 = vld [vmem:[#allocation5 + $0x2c0] sm:$0xf]  ;;  %v7104_v26 = vld [vmem:[#allocation5 + $0x2cc] sm:$0xf0] }
 0x230   : >> { %2324 = vmatpush.bf16.msrb.mxu0 %v5835_v36  ;;  %2258 = vmatmul.bf16.vlgmr.msra.gmra.mxu1 %v8135_v52  ;;  %v5931_v17 = vor.u32 %v6983_v39, %v5928_v43  ;;  %v6136_v36 = vld [vmem:[#allocation5 + $0xa0] sm:$0xf]  ;;  %v7060_v43 = vld [vmem:[#allocation5 + $0x16c] sm:$0xf0]  ;;  %v6409_v13 = vor.u32 %v7104_v26, %v6408_v11 }
 0x231   : >> { %2346 = vmatpush.bf16.msrb.mxu1 %v5995_v21  ;;  %v6264_v21 = vld [vmem:[#allocation5 + $0x1a0] sm:$0xf]  ;;  %v7020_v14 = vld [vmem:[#allocation5 + $0x2c] sm:$0xf0] }
 0x232   : >> { %2377 = vmatpush.bf16.msrb.mxu2 %v6011_v63  ;;  %v7068_v63 = vld [vmem:[#allocation5 + $0x1ac] sm:$0xf0]  ;;  %v6232_v23 = vld [vmem:[#allocation5 + $0x160] sm:$0xf] }
 0x233   : >> { %2304 = vmatpush.bf16.msrb.mxu3 %v5643_v45  ;;  %6016 = vmatmul.msk.bf16.gmra.mxu2 %vm2000_vm9, %v8108_v1  ;;  %v7036_v45 = vld [vmem:[#allocation5 + $0xac] sm:$0xf0]  ;;  %v6265_v2 = vor.u32 %v7068_v63, %v6264_v21  ;;  %v6233_v60 = vor.u32 %v7060_v43, %v6232_v23  ;;  %v6216_v16 = vld [vmem:[#allocation5 + $0x140] sm:$0xf] }
 0x234   : >> { %2325 = vmatpush.bf16.msrb.mxu0 %v5819_v51  ;;  %v6137_v20 = vor.u32 %v7036_v45, %v6136_v36  ;;  %v5899_v51 = vor.u32 %v6975_v9, %v5896_v12  ;;  %v7100_v39 = vld [vmem:[#allocation5 + $0x2ac] sm:$0xf0]  ;;  %v6056_v45 = vld [vmem:[#allocation5] sm:$0xf] }
 0x235   : >> { %2347 = vmatpush.bf16.msrb.mxu1 %v5979_v27  ;;  %v7108_v27 = vld [vmem:[#allocation5 + $0x2ec] sm:$0xf0]  ;;  %v6200_v31 = vld [vmem:[#allocation5 + $0x120] sm:$0xf] }
 0x236   : >> { %v7056_v41 = vld [vmem:[#allocation5 + $0x14c] sm:$0xf0]  ;;  %v6184_v63 = vld [vmem:[#allocation5 + $0x100] sm:$0xf] }
 0x237   : >> { %2305 = vmatpush.bf16.msrb.mxu3 %v5627_v30  ;;  %2239 = vmatmul.bf16.gmra.mxu0 %v8066_v3  ;;  %v6121_v30 = vor.u32 %v7032_v37, %v6120_v40  ;;  %v7052_v54 = vld [vmem:[#allocation5 + $0x12c] sm:$0xf0] }
 0x238   : >> { %2326 = vmatpush.bf16.msrb.mxu0 %v5803_v29  ;;  %v5880_v29 = vld [vmem:[#allocation5 + $0x218] sm:$0xf0]  ;;  %v7092_v37 = vld [vmem:[#allocation5 + $0x26c] sm:$0xf0] }
 0x239   : >> { %2348 = vmatpush.bf16.msrb.mxu1 %v5963_v5  ;;  %v8264_v10 = vpop.f32.mrf.mxu0  ;;  %v5883_v59 = vor.u32 %v6971_v35, %v5880_v29  ;;  %v6424_v5 = vld [vmem:[#allocation5 + $0x2e0] sm:$0xf]  ;;  %v7048_v40 = vld [vmem:[#allocation5 + $0x10c] sm:$0xf0] }
 0x23a   : >> { %2210 = vmatmul.bf16.vlgmr.msra.gmra.mxu3 %v7997_v47  ;;  %v6425_v25 = vor.u32 %v7108_v27, %v6424_v5  ;;  %v6185_v35 = vor.u32 %v7048_v40, %v6184_v63  ;;  %v7084_v29 = vld [vmem:[#allocation5 + $0x22c] sm:$0xf0] }
 0x23b   : >> { %4903 = vmatpush.bf16.msra.mxu3 %v6169_v48  ;;  %v6088_v48 = vld [vmem:[#allocation5 + $0x40] sm:$0xf] }
 0x23c   : >> { %2327 = vmatpush.bf16.msrb.mxu0 %v5787_v57  ;;  %v6249_v57 = vor.u32 %v7064_v42, %v6248_v6  ;;  %v6344_v42 = vld [vmem:[#allocation5 + $0x240] sm:$0xf] }
 0x23d   : >> { %2349 = vmatpush.bf16.msrb.mxu1 %v5947_v8 }
 0x23f   : >> { %4904 = vmatpush.bf16.msra.mxu3 %v6153_v50  ;;  %v6392_v50 = vld [vmem:[#allocation5 + $0x2a0] sm:$0xf] }
 0x240   : >> { %2328 = vmatpush.bf16.msrb.mxu0 %v5771_v38  ;;  %2263 = vmatmul.bf16.gmra.mxu1 %v8178_v61  ;;  %v6089_v38 = vor.u32 %v7024_v24, %v6088_v48  ;;  %v6393_v58 = vor.u32 %v7100_v39, %v6392_v50 }
 0x241   : >> { %2350 = vmatpush.bf16.msrb.mxu1 %v5931_v17  ;;  %v8270_v49 = vpop.f32.mrf.mxu0  ;;  %v6072_v17 = vld [vmem:[#allocation5 + $0x20] sm:$0xf] }
 0x242   : >> { %v6073_v28 = vor.u32 %v7020_v14, %v6072_v17 }
 0x243   : >> { %6017 = vmatmul.msk.bf16.gmra.mxu2 %vm2000_vm9, %v8156_v46  ;;  %4905 = vmatpush.bf16.msra.mxu3 %v6137_v20  ;;  %v6376_v20 = vld [vmem:[#allocation5 + $0x280] sm:$0xf] }
 0x244   : >> { %2329 = vmatpush.bf16.msrb.mxu0 %v5755_v53  ;;  %v7016_v53 = vld [vmem:[#allocation5 + $0xc] sm:$0xf0] }
 0x245   : >> { %2351 = vmatpush.bf16.msrb.mxu1 %v5915_v44  ;;  %v6217_v44 = vor.u32 %v7056_v41, %v6216_v16  ;;  %v6057_v9 = vor.u32 %v7016_v53, %v6056_v45 }
 0x247   : >> { %2244 = vmatmul.bf16.gmra.mxu0 %v8122_v55  ;;  %4906 = vmatpush.bf16.msra.mxu3 %v6121_v30  ;;  %v7088_v30 = vld [vmem:[#allocation5 + $0x24c] sm:$0xf0] }
 0x248   : >> { %4917 = vmatpush.bf16.msra.mxu0 %v6297_v22  ;;  %v7096_v22 = vld [vmem:[#allocation5 + $0x28c] sm:$0xf0] }
 0x249   : >> { %2352 = vmatpush.bf16.msrb.mxu1 %v5899_v51  ;;  %v6377_v12 = vor.u32 %v7096_v22, %v6376_v20  ;;  %v6360_v51 = vld [vmem:[#allocation5 + $0x260] sm:$0xf]  ;;  %v2528_v20 = vld [vmem:[#allocation4 + $0x58] sm:$0xff] }
 0x24a   : >> { %2215 = vmatmul.bf16.gmra.mxu3 %v8033_v34  ;;  %v8273_v8 = vpop.f32.mrf.mxu1  ;;  %v6361_v21 = vor.u32 %v7092_v37, %v6360_v51 }
 0x24b   : >> { %4907 = vmatpush.bf16.msra.mxu3 %v6105_v32 }
 0x24c   : >> { %4918 = vmatpush.bf16.msra.mxu0 %v6281_v56  ;;  %v6201_v56 = vor.u32 %v7052_v54, %v6200_v31 }
 0x24d   : >> { %2353 = vmatpush.bf16.msrb.mxu1 %v5883_v59  ;;  %v8280_v36 = vpop.f32.mrf.mxu0  ;;  %v7080_v59 = vld [vmem:[#allocation5 + $0x20c] sm:$0xf0] }
 0x24f   : >> { %4908 = vmatpush.bf16.msra.mxu3 %v6089_v38 }
 0x250   : >> { %4919 = vmatpush.bf16.msra.mxu0 %v6265_v2  ;;  %2268 = vmatmul.bf16.gmra.mxu1 %v8218_v19  ;;  %v6328_v2 = vld [vmem:[#allocation5 + $0x220] sm:$0xf] }
 0x251   : >> { %4931 = vmatpush.bf16.msra.mxu1 %v6425_v25  ;;  %v6329_v62 = vor.u32 %v7084_v29, %v6328_v2 }
 0x252   : >> { %v8278_v15 = vpop.f32.mrf.mxu1 }
 0x253   : >> { %6018 = vmatmul.msk.bf16.vlgmr.msra.gmra.mxu2 %vm2000_vm9, %v8053_v33  ;;  %4909 = vmatpush.bf16.msra.mxu3 %v6073_v28  ;;  %v2523_v28 = vld [vmem:[#allocation4 + $0x78] sm:$0xff] }
 0x254   : >> { %4920 = vmatpush.bf16.msra.mxu0 %v6249_v57  ;;  %v6312_v57 = vld [vmem:[#allocation5 + $0x200] sm:$0xf] }
 0x255   : >> { %4932 = vmatpush.bf16.msra.mxu1 %v6409_v13  ;;  %v8286_v27 = vpop.f32.mrf.mxu0  ;;  %v6313_v25 = vor.u32 %v7080_v59, %v6312_v57 }
 0x257   : >> { %2330 = vmatmul.bf16.vlgmr.msrb.gmra.mxu0 %v8018_v7  ;;  %4910 = vmatpush.bf16.msra.mxu3 %v6057_v9  ;;  %v6345_v7 = vor.u32 %v7088_v30, %v6344_v42 }
 0x258   : >> { %4921 = vmatpush.bf16.msra.mxu0 %v6233_v60 }
 0x259   : >> { %4933 = vmatpush.bf16.msra.mxu1 %v6393_v58 }
 0x25a   : >> { %2220 = vmatmul.bf16.gmra.mxu3 %v8087_v4  ;;  %v8284_v18 = vpop.f32.mrf.mxu1 }
 0x25c   : >> { %4922 = vmatpush.bf16.msra.mxu0 %v6217_v44 }
 0x25d   : >> { %4934 = vmatpush.bf16.msra.mxu1 %v6377_v12  ;;  %v2091_v6 = vpop.f32.mrf.mxu3 }
 0x25e   : >> { %v8322_v17 = vpop.permute.xlu2 %1425 }
 0x25f   : >> { %v8293_v24 = vpop.f32.mrf.mxu0  ;;  %v2025_v16 = vadd.f32 %v8280_v36, %v8322_v17 }
 0x260   : >> { %4923 = vmatpush.bf16.msra.mxu0 %v6201_v56  ;;  %2354 = vmatmul.bf16.vlgmr.msrb.gmra.mxu1 %v8135_v52  ;;  %v8299_v52 = vpop.permute.xlu0 %1415 }
 0x261   : >> { %4935 = vmatpush.bf16.msra.mxu1 %v6361_v21  ;;  %v2020_v48 = vadd.f32 %v8264_v10, %v8299_v52  ;;  %v8317_v10 = vperm.slane %v9738_v0, 0  ;;  %v2049_v36 = vadd.f32 %v8284_v18, %v2025_v16 }
 0x262   : >> { %v8291_v5 = vpop.f32.mrf.mxu1 }
 0x263   : >> { %6019 = vmatmul.msk.bf16.gmra.mxu2 %vm2000_vm9, %v8108_v1 }
 0x264   : >> { %4924 = vmatpush.bf16.msra.mxu0 %v6185_v35  ;;  %v2533_v35 = vld [vmem:[#allocation4 + $0x68] sm:$0xff] }
 0x265   : >> { %4936 = vmatpush.bf16.msra.mxu1 %v6345_v7  ;;  %v2093_v32 = vpop.f32.mrf.mxu3 }
 0x267   : >> { %2335 = vmatmul.bf16.gmra.mxu0 %v8066_v3  ;;  %v8304_v23 = vpop.f32.mrf.mxu0  ;;  %v2044_v3 = vadd.f32 %v8273_v8, %v2020_v48 }
 0x269   : >> { %4937 = vmatpush.bf16.msra.mxu1 %v6329_v62 }
 0x26a   : >> { %2306 = vmatmul.bf16.vlgmr.msrb.gmra.mxu3 %v7997_v47  ;;  %v8297_v11 = vpop.f32.mrf.mxu1  ;;  %v8311_v47 = vpop.permute.xlu1 %1420 }
 0x26b   : >> { %v8359_v63 = vpop.permute.xlu2 %1435 }
 0x26c   : >> { %v2030_v2 = vadd.f32 %v8293_v24, %v8359_v63  ;;  %v2538_v24 = vld [vmem:[#allocation4 + $0x18] sm:$0xff] }
 0x26d   : >> { %4938 = vmatpush.bf16.msra.mxu1 %v6313_v25  ;;  %v2096_v26 = vpop.f32.mrf.mxu3  ;;  %v8380_v25 = vpop.permute.xlu0 %1440 }
 0x26f   : >> { %v8320_v8 = vpop.f32.mrf.mxu0 }
 0x270   : >> { %2359 = vmatmul.bf16.gmra.mxu1 %v8178_v61  ;;  %v2022_v61 = vadd.f32 %v8270_v49, %v8311_v47 }
 0x272   : >> { %v8309_v38 = vpop.f32.mrf.mxu1  ;;  %v2046_v50 = vadd.f32 %v8278_v15, %v2022_v61  ;;  %v8342_v54 = vpop.permute.xlu1 %1430 }
 0x273   : >> { %6020 = vmatmul.msk.bf16.gmra.mxu2 %vm2000_vm9, %v8156_v46 }
 0x275   : >> { %v2098_v43 = vpop.f32.mrf.mxu3 }
 0x276   : >> { %v2067_v13 = vpop.f32.mrf.mxu2 }
 0x277   : >> { %v2068_v14 = vadd.f32 %v2067_v13, %v2044_v3  ;;  %2340 = vmatmul.bf16.gmra.mxu0 %v8122_v55  ;;  %v8344_v9 = vpop.f32.mrf.mxu0 }
 0x279   : >> { %v2092_v39 = vadd.f32 %v2091_v6, %v2068_v14 }
 0x27a   : >> { %2311 = vmatmul.bf16.gmra.mxu3 %v8033_v34  ;;  %v8330_v45 = vpop.f32.mrf.mxu1 }
 0x27b   : >> { %vm2394_vm12 = vcmp.ge.f32.partialorder %v2092_v39, 0.0  ;;  %v2418_v60 = vmul.f32 0.01, %v2092_v39 }
 0x27d   : >> { %v2442_v41 = vsel %vm2394_vm12, %v2092_v39, %v2418_v60  ;;  %v2101_v49 = vpop.f32.mrf.mxu3 }
 0x27e   : >> { %v8326_v55 = vmul.f32 %v8317_v10, %v2442_v41  ;;  %v2069_v58 = vpop.f32.mrf.mxu2 }
 0x27f   : >> { %v2070_v53 = vadd.f32 %v2069_v58, %v2046_v50  ;;  %v8367_v29 = vpop.f32.mrf.mxu0 }
 0x280   : >> { %2499 = vst [vmem:[#allocation4 + $0x88] sm:$0xff] %v8326_v55  ;;  %v8334_v34 = vpack.c.bf16 %v8326_v55, %v2523_v28  ;;  %2364 = vmatmul.bf16.gmra.mxu1 %v8218_v19  ;;  %v2543_v28 = vld [vmem:[#allocation4 + $0xc0] sm:$0xff] }
 0x281   : >> { %v2094_v22 = vadd.f32 %v2093_v32, %v2070_v53 }
 0x282   : >> { %2589 = vrot.lane.b32.xlu1 %v8334_v34, %s7310_s15  ;;  %v8354_v51 = vpop.f32.mrf.mxu1 }
 0x283   : >> { %vm2398_vm13 = vcmp.ge.f32.partialorder %v2094_v22, 0.0  ;;  %v2422_v15 = vmul.f32 0.01, %v2094_v22  ;;  %6021 = vmatmul.msk.bf16.vlgmr.msrb.gmra.mxu2 %vm2000_vm9, %v8053_v33  ;;  %v2027_v33 = vadd.f32 %v8286_v27, %v8342_v54 }
 0x285   : >> { %v2446_v44 = vsel %vm2398_vm13, %v2094_v22, %v2422_v15  ;;  %v2103_v31 = vpop.f32.mrf.mxu3  ;;  %v2051_v18 = vadd.f32 %v8291_v5, %v2027_v33  ;;  %v2054_v5 = vadd.f32 %v8297_v11, %v2030_v2 }
 0x286   : >> { %v8347_v12 = vmul.f32 %v8317_v10, %v2446_v44  ;;  %v2072_v19 = vpop.f32.mrf.mxu2 }
 0x287   : >> { %v2073_v37 = vadd.f32 %v2072_v19, %v2049_v36  ;;  %v2146_v11 = vpop.f32.mrf.mxu0 }
 0x288   : >> { %v8350_v56 = vpack.c.bf16 %v8347_v12, %v2528_v20 }
 0x289   : >> { %v2097_v40 = vadd.f32 %v2096_v26, %v2073_v37 }
 0x28a   : >> { %2595 = vrot.lane.b32.xlu1 %v8350_v56, %s7310_s15  ;;  %2316 = vmatmul.bf16.gmra.mxu3 %v8087_v4  ;;  %v8378_v32 = vpop.f32.mrf.mxu1 }
 0x28b   : >> { %vm2402_vm14 = vcmp.ge.f32.partialorder %v2097_v40, 0.0  ;;  %v2426_v21 = vmul.f32 0.01, %v2097_v40 }
 0x28d   : >> { %v2450_v30 = vsel %vm2402_vm14, %v2097_v40, %v2426_v21  ;;  %v2115_v27 = vpop.f32.mrf.mxu3 }
 0x28e   : >> { %v8363_v6 = vmul.f32 %v8317_v10, %v2450_v30  ;;  %v2074_v42 = vpop.f32.mrf.mxu2  ;;  %v2116_v39 = vadd.f32 %v2115_v27, %v8299_v52 }
 0x28f   : >> { %v2075_v7 = vadd.f32 %v2074_v42, %v2051_v18  ;;  %v2149_v44 = vpop.f32.mrf.mxu0 }
 0x290   : >> { %2507 = vst [vmem:[#allocation4 + $0x8] sm:$0xff] %v8363_v6  ;;  %v8371_v4 = vpack.c.bf16 %v8363_v6, %v2533_v35 }
 0x291   : >> { %v2099_v62 = vadd.f32 %v2098_v43, %v2075_v7 }
 0x292   : >> { %2601 = vrot.lane.b32.xlu1 %v8371_v4, %s7310_s15  ;;  %v8394_v50 = vpop.f32.mrf.mxu1 }
 0x293   : >> { %vm2406_vm15 = vcmp.ge.f32.partialorder %v2099_v62, 0.0  ;;  %v2430_v59 = vmul.f32 0.01, %v2099_v62  ;;  %6022 = vmatmul.msk.bf16.gmra.mxu2 %vm2000_vm9, %v8108_v1  ;;  %v2032_v1 = vadd.f32 %v8304_v23, %v8380_v25  ;;  %v2140_v23 = vadd.f32 %v8320_v8, %v2116_v39  ;;  %v2548_v8 = vld [vmem:[#allocation4 + $0xe0] sm:$0xff] }
 0x295   : >> { %v2454_v57 = vsel %vm2406_vm15, %v2099_v62, %v2430_v59  ;;  %v2117_v3 = vpop.f32.mrf.mxu3  ;;  %v2056_v41 = vadd.f32 %v8309_v38, %v2032_v1  ;;  %v2164_v38 = vadd.f32 %v8330_v45, %v2140_v23  ;;  %v8414_v45 = vperm.slane %v9738_v0, 1 }
 0x296   : >> { %v8383_v26 = vmul.f32 %v8317_v10, %v2454_v57  ;;  %v2077_v48 = vpop.f32.mrf.mxu2  ;;  %v2118_v20 = vadd.f32 %v2117_v3, %v8311_v47 }
 0x297   : >> { %v2078_v43 = vadd.f32 %v2077_v48, %v2054_v5  ;;  %9746 = vst [vmem:[#allocation7_spill] sm:$0xff] %v8414_v45  ;;  %v2151_v2 = vpop.f32.mrf.mxu0 }
 0x298   : >> { %v8386_v13 = vpack.c.bf16 %v8383_v26, %v2538_v24 }
 0x299   : >> { %v2102_v14 = vadd.f32 %v2101_v49, %v2078_v43 }
 0x29a   : >> { %2607 = vrot.lane.b32.xlu1 %v8386_v13, %s7310_s15  ;;  %v2173_v21 = vpop.f32.mrf.mxu1 }
 0x29b   : >> { %vm2410_vm1 = vcmp.ge.f32.partialorder %v2102_v14, 0.0  ;;  %v2434_v61 = vmul.f32 0.01, %v2102_v14 }
 0x29d   : >> { %v2458_v60 = vsel %vm2410_vm1, %v2102_v14, %v2434_v61  ;;  %v2120_v53 = vpop.f32.mrf.mxu3 }
 0x29e   : >> { %v8397_v58 = vmul.f32 %v8317_v10, %v2458_v60  ;;  %v2079_v49 = vpop.f32.mrf.mxu2  ;;  %v2121_v35 = vadd.f32 %v2120_v53, %v8322_v17 }
 0x29f   : >> { %v2080_v16 = vadd.f32 %v2079_v49, %v2056_v41 }
 0x2a0   : >> { %v8401_v22 = vpack.c.bf16 %v8397_v58, %v2543_v28 }
 0x2a1   : >> { %v2104_v15 = vadd.f32 %v2103_v31, %v2080_v16 }
 0x2a2   : >> { %2613 = vrot.lane.b32.xlu1 %v8401_v22, %s7310_s15  ;;  %v2175_v48 = vpop.f32.mrf.mxu1 }
 0x2a3   : >> { %vm2414_vm3 = vcmp.ge.f32.partialorder %v2104_v15, 0.0  ;;  %v2438_v36 = vmul.f32 0.01, %v2104_v15  ;;  %6023 = vmatmul.msk.bf16.gmra.mxu2 %vm2000_vm9, %v8156_v46  ;;  %v2142_v46 = vadd.f32 %v8344_v9, %v2118_v20  ;;  %v2145_v9 = vadd.f32 %v8367_v29, %v2121_v35 }
 0x2a4   : >> { %v2235_v61 = vpop.f32.mrf.mxu0 }
 0x2a5   : >> { %v2462_v19 = vsel %vm2414_vm3, %v2104_v15, %v2438_v36  ;;  %v2122_v40 = vpop.f32.mrf.mxu3  ;;  %v2166_v7 = vadd.f32 %v8354_v51, %v2142_v46  ;;  %v2169_v3 = vadd.f32 %v8378_v32, %v2145_v9 }
 0x2a6   : >> { %v8410_v37 = vmul.f32 %v8317_v10, %v2462_v19  ;;  %v2187_v31 = vpop.f32.mrf.mxu2  ;;  %v2123_v14 = vadd.f32 %v2122_v40, %v8342_v54 }
 0x2a7   : >> { %v2188_v33 = vadd.f32 %v2187_v31, %v2164_v38 }
 0x2a8   : >> { %2519 = vst [vmem:[#allocation4 + $0xe8] sm:$0xff] %v8410_v37  ;;  %v8417_v30 = vpack.c.bf16 %v8410_v37, %v2548_v8  ;;  %v2147_v60 = vadd.f32 %v2146_v11, %v2123_v14 }
 0x2a9   : >> { %vm2395_vm9 = vcmp.ge.f32.partialorder %v2188_v33, 0.0  ;;  %v2419_v18 = vmul.f32 0.01, %v2188_v33 }
 0x2aa   : >> { %2619 = vrot.lane.b32.xlu1 %v8417_v30, %s7310_s15 }
 0x2ab   : >> { %v2443_v42 = vsel %vm2395_vm9, %v2188_v33, %v2419_v18 }
 0x2ac   : >> { %v8424_v27 = vmul.f32 %v8414_v45, %v2443_v42  ;;  %v2237_v20 = vpop.f32.mrf.mxu0 }
 0x2ad   : >> { %v2125_v62 = vpop.f32.mrf.mxu3  ;;  %v2259_v49 = vpop.f32.mrf.mxu1 }
 0x2ae   : >> { %v2189_v59 = vpop.f32.mrf.mxu2  ;;  %v3069_v5 = vpack.c.bf16 %v8424_v27, %v8326_v55  ;;  %v2126_v32 = vadd.f32 %v2125_v62, %v8359_v63 }
 0x2af   : >> { %v2190_v57 = vadd.f32 %v2189_v59, %v2166_v7 }
 0x2b0   : >> { %3081 = vst [vmem:[#allocation5 + $0x4a0] sm:$0xff] %v3069_v5  ;;  %v2150_v11 = vadd.f32 %v2149_v44, %v2126_v32 }
 0x2b1   : >> { %vm2399_vm4 = vcmp.ge.f32.partialorder %v2190_v57, 0.0  ;;  %v2423_v24 = vmul.f32 0.01, %v2190_v57 }
 0x2b2   : >> { %2691 = vrot.lane.b32.xlu1 %v8334_v34, %s7311_s16  ;;  %v2174_v19 = vadd.f32 %v2173_v21, %v2150_v11 }
 0x2b3   : >> { %v2447_v43 = vsel %vm2399_vm4, %v2190_v57, %v2423_v24 }
 0x2b4   : >> { %v8434_v51 = vmul.f32 %v8414_v45, %v2447_v43  ;;  %v2240_v7 = vpop.f32.mrf.mxu0 }
 0x2b5   : >> { %v2127_v1 = vpop.f32.mrf.mxu3  ;;  %v2261_v31 = vpop.f32.mrf.mxu1 }
 0x2b6   : >> { %v2192_v55 = vpop.f32.mrf.mxu2  ;;  %v8439_v29 = vpack.c.bf16 %v8434_v51, %v8347_v12  ;;  %v2171_v12 = vadd.f32 %v8394_v50, %v2147_v60  ;;  %v2128_v40 = vadd.f32 %v2127_v1, %v8380_v25 }
 0x2b7   : >> { %v2193_v39 = vadd.f32 %v2192_v55, %v2169_v3 }
 0x2b8   : >> { %3083 = vst [vmem:[#allocation5 + $0x4b0] sm:$0xff] %v8439_v29  ;;  %v2152_v18 = vadd.f32 %v2151_v2, %v2128_v40 }
 0x2b9   : >> { %vm2403_vm10 = vcmp.ge.f32.partialorder %v2193_v39, 0.0  ;;  %v2427_v41 = vmul.f32 0.01, %v2193_v39 }
 0x2ba   : >> { %2697 = vrot.lane.b32.xlu1 %v8350_v56, %s7311_s16  ;;  %v2176_v59 = vadd.f32 %v2175_v48, %v2152_v18 }
 0x2bb   : >> { %v2451_v28 = vsel %vm2403_vm10, %v2193_v39, %v2427_v41  ;;  %v8485_v41 = vperm.slane %v9738_v0, 2 }
 0x2bc   : >> { %v8446_v53 = vmul.f32 %v8414_v45, %v2451_v28  ;;  %v2242_v1 = vpop.f32.mrf.mxu0 }
 0x2bd   : >> { %v2211_v16 = vpop.f32.mrf.mxu3  ;;  %v2264_v24 = vpop.f32.mrf.mxu1  ;;  %9747 = vst [vmem:[#allocation8_spill] sm:$0xff] %v8485_v41 }
 0x2be   : >> { %v2194_v23 = vpop.f32.mrf.mxu2  ;;  %v8451_v15 = vpack.c.bf16 %v8446_v53, %v8363_v6  ;;  %v2212_v21 = vadd.f32 %v2211_v16, %v8299_v52 }
 0x2bf   : >> { %v2195_v38 = vadd.f32 %v2194_v23, %v2171_v12 }
 0x2c0   : >> { %3085 = vst [vmem:[#allocation5 + $0x4c0] sm:$0xff] %v8451_v15  ;;  %v2236_v2 = vadd.f32 %v2235_v61, %v2212_v21 }
 0x2c1   : >> { %vm2407_vm12 = vcmp.ge.f32.partialorder %v2195_v38, 0.0  ;;  %v2431_v36 = vmul.f32 0.01, %v2195_v38 }
 0x2c2   : >> { %2703 = vrot.lane.b32.xlu1 %v8371_v4, %s7311_s16  ;;  %v2260_v43 = vadd.f32 %v2259_v49, %v2236_v2 }
 0x2c3   : >> { %v2455_v8 = vsel %vm2407_vm12, %v2195_v38, %v2431_v36 }
 0x2c4   : >> { %v8457_v50 = vmul.f32 %v8414_v45, %v2455_v8 }
 0x2c5   : >> { %v2213_v33 = vpop.f32.mrf.mxu3  ;;  %v2266_v49 = vpop.f32.mrf.mxu1 }
 0x2c6   : >> { %v2197_v6 = vpop.f32.mrf.mxu2  ;;  %v8462_v44 = vpack.c.bf16 %v8457_v50, %v8383_v26 }
 0x2c7   : >> { %v2198_v46 = vadd.f32 %v2197_v6, %v2174_v19  ;;  %v2245_v6 = vpop.f32.mrf.mxu0  ;;  %v6664_v21 = vld [vmem:[#allocation5 + $0x4c0] sm:$0xf] }
 0x2c8   : >> { %3087 = vst [vmem:[#allocation5 + $0x4d0] sm:$0xff] %v8462_v44 }
 0x2c9   : >> { %vm2411_vm13 = vcmp.ge.f32.partialorder %v2198_v46, 0.0  ;;  %v2435_v35 = vmul.f32 0.01, %v2198_v46 }
 0x2ca   : >> { %2709 = vrot.lane.b32.xlu1 %v8386_v13, %s7311_s16 }
 0x2cb   : >> { %v2459_v42 = vsel %vm2411_vm13, %v2198_v46, %v2435_v35 }
 0x2cc   : >> { %v8469_v62 = vmul.f32 %v8414_v45, %v2459_v42 }
 0x2cd   : >> { %v2216_v9 = vpop.f32.mrf.mxu3 }
 0x2ce   : >> { %v8473_v26 = vpack.c.bf16 %v8469_v62, %v8397_v58  ;;  %v2199_v5 = vpop.f32.mrf.mxu2  ;;  %v2214_v58 = vadd.f32 %v2213_v33, %v8311_v47  ;;  %v2217_v12 = vadd.f32 %v2216_v9, %v8322_v17  ;;  %v7164_v9 = vld [vmem:[#allocation5 + $0x4ac] sm:$0xf0] }
 0x2cf   : >> { %v2200_v57 = vadd.f32 %v2199_v5, %v2176_v59  ;;  %v7168_v18 = vld [vmem:[#allocation5 + $0x4cc] sm:$0xf0] }
 0x2d0   : >> { %3089 = vst [vmem:[#allocation5 + $0x4e0] sm:$0xff] %v8473_v26  ;;  %v2238_v32 = vadd.f32 %v2237_v20, %v2214_v58  ;;  %v2241_v20 = vadd.f32 %v2240_v7, %v2217_v12  ;;  %v2269_v7 = vpop.f32.mrf.mxu1  ;;  %v6665_v59 = vor.u32 %v7168_v18, %v6664_v21  ;;  %v2247_v58 = vpop.f32.mrf.mxu0 }
 0x2d1   : >> { %vm2415_vm14 = vcmp.ge.f32.partialorder %v2200_v57, 0.0  ;;  %v2439_v3 = vmul.f32 0.01, %v2200_v57 }
 0x2d2   : >> { %2715 = vrot.lane.b32.xlu1 %v8401_v22, %s7311_s16 }
 0x2d3   : >> { %v2463_v14 = vsel %vm2415_vm14, %v2200_v57, %v2439_v3 }
 0x2d4   : >> { %v8479_v48 = vmul.f32 %v8414_v45, %v2463_v14 }
 0x2d5   : >> { %v2218_v39 = vpop.f32.mrf.mxu3 }
 0x2d6   : >> { %v3079_v55 = vpack.c.bf16 %v8479_v48, %v8410_v37  ;;  %v2283_v61 = vpop.f32.mrf.mxu2  ;;  %v2262_v37 = vadd.f32 %v2261_v31, %v2238_v32  ;;  %v2265_v31 = vadd.f32 %v2264_v24, %v2241_v20  ;;  %v2219_v5 = vadd.f32 %v2218_v39, %v8342_v54 }
 0x2d7   : >> { %v2284_v60 = vadd.f32 %v2283_v61, %v2260_v43  ;;  %v6680_v8 = vld [vmem:[#allocation5 + $0x4e0] sm:$0xf] }
 0x2d8   : >> { %3091 = vst [vmem:[#allocation5 + $0x4f0] sm:$0xff] %v3079_v55  ;;  %v6648_v43 = vld [vmem:[#allocation5 + $0x4a0] sm:$0xf]  ;;  %v2243_v24 = vadd.f32 %v2242_v1, %v2219_v5  ;;  %v2271_v32 = vpop.f32.mrf.mxu1 }
 0x2d9   : >> { %vm2396_vm15 = vcmp.ge.f32.partialorder %v2284_v60, 0.0  ;;  %v2420_v28 = vmul.f32 0.01, %v2284_v60 }
 0x2da   : >> { %2721 = vrot.lane.b32.xlu1 %v8417_v30, %s7311_s16 }
 0x2db   : >> { %v2444_v23 = vsel %vm2396_vm15, %v2284_v60, %v2420_v28  ;;  %v2267_v60 = vadd.f32 %v2266_v49, %v2243_v24 }
 0x2dc   : >> { %v8491_v16 = vmul.f32 %v8485_v41, %v2444_v23 }
 0x2dd   : >> { %v2221_v11 = vpop.f32.mrf.mxu3 }
 0x2de   : >> { %v2285_v38 = vpop.f32.mrf.mxu2  ;;  %v8495_v36 = vpack.c.bf16 %v8491_v16, %v8424_v27  ;;  %v2222_v55 = vadd.f32 %v2221_v11, %v8359_v63 }
 0x2df   : >> { %v2286_v19 = vadd.f32 %v2285_v38, %v2262_v37  ;;  %v7172_v40 = vld [vmem:[#allocation5 + $0x4ec] sm:$0xf0] }
 0x2e0   : >> { %2591 = vrot.lane.b32.xlu2 %v8495_v36, %s7310_s15  ;;  %v6681_v33 = vor.u32 %v7172_v40, %v6680_v8  ;;  %v2246_v1 = vadd.f32 %v2245_v6, %v2222_v55 }
 0x2e1   : >> { %vm2400_vm1 = vcmp.ge.f32.partialorder %v2286_v19, 0.0  ;;  %v2424_v46 = vmul.f32 0.01, %v2286_v19 }
 0x2e2   : >> { %4959 = vmatpush.bf16.msrb.mxu3 %v6681_v33  ;;  %2793 = vrot.lane.b32.xlu1 %v8334_v34, %s7312_s17  ;;  %v6649_v34 = vor.u32 %v7164_v9, %v6648_v43  ;;  %v2270_v11 = vadd.f32 %v2269_v7, %v2246_v1 }
 0x2e3   : >> { %v2448_v35 = vsel %vm2400_vm1, %v2286_v19, %v2424_v46  ;;  %v2331_v19 = vpop.f32.mrf.mxu0  ;;  %v2355_v46 = vpop.f32.mrf.mxu1 }
 0x2e4   : >> { %v8502_v42 = vmul.f32 %v8485_v41, %v2448_v35 }
 0x2e5   : >> { %v2223_v2 = vpop.f32.mrf.mxu3 }
 0x2e6   : >> { %v2288_v57 = vpop.f32.mrf.mxu2  ;;  %4960 = vmatpush.bf16.msrb.mxu3 %v6665_v59  ;;  %v8515_v12 = vpack.c.bf16 %v8502_v42, %v8434_v51  ;;  %v2224_v51 = vadd.f32 %v2223_v2, %v8380_v25 }
 0x2e7   : >> { %v2289_v3 = vadd.f32 %v2288_v57, %v2265_v31 }
 0x2e8   : >> { %2693 = vrot.lane.b32.xlu2 %v8495_v36, %s7311_s16 }
 0x2e9   : >> { %vm2404_vm3 = vcmp.ge.f32.partialorder %v2289_v3, 0.0  ;;  %v2428_v14 = vmul.f32 0.01, %v2289_v3 }
 0x2ea   : >> { %4961 = vmatpush.bf16.msrb.mxu3 %v6649_v34  ;;  %2799 = vrot.lane.b32.xlu1 %v8350_v56, %s7312_s17 }
 0x2eb   : >> { %v2452_v39 = vsel %vm2404_vm3, %v2289_v3, %v2428_v14  ;;  %v2333_v59 = vpop.f32.mrf.mxu0  ;;  %v2357_v43 = vpop.f32.mrf.mxu1 }
 0x2ec   : >> { %v8511_v61 = vmul.f32 %v8485_v41, %v2452_v39 }
 0x2ed   : >> { %v2307_v37 = vpop.f32.mrf.mxu3 }
 0x2ee   : >> { %v2290_v28 = vpop.f32.mrf.mxu2  ;;  %v8529_v6 = vpack.c.bf16 %v8511_v61, %v8446_v53  ;;  %v2308_v35 = vadd.f32 %v2307_v37, %v8299_v52 }
 0x2ef   : >> { %v2291_v23 = vadd.f32 %v2290_v28, %v2267_v60  ;;  %v8556_v28 = vperm.slane %v9738_v0, 3 }
 0x2f0   : >> { %2597 = vrot.lane.b32.xlu2 %v8515_v12, %s7310_s15  ;;  %v2332_v2 = vadd.f32 %v2331_v19, %v2308_v35 }
 0x2f1   : >> { %vm2408_vm9 = vcmp.ge.f32.partialorder %v2291_v23, 0.0  ;;  %v2432_v38 = vmul.f32 0.01, %v2291_v23  ;;  %9748 = vst [vmem:[#allocation9_spill] sm:$0xff] %v8556_v28 }
 0x2f2   : >> { %2805 = vrot.lane.b32.xlu1 %v8371_v4, %s7312_s17  ;;  %v2248_v4 = vadd.f32 %v2247_v58, %v2224_v51  ;;  %v2356_v34 = vadd.f32 %v2355_v46, %v2332_v2 }
 0x2f3   : >> { %v2456_v20 = vsel %vm2408_vm9, %v2291_v23, %v2432_v38  ;;  %vm9749_vm9 = vcmask 162816  }
 0x2f4   : >> { %v8522_v49 = vmul.f32 %v8485_v41, %v2456_v20  ;;  %v8525_v8 = vpop.permute.xlu1 %2589  ;;  %v2272_v53 = vadd.f32 %v2271_v32, %v2248_v4  ;;  %v2336_v32 = vpop.f32.mrf.mxu0 }
 0x2f5   : >> { %v2309_v31 = vpop.f32.mrf.mxu3 }
 0x2f6   : >> { %v2293_v40 = vpop.f32.mrf.mxu2  ;;  %v8541_v9 = vpack.c.bf16 %v8522_v49, %v8457_v50  ;;  %v2310_v55 = vadd.f32 %v2309_v31, %v8311_v47 }
 0x2f7   : >> { %v2294_v33 = vadd.f32 %v2293_v40, %v2270_v11  ;;  %v2360_v11 = vpop.f32.mrf.mxu1 }
 0x2f8   : >> { %2603 = vrot.lane.b32.xlu2 %v8529_v6, %s7310_s15  ;;  %v2334_v1 = vadd.f32 %v2333_v59, %v2310_v55 }
 0x2f9   : >> { %vm2412_vm4 = vcmp.ge.f32.partialorder %v2294_v33, 0.0  ;;  %v2436_v18 = vmul.f32 0.01, %v2294_v33 }
 0x2fa   : >> { %2811 = vrot.lane.b32.xlu1 %v8386_v13, %s7312_s17  ;;  %v2358_v20 = vadd.f32 %v2357_v43, %v2334_v1 }
 0x2fb   : >> { %v2460_v21 = vsel %vm2412_vm4, %v2294_v33, %v2436_v18  ;;  %vm9750_vm4 = vmmov %vm9749_vm9 }
 0x2fc   : >> { %v8537_v7 = vmul.f32 %v8485_v41, %v2460_v21  ;;  %v8543_v3 = vpop.permute.xlu1 %2595  ;;  %v2338_v31 = vpop.f32.mrf.mxu0 }
 0x2fd   : >> { %v2312_v58 = vpop.f32.mrf.mxu3 }
 0x2fe   : >> { %v2295_v5 = vpop.f32.mrf.mxu2  ;;  %v8553_v39 = vpack.c.bf16 %v8537_v7, %v8469_v62  ;;  %v2313_v47 = vadd.f32 %v2312_v58, %v8322_v17 }
 0x2ff   : >> { %v2296_v57 = vadd.f32 %v2295_v5, %v2272_v53  ;;  %v2362_v5 = vpop.f32.mrf.mxu1 }
 0x300   : >> { %2609 = vrot.lane.b32.xlu2 %v8541_v9, %s7310_s15  ;;  %v2337_v4 = vadd.f32 %v2336_v32, %v2313_v47 }
 0x301   : >> { %vm2416_vm10 = vcmp.ge.f32.partialorder %v2296_v57, 0.0  ;;  %v2440_v52 = vmul.f32 0.01, %v2296_v57 }
 0x302   : >> { %v2361_v35 = vadd.f32 %v2360_v11, %v2337_v4 }
 0x303   : >> { %v2464_v24 = vsel %vm2416_vm10, %v2296_v57, %v2440_v52  ;;  %vm9751_vm10 = vmmov %vm9750_vm4 }
 0x304   : >> { %v8548_v14 = vmul.f32 %v8485_v41, %v2464_v24  ;;  %v8560_v37 = vpop.permute.xlu1 %2601  ;;  %v2341_v55 = vpop.f32.mrf.mxu0 }
 0x305   : >> { %v2314_v19 = vpop.f32.mrf.mxu3 }
 0x306   : >> { %v2379_v50 = vpop.f32.mrf.mxu2  ;;  %v8568_v33 = vpack.c.bf16 %v8548_v14, %v8479_v48  ;;  %v2315_v59 = vadd.f32 %v2314_v19, %v8342_v54 }
 0x307   : >> { %v2380_v60 = vadd.f32 %v2379_v50, %v2356_v34 }
 0x308   : >> { %2615 = vrot.lane.b32.xlu2 %v8553_v39, %s7310_s15  ;;  %v2339_v34 = vadd.f32 %v2338_v31, %v2315_v59 }
 0x309   : >> { %vm2397_vm12 = vcmp.ge.f32.partialorder %v2380_v60, 0.0  ;;  %v2421_v23 = vmul.f32 0.01, %v2380_v60 }
 0x30a   : >> { %v2363_v50 = vadd.f32 %v2362_v5, %v2339_v34 }
 0x30b   : >> { %v2445_v38 = vsel %vm2397_vm12, %v2380_v60, %v2421_v23  ;;  %vm9752_vm12 = vmmov %vm9750_vm4 }
 0x30c   : >> { %v2478_v62 = vmul.f32 %v8556_v28, %v2445_v38  ;;  %v8578_v53 = vpop.permute.xlu1 %2607 }
 0x30d   : >> { %v2317_v43 = vpop.f32.mrf.mxu3 }
 0x30e   : >> { %2502 = vst [vmem:[#allocation4 + $0xb0] sm:$0xff] %v2478_v62  ;;  %v2381_v51 = vpop.f32.mrf.mxu2  ;;  %v8564_v40 = vpack.c.bf16 %v2478_v62, %v2478_v62  ;;  %v8571_v46 = vpack.c.bf16 %v2478_v62, %v8491_v16  ;;  %v2318_v60 = vadd.f32 %v2317_v43, %v8359_v63 }
 0x30f   : >> { %v2382_v18 = vadd.f32 %v2381_v51, %v2358_v20  ;;  %v2365_v20 = vpop.f32.mrf.mxu1 }
 0x310   : >> { %2593 = vrot.lane.b32.xlu0 %v8564_v40, %s7310_s15  ;;  %2621 = vrot.lane.b32.xlu2 %v8568_v33, %s7310_s15  ;;  %3082 = vst [vmem:[#allocation5 + $0x4a8] sm:$0xff] %v8571_v46  ;;  %v2342_v63 = vadd.f32 %v2341_v55, %v2318_v60 }
 0x311   : >> { %vm2401_vm13 = vcmp.ge.f32.partialorder %v2382_v18, 0.0  ;;  %v2425_v17 = vmul.f32 0.01, %v2382_v18 }
 0x313   : >> { %v2449_v21 = vsel %vm2401_vm13, %v2382_v18, %v2425_v17  ;;  %vm9753_vm13 = vmmov %vm9750_vm4 }
 0x314   : >> { %v2482_v16 = vmul.f32 %v8556_v28, %v2449_v21  ;;  %v8591_v32 = vpop.permute.xlu1 %2613 }
 0x315   : >> { %v2319_v51 = vpop.f32.mrf.mxu3 }
 0x316   : >> { %2506 = vst [vmem:[#allocation4 + $0x118] sm:$0xff] %v2482_v16  ;;  %v2384_v2 = vpop.f32.mrf.mxu2  ;;  %v8583_v57 = vpack.c.bf16 %v2482_v16, %v8502_v42  ;;  %v8593_v47 = vpack.c.bf16 %v2482_v16, %v2482_v16  ;;  %v2320_v17 = vadd.f32 %v2319_v51, %v8380_v25 }
 0x317   : >> { %v2385_v52 = vadd.f32 %v2384_v2, %v2361_v35  ;;  %v2343_v35 = vpop.f32.mrf.mxu0 }
 0x318   : >> { %2695 = vrot.lane.b32.xlu0 %v8564_v40, %s7311_s16  ;;  %2699 = vrot.lane.b32.xlu2 %v8515_v12, %s7311_s16  ;;  %v2344_v25 = vadd.f32 %v2343_v35, %v2320_v17 }
 0x319   : >> { %vm2405_vm14 = vcmp.ge.f32.partialorder %v2385_v52, 0.0  ;;  %v2429_v24 = vmul.f32 0.01, %v2385_v52 }
 0x31b   : >> { %v2453_v58 = vsel %vm2405_vm14, %v2385_v52, %v2429_v24  ;;  %vm9754_vm14 = vmmov %vm9750_vm4 }
 0x31c   : >> { %v2486_v54 = vmul.f32 %v8556_v28, %v2453_v58  ;;  %v8611_v5 = vpop.permute.xlu1 %2619 }
 0x31d   : >> { %v2905_v1 = vld [vmem:[#allocation4 + $0x118] sm:$0xff] }
 0x31e   : >> { %2510 = vst [vmem:[#allocation4 + $0x38] sm:$0xff] %v2486_v54  ;;  %v2386_v23 = vpop.f32.mrf.mxu2  ;;  %v8596_v38 = vpack.c.bf16 %v2486_v54, %v8511_v61  ;;  %v3072_v11 = vpack.c.bf16 %v2905_v1, %v8502_v42  ;;  %v2366_v42 = vadd.f32 %v2365_v20, %v2342_v63  ;;  %v8621_v58 = vpack.c.bf16 %v2486_v54, %v2486_v54 }
 0x31f   : >> { %v2387_v62 = vadd.f32 %v2386_v23, %v2363_v50 }
 0x320   : >> { %2599 = vrot.lane.b32.xlu0 %v8593_v47, %s7310_s15  ;;  %2705 = vrot.lane.b32.xlu2 %v8529_v6, %s7311_s16  ;;  %3084 = vst [vmem:[#allocation5 + $0x4b8] sm:$0xff] %v3072_v11  ;;  %v2625_v11 = vrot.slane %v8525_v8, 4 }
 0x321   : >> { %vm2409_vm15 = vcmp.ge.f32.partialorder %v2387_v62, 0.0  ;;  %v2433_v19 = vmul.f32 0.01, %v2387_v62  ;;  %3401 = vrot.lane.b32.xlu1 %v8596_v38, %s7326_s11 }
 0x323   : >> { %v2457_v4 = vsel %vm2409_vm15, %v2387_v62, %v2433_v19  ;;  %vm9755_vm15 = vmmov %vm9750_vm4 }
 0x324   : >> { %v2490_v18 = vmul.f32 %v8556_v28, %v2457_v4  ;;  %v2692_v60 = vpop.permute.xlu1 %2691 }
 0x325   : >> { %v2911_v31 = vld [vmem:[#allocation4 + $0x38] sm:$0xff] }
 0x326   : >> { %2514 = vst [vmem:[#allocation4 + $0x40] sm:$0xff] %v2490_v18  ;;  %v2389_v21 = vpop.f32.mrf.mxu2  ;;  %v8608_v16 = vpack.c.bf16 %v2490_v18, %v8522_v49  ;;  %v3074_v59 = vpack.c.bf16 %v2911_v31, %v8511_v61  ;;  %v2367_v49 = vpop.f32.mrf.mxu1  ;;  %v8651_v4 = vpack.c.bf16 %v2490_v18, %v2490_v18 }
 0x327   : >> { %v2390_v2 = vadd.f32 %v2389_v21, %v2366_v42  ;;  %v2368_v34 = vadd.f32 %v2367_v49, %v2344_v25 }
 0x328   : >> { %2701 = vrot.lane.b32.xlu0 %v8593_v47, %s7311_s16  ;;  %2711 = vrot.lane.b32.xlu2 %v8541_v9, %s7311_s16  ;;  %3088 = vst [vmem:[#allocation5 + $0x4d8] sm:$0xff] %v8608_v16 }
 0x329   : >> { %vm2413_vm1 = vcmp.ge.f32.partialorder %v2390_v2, 0.0  ;;  %v2437_v52 = vmul.f32 0.01, %v2390_v2  ;;  %2991 = vrot.lane.b32.xlu1 %v8401_v22, %s7323_s30  ;;  %3086 = vst [vmem:[#allocation5 + $0x4c8] sm:$0xff] %v3074_v59 }
 0x32b   : >> { %v2461_v61 = vsel %vm2413_vm1, %v2390_v2, %v2437_v52  ;;  %v2628_v2 = vrot.slane %v8543_v3, 4  ;;  %vm9756_vm1 = vmmov %vm9750_vm4 }
 0x32c   : >> { %v2494_v43 = vmul.f32 %v8556_v28, %v2461_v61  ;;  %v8643_v62 = vpop.permute.xlu1 %2697 }
 0x32e   : >> { %v2391_v24 = vpop.f32.mrf.mxu2  ;;  %v8624_v55 = vpack.c.bf16 %v2494_v43, %v8537_v7  ;;  %v8687_v61 = vpack.c.bf16 %v2494_v43, %v2494_v43 }
 0x32f   : >> { %v2392_v50 = vadd.f32 %v2391_v24, %v2368_v34 }
 0x330   : >> { %2605 = vrot.lane.b32.xlu0 %v8621_v58, %s7310_s15  ;;  %2717 = vrot.lane.b32.xlu2 %v8553_v39, %s7311_s16  ;;  %3090 = vst [vmem:[#allocation5 + $0x4e8] sm:$0xff] %v8624_v55 }
 0x331   : >> { %vm2417_vm3 = vcmp.ge.f32.partialorder %v2392_v50, 0.0  ;;  %v2441_v1 = vmul.f32 0.01, %v2392_v50  ;;  %2999 = vrot.lane.b32.xlu1 %v8568_v33, %s7323_s30 }
 0x333   : >> { %v2465_v54 = vsel %vm2417_vm3, %v2392_v50, %v2441_v1  ;;  %vm9757_vm3 = vcmask 154624  }
 0x334   : >> { %v2498_v23 = vmul.f32 %v8556_v28, %v2465_v54  ;;  %v8666_v31 = vpop.permute.xlu1 %2703  ;;  %v2634_v54 = vrot.slane %v8578_v53, 4  ;;  %v6282_v28 = vld [vmem:[#allocation5 + $0x1d0] sm:$0xf0] }
 0x336   : >> { %2522 = vst [vmem:[#allocation4 + $0x50] sm:$0xff] %v2498_v23  ;;  %v8692_v24 = vpack.c.bf16 %v2498_v23, %v8548_v14 }
 0x338   : >> { %2707 = vrot.lane.b32.xlu0 %v8621_v58, %s7311_s16  ;;  %2723 = vrot.lane.b32.xlu2 %v8568_v33, %s7311_s16 }
 0x339   : >> { %3393 = vrot.lane.b32.xlu1 %v8439_v29, %s7326_s11 }
 0x33a   : >> { %v8640_v7 = vpop.permute.xlu2 %2591 }
 0x33b   : >> { %v2626_v20 = vrot.slane %v8640_v7, 4 }
 0x33c   : >> { %v8689_v34 = vpop.permute.xlu1 %2709 }
 0x33d   : >> { %v2643_v63 = vsel %vm361_vm0, %v2625_v11, %v2626_v20  ;;  %v2929_v19 = vld [vmem:[#allocation4 + $0x50] sm:$0xff] }
 0x33e   : >> { %v2644_v51 = vsel %vm595_vm7, %v8525_v8, %v2643_v63  ;;  %v8654_v42 = vpack.c.bf16 %v2929_v19, %v8548_v14  ;;  %v2727_v8 = vrot.slane %v2692_v60, 4  ;;  %v8726_v19 = vpack.c.bf16 %v2498_v23, %v2498_v23 }
 0x33f   : >> { %2679 = vst [vmem:[#allocation5 + $0x320] sm:$0xff] %v2644_v51  ;;  %v2637_v51 = vrot.slane %v8591_v32, 4 }
 0x340   : >> { %2611 = vrot.lane.b32.xlu0 %v8651_v4, %s7310_s15  ;;  %2795 = vrot.lane.b32.xlu2 %v8495_v36, %s7312_s17  ;;  %3092 = vst [vmem:[#allocation5 + $0x4f8] sm:$0xff] %v8654_v42 }
 0x341   : >> { %2981 = vrot.lane.b32.xlu1 %v8529_v6, %s7323_s30 }
 0x342   : >> { %v8663_v17 = vpop.permute.xlu2 %2693 }
 0x343   : >> { %v2728_v18 = vrot.slane %v8663_v17, 4 }
 0x345   : >> { %v2745_v35 = vsel %vm361_vm0, %v2727_v8, %v2728_v18 }
 0x346   : >> { %v2746_v21 = vsel %vm9749_vm9, %v2692_v60, %v2745_v35  ;;  %vm9758_vm9 = vmmov %vm9757_vm3 }
 0x347   : >> { %2781 = vst [vmem:[#allocation5 + $0x380] sm:$0xff] %v2746_v21 }
 0x348   : >> { %2713 = vrot.lane.b32.xlu0 %v8651_v4, %s7311_s16  ;;  %2801 = vrot.lane.b32.xlu2 %v8515_v12, %s7312_s17 }
 0x349   : >> { %3309 = vrot.lane.b32.xlu1 %v8473_v26, %s7327_s12 }
 0x34a   : >> { %v8678_v59 = vpop.permute.xlu2 %2597 }
 0x34b   : >> { %v2629_v25 = vrot.slane %v8678_v59, 4 }
 0x34d   : >> { %v2647_v52 = vsel %vm361_vm0, %v2628_v2, %v2629_v25  ;;  %v2640_v2 = vrot.slane %v8611_v5, 4 }
 0x34e   : >> { %v2648_v49 = vsel %vm595_vm7, %v8543_v3, %v2647_v52  ;;  %v2631_v3 = vrot.slane %v8560_v37, 4 }
 0x34f   : >> { %2681 = vst [vmem:[#allocation5 + $0x330] sm:$0xff] %v2648_v49 }
 0x350   : >> { %2617 = vrot.lane.b32.xlu0 %v8687_v61, %s7310_s15  ;;  %2807 = vrot.lane.b32.xlu2 %v8529_v6, %s7312_s17  ;;  %v8713_v6 = vpop.permute.xlu1 %2715 }
 0x351   : >> { %3317 = vrot.lane.b32.xlu1 %v8692_v24, %s7327_s12 }
 0x352   : >> { %v8700_v50 = vpop.permute.xlu2 %2603 }
 0x353   : >> { %v2632_v43 = vrot.slane %v8700_v50, 4 }
 0x355   : >> { %v2651_v14 = vsel %vm361_vm0, %v2631_v3, %v2632_v43  ;;  %v3219_v3 = vld [vmem:[#allocation4 + $0x88] sm:$0xff] }
 0x356   : >> { %v2652_v60 = vsel %vm595_vm7, %v8560_v37, %v2651_v14 }
 0x357   : >> { %2683 = vst [vmem:[#allocation5 + $0x340] sm:$0xff] %v2652_v60  ;;  %v8763_v60 = vpack.c.bf16 %v8424_v27, %v3219_v3 }
 0x358   : >> { %2719 = vrot.lane.b32.xlu0 %v8687_v61, %s7311_s16  ;;  %2813 = vrot.lane.b32.xlu2 %v8541_v9, %s7312_s17  ;;  %v8737_v8 = vpop.permute.xlu1 %2721 }
 0x359   : >> { %2973 = vrot.lane.b32.xlu1 %v8350_v56, %s7323_s30 }
 0x35a   : >> { %v8717_v1 = vpop.permute.xlu2 %2609 }
 0x35b   : >> { %v2635_v11 = vrot.slane %v8717_v1, 4 }
 0x35d   : >> { %v2655_v37 = vsel %vm361_vm0, %v2634_v54, %v2635_v11 }
 0x35e   : >> { %v2656_v63 = vsel %vm595_vm7, %v8578_v53, %v2655_v37  ;;  %v2730_v37 = vrot.slane %v8643_v62, 4 }
 0x35f   : >> { %2685 = vst [vmem:[#allocation5 + $0x350] sm:$0xff] %v2656_v63 }
 0x360   : >> { %2623 = vrot.lane.b32.xlu0 %v8726_v19, %s7310_s15  ;;  %3405 = vrot.lane.b32.xlu2 %v8462_v44, %s7326_s11  ;;  %v8755_v49 = vpop.permute.xlu1 %2793  ;;  %s7006_s15 = smul.u32 56, %s7301_s8 }
 0x361   : >> { %3515 = vrot.lane.b32.xlu1 %v8624_v55, %s7324_s9 }
 0x362   : >> { %v8734_v56 = vpop.permute.xlu2 %2615  ;;  %s8995_s27 = scalar_lea.vmem %s9696_s4, %s7006_s15 }
 0x363   : >> { %v2638_v53 = vrot.slane %v8734_v56, 4 }
 0x365   : >> { %v2659_v23 = vsel %vm361_vm0, %v2637_v51, %v2638_v53 }
 0x366   : >> { %v2660_v35 = vsel %vm595_vm7, %v8591_v32, %v2659_v23  ;;  %v2733_v23 = vrot.slane %v8666_v31, 4 }
 0x367   : >> { %2687 = vst [vmem:[#allocation5 + $0x360] sm:$0xff] %v2660_v35 }
 0x368   : >> { %2725 = vrot.lane.b32.xlu0 %v8726_v19, %s7311_s16  ;;  %2993 = vrot.lane.b32.xlu2 %v8553_v39, %s7323_s30 }
 0x369   : >> { %3297 = vrot.lane.b32.xlu1 %v8451_v15, %s7327_s12 }
 0x36a   : >> { %v8751_v21 = vpop.permute.xlu2 %2621 }
 0x36b   : >> { %v2641_v52 = vrot.slane %v8751_v21, 4 }
 0x36d   : >> { %v2663_v32 = vsel %vm361_vm0, %v2640_v2, %v2641_v52 }
 0x36e   : >> { %v2664_v14 = vsel %vm595_vm7, %v8611_v5, %v2663_v32 }
 0x36f   : >> { %2689 = vst [vmem:[#allocation5 + $0x370] sm:$0xff] %v2664_v14  ;;  %v2736_v14 = vrot.slane %v8689_v34, 4 }
 0x370   : >> { %2797 = vrot.lane.b32.xlu0 %v8564_v40, %s7312_s17  ;;  %3387 = vrot.lane.b32.xlu2 %v8763_v60, %s7326_s11  ;;  %v8780_v40 = vpop.permute.xlu1 %2799 }
 0x371   : >> { %3305 = vrot.lane.b32.xlu1 %v8608_v16, %s7327_s12 }
 0x372   : >> { %v8771_v54 = vpop.permute.xlu2 %2699 }
 0x373   : >> { %v2731_v63 = vrot.slane %v8771_v54, 4 }
 0x375   : >> { %v2749_v27 = vsel %vm361_vm0, %v2730_v37, %v2731_v63 }
 0x376   : >> { %v2750_v5 = vsel %vm9750_vm4, %v8643_v62, %v2749_v27  ;;  %vm9759_vm4 = vmmov %vm9756_vm1 }
 0x377   : >> { %2783 = vst [vmem:[#allocation5 + $0x390] sm:$0xff] %v2750_v5 }
 0x378   : >> { %2803 = vrot.lane.b32.xlu0 %v8593_v47, %s7312_s17  ;;  %3395 = vrot.lane.b32.xlu2 %v8583_v57, %s7326_s11  ;;  %v8801_v47 = vpop.permute.xlu1 %2805 }
 0x379   : >> { %2823 = vrot.lane.b32.xlu1 %v8417_v30, %s7312_s17 }
 0x37a   : >> { %v8788_v51 = vpop.permute.xlu2 %2705 }
 0x37b   : >> { %v2734_v35 = vrot.slane %v8788_v51, 4 }
 0x37d   : >> { %v2753_v62 = vsel %vm361_vm0, %v2733_v23, %v2734_v35 }
 0x37e   : >> { %v2754_v2 = vsel %vm9751_vm10, %v8666_v31, %v2753_v62  ;;  %v2739_v62 = vrot.slane %v8713_v6, 4  ;;  %vm9760_vm10 = vmmov %vm9757_vm3 }
 0x37f   : >> { %2785 = vst [vmem:[#allocation5 + $0x3a0] sm:$0xff] %v2754_v2 }
 0x380   : >> { %2809 = vrot.lane.b32.xlu0 %v8621_v58, %s7312_s17  ;;  %2985 = vrot.lane.b32.xlu2 %v8386_v13, %s7323_s30 }
 0x381   : >> { %3503 = vrot.lane.b32.xlu1 %v8596_v38, %s7324_s9 }
 0x382   : >> { %v2594_v32 = vpop.permute.xlu0 %2593  ;;  %v8805_v3 = vpop.permute.xlu2 %2711 }
 0x383   : >> { %v2627_v37 = vrot.slane %v2594_v32, 4  ;;  %v2737_v31 = vrot.slane %v8805_v3, 4  ;;  %v2895_v32 = vld [vmem:[#allocation4 + $0x78] sm:$0xff] }
 0x385   : >> { %v2645_v58 = vsel %vm361_vm0, %v2626_v20, %v2627_v37  ;;  %v2757_v13 = vsel %vm361_vm0, %v2736_v14, %v2737_v31 }
 0x386   : >> { %v2646_v27 = vsel %vm595_vm7, %v8640_v7, %v2645_v58  ;;  %v2758_v5 = vsel %vm9752_vm12, %v8689_v34, %v2757_v13  ;;  %v8828_v7 = vpop.permute.xlu1 %2811  ;;  %v7272_v13 = vld [vmem:[#allocation4 + $0x88] sm:$0xff]  ;;  %vm9761_vm12 = vmmov %vm9757_vm3 }
 0x387   : >> { %2680 = vst [vmem:[#allocation5 + $0x328] sm:$0xff] %v2646_v27  ;;  %v2931_v27 = vpack.c.bf16 %v7272_v13, %v2895_v32 }
 0x388   : >> { %2787 = vst [vmem:[#allocation5 + $0x3b0] sm:$0xff] %v2758_v5  ;;  %3399 = vrot.lane.b32.xlu0 %v8451_v15, %s7326_s11  ;;  %3311 = vrot.lane.b32.xlu2 %v8624_v55, %s7327_s12 }
 0x389   : >> { %3285 = vrot.lane.b32.xlu1 %v8763_v60, %s7327_s12 }
 0x38a   : >> { %v2696_v20 = vpop.permute.xlu0 %2695  ;;  %v8825_v23 = vpop.permute.xlu2 %2717 }
 0x38b   : >> { %v2729_v2 = vrot.slane %v2696_v20, 4  ;;  %v2740_v34 = vrot.slane %v8825_v23, 4 }
 0x38d   : >> { %v2747_v15 = vsel %vm361_vm0, %v2728_v18, %v2729_v2  ;;  %v2761_v14 = vsel %vm361_vm0, %v2739_v62, %v2740_v34 }
 0x38e   : >> { %v2748_v37 = vsel %vm9753_vm13, %v8663_v17, %v2747_v15  ;;  %v2762_v58 = vsel %vm9754_vm14, %v8713_v6, %v2761_v14  ;;  %v2742_v17 = vrot.slane %v8737_v8, 4  ;;  %vm9762_vm13 = vmmov %vm9756_vm1 }
 0x38f   : >> { %2782 = vst [vmem:[#allocation5 + $0x388] sm:$0xff] %v2748_v37  ;;  %vm9763_vm14 = vmmov %vm9756_vm1 }
 0x390   : >> { %2789 = vst [vmem:[#allocation5 + $0x3c0] sm:$0xff] %v2762_v58  ;;  %3407 = vrot.lane.b32.xlu0 %v8608_v16, %s7326_s11  ;;  %2967 = vrot.lane.b32.xlu2 %v2931_v27, %s7323_s30  ;;  %v2829_v58 = vrot.slane %v8755_v49, 4  ;;  %v3244_v27 = vld [vmem:[#allocation4 + $0xe8] sm:$0xff] }
 0x391   : >> { %3293 = vrot.lane.b32.xlu1 %v8583_v57, %s7327_s12 }
 0x392   : >> { %v2600_v18 = vpop.permute.xlu0 %2599  ;;  %v8846_v5 = vpop.permute.xlu2 %2723 }
 0x393   : >> { %v2630_v20 = vrot.slane %v2600_v18, 4  ;;  %v2743_v6 = vrot.slane %v8846_v5, 4  ;;  %v8850_v62 = vpop.permute.xlu1 %3401 }
 0x395   : >> { %v2649_v2 = vsel %vm361_vm0, %v2629_v25, %v2630_v20  ;;  %v2765_v32 = vsel %vm361_vm0, %v2742_v17, %v2743_v6  ;;  %v8885_v17 = vpack.c.bf16 %v8479_v48, %v3244_v27 }
 0x396   : >> { %v2650_v15 = vsel %vm595_vm7, %v8678_v59, %v2649_v2  ;;  %v2766_v14 = vsel %vm9755_vm15, %v8737_v8, %v2765_v32  ;;  %v2907_v32 = vld [vmem:[#allocation4 + $0x68] sm:$0xff]  ;;  %vm9765_vm15 = vmmov %vm9757_vm3 }
 0x397   : >> { %2682 = vst [vmem:[#allocation5 + $0x338] sm:$0xff] %v2650_v15 }
 0x398   : >> { %2791 = vst [vmem:[#allocation5 + $0x3d0] sm:$0xff] %v2766_v14  ;;  %2997 = vrot.lane.b32.xlu0 %v8417_v30, %s7323_s30  ;;  %2975 = vrot.lane.b32.xlu2 %v8515_v12, %s7323_s30 }
 0x399   : >> { %3495 = vrot.lane.b32.xlu1 %v8439_v29, %s7324_s9 }
 0x39a   : >> { %v2702_v25 = vpop.permute.xlu0 %2701  ;;  %v8868_v37 = vpop.permute.xlu2 %2795 }
 0x39b   : >> { %v2732_v59 = vrot.slane %v2702_v25, 4  ;;  %v2830_v13 = vrot.slane %v8868_v37, 4  ;;  %v8872_v8 = vpop.permute.xlu1 %2991 }
 0x39d   : >> { %v2751_v30 = vsel %vm361_vm0, %v2731_v63, %v2732_v59  ;;  %v2847_v12 = vsel %vm361_vm0, %v2829_v58, %v2830_v13  ;;  %v7273_v59 = vld [vmem:[#allocation4 + $0x8] sm:$0xff] }
 0x39e   : >> { %v2752_v29 = vsel %vm9756_vm1, %v8771_v54, %v2751_v30  ;;  %v2848_v18 = vsel %vm9757_vm3, %v8755_v49, %v2847_v12  ;;  %v2832_v54 = vrot.slane %v8780_v40, 4  ;;  %v2937_v30 = vpack.c.bf16 %v7273_v59, %v2907_v32 }
 0x39f   : >> { %2784 = vst [vmem:[#allocation5 + $0x398] sm:$0xff] %v2752_v29 }
 0x3a0   : >> { %2883 = vst [vmem:[#allocation5 + $0x3e0] sm:$0xff] %v2848_v18  ;;  %3389 = vrot.lane.b32.xlu0 %v8571_v46, %s7326_s11  ;;  %3519 = vrot.lane.b32.xlu2 %v8885_v17, %s7324_s9 }
 0x3a1   : >> { %3143 = vrot.lane.b32.xlu1 %v8624_v55, %s7320_s26 }
 0x3a2   : >> { %v2606_v63 = vpop.permute.xlu0 %2605  ;;  %v8893_v20 = vpop.permute.xlu2 %2801 }
 0x3a3   : >> { %v2633_v49 = vrot.slane %v2606_v63, 4  ;;  %v2833_v48 = vrot.slane %v8893_v20, 4  ;;  %v8897_v2 = vpop.permute.xlu1 %2999 }
 0x3a5   : >> { %v2653_v15 = vsel %vm361_vm0, %v2632_v43, %v2633_v49  ;;  %v2851_v14 = vsel %vm361_vm0, %v2832_v54, %v2833_v48 }
 0x3a6   : >> { %v2654_v25 = vsel %vm595_vm7, %v8700_v50, %v2653_v15  ;;  %v2852_v58 = vsel %vm9758_vm9, %v8780_v40, %v2851_v14  ;;  %v2835_v50 = vrot.slane %v8801_v47, 4  ;;  %v7136_v15 = vld [vmem:[#allocation5 + $0x3cc] sm:$0xf0] }
 0x3a7   : >> { %2684 = vst [vmem:[#allocation5 + $0x348] sm:$0xff] %v2654_v25  ;;  %v6552_v49 = vld [vmem:[#allocation5 + $0x3e0] sm:$0xf] }
 0x3a8   : >> { %2885 = vst [vmem:[#allocation5 + $0x3f0] sm:$0xff] %v2852_v58  ;;  %2979 = vrot.lane.b32.xlu0 %v2937_v30, %s7323_s30  ;;  %3299 = vrot.lane.b32.xlu2 %v8596_v38, %s7327_s12 }
 0x3a9   : >> { %3411 = vrot.lane.b32.xlu1 %v8473_v26, %s7326_s11 }
 0x3aa   : >> { %v2708_v43 = vpop.permute.xlu0 %2707  ;;  %v8914_v12 = vpop.permute.xlu2 %2807 }
 0x3ab   : >> { %v2735_v27 = vrot.slane %v2708_v43, 4  ;;  %v2836_v40 = vrot.slane %v8914_v12, 4  ;;  %v8918_v29 = vpop.permute.xlu1 %3393 }
 0x3ad   : >> { %v2755_v18 = vsel %vm361_vm0, %v2734_v35, %v2735_v27  ;;  %v2855_v38 = vsel %vm361_vm0, %v2835_v50, %v2836_v40  ;;  %v7132_v50 = vld [vmem:[#allocation5 + $0x3ac] sm:$0xf0] }
 0x3ae   : >> { %v2756_v63 = vsel %vm9759_vm4, %v8788_v51, %v2755_v18  ;;  %v2856_v54 = vsel %vm9760_vm10, %v8801_v47, %v2855_v38  ;;  %v2838_v47 = vrot.slane %v8828_v7, 4  ;;  %v6520_v38 = vld [vmem:[#allocation5 + $0x3a0] sm:$0xf] }
 0x3af   : >> { %2786 = vst [vmem:[#allocation5 + $0x3a8] sm:$0xff] %v2756_v63  ;;  %v7140_v32 = vld [vmem:[#allocation5 + $0x3ec] sm:$0xf0] }
 0x3b0   : >> { %2887 = vst [vmem:[#allocation5 + $0x400] sm:$0xff] %v2856_v54  ;;  %2987 = vrot.lane.b32.xlu0 %v8541_v9, %s7323_s30  ;;  %2817 = vrot.lane.b32.xlu2 %v8401_v22, %s7312_s17  ;;  %v6553_v35 = vor.u32 %v7140_v32, %v6552_v49  ;;  %v6536_v9 = vld [vmem:[#allocation5 + $0x3c0] sm:$0xf]  ;;  %v7128_v63 = vld [vmem:[#allocation5 + $0x38c] sm:$0xf0] }
 0x3b1   : >> { %3419 = vrot.lane.b32.xlu1 %v8692_v24, %s7326_s11  ;;  %v6537_v30 = vor.u32 %v7136_v15, %v6536_v9  ;;  %v6504_v32 = vld [vmem:[#allocation5 + $0x380] sm:$0xf]  ;;  %v7120_v9 = vld [vmem:[#allocation5 + $0x34c] sm:$0xf0] }
 0x3b2   : >> { %4945 = vmatpush.bf16.msra.mxu2 %v6553_v35  ;;  %v2612_v51 = vpop.permute.xlu0 %2611  ;;  %v8936_v14 = vpop.permute.xlu2 %2813  ;;  %v6505_v35 = vor.u32 %v7128_v63, %v6504_v32  ;;  %v7116_v63 = vld [vmem:[#allocation5 + $0x32c] sm:$0xf0]  ;;  %v6456_v32 = vld [vmem:[#allocation5 + $0x320] sm:$0xf] }
 0x3b3   : >> { %v2636_v25 = vrot.slane %v2612_v51, 4  ;;  %v9708_v58 = vrot.slane %v8936_v14, 4  ;;  %v8940_v59 = vpop.permute.xlu1 %2981  ;;  %v7124_v51 = vld [vmem:[#allocation5 + $0x36c] sm:$0xf0] }
 0x3b5   : >> { %v2657_v22 = vsel %vm361_vm0, %v2635_v11, %v2636_v25  ;;  %v2859_v43 = vsel %vm361_vm0, %v2838_v47, %v9708_v58  ;;  %v6521_v11 = vor.u32 %v7132_v50, %v6520_v38  ;;  %v6488_v47 = vld [vmem:[#allocation5 + $0x360] sm:$0xf] }
 0x3b6   : >> { %v2658_v27 = vsel %vm595_vm7, %v8717_v1, %v2657_v22  ;;  %v2860_v18 = vsel %vm9761_vm12, %v8828_v7, %v2859_v43  ;;  %4946 = vmatpush.bf16.msra.mxu2 %v6537_v30  ;;  %v6489_v25 = vor.u32 %v7124_v51, %v6488_v47  ;;  %v3015_v22 = vrot.slane %v8872_v8, 4  ;;  %v3238_v51 = vld [vmem:[#allocation4 + $0x48] sm:$0xff] }
 0x3b7   : >> { %2686 = vst [vmem:[#allocation5 + $0x358] sm:$0xff] %v2658_v27  ;;  %v6038_v47 = vld [vmem:[%s8995_s27 + $0x24] sm:$0xf0] }
 0x3b8   : >> { %2889 = vst [vmem:[#allocation5 + $0x410] sm:$0xff] %v2860_v18  ;;  %3315 = vrot.lane.b32.xlu0 %v8885_v17, %s7327_s12  ;;  %2825 = vrot.lane.b32.xlu2 %v8568_v33, %s7312_s17 }
 0x3b9   : >> { %3135 = vrot.lane.b32.xlu1 %v8462_v44, %s7320_s26 }
 0x3ba   : >> { %4947 = vmatpush.bf16.msra.mxu2 %v6521_v11  ;;  %v2714_v1 = vpop.permute.xlu0 %2713  ;;  %v8958_v54 = vpop.permute.xlu2 %3405 }
 0x3bb   : >> { %v2738_v7 = vrot.slane %v2714_v1, 4  ;;  %v8960_v49 = vpop.permute.xlu1 %3309 }
 0x3bd   : >> { %v2759_v15 = vsel %vm361_vm0, %v2737_v31, %v2738_v7 }
 0x3be   : >> { %v2760_v33 = vsel %vm9762_vm13, %v8805_v3, %v2759_v15  ;;  %4948 = vmatpush.bf16.msra.mxu2 %v6505_v35  ;;  %v3243_v3 = vld [vmem:[#allocation4 + $0x110] sm:$0xff] }
 0x3bf   : >> { %2788 = vst [vmem:[#allocation5 + $0x3b8] sm:$0xff] %v2760_v33  ;;  %v8986_v11 = vpack.c.bf16 %v3243_v3, %v3243_v3  ;;  %v7008_v33 = vld [vmem:[%s8995_s27 + $0xc] sm:$0xf]  ;;  %v7042_v3 = vld [vmem:[#allocation5 + $0xe4] sm:$0xf] }
 0x3c0   : >> { %2969 = vrot.lane.b32.xlu0 %v8495_v36, %s7323_s30  ;;  %3507 = vrot.lane.b32.xlu2 %v8462_v44, %s7324_s9  ;;  %v6472_v36 = vld [vmem:[#allocation5 + $0x340] sm:$0xf] }
 0x3c1   : >> { %3119 = vrot.lane.b32.xlu1 %v8571_v46, %s7320_s26  ;;  %v6473_v44 = vor.u32 %v7120_v9, %v6472_v36  ;;  %v9012_v36 = vpack.c.bf16 %v3238_v51, %v3238_v51 }
 0x3c2   : >> { %4949 = vmatpush.bf16.msra.mxu2 %v6489_v25  ;;  %v2618_v31 = vpop.permute.xlu0 %2617  ;;  %v8973_v30 = vpop.permute.xlu2 %2993 }
 0x3c3   : >> { %v2639_v43 = vrot.slane %v2618_v31, 4  ;;  %v9721_v50 = vrot.slane %v8973_v30, 4  ;;  %v8977_v27 = vpop.permute.xlu1 %3317 }
 0x3c5   : >> { %v2661_v18 = vsel %vm361_vm0, %v2638_v53, %v2639_v43  ;;  %v3037_v38 = vsel %vm361_vm0, %v3015_v22, %v9721_v50  ;;  %v7112_v53 = vld [vmem:[#allocation5 + $0x30c] sm:$0xf0] }
 0x3c6   : >> { %v2662_v1 = vsel %vm595_vm7, %v8734_v56, %v2661_v18  ;;  %v3038_v7 = vsel %vm794_vm5, %v8872_v8, %v3037_v38  ;;  %4950 = vmatpush.bf16.msra.mxu2 %v6473_v44  ;;  %v6457_v56 = vor.u32 %v7116_v63, %v6456_v32  ;;  %v6170_v8 = vld [vmem:[#allocation5 + $0xf0] sm:$0xf0]  ;;  %v9014_v44 = vor.u32 %v7008_v33, %v6038_v47  ;;  %v7038_v63 = vld [vmem:[#allocation5 + $0xc4] sm:$0xf] }
 0x3c7   : >> { %2688 = vst [vmem:[#allocation5 + $0x368] sm:$0xff] %v2662_v1  ;;  %v6173_v43 = vor.u32 %v7042_v3, %v6170_v8  ;;  %v6154_v38 = vld [vmem:[#allocation5 + $0xd0] sm:$0xf0] }
 0x3c8   : >> { %3065 = vst [vmem:[#allocation5 + $0x480] sm:$0xff] %v3038_v7  ;;  %3513 = vrot.lane.b32.xlu0 %v8473_v26, %s7324_s9  ;;  %3287 = vrot.lane.b32.xlu2 %v8571_v46, %s7327_s12  ;;  %v6440_v26 = vld [vmem:[#allocation5 + $0x300] sm:$0xf]  ;;  %v3233_v32 = vld [vmem:[#allocation4 + $0xf0] sm:$0xff] }
 0x3c9   : >> { %3517 = vrot.lane.b32.xlu1 %v8986_v11, %s7324_s9  ;;  %v6441_v31 = vor.u32 %v7112_v53, %v6440_v26  ;;  %v9037_v47 = vpack.c.bf16 %v3233_v32, %v3233_v32  ;;  %v7274_v3 = vld [vmem:[#allocation5 + $0x4d0] sm:$0xff] }
 0x3ca   : >> { %4951 = vmatpush.bf16.msra.mxu2 %v6457_v56  ;;  %v2720_v35 = vpop.permute.xlu0 %2719  ;;  %v9003_v15 = vpop.permute.xlu2 %3387  ;;  %v3426_v56 = vrot.slane %v8918_v29, 4 }
 0x3cb   : >> { %v2741_v25 = vrot.slane %v2720_v35, 4  ;;  %v9007_v9 = vpop.permute.xlu1 %2973 }
 0x3cd   : >> { %v2763_v22 = vsel %vm361_vm0, %v2740_v34, %v2741_v25  ;;  %v6157_v34 = vor.u32 %v7038_v63, %v6154_v38 }
 0x3ce   : >> { %v2764_v18 = vsel %vm9763_vm14, %v8825_v23, %v2763_v22  ;;  %4952 = vmatpush.bf16.msra.mxu2 %v6441_v31  ;;  %v6138_v23 = vld [vmem:[#allocation5 + $0xb0] sm:$0xf0] }
 0x3cf   : >> { %2790 = vst [vmem:[#allocation5 + $0x3c8] sm:$0xff] %v2764_v18  ;;  %v6122_v31 = vld [vmem:[#allocation5 + $0x90] sm:$0xf0]  ;;  %v7158_v58 = vld [vmem:[#allocation5 + $0x484] sm:$0xf] }
 0x3d0   : >> { %3521 = vrot.lane.b32.xlu0 %v8692_v24, %s7324_s9  ;;  %3489 = vrot.lane.b32.xlu2 %v8763_v60, %s7324_s9  ;;  %v7034_v60 = vld [vmem:[#allocation5 + $0xa4] sm:$0xf]  ;;  %v6106_v18 = vld [vmem:[#allocation5 + $0x70] sm:$0xf0] }
 0x3d1   : >> { %3409 = vrot.lane.b32.xlu1 %v9012_v36, %s7326_s11  ;;  %4953 = vmatmul.bf16.vlgmr.msra.gmra.mxu2 %v9014_v44  ;;  %v6141_v33 = vor.u32 %v7034_v60, %v6138_v23  ;;  %v7022_v60 = vld [vmem:[#allocation5 + $0x44] sm:$0xf] }
 0x3d2   : >> { %5001 = vmatpush.bf16.msrb.mxu2 %v6173_v43  ;;  %v2624_v1 = vpop.permute.xlu0 %2623  ;;  %v9025_v7 = vpop.permute.xlu2 %3395 }
 0x3d3   : >> { %v2642_v53 = vrot.slane %v2624_v1, 4  ;;  %v9723_v24 = vrot.slane %v9025_v7, 4  ;;  %v9029_v8 = vpop.permute.xlu1 %3515 }
 0x3d5   : >> { %v2665_v35 = vsel %vm361_vm0, %v2641_v52, %v2642_v53  ;;  %v3445_v51 = vsel %vm361_vm0, %v3426_v56, %v9723_v24  ;;  %v7030_v52 = vld [vmem:[#allocation5 + $0x84] sm:$0xf]  ;;  %v6090_v56 = vld [vmem:[#allocation5 + $0x50] sm:$0xf0] }
 0x3d6   : >> { %5002 = vmatpush.bf16.msrb.mxu2 %v6157_v34  ;;  %v2666_v25 = vsel %vm595_vm7, %v8751_v21, %v2665_v35  ;;  %v3446_v26 = vsel %vm1007_vm11, %v8918_v29, %v3445_v51  ;;  %v6125_v22 = vor.u32 %v7030_v52, %v6122_v31  ;;  %v3228_v29 = vld [vmem:[#allocation4 + $0x30] sm:$0xff]  ;;  %v7026_v34 = vld [vmem:[#allocation5 + $0x64] sm:$0xf]  ;;  %vm9764_vm7 = vmmov %vm9756_vm1 }
 0x3d7   : >> { %2690 = vst [vmem:[#allocation5 + $0x378] sm:$0xff] %v2666_v25  ;;  %v9055_v23 = vpack.c.bf16 %v3228_v29, %v3228_v29  ;;  %v7275_v53 = vld [vmem:[#allocation5 + $0x4f0] sm:$0xff]  ;;  %v3223_v25 = vld [vmem:[#allocation4 + $0x80] sm:$0xff]  ;;  %vm9766_vm1 = vmmov %vm9757_vm3 }
 0x3d8   : >> { %3479 = vst [vmem:[#allocation5 + $0x5d0] sm:$0xff] %v3446_v26  ;;  %3303 = vrot.lane.b32.xlu0 %v7274_v3, %s7327_s12  ;;  %3497 = vrot.lane.b32.xlu2 %v8583_v57, %s7324_s9  ;;  %v6109_v57 = vor.u32 %v7026_v34, %v6106_v18  ;;  %v7018_v3 = vld [vmem:[#allocation5 + $0x24] sm:$0xf]  ;;  %v9076_v18 = vpack.c.bf16 %v3223_v25, %v3223_v25  ;;  %vm9767_vm3 = vmmov %vm9766_vm1 }
 0x3d9   : >> { %3505 = vrot.lane.b32.xlu1 %v9037_v47, %s7324_s9  ;;  %v7014_v34 = vld [vmem:[#allocation5 + $0x4] sm:$0xf]  ;;  %vm9768_vm9 = vmmov %vm9766_vm1 }
 0x3da   : >> { %5003 = vmatpush.bf16.msrb.mxu2 %v6141_v33  ;;  %v2726_v43 = vpop.permute.xlu0 %2725  ;;  %v9048_v21 = vpop.permute.xlu2 %2985  ;;  %v6074_v33 = vld [vmem:[#allocation5 + $0x30] sm:$0xf0]  ;;  %v7166_v25 = vld [vmem:[#allocation5 + $0x4c4] sm:$0xf]  ;;  %vm9770_vm4 = vmmov %vm9766_vm1 }
 0x3db   : >> { %v2744_v38 = vrot.slane %v2726_v43, 4  ;;  %v9050_v63 = vpop.permute.xlu1 %3297  ;;  %v6077_v43 = vor.u32 %v7018_v3, %v6074_v33  ;;  %v6666_v33 = vld [vmem:[#allocation5 + $0x4d0] sm:$0xf0]  ;;  %vm9783_vm10 = vmmov %vm9766_vm1 }
 0x3dc   : >> { %v6669_v3 = vor.u32 %v7166_v25, %v6666_v33  ;;  %v6030_v33 = vld [vmem:[%s8995_s27 + $0x1c] sm:$0xf0]  ;;  %v7277_v25 = vld [vmem:[#allocation5 + $0x4b0] sm:$0xff] }
 0x3dd   : >> { %v2767_v1 = vsel %vm361_vm0, %v2743_v6, %v2744_v38  ;;  %v6093_v6 = vor.u32 %v7022_v60, %v6090_v56  ;;  %v3248_v60 = vld [vmem:[#allocation4 + $0xb8] sm:$0xff] }
 0x3de   : >> { %5004 = vmatpush.bf16.msrb.mxu2 %v6125_v22  ;;  %v2768_v32 = vsel %vm9764_vm7, %v8846_v5, %v2767_v1  ;;  %v3333_v5 = vrot.slane %v8960_v49, 4  ;;  %v6058_v1 = vld [vmem:[#allocation5 + $0x10] sm:$0xf0] }
 0x3df   : >> { %2792 = vst [vmem:[#allocation5 + $0x3d8] sm:$0xff] %v2768_v32  ;;  %v6061_v32 = vor.u32 %v7014_v34, %v6058_v1  ;;  %v3006_v1 = vrot.slane %v9007_v9, 4 }
 0x3e0   : >> { %2819 = vrot.lane.b32.xlu0 %v8553_v39, %s7312_s17  ;;  %3147 = vrot.lane.b32.xlu2 %v7275_v53, %s7320_s26 }
 0x3e1   : >> { %3397 = vrot.lane.b32.xlu1 %v9055_v23, %s7326_s11 }
 0x3e2   : >> { %5005 = vmatpush.bf16.msrb.mxu2 %v6109_v57  ;;  %v2798_v35 = vpop.permute.xlu0 %2797  ;;  %v9064_v51 = vpop.permute.xlu2 %3311  ;;  %v6682_v57 = vld [vmem:[#allocation5 + $0x4f0] sm:$0xf0] }
 0x3e3   : >> { %v2831_v26 = vrot.slane %v2798_v35, 4  ;;  %v9711_v31 = vrot.slane %v9064_v51, 4  ;;  %v9068_v39 = vpop.permute.xlu1 %3305 }
 0x3e5   : >> { %v2849_v52 = vsel %vm361_vm0, %v2830_v13, %v2831_v26  ;;  %v3355_v22 = vsel %vm361_vm0, %v3333_v5, %v9711_v31  ;;  %v7276_v13 = vld [vmem:[#allocation5 + $0x4c0] sm:$0xff]  ;;  %v9094_v5 = vpack.c.bf16 %v3248_v60, %v3248_v60 }
 0x3e6   : >> { %5006 = vmatpush.bf16.msrb.mxu2 %v6093_v6  ;;  %v2850_v29 = vsel %vm9765_vm15, %v8868_v37, %v2849_v52  ;;  %v3356_v38 = vsel %vm972_vm8, %v8960_v49, %v3355_v22  ;;  %v7170_v37 = vld [vmem:[#allocation5 + $0x4e4] sm:$0xf]  ;;  %v6028_v52 = vld [vmem:[%s8995_s27] sm:$0xf]  ;;  %v7010_v22 = vld [vmem:[%s8995_s27 + $0x18] sm:$0xf0] }
 0x3e7   : >> { %2884 = vst [vmem:[#allocation5 + $0x3e8] sm:$0xff] %v2850_v29  ;;  %v6685_v53 = vor.u32 %v7170_v37, %v6682_v57  ;;  %v9100_v29 = vor.u32 %v7010_v22, %v6028_v52  ;;  %v9716_v52 = vrot.slane %v8850_v62, 4 }
 0x3e8   : >> { %3383 = vst [vmem:[#allocation5 + $0x5a0] sm:$0xff] %v3356_v38  ;;  %3501 = vrot.lane.b32.xlu0 %v7276_v13, %s7324_s9  ;;  %3413 = vrot.lane.b32.xlu2 %v8624_v55, %s7326_s11 }
 0x3e9   : >> { %3493 = vrot.lane.b32.xlu1 %v9076_v18, %s7324_s9  ;;  %4911 = vmatmul.bf16.vlgmr.msra.gmra.mxu3 %v9100_v29 }
 0x3ea   : >> { %5007 = vmatpush.bf16.msrb.mxu2 %v6077_v43  ;;  %v2804_v49 = vpop.permute.xlu0 %2803  ;;  %v9087_v56 = vpop.permute.xlu2 %2967  ;;  %v6650_v43 = vld [vmem:[#allocation5 + $0x4b0] sm:$0xf0] }
 0x3eb   : >> { %v2834_v6 = vrot.slane %v2804_v49, 4  ;;  %v9089_v35 = vpop.permute.xlu1 %2823 }
 0x3ed   : >> { %v2853_v55 = vsel %vm361_vm0, %v2833_v48, %v2834_v6  ;;  %v7162_v48 = vld [vmem:[#allocation5 + $0x4a4] sm:$0xf] }
 0x3ee   : >> { %5008 = vmatpush.bf16.msrb.mxu2 %v6061_v32  ;;  %v2854_v26 = vsel %vm9766_vm1, %v8893_v20, %v2853_v55  ;;  %v6653_v34 = vor.u32 %v7162_v48, %v6650_v43  ;;  %v7007_v6 = vld [vmem:[%s8995_s27 + $0x4] sm:$0xf] }
 0x3ef   : >> { %2886 = vst [vmem:[#allocation5 + $0x3f8] sm:$0xff] %v2854_v26  ;;  %v9127_v55 = vor.u32 %v7007_v6, %v6030_v33  ;;  %v7011_v26 = vld [vmem:[%s8995_s27 + $0x20] sm:$0xf0] }
 0x3f0   : >> { %3509 = vrot.lane.b32.xlu0 %v8608_v16, %s7324_s9  ;;  %3129 = vrot.lane.b32.xlu2 %v7276_v13, %s7320_s26 }
 0x3f1   : >> { %3319 = vrot.lane.b32.xlu1 %v9094_v5, %s7327_s12  ;;  %5009 = vmatmul.bf16.vlgmr.msrb.gmra.mxu2 %v9100_v29 }
 0x3f2   : >> { %5057 = vmatpush.bf16.msra.mxu2 %v6685_v53  ;;  %v2810_v20 = vpop.permute.xlu0 %2809  ;;  %v9107_v38 = vpop.permute.xlu2 %2975  ;;  %4925 = vmatmul.bf16.vlgmr.msra.gmra.mxu0 %v9127_v55 }
 0x3f3   : >> { %v2837_v57 = vrot.slane %v2810_v20, 4  ;;  %v9710_v13 = vrot.slane %v9107_v38, 4  ;;  %v9113_v32 = vpop.permute.xlu1 %3503 }
 0x3f5   : >> { %v2857_v37 = vsel %vm361_vm0, %v2836_v40, %v2837_v57  ;;  %v3025_v49 = vsel %vm361_vm0, %v3006_v1, %v9710_v13  ;;  %v6036_v40 = vld [vmem:[%s8995_s27 + $0x8] sm:$0xf]  ;;  %v3432_v1 = vrot.slane %v8958_v54, 4  ;;  %v3327_v57 = vrot.slane %v9050_v63, 4 }
 0x3f6   : >> { %5058 = vmatpush.bf16.msra.mxu2 %v6669_v3  ;;  %v2858_v53 = vsel %vm9767_vm3, %v8914_v12, %v2857_v37  ;;  %v3026_v60 = vsel %vm794_vm5, %v9007_v9, %v3025_v49  ;;  %v9136_v12 = vor.u32 %v7011_v26, %v6036_v40 }
 0x3f7   : >> { %2888 = vst [vmem:[#allocation5 + $0x408] sm:$0xff] %v2858_v53 }
 0x3f8   : >> { %3059 = vst [vmem:[#allocation5 + $0x450] sm:$0xff] %v3026_v60  ;;  %3291 = vrot.lane.b32.xlu0 %v7277_v25, %s7327_s12  ;;  %3137 = vrot.lane.b32.xlu2 %v8608_v16, %s7320_s26 }
 0x3f9   : >> { %3415 = vrot.lane.b32.xlu1 %v8986_v11, %s7326_s11  ;;  %4939 = vmatmul.bf16.vlgmr.msra.gmra.mxu1 %v9136_v12 }
 0x3fa   : >> { %5059 = vmatpush.bf16.msra.mxu2 %v6653_v34  ;;  %v3400_v9 = vpop.permute.xlu0 %3399  ;;  %v9138_v3 = vpop.permute.xlu2 %3519 }
 0x3fb   : >> { %v3429_v22 = vrot.slane %v3400_v9, 4  ;;  %v9142_v43 = vpop.permute.xlu1 %3285 }
 0x3fd   : >> { %v3449_v16 = vsel %vm361_vm0, %v3429_v22, %v9716_v52 }
 0x3fe   : >> { %v3450_v48 = vsel %vm1007_vm11, %v3400_v9, %v3449_v16  ;;  %v9715_v9 = vrot.slane %v8897_v2, 4 }
 0x3ff   : >> { %3481 = vst [vmem:[#allocation5 + $0x5e0] sm:$0xff] %v3450_v48 }
 0x400   : >> { %3491 = vrot.lane.b32.xlu0 %v8571_v46, %s7324_s9  ;;  %3123 = vrot.lane.b32.xlu2 %v7277_v25, %s7320_s26  ;;  %v7278_v25 = vld [vmem:[#allocation5 + $0x4e0] sm:$0xff] }
 0x401   : >> { %3307 = vrot.lane.b32.xlu1 %v9012_v36, %s7327_s12 }
 0x402   : >> { %v9154_v20 = vpop.permute.xlu0 %3407  ;;  %v9156_v34 = vpop.permute.xlu2 %3299 }
 0x403   : >> { %v9724_v37 = vrot.slane %v9154_v20, 4  ;;  %v9709_v49 = vrot.slane %v9156_v34, 4  ;;  %v9162_v53 = vpop.permute.xlu1 %3293 }
 0x405   : >> { %v3453_v46 = vsel %vm361_vm0, %v3432_v1, %v9724_v37  ;;  %v3347_v60 = vsel %vm361_vm0, %v3327_v57, %v9709_v49 }
 0x406   : >> { %v3454_v6 = vsel %vm1007_vm11, %v8958_v54, %v3453_v46  ;;  %v3348_v33 = vsel %vm972_vm8, %v9050_v63, %v3347_v60  ;;  %v6808_v48 = vld [vmem:[#allocation5 + $0x5e0] sm:$0xf] }
 0x407   : >> { %3483 = vst [vmem:[#allocation5 + $0x5f0] sm:$0xff] %v3454_v6  ;;  %v3423_v6 = vrot.slane %v9003_v15, 4 }
 0x408   : >> { %3379 = vst [vmem:[#allocation5 + $0x580] sm:$0xff] %v3348_v33  ;;  %3141 = vrot.lane.b32.xlu0 %v7278_v25, %s7320_s26  ;;  %3523 = vrot.lane.b32.xlu2 %v9094_v5, %s7324_s9  ;;  %v2844_v33 = vrot.slane %v9089_v35, 4 }
 0x409   : >> { %3289 = vrot.lane.b32.xlu1 %v9076_v18, %s7327_s12 }
 0x40a   : >> { %v2998_v40 = vpop.permute.xlu0 %2997  ;;  %v9179_v26 = vpop.permute.xlu2 %2817 }
 0x40b   : >> { %v3018_v54 = vrot.slane %v2998_v40, 4  ;;  %v9182_v22 = vpop.permute.xlu1 %3495 }
 0x40d   : >> { %v3041_v63 = vsel %vm361_vm0, %v3018_v54, %v9715_v9 }
 0x40e   : >> { %v3042_v16 = vsel %vm794_vm5, %v2998_v40, %v3041_v63  ;;  %v7204_v1 = vld [vmem:[#allocation5 + $0x5ec] sm:$0xf0] }
 0x40f   : >> { %3067 = vst [vmem:[#allocation5 + $0x490] sm:$0xff] %v3042_v16  ;;  %v6809_v57 = vor.u32 %v7204_v1, %v6808_v48  ;;  %v6632_v16 = vld [vmem:[#allocation5 + $0x480] sm:$0xf] }
 0x410   : >> { %3149 = vrot.lane.b32.xlu0 %v8654_v42, %s7320_s26  ;;  %2995 = vrot.lane.b32.xlu2 %v8687_v61, %s7323_s30 }
 0x411   : >> { %3145 = vrot.lane.b32.xlu1 %v8986_v11, %s7320_s26  ;;  %4973 = vmatpush.bf16.msrb.mxu0 %v6809_v57 }
 0x412   : >> { %v9194_v46 = vpop.permute.xlu0 %3389  ;;  %v9196_v60 = vpop.permute.xlu2 %2825 }
 0x413   : >> { %v9714_v25 = vrot.slane %v9194_v46, 4  ;;  %v9712_v42 = vrot.slane %v9196_v60, 4  ;;  %v9202_v40 = vpop.permute.xlu1 %3143 }
 0x415   : >> { %v3441_v54 = vsel %vm361_vm0, %v3423_v6, %v9714_v25  ;;  %v2867_v63 = vsel %vm361_vm0, %v2844_v33, %v9712_v42  ;;  %v9718_v6 = vrot.slane %v8940_v59, 4  ;;  %v9722_v42 = vrot.slane %v8977_v27, 4 }
 0x416   : >> { %v3442_v48 = vsel %vm1007_vm11, %v9003_v15, %v3441_v54  ;;  %v2868_v1 = vsel %vm9768_vm9, %v9089_v35, %v2867_v63  ;;  %v7160_v57 = vld [vmem:[#allocation5 + $0x48c] sm:$0xf0]  ;;  %v6634_v49 = vld [vmem:[#allocation5 + $0x490] sm:$0xf0]  ;;  %v7279_v54 = vld [vmem:[#allocation4 + $0x38] sm:$0xff] }
 0x417   : >> { %3477 = vst [vmem:[#allocation5 + $0x5c0] sm:$0xff] %v3442_v48  ;;  %v6633_v13 = vor.u32 %v7160_v57, %v6632_v16  ;;  %v6637_v31 = vor.u32 %v7158_v58, %v6634_v49  ;;  %v7200_v49 = vld [vmem:[#allocation5 + $0x5cc] sm:$0xf0]  ;;  %v2939_v63 = vpack.c.bf16 %v7279_v54, %v7279_v54  ;;  %v7280_v48 = vld [vmem:[#allocation5 + $0x4c8] sm:$0xff] }
 0x418   : >> { %2893 = vst [vmem:[#allocation5 + $0x430] sm:$0xff] %v2868_v1  ;;  %3417 = vrot.lane.b32.xlu0 %v8885_v17, %s7326_s11  ;;  %3511 = vrot.lane.b32.xlu2 %v9012_v36, %s7324_s9 }
 0x419   : >> { %3139 = vrot.lane.b32.xlu1 %v9012_v36, %s7320_s26  ;;  %4962 = vmatpush.bf16.msrb.mxu3 %v6633_v13 }
 0x41a   : >> { %5060 = vmatpush.bf16.msra.mxu2 %v6637_v31  ;;  %v2980_v15 = vpop.permute.xlu0 %2979  ;;  %v9221_v35 = vpop.permute.xlu2 %3507  ;;  %v3812_v31 = vld [vmem:[%s9229_s14] sm:$0xff] }
 0x41b   : >> { %v3009_v33 = vrot.slane %v2980_v15, 4  ;;  %v9224_v58 = vpop.permute.xlu1 %3411 }
 0x41d   : >> { %v3029_v17 = vsel %vm361_vm0, %v3009_v33, %v9718_v6  ;;  %v3321_v33 = vrot.slane %v9142_v43, 4 }
 0x41e   : >> { %v3030_v36 = vsel %vm794_vm5, %v2980_v15, %v3029_v17  ;;  %v6792_v13 = vld [vmem:[#allocation5 + $0x5c0] sm:$0xf]  ;;  %v3012_v15 = vrot.slane %v9048_v21, 4 }
 0x41f   : >> { %3061 = vst [vmem:[#allocation5 + $0x460] sm:$0xff] %v3030_v36  ;;  %v6793_v16 = vor.u32 %v7200_v49, %v6792_v13 }
 0x420   : >> { %3131 = vrot.lane.b32.xlu0 %v7280_v48, %s7320_s26  ;;  %2983 = vrot.lane.b32.xlu2 %v2939_v63, %s7323_s30 }
 0x421   : >> { %3816 = vperm.xlu1 %7267, %v3812_v31   ;;  %4974 = vmatpush.bf16.msrb.mxu0 %v6793_v16  ;;  %v7281_v16 = vld [vmem:[#allocation5 + $0x4a0] sm:$0xff] }
 0x422   : >> { %v9238_v1 = vpop.permute.xlu0 %2987  ;;  %v9240_v57 = vpop.permute.xlu2 %3287 }
 0x423   : >> { %v9713_v17 = vrot.slane %v9238_v1, 4  ;;  %v9717_v36 = vrot.slane %v9240_v57, 4  ;;  %v9246_v13 = vpop.permute.xlu1 %3419 }
 0x425   : >> { %v3033_v49 = vsel %vm361_vm0, %v3012_v15, %v9713_v17  ;;  %v3339_v31 = vsel %vm361_vm0, %v3321_v33, %v9717_v36  ;;  %v7283_v36 = vld [vmem:[#allocation5 + $0x4b8] sm:$0xff] }
 0x426   : >> { %v3034_v54 = vsel %vm794_vm5, %v9048_v21, %v3033_v49  ;;  %v3340_v63 = vsel %vm972_vm8, %v9142_v43, %v3339_v31  ;;  %v6616_v43 = vld [vmem:[#allocation5 + $0x460] sm:$0xf] }
 0x427   : >> { %3063 = vst [vmem:[#allocation5 + $0x470] sm:$0xff] %v3034_v54  ;;  %v7154_v54 = vld [vmem:[#allocation5 + $0x464] sm:$0xf] }
 0x428   : >> { %3375 = vst [vmem:[#allocation5 + $0x560] sm:$0xff] %v3340_v63  ;;  %3117 = vrot.lane.b32.xlu0 %v7281_v16, %s7320_s26  ;;  %3499 = vrot.lane.b32.xlu2 %v9055_v23, %s7324_s9  ;;  %v7282_v16 = vld [vmem:[#allocation4 + $0xb0] sm:$0xff] }
 0x429   : >> { %v2933_v25 = vpack.c.bf16 %v7282_v16, %v7282_v16 }
 0x42a   : >> { %v3316_v48 = vpop.permute.xlu0 %3315  ;;  %v9261_v15 = vpop.permute.xlu2 %3489 }
 0x42b   : >> { %v3336_v33 = vrot.slane %v3316_v48, 4  ;;  %v9264_v17 = vpop.permute.xlu1 %3135 }
 0x42d   : >> { %v3359_v21 = vsel %vm361_vm0, %v3336_v33, %v9722_v42 }
 0x42e   : >> { %v3360_v49 = vsel %vm972_vm8, %v3316_v48, %v3359_v21  ;;  %v7156_v31 = vld [vmem:[#allocation5 + $0x46c] sm:$0xf0]  ;;  %v6618_v63 = vld [vmem:[#allocation5 + $0x470] sm:$0xf0]  ;;  %v3003_v48 = vrot.slane %v9087_v56, 4  ;;  %v3528_v21 = vrot.slane %v9182_v22, 4 }
 0x42f   : >> { %3385 = vst [vmem:[#allocation5 + $0x5b0] sm:$0xff] %v3360_v49  ;;  %v6617_v9 = vor.u32 %v7156_v31, %v6616_v43  ;;  %v6621_v52 = vor.u32 %v7154_v54, %v6618_v63  ;;  %v6776_v54 = vld [vmem:[#allocation5 + $0x5a0] sm:$0xf] }
 0x430   : >> { %3125 = vrot.lane.b32.xlu0 %v7283_v36, %s7320_s26  ;;  %2971 = vrot.lane.b32.xlu2 %v2933_v25, %s7323_s30 }
 0x431   : >> { %4963 = vmatpush.bf16.msrb.mxu3 %v6617_v9  ;;  %5061 = vmatpush.bf16.msra.mxu2 %v6621_v52 }
 0x432   : >> { %v9272_v6 = vpop.permute.xlu0 %2969  ;;  %v9274_v33 = vpop.permute.xlu2 %3497 }
 0x433   : >> { %v9719_v49 = vrot.slane %v9272_v6, 4  ;;  %v9720_v43 = vrot.slane %v9274_v33, 4  ;;  %v9280_v31 = vpop.permute.xlu1 %3119 }
 0x435   : >> { %v3021_v25 = vsel %vm361_vm0, %v3003_v48, %v9719_v49  ;;  %v3547_v52 = vsel %vm361_vm0, %v3528_v21, %v9720_v43 }
 0x436   : >> { %v3022_v9 = vsel %vm794_vm5, %v9087_v56, %v3021_v25  ;;  %v3548_v36 = vsel %vm1042_vm6, %v9182_v22, %v3547_v52  ;;  %v7196_v63 = vld [vmem:[#allocation5 + $0x5ac] sm:$0xf0]  ;;  %v3538_v56 = vrot.slane %v9029_v8, 4 }
 0x437   : >> { %3057 = vst [vmem:[#allocation5 + $0x440] sm:$0xff] %v3022_v9  ;;  %v6777_v16 = vor.u32 %v7196_v63, %v6776_v54  ;;  %v7152_v9 = vld [vmem:[#allocation5 + $0x44c] sm:$0xf0] }
 0x438   : >> { %3581 = vst [vmem:[#allocation5 + $0x630] sm:$0xff] %v3548_v36  ;;  %3403 = vrot.lane.b32.xlu0 %v9037_v47, %s7326_s11  ;;  %3421 = vrot.lane.b32.xlu2 %v9094_v5, %s7326_s11  ;;  %v7284_v63 = vld [vmem:[#allocation4 + $0x50] sm:$0xff] }
 0x439   : >> { %4975 = vmatpush.bf16.msrb.mxu0 %v6777_v16  ;;  %v2948_v43 = vpack.c.bf16 %v7284_v63, %v7284_v63  ;;  %v6602_v16 = vld [vmem:[#allocation5 + $0x450] sm:$0xf0] }
 0x43a   : >> { %v3514_v48 = vpop.permute.xlu0 %3513  ;;  %v9296_v21 = vpop.permute.xlu2 %3147 }
 0x43b   : >> { %v3537_v25 = vrot.slane %v3514_v48, 4  ;;  %v3518_v49 = vpop.permute.xlu1 %3517 }
 0x43c   : >> { %v3539_v22 = vrot.slane %v3518_v49, 4 }
 0x43d   : >> { %v3559_v52 = vsel %vm361_vm0, %v3537_v25, %v3538_v56  ;;  %v3435_v25 = vrot.slane %v9224_v58, 4 }
 0x43e   : >> { %v3560_v36 = vsel %vm1042_vm6, %v3514_v48, %v3559_v52  ;;  %v3561_v54 = vsel %vm361_vm0, %v3538_v56, %v3539_v22  ;;  %v6600_v50 = vld [vmem:[#allocation5 + $0x440] sm:$0xf]  ;;  %v7150_v42 = vld [vmem:[#allocation5 + $0x444] sm:$0xf]  ;;  %v3540_v56 = vrot.slane %v9138_v3, 4  ;;  %v9769_v22 = vrot.slane %v9154_v20, 4 }
 0x43f   : >> { %3587 = vst [vmem:[#allocation5 + $0x660] sm:$0xff] %v3560_v36  ;;  %v3562_v24 = vsel %vm1042_vm6, %v9029_v8, %v3561_v54  ;;  %v6601_v37 = vor.u32 %v7152_v9, %v6600_v50  ;;  %v6605_v0 = vor.u32 %v7150_v42, %v6602_v16  ;;  %v9728_v36 = vrot.slane %v9068_v39, 4 }
 0x440   : >> { %3588 = vst [vmem:[#allocation5 + $0x668] sm:$0xff] %v3562_v24  ;;  %3001 = vrot.lane.b32.xlu0 %v2948_v43, %s7323_s30  ;;  %2821 = vrot.lane.b32.xlu2 %v8687_v61, %s7312_s17  ;;  %v3532_v16 = vrot.slane %v9113_v32, 4 }
 0x441   : >> { %4964 = vmatpush.bf16.msrb.mxu3 %v6601_v37  ;;  %5062 = vmatpush.bf16.msra.mxu2 %v6605_v0 }
 0x442   : >> { %v9307_v49 = vpop.permute.xlu0 %3521  ;;  %v9309_v48 = vpop.permute.xlu2 %3413 }
 0x443   : >> { %v9730_v8 = vrot.slane %v9307_v49, 4  ;;  %v9729_v50 = vrot.slane %v9309_v48, 4  ;;  %v3410_v24 = vpop.permute.xlu1 %3409  ;;  %v9772_v45 = vrot.slane %v9307_v49, 4 }
 0x444   : >> { %v3434_v42 = vrot.slane %v3410_v24, 4 }
 0x445   : >> { %v3563_v61 = vsel %vm361_vm0, %v3540_v56, %v9730_v8  ;;  %v3457_v0 = vsel %vm361_vm0, %v3435_v25, %v9729_v50 }
 0x446   : >> { %v3564_v37 = vsel %vm1042_vm6, %v9138_v3, %v3563_v61  ;;  %v3458_v43 = vsel %vm1007_vm11, %v9224_v58, %v3457_v0  ;;  %v3455_v52 = vsel %vm361_vm0, %v9769_v22, %v3434_v42  ;;  %v7285_v42 = vld [vmem:[#allocation4 + $0x40] sm:$0xff] }
 0x447   : >> { %3589 = vst [vmem:[#allocation5 + $0x670] sm:$0xff] %v3564_v37  ;;  %v3456_v9 = vsel %vm1007_vm11, %v9154_v20, %v3455_v52  ;;  %v6872_v61 = vld [vmem:[#allocation5 + $0x660] sm:$0xf]  ;;  %v2841_v52 = vrot.slane %v9179_v26, 4 }
 0x448   : >> { %3485 = vst [vmem:[#allocation5 + $0x600] sm:$0xff] %v3458_v43  ;;  %3391 = vrot.lane.b32.xlu0 %v9076_v18, %s7326_s11  ;;  %3295 = vrot.lane.b32.xlu2 %v9055_v23, %s7327_s12  ;;  %v2942_v23 = vpack.c.bf16 %v7285_v42, %v7285_v42 }
 0x449   : >> { %3484 = vst [vmem:[#allocation5 + $0x5f8] sm:$0xff] %v3456_v9 }
 0x44a   : >> { %v3304_v3 = vpop.permute.xlu0 %3303  ;;  %v9335_v54 = vpop.permute.xlu2 %3129 }
 0x44b   : >> { %v3330_v58 = vrot.slane %v3304_v3, 4  ;;  %v3506_v63 = vpop.permute.xlu1 %3505 }
 0x44c   : >> { %v3533_v56 = vrot.slane %v3506_v63, 4  ;;  %v3162_v63 = vrot.slane %v9264_v17, 4 }
 0x44d   : >> { %v3351_v20 = vsel %vm361_vm0, %v3330_v58, %v9728_v36 }
 0x44e   : >> { %v3352_v25 = vsel %vm972_vm8, %v3304_v3, %v3351_v20  ;;  %v3553_v24 = vsel %vm361_vm0, %v3532_v16, %v3533_v56  ;;  %v7220_v0 = vld [vmem:[#allocation5 + $0x66c] sm:$0xf0] }
 0x44f   : >> { %3381 = vst [vmem:[#allocation5 + $0x590] sm:$0xff] %v3352_v25  ;;  %v3554_v37 = vsel %vm1042_vm6, %v9113_v32, %v3553_v24  ;;  %v6873_v43 = vor.u32 %v7220_v0, %v6872_v61  ;;  %v9771_v24 = vrot.slane %v9025_v7, 4 }
 0x450   : >> { %3584 = vst [vmem:[#allocation5 + $0x648] sm:$0xff] %v3554_v37  ;;  %2989 = vrot.lane.b32.xlu0 %v2942_v23, %s7323_s30  ;;  %3151 = vrot.lane.b32.xlu2 %v9094_v5, %s7320_s26  ;;  %v6760_v23 = vld [vmem:[#allocation5 + $0x580] sm:$0xf] }
 0x451   : >> { %4991 = vmatpush.bf16.msrb.mxu1 %v6873_v43 }
 0x452   : >> { %v9348_v22 = vpop.permute.xlu0 %2819  ;;  %v9352_v3 = vpop.permute.xlu2 %3137 }
 0x453   : >> { %v9726_v9 = vrot.slane %v9348_v22, 4  ;;  %v3398_v58 = vpop.permute.xlu1 %3397  ;;  %v9727_v32 = vrot.slane %v9352_v3, 4 }
 0x454   : >> { %v3428_v56 = vrot.slane %v3398_v58, 4 }
 0x455   : >> { %v2863_v20 = vsel %vm361_vm0, %v2841_v52, %v9726_v9  ;;  %v3183_v25 = vsel %vm361_vm0, %v3162_v63, %v9727_v32  ;;  %v7109_v9 = vld [vmem:[#allocation5 + $0x2f4] sm:$0xf0] }
 0x456   : >> { %v2864_v5 = vsel %vm9770_vm4, %v9179_v26, %v2863_v20  ;;  %v3447_v42 = vsel %vm361_vm0, %v9771_v24, %v3428_v56  ;;  %v7192_v61 = vld [vmem:[#allocation5 + $0x58c] sm:$0xf0]  ;;  %v3184_v0 = vsel %vm845_vm2, %v9264_v17, %v3183_v25  ;;  %v6586_v56 = vld [vmem:[#allocation5 + $0x430] sm:$0xf0]  ;;  %v3813_v25 = vld [vmem:[%s9229_s14 + $0x8] sm:$0xff] }
 0x457   : >> { %2891 = vst [vmem:[#allocation5 + $0x420] sm:$0xff] %v2864_v5  ;;  %v3448_v37 = vsel %vm1007_vm11, %v9025_v7, %v3447_v42  ;;  %v6761_v43 = vor.u32 %v7192_v61, %v6760_v23  ;;  %v7148_v7 = vld [vmem:[#allocation5 + $0x42c] sm:$0xf0]  ;;  %v7286_v5 = vld [vmem:[#allocation4 + $0x118] sm:$0xff] }
 0x458   : >> { %3213 = vst [vmem:[#allocation5 + $0x530] sm:$0xff] %v3184_v0  ;;  %3313 = vrot.lane.b32.xlu0 %v8986_v11, %s7327_s12  ;;  %3121 = vrot.lane.b32.xlu2 %v9076_v18, %s7320_s26  ;;  %v2936_v11 = vpack.c.bf16 %v7286_v5, %v7286_v5  ;;  %v7144_v61 = vld [vmem:[#allocation5 + $0x40c] sm:$0xf0]  ;;  %v7074_v0 = vld [vmem:[#allocation5 + $0x1e4] sm:$0xf] }
 0x459   : >> { %3480 = vst [vmem:[#allocation5 + $0x5d8] sm:$0xff] %v3448_v37  ;;  %4976 = vmatpush.bf16.msrb.mxu0 %v6761_v43  ;;  %v6298_v37 = vld [vmem:[#allocation5 + $0x1f0] sm:$0xf0]  ;;  %v6044_v43 = vld [vmem:[%s8995_s27 + $0x10] sm:$0xf] }
 0x45a   : >> { %v3502_v26 = vpop.permute.xlu0 %3501  ;;  %v9375_v58 = vpop.permute.xlu2 %3123  ;;  %v6432_v5 = vld [vmem:[#allocation5 + $0x2e8] sm:$0xf]  ;;  %v6301_v32 = vor.u32 %v7074_v0, %v6298_v37  ;;  %v9773_v0 = vrot.slane %v8977_v27, 4 }
 0x45b   : >> { %v3531_v52 = vrot.slane %v3502_v26, 4  ;;  %v9377_v63 = vpop.permute.xlu1 %3493  ;;  %v6433_v8 = vor.u32 %v7109_v9, %v6432_v5 }
 0x45d   : >> { %v3551_v17 = vsel %vm361_vm0, %v3531_v52, %v3532_v16  ;;  %v6570_v16 = vld [vmem:[#allocation5 + $0x410] sm:$0xf0] }
 0x45e   : >> { %v3552_v20 = vsel %vm1042_vm6, %v3502_v26, %v3551_v17  ;;  %v6584_v24 = vld [vmem:[#allocation5 + $0x420] sm:$0xf]  ;;  %v7146_v18 = vld [vmem:[#allocation5 + $0x424] sm:$0xf]  ;;  %v7012_v26 = vld [vmem:[%s8995_s27 + $0x28] sm:$0xf0] }
 0x45f   : >> { %3583 = vst [vmem:[#allocation5 + $0x640] sm:$0xff] %v3552_v20  ;;  %v6585_v42 = vor.u32 %v7148_v7, %v6584_v24  ;;  %v6589_v23 = vor.u32 %v7146_v18, %v6586_v56  ;;  %v6568_v17 = vld [vmem:[#allocation5 + $0x400] sm:$0xf]  ;;  %v3534_v20 = vrot.slane %v9221_v35, 4  ;;  %v7142_v18 = vld [vmem:[#allocation5 + $0x404] sm:$0xf]  ;;  %v9389_v50 = vor.u32 %v7012_v26, %v6044_v43 }
 0x460   : >> { %2977 = vrot.lane.b32.xlu0 %v2936_v11, %s7323_s30  ;;  %3821 = vperm.xlu2 %7268, %v3813_v25   ;;  %v6569_v24 = vor.u32 %v7144_v61, %v6568_v17  ;;  %v6573_v36 = vor.u32 %v7142_v18, %v6570_v16  ;;  %v6416_v16 = vld [vmem:[#allocation5 + $0x2c8] sm:$0xf]  ;;  %v7105_v26 = vld [vmem:[#allocation5 + $0x2d4] sm:$0xf0] }
 0x461   : >> { %4965 = vmatpush.bf16.msrb.mxu3 %v6585_v42  ;;  %5063 = vmatpush.bf16.msra.mxu2 %v6589_v23  ;;  %v7101_v17 = vld [vmem:[#allocation5 + $0x2b4] sm:$0xf0]  ;;  %v6400_v18 = vld [vmem:[#allocation5 + $0x2a8] sm:$0xf] }
 0x462   : >> { %v9385_v52 = vpop.permute.xlu0 %3509  ;;  %v3524_v56 = vpop.permute.xlu2 %3523 }
 0x463   : >> { %v3535_v7 = vrot.slane %v9385_v52, 4  ;;  %v3320_v11 = vpop.permute.xlu1 %3319  ;;  %v3542_v25 = vrot.slane %v3524_v56, 4  ;;  %v6250_v56 = vld [vmem:[#allocation5 + $0x190] sm:$0xf0] }
 0x464   : >> { %v3338_v42 = vrot.slane %v3320_v11, 4 }
 0x465   : >> { %v3555_v23 = vsel %vm361_vm0, %v3534_v20, %v3535_v7  ;;  %4966 = vmatpush.bf16.msrb.mxu3 %v6569_v24  ;;  %v3565_v61 = vsel %vm361_vm0, %v9772_v45, %v3542_v25  ;;  %5064 = vmatpush.bf16.msra.mxu2 %v6573_v36  ;;  %v6417_v36 = vor.u32 %v7105_v26, %v6416_v16 }
 0x466   : >> { %v3556_v41 = vsel %vm1042_vm6, %v9221_v35, %v3555_v23  ;;  %v3361_v37 = vsel %vm361_vm0, %v9773_v0, %v3338_v42  ;;  %v3566_v43 = vsel %vm1042_vm6, %v9307_v49, %v3565_v61  ;;  %v7070_v35 = vld [vmem:[#allocation5 + $0x1c4] sm:$0xf]  ;;  %v6401_v42 = vor.u32 %v7101_v17, %v6400_v18  ;;  %v6368_v18 = vld [vmem:[#allocation5 + $0x268] sm:$0xf] }
 0x467   : >> { %3585 = vst [vmem:[#allocation5 + $0x650] sm:$0xff] %v3556_v41  ;;  %v3362_v9 = vsel %vm972_vm8, %v8977_v27, %v3361_v37  ;;  %v6285_v45 = vor.u32 %v7070_v35, %v6282_v28  ;;  %v6266_v41 = vld [vmem:[#allocation5 + $0x1b0] sm:$0xf0]  ;;  %v3325_v27 = vrot.slane %v9162_v53, 4  ;;  %v9774_v61 = vrot.slane %v8973_v30, 4 }
 0x468   : >> { %3590 = vst [vmem:[#allocation5 + $0x678] sm:$0xff] %v3566_v43  ;;  %3301 = vrot.lane.b32.xlu0 %v9037_v47, %s7327_s12  ;;  %4967 = vmatmul.bf16.vlgmr.msrb.gmra.mxu3 %v9389_v50  ;;  %v7062_v47 = vld [vmem:[#allocation5 + $0x184] sm:$0xf]  ;;  %v9775_v37 = vrot.slane %v9309_v48, 4  ;;  %v6856_v43 = vld [vmem:[#allocation5 + $0x640] sm:$0xf] }
 0x469   : >> { %5015 = vmatpush.bf16.msra.mxu3 %v6301_v32  ;;  %5127 = vmatpush.bf16.msrb.mxu2 %v6433_v8  ;;  %3386 = vst [vmem:[#allocation5 + $0x5b8] sm:$0xff] %v3362_v9  ;;  %v7066_v32 = vld [vmem:[#allocation5 + $0x1a4] sm:$0xf]  ;;  %v6253_v35 = vor.u32 %v7062_v47, %v6250_v56  ;;  %v3525_v47 = vrot.slane %v9261_v15, 4 }
 0x46a   : >> { %5065 = vmatmul.bf16.vlgmr.msra.gmra.mxu2 %v9389_v50  ;;  %v3292_v49 = vpop.permute.xlu0 %3291  ;;  %v2996_v5 = vpop.permute.xlu2 %2995  ;;  %v6269_v24 = vor.u32 %v7066_v32, %v6266_v41  ;;  %v7097_v41 = vld [vmem:[#allocation5 + $0x294] sm:$0xf0] }
 0x46b   : >> { %v3324_v8 = vrot.slane %v3292_v49, 4  ;;  %v3416_v20 = vpop.permute.xlu1 %3415  ;;  %v3017_v11 = vrot.slane %v2996_v5, 4  ;;  %v6234_v5 = vld [vmem:[#allocation5 + $0x170] sm:$0xf0] }
 0x46c   : >> { %v3437_v28 = vrot.slane %v3416_v20, 4 }
 0x46d   : >> { %5016 = vmatpush.bf16.msra.mxu3 %v6285_v45  ;;  %5128 = vmatpush.bf16.msrb.mxu2 %v6417_v36  ;;  %v3343_v25 = vsel %vm361_vm0, %v3324_v8, %v3325_v27  ;;  %v3039_v0 = vsel %vm361_vm0, %v9774_v61, %v3017_v11  ;;  %v6384_v45 = vld [vmem:[#allocation5 + $0x288] sm:$0xf]  ;;  %v7058_v8 = vld [vmem:[#allocation5 + $0x164] sm:$0xf] }
 0x46e   : >> { %v3344_v23 = vsel %vm972_vm8, %v3292_v49, %v3343_v25  ;;  %v3459_v16 = vsel %vm361_vm0, %v9775_v37, %v3437_v28  ;;  %v7216_v9 = vld [vmem:[#allocation5 + $0x64c] sm:$0xf0]  ;;  %v3040_v26 = vsel %vm794_vm5, %v8973_v30, %v3039_v0  ;;  %v3527_v49 = vrot.slane %v9377_v63, 4  ;;  %v7093_v30 = vld [vmem:[#allocation5 + $0x274] sm:$0xf0] }
 0x46f   : >> { %3377 = vst [vmem:[#allocation5 + $0x570] sm:$0xff] %v3344_v23  ;;  %v3460_v36 = vsel %vm1007_vm11, %v9309_v48, %v3459_v16  ;;  %v6857_v32 = vor.u32 %v7216_v9, %v6856_v43  ;;  %v6385_v17 = vor.u32 %v7097_v41, %v6384_v45  ;;  %v6218_v23 = vld [vmem:[#allocation5 + $0x150] sm:$0xf0]  ;;  %v9776_v16 = vrot.slane %v9068_v39, 4  ;;  %v6744_v9 = vld [vmem:[#allocation5 + $0x560] sm:$0xf] }
 0x470   : >> { %3066 = vst [vmem:[#allocation5 + $0x488] sm:$0xff] %v3040_v26  ;;  %2827 = vrot.lane.b32.xlu0 %v8726_v19, %s7312_s17  ;;  %v6237_v19 = vor.u32 %v7058_v8, %v6234_v5  ;;  %v6352_v45 = vld [vmem:[#allocation5 + $0x248] sm:$0xf]  ;;  %v7089_v41 = vld [vmem:[#allocation5 + $0x254] sm:$0xf0]  ;;  %v2912_v8 = vld [vmem:[#allocation4 + $0xf0] sm:$0xff] }
 0x471   : >> { %5017 = vmatpush.bf16.msra.mxu3 %v6269_v24  ;;  %5129 = vmatpush.bf16.msrb.mxu2 %v6401_v42  ;;  %3486 = vst [vmem:[#allocation5 + $0x608] sm:$0xff] %v3460_v36  ;;  %v6369_v42 = vor.u32 %v7093_v30, %v6368_v18 }
 0x472   : >> { %4992 = vmatpush.bf16.msrb.mxu1 %v6857_v32  ;;  %v3492_v20 = vpop.permute.xlu0 %3491  ;;  %v3512_v56 = vpop.permute.xlu2 %3511  ;;  %v7054_v32 = vld [vmem:[#allocation5 + $0x144] sm:$0xf] }
 0x473   : >> { %v3526_v48 = vrot.slane %v3492_v20, 4  ;;  %v3308_v11 = vpop.permute.xlu1 %3307  ;;  %v3536_v28 = vrot.slane %v3512_v56, 4  ;;  %v7050_v56 = vld [vmem:[#allocation5 + $0x124] sm:$0xf] }
 0x474   : >> { %v3332_v24 = vrot.slane %v3308_v11, 4 }
 0x475   : >> { %5018 = vmatpush.bf16.msra.mxu3 %v6253_v35  ;;  %5130 = vmatpush.bf16.msrb.mxu2 %v6385_v17  ;;  %v3543_v63 = vsel %vm361_vm0, %v3525_v47, %v3526_v48  ;;  %v3545_v25 = vsel %vm361_vm0, %v3526_v48, %v3527_v49  ;;  %v3557_v37 = vsel %vm361_vm0, %v3535_v7, %v3536_v28  ;;  %v6202_v17 = vld [vmem:[#allocation5 + $0x130] sm:$0xf0] }
 0x476   : >> { %v3544_v61 = vsel %vm1042_vm6, %v9261_v15, %v3543_v63  ;;  %v3546_v0 = vsel %vm1042_vm6, %v3492_v20, %v3545_v25  ;;  %v3353_v43 = vsel %vm361_vm0, %v9776_v16, %v3332_v24  ;;  %v7188_v35 = vld [vmem:[#allocation5 + $0x56c] sm:$0xf0]  ;;  %v3558_v26 = vsel %vm1042_vm6, %v9385_v52, %v3557_v37  ;;  %v6336_v52 = vld [vmem:[#allocation5 + $0x228] sm:$0xf]  ;;  %v7085_v20 = vld [vmem:[#allocation5 + $0x234] sm:$0xf0] }
 0x477   : >> { %3579 = vst [vmem:[#allocation5 + $0x620] sm:$0xff] %v3544_v61  ;;  %v3354_v15 = vsel %vm972_vm8, %v9068_v39, %v3353_v43  ;;  %v6745_v36 = vor.u32 %v7188_v35, %v6744_v9  ;;  %v6221_v7 = vor.u32 %v7054_v32, %v6218_v23  ;;  %v6353_v49 = vor.u32 %v7089_v41, %v6352_v45  ;;  %v6186_v63 = vld [vmem:[#allocation5 + $0x110] sm:$0xf0]  ;;  %v6320_v25 = vld [vmem:[#allocation5 + $0x208] sm:$0xf] }
 0x478   : >> { %3580 = vst [vmem:[#allocation5 + $0x628] sm:$0xff] %v3546_v0  ;;  %2815 = vrot.lane.b32.xlu0 %v8651_v4, %s7312_s17  ;;  %v3166_v39 = vrot.slane %v9202_v40, 4  ;;  %v6205_v28 = vor.u32 %v7050_v56, %v6202_v17  ;;  %v3095_v24 = vpack.c.bf16 %v2912_v8, %v2912_v8  ;;  %v6337_v18 = vor.u32 %v7085_v20, %v6336_v52  ;;  %v7212_v43 = vld [vmem:[#allocation5 + $0x62c] sm:$0xf0]  ;;  %v6810_v9 = vld [vmem:[#allocation5 + $0x5f0] sm:$0xf0] }
 0x479   : >> { %5019 = vmatpush.bf16.msra.mxu3 %v6237_v19  ;;  %5131 = vmatpush.bf16.msrb.mxu2 %v6369_v42  ;;  %3586 = vst [vmem:[#allocation5 + $0x658] sm:$0xff] %v3558_v26  ;;  %v9777_v23 = vrot.slane %v8940_v59, 4  ;;  %v9778_v0 = vrot.slane %v9240_v57, 4  ;;  %v7202_v41 = vld [vmem:[#allocation5 + $0x5e4] sm:$0xf]  ;;  %v3168_v20 = vrot.slane %v9296_v21, 4 }
 0x47a   : >> { %4977 = vmatpush.bf16.msrb.mxu0 %v6745_v36  ;;  %3382 = vst [vmem:[#allocation5 + $0x598] sm:$0xff] %v3354_v15  ;;  %v3142_v5 = vpop.permute.xlu0 %3141  ;;  %v2984_v47 = vpop.permute.xlu2 %2983  ;;  %v7046_v15 = vld [vmem:[#allocation5 + $0x104] sm:$0xf]  ;;  %v7221_v36 = vld [vmem:[#allocation5 + $0x674] sm:$0xf0]  ;;  %v6813_v17 = vor.u32 %v7202_v41, %v6810_v9  ;;  %s309_s17 = ssub.s32 0, %s7301_s8 }
 0x47b   : >> { %v3165_v30 = vrot.slane %v3142_v5, 4  ;;  %v3290_v48 = vpop.permute.xlu1 %3289  ;;  %v3011_v4 = vrot.slane %v2984_v47, 4  ;;  %v6189_v32 = vor.u32 %v7046_v15, %v6186_v63  ;;  %v6880_v8 = vld [vmem:[#allocation5 + $0x668] sm:$0xf]  ;;  %v7198_v52 = vld [vmem:[#allocation5 + $0x5c4] sm:$0xf] }
 0x47c   : >> { %v3323_v11 = vrot.slane %v3290_v48, 4  ;;  %v6864_v63 = vld [vmem:[#allocation5 + $0x648] sm:$0xf] }
 0x47d   : >> { %5020 = vmatpush.bf16.msra.mxu3 %v6221_v7  ;;  %5132 = vmatpush.bf16.msrb.mxu2 %v6353_v49  ;;  %v3187_v19 = vsel %vm361_vm0, %v3165_v30, %v3166_v39  ;;  %v3031_v61 = vsel %vm361_vm0, %v9777_v23, %v3011_v4  ;;  %v7081_v7 = vld [vmem:[#allocation5 + $0x214] sm:$0xf0] }
 0x47e   : >> { %v3188_v42 = vsel %vm845_vm2, %v3142_v5, %v3187_v19  ;;  %v3341_v37 = vsel %vm361_vm0, %v9778_v0, %v3323_v11  ;;  %v6840_v16 = vld [vmem:[#allocation5 + $0x620] sm:$0xf]  ;;  %v3032_v35 = vsel %vm794_vm5, %v8940_v59, %v3031_v61  ;;  %v6321_v49 = vor.u32 %v7081_v7, %v6320_v25  ;;  %v2906_v5 = vld [vmem:[#allocation4 + $0x30] sm:$0xff]  ;;  %v7190_v7 = vld [vmem:[#allocation5 + $0x584] sm:$0xf] }
 0x47f   : >> { %3215 = vst [vmem:[#allocation5 + $0x540] sm:$0xff] %v3188_v42  ;;  %v3342_v45 = vsel %vm972_vm8, %v9240_v57, %v3341_v37  ;;  %v6841_v26 = vor.u32 %v7212_v43, %v6840_v16  ;;  %v6881_v57 = vor.u32 %v7221_v36, %v6880_v8  ;;  %v9779_v42 = vrot.slane %v9274_v33, 4  ;;  %v6778_v37 = vld [vmem:[#allocation5 + $0x5b0] sm:$0xf0] }
 0x480   : >> { %3062 = vst [vmem:[#allocation5 + $0x468] sm:$0xff] %v3032_v35  ;;  %3133 = vrot.lane.b32.xlu0 %v3095_v24, %s7320_s26  ;;  %v7217_v56 = vld [vmem:[#allocation5 + $0x654] sm:$0xf0]  ;;  %v3094_v24 = vpack.c.bf16 %v2906_v5, %v2906_v5  ;;  %v6762_v35 = vld [vmem:[#allocation5 + $0x590] sm:$0xf0]  ;;  %v9781_v5 = vrot.slane %v9352_v3, 4 }
 0x481   : >> { %5021 = vmatpush.bf16.msra.mxu3 %v6205_v28  ;;  %5133 = vmatpush.bf16.msrb.mxu2 %v6337_v18  ;;  %3376 = vst [vmem:[#allocation5 + $0x568] sm:$0xff] %v3342_v45  ;;  %v6794_v28 = vld [vmem:[#allocation5 + $0x5d0] sm:$0xf0]  ;;  %v6865_v0 = vor.u32 %v7217_v56, %v6864_v63  ;;  %v3439_v45 = vrot.slane %v9246_v13, 4  ;;  %v6765_v41 = vor.u32 %v7190_v7, %v6762_v35  ;;  %v6824_v35 = vld [vmem:[#allocation5 + $0x600] sm:$0xf] }
 0x482   : >> { %4993 = vmatpush.bf16.msrb.mxu1 %v6841_v26  ;;  %v9460_v59 = vpop.permute.xlu0 %3149  ;;  %v3500_v47 = vpop.permute.xlu2 %3499  ;;  %v6797_v18 = vor.u32 %v7198_v52, %v6794_v28 }
 0x483   : >> { %v3169_v30 = vrot.slane %v9460_v59, 4  ;;  %v3146_v48 = vpop.permute.xlu1 %3145  ;;  %v3530_v4 = vrot.slane %v3500_v47, 4  ;;  %v6746_v47 = vld [vmem:[#allocation5 + $0x570] sm:$0xf0] }
 0x484   : >> { %v3167_v11 = vrot.slane %v3146_v48, 4 }
 0x485   : >> { %5022 = vmatpush.bf16.msra.mxu3 %v6189_v32  ;;  %5134 = vmatpush.bf16.msrb.mxu2 %v6321_v49  ;;  %v3191_v19 = vsel %vm361_vm0, %v3168_v20, %v3169_v30  ;;  %v3549_v23 = vsel %vm361_vm0, %v9779_v42, %v3530_v4 }
 0x486   : >> { %v3192_v25 = vsel %vm845_vm2, %v9296_v21, %v3191_v19  ;;  %v3189_v61 = vsel %vm361_vm0, %v3166_v39, %v3167_v11  ;;  %v3550_v16 = vsel %vm1042_vm6, %v9274_v33, %v3549_v23  ;;  %v7194_v21 = vld [vmem:[#allocation5 + $0x5a4] sm:$0xf]  ;;  %v6728_v52 = vld [vmem:[#allocation5 + $0x540] sm:$0xf]  ;;  %v6848_v11 = vld [vmem:[#allocation5 + $0x628] sm:$0xf] }
 0x487   : >> { %3217 = vst [vmem:[#allocation5 + $0x550] sm:$0xff] %v3192_v25  ;;  %v3190_v43 = vsel %vm845_vm2, %v9202_v40, %v3189_v61  ;;  %v6781_v9 = vor.u32 %v7194_v21, %v6778_v37  ;;  %v7186_v19 = vld [vmem:[#allocation5 + $0x564] sm:$0xf]  ;;  %v7013_v21 = vld [vmem:[%s8995_s27 + $0x30] sm:$0xf0]  ;;  %vm4899_vm6 = vcmask 523264  }
 0x488   : >> { %5023 = vmatmul.bf16.vlgmr.msra.gmra.mxu3 %v9127_v55  ;;  %5135 = vmatmul.bf16.vlgmr.msrb.gmra.mxu2 %v9136_v12  ;;  %3582 = vst [vmem:[#allocation5 + $0x638] sm:$0xff] %v3550_v16  ;;  %v7182_v61 = vld [vmem:[#allocation5 + $0x544] sm:$0xf]  ;;  %v6426_v16 = vld [vmem:[#allocation5 + $0x2f0] sm:$0xf0] }
 0x489   : >> { %5071 = vmatpush.bf16.msrb.mxu3 %v6813_v17  ;;  %5187 = vmatpush.bf16.msra.mxu2 %v6881_v57  ;;  %3216 = vst [vmem:[#allocation5 + $0x548] sm:$0xff] %v3190_v43  ;;  %v9780_v17 = vrot.slane %v9272_v6, 4  ;;  %v6052_v43 = vld [vmem:[%s8995_s27 + $0x18] sm:$0xf] }
 0x48a   : >> { %3127 = vrot.lane.b32.xlu0 %v3094_v24, %s7320_s26  ;;  %v3418_v39 = vpop.permute.xlu0 %3417  ;;  %v2972_v15 = vpop.permute.xlu2 %2971  ;;  %v9507_v7 = vor.u32 %v7013_v21, %v6052_v43  ;;  %v6290_v21 = vld [vmem:[#allocation5 + $0x1d8] sm:$0xf0]  ;;  %s5560_s26 = smin.u32 %s7301_s8, %s309_s17 }
 0x48b   : >> { %v3438_v26 = vrot.slane %v3418_v39, 4  ;;  %v3140_v36 = vpop.permute.xlu1 %3139  ;;  %v3005_v33 = vrot.slane %v2972_v15, 4  ;;  %7269 = sdivrem.u32 %s5560_s26, 5 }
 0x48c   : >> { %v3164_v32 = vrot.slane %v3140_v36, 4 }
 0x48d   : >> { %5072 = vmatpush.bf16.msrb.mxu3 %v6797_v18  ;;  %5188 = vmatpush.bf16.msra.mxu2 %v6865_v0  ;;  %v3461_v40 = vsel %vm361_vm0, %v3438_v26, %v3439_v45  ;;  %v3023_v8 = vsel %vm361_vm0, %v9780_v17, %v3005_v33  ;;  %v6749_v18 = vor.u32 %v7186_v19, %v6746_v47  ;;  %v7106_v33 = vld [vmem:[#allocation5 + $0x2e4] sm:$0xf]  ;;  %v7075_v47 = vld [vmem:[#allocation5 + $0x1ec] sm:$0xf] }
 0x48e   : >> { %v3462_v49 = vsel %vm1007_vm11, %v3418_v39, %v3461_v40  ;;  %v3185_v57 = vsel %vm361_vm0, %v9781_v5, %v3164_v32  ;;  %v7184_v20 = vld [vmem:[#allocation5 + $0x54c] sm:$0xf0]  ;;  %v3024_v48 = vsel %vm794_vm5, %v9272_v6, %v3023_v8  ;;  %v6730_v25 = vld [vmem:[#allocation5 + $0x550] sm:$0xf0]  ;;  %v3159_v6 = vrot.slane %v9335_v54, 4 }
 0x48f   : >> { %3487 = vst [vmem:[#allocation5 + $0x610] sm:$0xff] %v3462_v49  ;;  %v3186_v56 = vsel %vm845_vm2, %v9352_v3, %v3185_v57  ;;  %v6729_v4 = vor.u32 %v7184_v20, %v6728_v52  ;;  %v7213_v28 = vld [vmem:[#allocation5 + $0x634] sm:$0xf0]  ;;  %v6733_v37 = vor.u32 %v7182_v61, %v6730_v25  ;;  %v6429_v32 = vor.u32 %v7106_v33, %v6426_v16  ;;  %v7102_v40 = vld [vmem:[#allocation5 + $0x2c4] sm:$0xf] }
 0x490   : >> { %3058 = vst [vmem:[#allocation5 + $0x448] sm:$0xff] %v3024_v48  ;;  %v6849_v24 = vor.u32 %v7213_v28, %v6848_v11  ;;  %v7180_v57 = vld [vmem:[#allocation5 + $0x52c] sm:$0xf0]  ;;  %v7098_v52 = vld [vmem:[#allocation5 + $0x2a4] sm:$0xf] }
 0x491   : >> { %5073 = vmatpush.bf16.msrb.mxu3 %v6781_v9  ;;  %3214 = vst [vmem:[#allocation5 + $0x538] sm:$0xff] %v3186_v56  ;;  %4978 = vmatpush.bf16.msrb.mxu0 %v6729_v4  ;;  %v6394_v20 = vld [vmem:[#allocation5 + $0x2b0] sm:$0xf0]  ;;  %v9782_v56 = vrot.slane %v9348_v22, 4 }
 0x492   : >> { %5189 = vmatpush.bf16.msra.mxu2 %v6849_v24  ;;  %v9493_v63 = vpop.permute.xlu0 %3131  ;;  %v3422_v42 = vpop.permute.xlu2 %3421  ;;  %v6714_v24 = vld [vmem:[#allocation5 + $0x530] sm:$0xf0]  ;;  %v6397_v61 = vor.u32 %v7098_v52, %v6394_v20  ;;  %v6258_v52 = vld [vmem:[#allocation5 + $0x198] sm:$0xf0] }
 0x493   : >> { %v3160_v3 = vrot.slane %v9493_v63, 4  ;;  %v3440_v23 = vrot.slane %v3422_v42, 4  ;;  %v6378_v16 = vld [vmem:[#allocation5 + $0x290] sm:$0xf0] }
 0x494   : >> { %s7270_s30 = spop.drf %7269 }
 0x495   : >> { %5074 = vmatpush.bf16.msrb.mxu3 %v6765_v41  ;;  %v3179_v0 = vsel %vm361_vm0, %v3159_v6, %v3160_v3  ;;  %v3463_v39 = vsel %vm361_vm0, %v3439_v45, %v3440_v23  ;;  %v6410_v41 = vld [vmem:[#allocation5 + $0x2d0] sm:$0xf0]  ;;  %v3154_v45 = vrot.slane %v9280_v31, 4  ;;  %v6832_v6 = vld [vmem:[#allocation5 + $0x608] sm:$0xf]  ;;  %s7271_s9 = spop.drf %7269 }
 0x496   : >> { %v3180_v9 = vsel %vm845_vm2, %v9335_v54, %v3179_v0  ;;  %v7208_v26 = vld [vmem:[#allocation5 + $0x60c] sm:$0xf0]  ;;  %v3464_v15 = vsel %vm1007_vm11, %v9246_v13, %v3463_v39  ;;  %v6413_v5 = vor.u32 %v7102_v40, %v6410_v41  ;;  %v6306_v0 = vld [vmem:[#allocation5 + $0x1f8] sm:$0xf0]  ;;  %v6362_v40 = vld [vmem:[#allocation5 + $0x270] sm:$0xf0] }
 0x497   : >> { %3211 = vst [vmem:[#allocation5 + $0x520] sm:$0xff] %v3180_v9  ;;  %v6825_v36 = vor.u32 %v7208_v26, %v6824_v35  ;;  %v7094_v35 = vld [vmem:[#allocation5 + $0x284] sm:$0xf]  ;;  %s313_s11 = ssub.s32 0, %s7271_s9 }
 0x498   : >> { %3488 = vst [vmem:[#allocation5 + $0x618] sm:$0xff] %v3464_v15  ;;  %v6381_v15 = vor.u32 %v7094_v35, %v6378_v16  ;;  %s9801_s11 = smov (!%p308_p4, %s313_s11), %s7271_s9 }
 0x499   : >> { %5075 = vmatpush.bf16.msrb.mxu3 %v6749_v18  ;;  %4994 = vmatpush.bf16.msrb.mxu1 %v6825_v36  ;;  %v7071_v36 = vld [vmem:[#allocation5 + $0x1cc] sm:$0xf]  ;;  %p5562_p5 = scmp.lt.s32.totalorder %s9801_s11, 0  ;;  %s319_s12 = sadd.s32 5, %s9801_s11 }
 0x49a   : >> { %v3118_v54 = vpop.permute.xlu0 %3117  ;;  %v2822_v17 = vpop.permute.xlu2 %2821 }
 0x49b   : >> { %v3153_v49 = vrot.slane %v3118_v54, 4  ;;  %v2843_v8 = vrot.slane %v2822_v17, 4  ;;  %v6274_v17 = vld [vmem:[#allocation5 + $0x1b8] sm:$0xf0]  ;;  %s9803_s12 = smov (!%p5562_p5, %s319_s12), %s9801_s11 }
 0x49c   : >> { %6886 = vmatmul.msk.bf16.vlgmr.msrb.gmra.mxu1 %vm4899_vm6, %v9507_v7  ;;  %p5295_p6 = scmp.eq.s32.totalorder %s9803_s12, 4  ;;  %p6890_p7 = scmp.ne.s32.totalorder %s9803_s12, 4 }
 0x49d   : >> { %5076 = vmatpush.bf16.msrb.mxu3 %v6733_v37  ;;  %5029 = vmatpush.bf16.msra.mxu1 %v6429_v32  ;;  %v3171_v13 = vsel %vm361_vm0, %v3153_v49, %v3154_v45  ;;  %v2865_v4 = vsel %vm361_vm0, %v9782_v56, %v2843_v8  ;;  %v6309_v37 = vor.u32 %v7075_v47, %v6306_v0  ;;  %v7067_v49 = vld [vmem:[#allocation5 + $0x1ac] sm:$0xf]  ;;  %v6346_v47 = vld [vmem:[#allocation5 + $0x250] sm:$0xf0] }
 0x49e   : >> { %v3172_v48 = vsel %vm845_vm2, %v3118_v54, %v3171_v13  ;;  %v6712_v11 = vld [vmem:[#allocation5 + $0x520] sm:$0xf]  ;;  %v7178_v28 = vld [vmem:[#allocation5 + $0x524] sm:$0xf]  ;;  %v2866_v19 = vsel %vm9783_vm10, %v9348_v22, %v2865_v4  ;;  %v3156_v22 = vrot.slane %v9375_v58, 4  ;;  %v6293_v32 = vor.u32 %v7071_v36, %v6290_v21 }
 0x49f   : >> { %3207 = vst [vmem:[#allocation5 + $0x500] sm:$0xff] %v3172_v48  ;;  %v6713_v18 = vor.u32 %v7180_v57, %v6712_v11  ;;  %v6717_v25 = vor.u32 %v7178_v28, %v6714_v24  ;;  %v7209_v42 = vld [vmem:[#allocation5 + $0x614] sm:$0xf0]  ;;  %v7063_v57 = vld [vmem:[#allocation5 + $0x18c] sm:$0xf]  ;;  %v6277_v20 = vor.u32 %v7067_v49, %v6274_v17 }
 0x4a0   : >> { %2892 = vst [vmem:[#allocation5 + $0x428] sm:$0xff] %v2866_v19  ;;  %v6833_v23 = vor.u32 %v7209_v42, %v6832_v6  ;;  %v7086_v48 = vld [vmem:[#allocation5 + $0x244] sm:$0xf]  ;;  %v6261_v4 = vor.u32 %v7063_v57, %v6258_v52  ;;  %v6330_v28 = vld [vmem:[#allocation5 + $0x230] sm:$0xf0]  ;;  %v9784_v42 = vrot.slane %v8850_v62, 4 }
 0x4a1   : >> { %5030 = vmatpush.bf16.msra.mxu1 %v6413_v5  ;;  %4979 = vmatpush.bf16.msrb.mxu0 %v6713_v18  ;;  %v7090_v5 = vld [vmem:[#allocation5 + $0x264] sm:$0xf]  ;;  %v6349_v24 = vor.u32 %v7086_v48, %v6346_v47  ;;  %v6554_v19 = vld [vmem:[#allocation5 + $0x3f0] sm:$0xf0]  ;;  %v7141_v18 = vld [vmem:[#allocation5 + $0x3f4] sm:$0xf0] }
 0x4a2   : >> { %5077 = vmatpush.bf16.msrb.mxu3 %v6717_v25  ;;  %5190 = vmatpush.bf16.msra.mxu2 %v6833_v23  ;;  %v9521_v43 = vpop.permute.xlu0 %3125  ;;  %v3296_v39 = vpop.permute.xlu2 %3295  ;;  %v6365_v13 = vor.u32 %v7090_v5, %v6362_v40  ;;  %v7082_v11 = vld [vmem:[#allocation5 + $0x224] sm:$0xf]  ;;  %v7059_v25 = vld [vmem:[#allocation5 + $0x16c] sm:$0xf]  ;;  %v6242_v6 = vld [vmem:[#allocation5 + $0x178] sm:$0xf0] }
 0x4a3   : >> { %v3157_v9 = vrot.slane %v9521_v43, 4  ;;  %v3326_v26 = vrot.slane %v3296_v39, 4  ;;  %v7009_v0 = vld [vmem:[%s8995_s27 + $0x14] sm:$0xf]  ;;  %v6560_v40 = vld [vmem:[#allocation5 + $0x3e8] sm:$0xf] }
 0x4a4   : >> { %v6314_v49 = vld [vmem:[#allocation5 + $0x210] sm:$0xf0]  ;;  %v7137_v5 = vld [vmem:[#allocation5 + $0x3d4] sm:$0xf0] }
 0x4a5   : >> { %5031 = vmatpush.bf16.msra.mxu1 %v6397_v61  ;;  %v3175_v33 = vsel %vm361_vm0, %v3156_v22, %v3157_v9  ;;  %6888 = vmatmul.msk.bf16.vlgmr.msra.gmra.mxu2 %vm4899_vm6, %v9507_v7  ;;  %v3345_v54 = vsel %vm361_vm0, %v3325_v27, %v3326_v26  ;;  %v6538_v17 = vld [vmem:[#allocation5 + $0x3d0] sm:$0xf0]  ;;  %s5296_s18 = scalar_select %p5295_p6, 1.0, 0.01 }
 0x4a6   : >> { %5211 = vmatpush.bf16.msrb.mxu2 %v6309_v37  ;;  %v3176_v41 = vsel %vm845_vm2, %v9375_v58, %v3175_v33  ;;  %v3346_v8 = vsel %vm972_vm8, %v9162_v53, %v3345_v54  ;;  %v6696_v61 = vld [vmem:[#allocation5 + $0x500] sm:$0xf]  ;;  %v6046_v37 = vld [vmem:[%s8995_s27 + $0x2c] sm:$0xf0]  ;;  %v7174_v39 = vld [vmem:[#allocation5 + $0x504] sm:$0xf]  ;;  %v6245_v54 = vor.u32 %v7059_v25, %v6242_v6 }
 0x4a7   : >> { %3209 = vst [vmem:[#allocation5 + $0x510] sm:$0xff] %v3176_v41  ;;  %v7138_v33 = vld [vmem:[#allocation5 + $0x3e4] sm:$0xf]  ;;  %v9551_v41 = vor.u32 %v7009_v0, %v6046_v37  ;;  %v6874_v47 = vld [vmem:[#allocation5 + $0x670] sm:$0xf0] }
 0x4a8   : >> { %3378 = vst [vmem:[#allocation5 + $0x578] sm:$0xff] %v3346_v8  ;;  %v7130_v37 = vld [vmem:[#allocation5 + $0x3a4] sm:$0xf] }
 0x4a9   : >> { %5032 = vmatpush.bf16.msra.mxu1 %v6381_v15 }
 0x4aa   : >> { %5212 = vmatpush.bf16.msrb.mxu2 %v6293_v32  ;;  %v3404_v58 = vpop.permute.xlu0 %3403  ;;  %v3152_v56 = vpop.permute.xlu2 %3151  ;;  %v6333_v32 = vor.u32 %v7082_v11, %v6330_v28  ;;  %v9785_v11 = vrot.slane %v8897_v2, 4 }
 0x4ab   : >> { %v3431_v27 = vrot.slane %v3404_v58, 4  ;;  %v3170_v53 = vrot.slane %v3152_v56, 4  ;;  %v6544_v56 = vld [vmem:[#allocation5 + $0x3c8] sm:$0xf] }
 0x4ad   : >> { %5033 = vmatpush.bf16.msra.mxu1 %v6365_v13  ;;  %v3451_v23 = vsel %vm361_vm0, %v9784_v42, %v3431_v27  ;;  %v3193_v21 = vsel %vm361_vm0, %v3169_v30, %v3170_v53  ;;  %v6561_v30 = vor.u32 %v7141_v18, %v6560_v40  ;;  %v6226_v13 = vld [vmem:[#allocation5 + $0x158] sm:$0xf0]  ;;  %v6545_v53 = vor.u32 %v7137_v5, %v6544_v56  ;;  %v6522_v18 = vld [vmem:[#allocation5 + $0x3b0] sm:$0xf0]  ;;  %v7210_v40 = vld [vmem:[#allocation5 + $0x624] sm:$0xf] }
 0x4ae   : >> { %5213 = vmatpush.bf16.msrb.mxu2 %v6277_v20  ;;  %v3452_v16 = vsel %vm1007_vm11, %v8850_v62, %v3451_v23  ;;  %v7176_v22 = vld [vmem:[#allocation5 + $0x50c] sm:$0xf0]  ;;  %v6698_v35 = vld [vmem:[#allocation5 + $0x510] sm:$0xf0]  ;;  %v3194_v26 = vsel %vm845_vm2, %v9460_v59, %v3193_v21  ;;  %v6557_v62 = vor.u32 %v7138_v33, %v6554_v19  ;;  %v7078_v59 = vld [vmem:[#allocation5 + $0x204] sm:$0xf] }
 0x4af   : >> { %3482 = vst [vmem:[#allocation5 + $0x5e8] sm:$0xff] %v3452_v16  ;;  %v6697_v15 = vor.u32 %v7176_v22, %v6696_v61  ;;  %v6701_v36 = vor.u32 %v7174_v39, %v6698_v35  ;;  %v7134_v20 = vld [vmem:[#allocation5 + $0x3c4] sm:$0xf]  ;;  %v6317_v48 = vor.u32 %v7078_v59, %v6314_v49  ;;  %v7133_v23 = vld [vmem:[#allocation5 + $0x3b4] sm:$0xf0] }
 0x4b0   : >> { %3218 = vst [vmem:[#allocation5 + $0x558] sm:$0xff] %v3194_v26  ;;  %v6541_v27 = vor.u32 %v7134_v20, %v6538_v17  ;;  %v7218_v19 = vld [vmem:[#allocation5 + $0x664] sm:$0xf]  ;;  %v6210_v61 = vld [vmem:[#allocation5 + $0x138] sm:$0xf0] }
 0x4b1   : >> { %5034 = vmatpush.bf16.msra.mxu1 %v6349_v24  ;;  %4980 = vmatpush.bf16.msrb.mxu0 %v6697_v15  ;;  %v6877_v42 = vor.u32 %v7218_v19, %v6874_v47  ;;  %v6858_v16 = vld [vmem:[#allocation5 + $0x650] sm:$0xf0]  ;;  %v6528_v21 = vld [vmem:[#allocation5 + $0x3a8] sm:$0xf]  ;;  %v7051_v22 = vld [vmem:[#allocation5 + $0x12c] sm:$0xf] }
 0x4b2   : >> { %5214 = vmatpush.bf16.msrb.mxu2 %v6261_v4  ;;  %5078 = vmatpush.bf16.msrb.mxu3 %v6701_v36  ;;  %v3002_v8 = vpop.permute.xlu0 %3001  ;;  %v3122_v52 = vpop.permute.xlu2 %3121  ;;  %v7055_v4 = vld [vmem:[#allocation5 + $0x14c] sm:$0xf]  ;;  %v6213_v39 = vor.u32 %v7051_v22, %v6210_v61  ;;  %v7214_v35 = vld [vmem:[#allocation5 + $0x644] sm:$0xf]  ;;  %v6506_v26 = vld [vmem:[#allocation5 + $0x390] sm:$0xf0] }
 0x4b3   : >> { %v3020_v57 = vrot.slane %v3002_v8, 4  ;;  %v3155_v58 = vrot.slane %v3122_v52, 4  ;;  %v6229_v24 = vor.u32 %v7055_v4, %v6226_v13  ;;  %v6861_v36 = vor.u32 %v7214_v35, %v6858_v16  ;;  %v7126_v33 = vld [vmem:[#allocation5 + $0x384] sm:$0xf]  ;;  %v6512_v49 = vld [vmem:[#allocation5 + $0x388] sm:$0xf] }
 0x4b4   : >> { %4981 = vmatmul.bf16.vlgmr.msrb.gmra.mxu0 %v9551_v41  ;;  %v7047_v17 = vld [vmem:[#allocation5 + $0x10c] sm:$0xf]  ;;  %v9786_v8 = vrot.slane %v9194_v46, 4  ;;  %v6818_v52 = vld [vmem:[#allocation5 + $0x5f8] sm:$0xf0] }
 0x4b5   : >> { %5035 = vmatpush.bf16.msra.mxu1 %v6333_v32  ;;  %5043 = vmatpush.bf16.msra.mxu0 %v6557_v62  ;;  %v3043_v28 = vsel %vm361_vm0, %v9785_v11, %v3020_v57  ;;  %v3173_v6 = vsel %vm361_vm0, %v3154_v45, %v3155_v58  ;;  %v6529_v45 = vor.u32 %v7133_v23, %v6528_v21  ;;  %v6194_v32 = vld [vmem:[#allocation5 + $0x118] sm:$0xf0]  ;;  %v6842_v57 = vld [vmem:[#allocation5 + $0x630] sm:$0xf0]  ;;  %v7122_v56 = vld [vmem:[#allocation5 + $0x364] sm:$0xf] }
 0x4b6   : >> { %5141 = vmatpush.bf16.msra.mxu3 %v6561_v30  ;;  %5215 = vmatpush.bf16.msrb.mxu2 %v6245_v54  ;;  %v3044_v25 = vsel %vm794_vm5, %v8897_v2, %v3043_v28  ;;  %v3174_v0 = vsel %vm845_vm2, %v9280_v31, %v3173_v6  ;;  %v6525_v2 = vor.u32 %v7130_v37, %v6522_v18  ;;  %v7129_v31 = vld [vmem:[#allocation5 + $0x394] sm:$0xf0]  ;;  %v7203_v30 = vld [vmem:[#allocation5 + $0x5ec] sm:$0xf]  ;;  %v6490_v20 = vld [vmem:[#allocation5 + $0x370] sm:$0xf0] }
 0x4b7   : >> { %5079 = vmatmul.bf16.vlgmr.msrb.gmra.mxu3 %v9551_v41  ;;  %3068 = vst [vmem:[#allocation5 + $0x498] sm:$0xff] %v3044_v25  ;;  %v6509_v54 = vor.u32 %v7126_v33, %v6506_v26  ;;  %v6513_v5 = vor.u32 %v7129_v31, %v6512_v49  ;;  %v6197_v13 = vor.u32 %v7047_v17, %v6194_v32  ;;  %v6826_v4 = vld [vmem:[#allocation5 + $0x610] sm:$0xf0]  ;;  %v6496_v28 = vld [vmem:[#allocation5 + $0x368] sm:$0xf]  ;;  %v9787_v21 = vrot.slane %v9238_v1, 4 }
 0x4b8   : >> { %3208 = vst [vmem:[#allocation5 + $0x508] sm:$0xff] %v3174_v0  ;;  %v6845_v58 = vor.u32 %v7210_v40, %v6842_v57  ;;  %v6493_v11 = vor.u32 %v7122_v56, %v6490_v20  ;;  %v7206_v19 = vld [vmem:[#allocation5 + $0x604] sm:$0xf]  ;;  %v6474_v18 = vld [vmem:[#allocation5 + $0x350] sm:$0xf0] }
 0x4b9   : >> { %5036 = vmatpush.bf16.msra.mxu1 %v6317_v48  ;;  %5044 = vmatpush.bf16.msra.mxu0 %v6541_v27  ;;  %v6821_v48 = vor.u32 %v7203_v30, %v6818_v52  ;;  %v7125_v27 = vld [vmem:[#allocation5 + $0x374] sm:$0xf0]  ;;  %v7118_v0 = vld [vmem:[#allocation5 + $0x344] sm:$0xf]  ;;  %v6480_v16 = vld [vmem:[#allocation5 + $0x348] sm:$0xf] }
 0x4ba   : >> { %5142 = vmatpush.bf16.msra.mxu3 %v6545_v53  ;;  %5216 = vmatpush.bf16.msrb.mxu2 %v6229_v24  ;;  %v3392_v15 = vpop.permute.xlu0 %3391  ;;  %v6304_v53 = vld [vmem:[#allocation5 + $0x1e8] sm:$0xf]  ;;  %v6497_v24 = vor.u32 %v7125_v27, %v6496_v28  ;;  %v7077_v6 = vld [vmem:[#allocation5 + $0x1f4] sm:$0xf0]  ;;  %v6477_v37 = vor.u32 %v7118_v0, %v6474_v18  ;;  %v6458_v35 = vld [vmem:[#allocation5 + $0x330] sm:$0xf0] }
 0x4bb   : >> { %v3425_v62 = vrot.slane %v3392_v15, 4  ;;  %v6305_v61 = vor.u32 %v7077_v6, %v6304_v53  ;;  %v7117_v33 = vld [vmem:[#allocation5 + $0x334] sm:$0xf0]  ;;  %v6464_v30 = vld [vmem:[#allocation5 + $0x328] sm:$0xf] }
 0x4bc   : >> { %5037 = vmatmul.bf16.vlgmr.msra.gmra.mxu1 %v9136_v12  ;;  %v7069_v49 = vld [vmem:[#allocation5 + $0x1b4] sm:$0xf0]  ;;  %v6465_v17 = vor.u32 %v7117_v33, %v6464_v30  ;;  %v6448_v27 = vld [vmem:[#allocation5 + $0x308] sm:$0xf]  ;;  %v6162_v6 = vld [vmem:[#allocation5 + $0xd8] sm:$0xf0] }
 0x4bd   : >> { %5089 = vmatpush.bf16.msrb.mxu1 %v6877_v42  ;;  %5045 = vmatpush.bf16.msra.mxu0 %v6525_v2  ;;  %v3443_v59 = vsel %vm361_vm0, %v9786_v8, %v3425_v62  ;;  %v7121_v42 = vld [vmem:[#allocation5 + $0x354] sm:$0xf0]  ;;  %v7114_v62 = vld [vmem:[#allocation5 + $0x324] sm:$0xf]  ;;  %v6442_v8 = vld [vmem:[#allocation5 + $0x310] sm:$0xf0] }
 0x4be   : >> { %5143 = vmatpush.bf16.msra.mxu3 %v6529_v45  ;;  %5217 = vmatpush.bf16.msrb.mxu2 %v6213_v39  ;;  %v3444_v47 = vsel %vm1007_vm11, %v9194_v46, %v3443_v59  ;;  %v6829_v46 = vor.u32 %v7206_v19, %v6826_v4  ;;  %v7073_v2 = vld [vmem:[#allocation5 + $0x1d4] sm:$0xf0]  ;;  %v6481_v45 = vor.u32 %v7121_v42, %v6480_v16  ;;  %v6288_v39 = vld [vmem:[#allocation5 + $0x1c8] sm:$0xf]  ;;  %v9788_v4 = vrot.slane %v9064_v51, 4 }
 0x4bf   : >> { %3478 = vst [vmem:[#allocation5 + $0x5c8] sm:$0xff] %v3444_v47  ;;  %v6289_v31 = vor.u32 %v7073_v2, %v6288_v39  ;;  %v6461_v40 = vor.u32 %v7114_v62, %v6458_v35  ;;  %v7045_v59 = vld [vmem:[#allocation5 + $0xf4] sm:$0xf0]  ;;  %v7110_v47 = vld [vmem:[#allocation5 + $0x304] sm:$0xf] }
 0x4c0   : >> { %v7065_v57 = vld [vmem:[#allocation5 + $0x194] sm:$0xf0]  ;;  %v6176_v56 = vld [vmem:[#allocation5 + $0xe8] sm:$0xf]  ;;  %v7035_v33 = vld [vmem:[#allocation5 + $0xac] sm:$0xf] }
 0x4c1   : >> { %5090 = vmatpush.bf16.msrb.mxu1 %v6861_v36  ;;  %5046 = vmatpush.bf16.msra.mxu0 %v6509_v54  ;;  %v6802_v36 = vld [vmem:[#allocation5 + $0x5d8] sm:$0xf0]  ;;  %v6272_v54 = vld [vmem:[#allocation5 + $0x1a8] sm:$0xf]  ;;  %v6177_v53 = vor.u32 %v7045_v59, %v6176_v56  ;;  %v7057_v35 = vld [vmem:[#allocation5 + $0x154] sm:$0xf0] }
 0x4c2   : >> { %5144 = vmatpush.bf16.msra.mxu3 %v6513_v5  ;;  %5218 = vmatpush.bf16.msrb.mxu2 %v6197_v13  ;;  %v2990_v25 = vpop.permute.xlu0 %2989  ;;  %v6256_v13 = vld [vmem:[#allocation5 + $0x188] sm:$0xf]  ;;  %v6273_v20 = vor.u32 %v7069_v49, %v6272_v54  ;;  %v6786_v54 = vld [vmem:[#allocation5 + $0x5b8] sm:$0xf0]  ;;  %v7049_v56 = vld [vmem:[#allocation5 + $0x114] sm:$0xf0] }
 0x4c3   : >> { %v3014_v23 = vrot.slane %v2990_v25, 4  ;;  %v6257_v19 = vor.u32 %v7065_v57, %v6256_v13  ;;  %v6160_v42 = vld [vmem:[#allocation5 + $0xc8] sm:$0xf]  ;;  %v7031_v13 = vld [vmem:[#allocation5 + $0x8c] sm:$0xf] }
 0x4c4   : >> { %v6144_v39 = vld [vmem:[#allocation5 + $0xa8] sm:$0xf] }
 0x4c5   : >> { %5091 = vmatpush.bf16.msrb.mxu1 %v6845_v58  ;;  %5047 = vmatpush.bf16.msra.mxu0 %v6493_v11  ;;  %v3035_v22 = vsel %vm361_vm0, %v9787_v21, %v3014_v23  ;;  %v6178_v58 = vld [vmem:[#allocation5 + $0xf8] sm:$0xf0]  ;;  %v6240_v23 = vld [vmem:[#allocation5 + $0x168] sm:$0xf]  ;;  %v7037_v21 = vld [vmem:[#allocation5 + $0xb4] sm:$0xf0] }
 0x4c6   : >> { %5267 = vmatpush.bf16.msra.mxu2 %v6821_v48  ;;  %5145 = vmatpush.bf16.msra.mxu3 %v6497_v24  ;;  %v3036_v26 = vsel %vm794_vm5, %v9238_v1, %v3035_v22  ;;  %v7199_v15 = vld [vmem:[#allocation5 + $0x5cc] sm:$0xf]  ;;  %v7113_v1 = vld [vmem:[#allocation5 + $0x314] sm:$0xf0]  ;;  %v6445_v48 = vor.u32 %v7110_v47, %v6442_v8  ;;  %v6130_v8 = vld [vmem:[#allocation5 + $0x98] sm:$0xf0] }
 0x4c7   : >> { %5219 = vmatmul.bf16.vlgmr.msrb.gmra.mxu2 %v9127_v55  ;;  %3064 = vst [vmem:[#allocation5 + $0x478] sm:$0xff] %v3036_v26  ;;  %v6805_v32 = vor.u32 %v7199_v15, %v6802_v36  ;;  %v6449_v28 = vor.u32 %v7113_v1, %v6448_v27  ;;  %v7043_v24 = vld [vmem:[#allocation5 + $0xec] sm:$0xf]  ;;  %v9789_v26 = vrot.slane %v9107_v38, 4  ;;  %v6145_v36 = vor.u32 %v7037_v21, %v6144_v39  ;;  %v6128_v59 = vld [vmem:[#allocation5 + $0x88] sm:$0xf] }
 0x4c8   : >> { %v6181_v25 = vor.u32 %v7043_v24, %v6178_v58  ;;  %v6112_v27 = vld [vmem:[#allocation5 + $0x68] sm:$0xf]  ;;  %v6082_v39 = vld [vmem:[#allocation5 + $0x38] sm:$0xf0] }
 0x4c9   : >> { %5092 = vmatpush.bf16.msrb.mxu1 %v6829_v46  ;;  %5048 = vmatpush.bf16.msra.mxu0 %v6477_v37  ;;  %v7041_v46 = vld [vmem:[#allocation5 + $0xd4] sm:$0xf0]  ;;  %v7039_v37 = vld [vmem:[#allocation5 + $0xcc] sm:$0xf]  ;;  %v6816_v24 = vld [vmem:[#allocation5 + $0x5e8] sm:$0xf] }
 0x4ca   : >> { %5146 = vmatpush.bf16.msra.mxu3 %v6481_v45  ;;  %5268 = vmatpush.bf16.msra.mxu2 %v6805_v32  ;;  %v3314_v5 = vpop.permute.xlu0 %3313  ;;  %v6161_v0 = vor.u32 %v7041_v46, %v6160_v42  ;;  %v6165_v2 = vor.u32 %v7039_v37, %v6162_v6  ;;  %v6146_v45 = vld [vmem:[#allocation5 + $0xb8] sm:$0xf0]  ;;  %v7025_v46 = vld [vmem:[#allocation5 + $0x54] sm:$0xf0] }
 0x4cb   : >> { %v3335_v52 = vrot.slane %v3314_v5, 4  ;;  %v6149_v62 = vor.u32 %v7035_v33, %v6146_v45  ;;  %v7053_v5 = vld [vmem:[#allocation5 + $0x134] sm:$0xf0] }
 0x4cc   : >> { %6887 = vmatmul.msk.bf16.vlgmr.msrb.gmra.mxu1 %vm4899_vm6, %v9507_v7  ;;  %v7205_v42 = vld [vmem:[#allocation5 + $0x5f4] sm:$0xf0] }
 0x4cd   : >> { %5113 = vmatpush.bf16.msra.mxu1 %v6305_v61  ;;  %5049 = vmatpush.bf16.msra.mxu0 %v6461_v40  ;;  %v3357_v11 = vsel %vm361_vm0, %v9788_v4, %v3335_v52  ;;  %v7061_v61 = vld [vmem:[#allocation5 + $0x174] sm:$0xf0]  ;;  %v6224_v40 = vld [vmem:[#allocation5 + $0x148] sm:$0xf]  ;;  %v6133_v52 = vor.u32 %v7031_v13, %v6130_v8  ;;  %v9790_v4 = vrot.slane %v9156_v34, 4 }
 0x4ce   : >> { %5147 = vmatpush.bf16.msra.mxu3 %v6465_v17  ;;  %v3358_v18 = vsel %vm972_vm8, %v9064_v51, %v3357_v11  ;;  %v6241_v22 = vor.u32 %v7061_v61, %v6240_v23  ;;  %v6225_v49 = vor.u32 %v7057_v35, %v6224_v40  ;;  %v6098_v23 = vld [vmem:[#allocation5 + $0x58] sm:$0xf0]  ;;  %v6817_v61 = vor.u32 %v7205_v42, %v6816_v24  ;;  %v7201_v45 = vld [vmem:[#allocation5 + $0x5d4] sm:$0xf0] }
 0x4cf   : >> { %3384 = vst [vmem:[#allocation5 + $0x5a8] sm:$0xff] %v3358_v18  ;;  %v7197_v8 = vld [vmem:[#allocation5 + $0x5b4] sm:$0xf0]  ;;  %v6690_v13 = vld [vmem:[#allocation5 + $0x4f8] sm:$0xf0]  ;;  %v9793_v42 = vrot.slane %v8936_v14, 4 }
 0x4d1   : >> { %5114 = vmatpush.bf16.msra.mxu1 %v6289_v31  ;;  %5050 = vmatpush.bf16.msra.mxu0 %v6445_v48  ;;  %v7033_v31 = vld [vmem:[#allocation5 + $0x94] sm:$0xf0]  ;;  %v6114_v48 = vld [vmem:[#allocation5 + $0x78] sm:$0xf0] }
 0x4d2   : >> { %5148 = vmatpush.bf16.msra.mxu3 %v6449_v28  ;;  %v2978_v16 = vpop.permute.xlu0 %2977  ;;  %v6129_v1 = vor.u32 %v7033_v31, %v6128_v59  ;;  %v7019_v31 = vld [vmem:[#allocation5 + $0x2c] sm:$0xf]  ;;  %v7173_v59 = vld [vmem:[#allocation5 + $0x4f4] sm:$0xf0] }
 0x4d3   : >> { %v3008_v51 = vrot.slane %v2978_v16, 4  ;;  %v7023_v16 = vld [vmem:[#allocation5 + $0x4c] sm:$0xf] }
 0x4d4   : >> { %5051 = vmatmul.bf16.vlgmr.msra.gmra.mxu0 %v9014_v44 }
 0x4d5   : >> { %5115 = vmatpush.bf16.msra.mxu1 %v6273_v20  ;;  %5099 = vmatpush.bf16.msrb.mxu0 %v6177_v53  ;;  %v3027_v15 = vsel %vm361_vm0, %v9789_v26, %v3008_v51  ;;  %v6208_v20 = vld [vmem:[#allocation5 + $0x128] sm:$0xf]  ;;  %v7027_v53 = vld [vmem:[#allocation5 + $0x6c] sm:$0xf]  ;;  %v6101_v51 = vor.u32 %v7023_v16, %v6098_v23 }
 0x4d6   : >> { %5197 = vmatpush.bf16.msrb.mxu3 %v6181_v25  ;;  %v3028_v32 = vsel %vm794_vm5, %v9107_v38, %v3027_v15  ;;  %v7195_v30 = vld [vmem:[#allocation5 + $0x5ac] sm:$0xf]  ;;  %v7029_v38 = vld [vmem:[#allocation5 + $0x74] sm:$0xf0]  ;;  %v6209_v58 = vor.u32 %v7053_v5, %v6208_v20  ;;  %v6117_v18 = vor.u32 %v7027_v53, %v6114_v48  ;;  %v6192_v25 = vld [vmem:[#allocation5 + $0x108] sm:$0xf] }
 0x4d7   : >> { %5149 = vmatmul.bf16.vlgmr.msra.gmra.mxu3 %v9014_v44  ;;  %3060 = vst [vmem:[#allocation5 + $0x458] sm:$0xff] %v3028_v32  ;;  %v6789_v17 = vor.u32 %v7195_v30, %v6786_v54  ;;  %v6113_v28 = vor.u32 %v7029_v38, %v6112_v27  ;;  %v6193_v6 = vor.u32 %v7049_v56, %v6192_v25  ;;  %v6080_v26 = vld [vmem:[#allocation5 + $0x28] sm:$0xf]  ;;  %v9791_v15 = vrot.slane %v9196_v60, 4  ;;  %v6066_v20 = vld [vmem:[#allocation5 + $0x18] sm:$0xf0]  ;;  %vm9794_vm5 = vmmov %vm9766_vm1 }
 0x4d8   : >> { %v6784_v32 = vld [vmem:[#allocation5 + $0x5a8] sm:$0xf]  ;;  %v6085_v30 = vor.u32 %v7019_v31, %v6082_v39  ;;  %v7171_v27 = vld [vmem:[#allocation5 + $0x4ec] sm:$0xf]  ;;  %v7193_v53 = vld [vmem:[#allocation5 + $0x594] sm:$0xf0] }
 0x4d9   : >> { %5116 = vmatpush.bf16.msra.mxu1 %v6257_v19  ;;  %5100 = vmatpush.bf16.msrb.mxu0 %v6161_v0  ;;  %v6096_v0 = vld [vmem:[#allocation5 + $0x48] sm:$0xf]  ;;  %v6785_v5 = vor.u32 %v7197_v8, %v6784_v32  ;;  %v7187_v56 = vld [vmem:[#allocation5 + $0x56c] sm:$0xf]  ;;  %v7161_v32 = vld [vmem:[#allocation5 + $0x494] sm:$0xf0] }
 0x4da   : >> { %5198 = vmatpush.bf16.msrb.mxu3 %v6165_v2  ;;  %5269 = vmatpush.bf16.msra.mxu2 %v6789_v17  ;;  %v3302_v57 = vpop.permute.xlu0 %3301  ;;  %v6097_v37 = vor.u32 %v7025_v46, %v6096_v0  ;;  %v6800_v2 = vld [vmem:[#allocation5 + $0x5c8] sm:$0xf]  ;;  %v7015_v17 = vld [vmem:[#allocation5 + $0xc] sm:$0xf]  ;;  %v6674_v46 = vld [vmem:[#allocation5 + $0x4d8] sm:$0xf0] }
 0x4db   : >> { %v3329_v47 = vrot.slane %v3302_v57, 4  ;;  %v6801_v35 = vor.u32 %v7201_v45, %v6800_v2  ;;  %v6754_v57 = vld [vmem:[#allocation5 + $0x578] sm:$0xf0]  ;;  %v6688_v38 = vld [vmem:[#allocation5 + $0x4e8] sm:$0xf] }
 0x4dc   : >> { %v6689_v48 = vor.u32 %v7173_v59, %v6688_v38  ;;  %v6757_v24 = vor.u32 %v7187_v56, %v6754_v57  ;;  %v7167_v25 = vld [vmem:[#allocation5 + $0x4cc] sm:$0xf]  ;;  %v6658_v45 = vld [vmem:[#allocation5 + $0x4b8] sm:$0xf0]  ;;  %v6656_v39 = vld [vmem:[#allocation5 + $0x4a8] sm:$0xf] }
 0x4dd   : >> { %5117 = vmatpush.bf16.msra.mxu1 %v6241_v22  ;;  %5101 = vmatpush.bf16.msrb.mxu0 %v6145_v36  ;;  %v3349_v11 = vsel %vm361_vm0, %v9790_v4, %v3329_v47  ;;  %v7021_v22 = vld [vmem:[#allocation5 + $0x34] sm:$0xf0]  ;;  %v7183_v16 = vld [vmem:[#allocation5 + $0x54c] sm:$0xf]  ;;  %v6677_v2 = vor.u32 %v7167_v25, %v6674_v46  ;;  %v6736_v31 = vld [vmem:[#allocation5 + $0x548] sm:$0xf] }
 0x4de   : >> { %5199 = vmatpush.bf16.msrb.mxu3 %v6149_v62  ;;  %v3350_v19 = vsel %vm972_vm8, %v9156_v34, %v3349_v11  ;;  %v6081_v33 = vor.u32 %v7021_v22, %v6080_v26  ;;  %v6064_v62 = vld [vmem:[#allocation5 + $0x8] sm:$0xf]  ;;  %vm9792_vm8 = vmmov %vm9766_vm1  ;;  %v7169_v4 = vld [vmem:[#allocation5 + $0x4d4] sm:$0xf0] }
 0x4df   : >> { %3380 = vst [vmem:[#allocation5 + $0x588] sm:$0xff] %v3350_v19  ;;  %v6672_v19 = vld [vmem:[#allocation5 + $0x4c8] sm:$0xf]  ;;  %v7165_v22 = vld [vmem:[#allocation5 + $0x4b4] sm:$0xf0] }
 0x4e0   : >> { %v6657_v26 = vor.u32 %v7165_v22, %v6656_v39  ;;  %v6626_v59 = vld [vmem:[#allocation5 + $0x478] sm:$0xf0]  ;;  %v7155_v57 = vld [vmem:[#allocation5 + $0x46c] sm:$0xf] }
 0x4e1   : >> { %5118 = vmatpush.bf16.msra.mxu1 %v6225_v49  ;;  %5102 = vmatpush.bf16.msrb.mxu0 %v6129_v1  ;;  %v6770_v49 = vld [vmem:[#allocation5 + $0x598] sm:$0xf0]  ;;  %v7017_v1 = vld [vmem:[#allocation5 + $0x14] sm:$0xf0]  ;;  %v7147_v46 = vld [vmem:[#allocation5 + $0x42c] sm:$0xf] }
 0x4e2   : >> { %5200 = vmatpush.bf16.msrb.mxu3 %v6133_v52  ;;  %v2828_v21 = vpop.permute.xlu0 %2827  ;;  %v6065_v52 = vor.u32 %v7017_v1, %v6064_v62  ;;  %v6642_v62 = vld [vmem:[#allocation5 + $0x498] sm:$0xf0]  ;;  %v7175_v22 = vld [vmem:[#allocation5 + $0x50c] sm:$0xf] }
 0x4e3   : >> { %v2846_v34 = vrot.slane %v2828_v21, 4  ;;  %v6752_v21 = vld [vmem:[#allocation5 + $0x568] sm:$0xf]  ;;  %v6610_v38 = vld [vmem:[#allocation5 + $0x458] sm:$0xf0] }
 0x4e5   : >> { %5119 = vmatpush.bf16.msra.mxu1 %v6209_v58  ;;  %5103 = vmatpush.bf16.msrb.mxu0 %v6113_v28  ;;  %v2869_v36 = vsel %vm361_vm0, %v9791_v15, %v2846_v34  ;;  %v6069_v58 = vor.u32 %v7015_v17, %v6066_v20  ;;  %v6693_v28 = vor.u32 %v7171_v27, %v6690_v13  ;;  %v7163_v15 = vld [vmem:[#allocation5 + $0x4ac] sm:$0xf]  ;;  %v7153_v20 = vld [vmem:[#allocation5 + $0x454] sm:$0xf0] }
 0x4e6   : >> { %5201 = vmatpush.bf16.msrb.mxu3 %v6117_v18  ;;  %v2870_v40 = vsel %vm9792_vm8, %v9196_v60, %v2869_v36  ;;  %v7191_v54 = vld [vmem:[#allocation5 + $0x58c] sm:$0xf]  ;;  %v6768_v60 = vld [vmem:[#allocation5 + $0x588] sm:$0xf] }
 0x4e7   : >> { %2894 = vst [vmem:[#allocation5 + $0x438] sm:$0xff] %v2870_v40  ;;  %v6769_v18 = vor.u32 %v7193_v53, %v6768_v60  ;;  %v7159_v17 = vld [vmem:[#allocation5 + $0x48c] sm:$0xf]  ;;  %v6608_v60 = vld [vmem:[#allocation5 + $0x448] sm:$0xf] }
 0x4e8   : >> { %v6645_v8 = vor.u32 %v7159_v17, %v6642_v62  ;;  %v6609_v27 = vor.u32 %v7153_v20, %v6608_v60  ;;  %v7131_v17 = vld [vmem:[#allocation5 + $0x3ac] sm:$0xf]  ;;  %v4912_v60 = vpop.f32.mrf.mxu3 }
 0x4e9   : >> { %5120 = vmatpush.bf16.msra.mxu1 %v6193_v6  ;;  %5104 = vmatpush.bf16.msrb.mxu0 %v6097_v37  ;;  %v6738_v6 = vld [vmem:[#allocation5 + $0x558] sm:$0xf0]  ;;  %v6673_v37 = vor.u32 %v7169_v4, %v6672_v19  ;;  %v7123_v20 = vld [vmem:[#allocation5 + $0x36c] sm:$0xf] }
 0x4ea   : >> { %5202 = vmatpush.bf16.msrb.mxu3 %v6101_v51  ;;  %v2816_v47 = vpop.permute.xlu0 %2815  ;;  %v6741_v51 = vor.u32 %v7183_v16, %v6738_v6  ;;  %v7143_v16 = vld [vmem:[#allocation5 + $0x40c] sm:$0xf] }
 0x4eb   : >> { %v2840_v11 = vrot.slane %v2816_v47, 4  ;;  %v7151_v47 = vld [vmem:[#allocation5 + $0x44c] sm:$0xf] }
 0x4ec   : >> { %5121 = vmatmul.bf16.vlgmr.msra.gmra.mxu1 %v9127_v55  ;;  %v6773_v55 = vor.u32 %v7191_v54, %v6770_v49 }
 0x4ed   : >> { %5169 = vmatpush.bf16.msrb.mxu1 %v6817_v61  ;;  %5105 = vmatpush.bf16.msrb.mxu0 %v6081_v33  ;;  %v2861_v23 = vsel %vm361_vm0, %v9793_v42, %v2840_v11  ;;  %v7189_v61 = vld [vmem:[#allocation5 + $0x574] sm:$0xf0]  ;;  %v6661_v33 = vor.u32 %v7163_v15, %v6658_v45  ;;  %v6722_v11 = vld [vmem:[#allocation5 + $0x538] sm:$0xf0] }
 0x4ee   : >> { %5203 = vmatpush.bf16.msrb.mxu3 %v6085_v30  ;;  %5270 = vmatpush.bf16.msra.mxu2 %v6773_v55  ;;  %v2862_v0 = vsel %vm9794_vm5, %v8936_v14, %v2861_v23  ;;  %v6753_v34 = vor.u32 %v7189_v61, %v6752_v21  ;;  %v6640_v30 = vld [vmem:[#allocation5 + $0x488] sm:$0xf]  ;;  %v7157_v55 = vld [vmem:[#allocation5 + $0x474] sm:$0xf0]  ;;  %v6434_v61 = vld [vmem:[#allocation5 + $0x2f8] sm:$0xf0] }
 0x4ef   : >> { %2890 = vst [vmem:[#allocation5 + $0x418] sm:$0xff] %v2862_v0  ;;  %v6641_v49 = vor.u32 %v7161_v32, %v6640_v30  ;;  %v7149_v19 = vld [vmem:[#allocation5 + $0x434] sm:$0xf0]  ;;  %v6562_v0 = vld [vmem:[#allocation5 + $0x3f8] sm:$0xf0] }
 0x4f0   : >> { %v6530_v30 = vld [vmem:[#allocation5 + $0x3b8] sm:$0xf0] }
 0x4f1   : >> { %5170 = vmatpush.bf16.msrb.mxu1 %v6801_v35  ;;  %5106 = vmatpush.bf16.msrb.mxu0 %v6065_v52  ;;  %v7185_v35 = vld [vmem:[#allocation5 + $0x554] sm:$0xf0] }
 0x4f2   : >> { %5204 = vmatpush.bf16.msrb.mxu3 %v6069_v58  ;;  %5271 = vmatpush.bf16.msra.mxu2 %v6757_v24  ;;  %v3134_v14 = vpop.permute.xlu0 %3133  ;;  %v7181_v58 = vld [vmem:[#allocation5 + $0x534] sm:$0xf0] }
 0x4f3   : >> { %v3161_v36 = vrot.slane %v3134_v14, 4 }
 0x4f4   : >> { %5107 = vmatmul.bf16.vlgmr.msrb.gmra.mxu0 %v9100_v29 }
 0x4f5   : >> { %5171 = vmatpush.bf16.msrb.mxu1 %v6785_v5  ;;  %5155 = vmatpush.bf16.msra.mxu0 %v6689_v48  ;;  %v3181_v40 = vsel %vm361_vm0, %v3160_v3, %v3161_v36  ;;  %v6624_v5 = vld [vmem:[#allocation5 + $0x468] sm:$0xf]  ;;  %v6629_v3 = vor.u32 %v7155_v57, %v6626_v59  ;;  %v7103_v36 = vld [vmem:[#allocation5 + $0x2cc] sm:$0xf]  ;;  %v6514_v59 = vld [vmem:[#allocation5 + $0x398] sm:$0xf0] }
 0x4f6   : >> { %5253 = vmatpush.bf16.msra.mxu3 %v6693_v28  ;;  %5272 = vmatpush.bf16.msra.mxu2 %v6741_v51  ;;  %v3182_v54 = vsel %vm845_vm2, %v9493_v63, %v3181_v40  ;;  %v6625_v13 = vor.u32 %v7157_v55, %v6624_v5  ;;  %v6613_v28 = vor.u32 %v7151_v47, %v6610_v38  ;;  %v7145_v42 = vld [vmem:[#allocation5 + $0x414] sm:$0xf0]  ;;  %v6578_v23 = vld [vmem:[#allocation5 + $0x418] sm:$0xf0]  ;;  %v7095_v55 = vld [vmem:[#allocation5 + $0x28c] sm:$0xf]  ;;  %v4940_v47 = vpop.f32.mrf.mxu1 }
 0x4f7   : >> { %5205 = vmatmul.bf16.vlgmr.msrb.gmra.mxu3 %v9100_v29  ;;  %v6737_v29 = vor.u32 %v7185_v35, %v6736_v31  ;;  %3212 = vst [vmem:[#allocation5 + $0x528] sm:$0xff] %v3182_v54  ;;  %v6581_v45 = vor.u32 %v7143_v16, %v6578_v23  ;;  %v6418_v31 = vld [vmem:[#allocation5 + $0x2d8] sm:$0xf0]  ;;  %v7099_v54 = vld [vmem:[#allocation5 + $0x2ac] sm:$0xf] }
 0x4f8   : >> { %v6421_v32 = vor.u32 %v7103_v36, %v6418_v31  ;;  %v6402_v40 = vld [vmem:[#allocation5 + $0x2b8] sm:$0xf0]  ;;  %v7111_v16 = vld [vmem:[#allocation5 + $0x30c] sm:$0xf] }
 0x4f9   : >> { %5172 = vmatpush.bf16.msrb.mxu1 %v6769_v18  ;;  %5156 = vmatpush.bf16.msra.mxu0 %v6673_v37  ;;  %v6594_v18 = vld [vmem:[#allocation5 + $0x438] sm:$0xf0]  ;;  %v6576_v37 = vld [vmem:[#allocation5 + $0x408] sm:$0xf] }
 0x4fa   : >> { %5254 = vmatpush.bf16.msra.mxu3 %v6677_v2  ;;  %v6597_v6 = vor.u32 %v7147_v46, %v6594_v18  ;;  %v6704_v2 = vld [vmem:[#allocation5 + $0x508] sm:$0xf]  ;;  %v6577_v21 = vor.u32 %v7145_v42, %v6576_v37  ;;  %v6386_v5 = vld [vmem:[#allocation5 + $0x298] sm:$0xf0]  ;;  %v7115_v18 = vld [vmem:[#allocation5 + $0x32c] sm:$0xf]  ;;  %v4914_v42 = vpop.f32.mrf.mxu3 }
 0x4fb   : >> { %v7079_v46 = vld [vmem:[#allocation5 + $0x20c] sm:$0xf]  ;;  %v6450_v23 = vld [vmem:[#allocation5 + $0x318] sm:$0xf0] }
 0x4fc   : >> { %v3128_v1 = vpop.permute.xlu0 %3127 }
 0x4fd   : >> { %5173 = vmatpush.bf16.msrb.mxu1 %v6753_v34  ;;  %5157 = vmatpush.bf16.msra.mxu0 %v6657_v26  ;;  %v3158_v52 = vrot.slane %v3128_v1, 4  ;;  %v7139_v26 = vld [vmem:[#allocation5 + $0x3ec] sm:$0xf]  ;;  %v6389_v1 = vor.u32 %v7095_v55, %v6386_v5 }
 0x4fe   : >> { %5255 = vmatpush.bf16.msra.mxu3 %v6661_v33  ;;  %v6720_v56 = vld [vmem:[#allocation5 + $0x528] sm:$0xf]  ;;  %v7179_v4 = vld [vmem:[#allocation5 + $0x52c] sm:$0xf]  ;;  %v6565_v15 = vor.u32 %v7139_v26, %v6562_v0  ;;  %v6546_v33 = vld [vmem:[#allocation5 + $0x3d8] sm:$0xf0] }
 0x4ff   : >> { %v3177_v63 = vsel %vm361_vm0, %v3157_v9, %v3158_v52  ;;  %v6721_v53 = vor.u32 %v7181_v58, %v6720_v56  ;;  %v6725_v24 = vor.u32 %v7179_v4, %v6722_v11  ;;  %v6592_v9 = vld [vmem:[#allocation5 + $0x428] sm:$0xf]  ;;  %v6498_v52 = vld [vmem:[#allocation5 + $0x378] sm:$0xf0]  ;;  %v7119_v56 = vld [vmem:[#allocation5 + $0x34c] sm:$0xf] }
 0x500   : >> { %v3178_v48 = vsel %vm845_vm2, %v9521_v43, %v3177_v63  ;;  %v6593_v25 = vor.u32 %v7149_v19, %v6592_v9  ;;  %v7107_v43 = vld [vmem:[#allocation5 + $0x2ec] sm:$0xf]  ;;  %v6501_v38 = vor.u32 %v7123_v20, %v6498_v52  ;;  %v6482_v58 = vld [vmem:[#allocation5 + $0x358] sm:$0xf0]  ;;  %v4926_v9 = vpop.f32.mrf.mxu0 }
 0x501   : >> { %5174 = vmatpush.bf16.msrb.mxu1 %v6737_v29  ;;  %5158 = vmatpush.bf16.msra.mxu0 %v6641_v49  ;;  %3210 = vst [vmem:[#allocation5 + $0x518] sm:$0xff] %v3178_v48  ;;  %v6437_v14 = vor.u32 %v7107_v43, %v6434_v61  ;;  %v7135_v29 = vld [vmem:[#allocation5 + $0x3cc] sm:$0xf]  ;;  %v6405_v49 = vor.u32 %v7099_v54, %v6402_v40  ;;  %v6354_v48 = vld [vmem:[#allocation5 + $0x258] sm:$0xf0]  ;;  %v4942_v43 = vpop.f32.mrf.mxu1 }
 0x502   : >> { %5256 = vmatpush.bf16.msra.mxu3 %v6645_v8  ;;  %5273 = vmatpush.bf16.msra.mxu2 %v6725_v24  ;;  %v6549_v62 = vor.u32 %v7135_v29, %v6546_v33  ;;  %v6533_v8 = vor.u32 %v7131_v17, %v6530_v30  ;;  %v7087_v63 = vld [vmem:[#allocation5 + $0x24c] sm:$0xf]  ;;  %v6485_v4 = vor.u32 %v7119_v56, %v6482_v58  ;;  %v9624_v24 = vpop.permute.xlu1 %3816  ;;  %v6882_v61 = vld [vmem:[#allocation5 + $0x678] sm:$0xf0]  ;;  %v4968_v33 = vpop.f32.mrf.mxu3 }
 0x503   : >> { %v7083_v11 = vld [vmem:[#allocation5 + $0x22c] sm:$0xf]  ;;  %v6322_v0 = vld [vmem:[#allocation5 + $0x218] sm:$0xf0] }
 0x504   : >> { %v6325_v37 = vor.u32 %v7079_v46, %v6322_v0  ;;  %v7211_v29 = vld [vmem:[#allocation5 + $0x62c] sm:$0xf]  ;;  %v6834_v54 = vld [vmem:[#allocation5 + $0x618] sm:$0xf0] }
 0x505   : >> { %5159 = vmatpush.bf16.msra.mxu0 %v6625_v13  ;;  %5175 = vmatpush.bf16.msrb.mxu1 %v6721_v53  ;;  %v7127_v13 = vld [vmem:[#allocation5 + $0x38c] sm:$0xf]  ;;  %v6466_v53 = vld [vmem:[#allocation5 + $0x338] sm:$0xf0] }
 0x506   : >> { %5257 = vmatpush.bf16.msra.mxu3 %v6629_v3  ;;  %v6517_v57 = vor.u32 %v7127_v13, %v6514_v59 }
 0x508   : >> { %v7177_v51 = vld [vmem:[#allocation5 + $0x514] sm:$0xf0]  ;;  %v6706_v34 = vld [vmem:[#allocation5 + $0x518] sm:$0xf0] }
 0x509   : >> { %5160 = vmatpush.bf16.msra.mxu0 %v6609_v27  ;;  %v6705_v39 = vor.u32 %v7177_v51, %v6704_v2  ;;  %v6709_v35 = vor.u32 %v7175_v22, %v6706_v34  ;;  %v6357_v27 = vor.u32 %v7087_v63, %v6354_v48  ;;  %v7219_v2 = vld [vmem:[#allocation5 + $0x66c] sm:$0xf]  ;;  %v6866_v34 = vld [vmem:[#allocation5 + $0x658] sm:$0xf0] }
 0x50a   : >> { %5258 = vmatpush.bf16.msra.mxu3 %v6613_v28  ;;  %v6338_v28 = vld [vmem:[#allocation5 + $0x238] sm:$0xf0]  ;;  %v6885_v51 = vor.u32 %v7219_v2, %v6882_v61 }
 0x50b   : >> { %5176 = vmatpush.bf16.msrb.mxu1 %v6705_v39  ;;  %5274 = vmatpush.bf16.msra.mxu2 %v6709_v35  ;;  %v6341_v19 = vor.u32 %v7083_v11, %v6338_v28  ;;  %v7215_v39 = vld [vmem:[#allocation5 + $0x64c] sm:$0xf]  ;;  %v4954_v35 = vpop.f32.mrf.mxu2 }
 0x50c   : >> { %v6869_v26 = vor.u32 %v7215_v39, %v6866_v34 }
 0x50d   : >> { %5161 = vmatpush.bf16.msra.mxu0 %v6593_v25  ;;  %v6469_v25 = vor.u32 %v7115_v18, %v6466_v53 }
 0x50e   : >> { %5259 = vmatpush.bf16.msra.mxu3 %v6597_v6  ;;  %5177 = vmatmul.bf16.vlgmr.msrb.gmra.mxu1 %v9551_v41  ;;  %v4913_v6 = vadd.f32 %v4912_v60, %v9624_v24 }
 0x50f   : >> { %5239 = vmatpush.bf16.msra.mxu1 %v6565_v15  ;;  %5275 = vmatmul.bf16.vlgmr.msra.gmra.mxu2 %v9551_v41  ;;  %v7091_v41 = vld [vmem:[#allocation5 + $0x26c] sm:$0xf] }
 0x510   : >> { %v4927_v22 = vadd.f32 %v4926_v9, %v4913_v6 }
 0x511   : >> { %5162 = vmatpush.bf16.msra.mxu0 %v6577_v21  ;;  %v6453_v21 = vor.u32 %v7111_v16, %v6450_v23 }
 0x512   : >> { %5260 = vmatpush.bf16.msra.mxu3 %v6581_v45  ;;  %v9627_v45 = vpop.permute.xlu2 %3821  ;;  %v4941_v15 = vadd.f32 %v4940_v47, %v4927_v22 }
 0x513   : >> { %5240 = vmatpush.bf16.msra.mxu1 %v6549_v62  ;;  %v4915_v36 = vadd.f32 %v4914_v42, %v9627_v45  ;;  %v4956_v5 = vpop.f32.mrf.mxu2 }
 0x514   : >> { %5163 = vmatmul.bf16.vlgmr.msra.gmra.mxu0 %v9389_v50  ;;  %v4955_v30 = vadd.f32 %v4954_v35, %v4941_v15  ;;  %v9795_v35 = vld [vmem:[#allocation7_spill] sm:$0xff] }
 0x515   : >> { %5225 = vmatpush.bf16.msrb.mxu0 %v6437_v14  ;;  %5261 = vmatmul.bf16.vlgmr.msra.gmra.mxu3 %v9389_v50  ;;  %v6370_v50 = vld [vmem:[#allocation5 + $0x278] sm:$0xf0]  ;;  %v4928_v14 = vpop.f32.mrf.mxu0 }
 0x516   : >> { %v6373_v3 = vor.u32 %v7091_v41, %v6370_v50  ;;  %v4929_v40 = vadd.f32 %v4928_v14, %v4915_v36 }
 0x517   : >> { %5241 = vmatpush.bf16.msra.mxu1 %v6533_v8 }
 0x518   : >> { %v4943_v55 = vadd.f32 %v4942_v43, %v4929_v40 }
 0x519   : >> { %5226 = vmatpush.bf16.msrb.mxu0 %v6421_v32  ;;  %v4996_v31 = vpop.f32.mrf.mxu1  ;;  %v6850_v32 = vld [vmem:[#allocation5 + $0x638] sm:$0xf0] }
 0x51a   : >> { %v6853_v62 = vor.u32 %v7211_v29, %v6850_v32  ;;  %v4957_v50 = vadd.f32 %v4956_v5, %v4943_v55 }
 0x51b   : >> { %5242 = vmatpush.bf16.msra.mxu1 %v6517_v57  ;;  %v5010_v58 = vpop.f32.mrf.mxu2 }
 0x51d   : >> { %5227 = vmatpush.bf16.msrb.mxu0 %v6405_v49  ;;  %v4969_v49 = vadd.f32 %v4968_v33, %v4955_v30 }
 0x51f   : >> { %5243 = vmatpush.bf16.msra.mxu1 %v6501_v38 }
 0x521   : >> { %5228 = vmatpush.bf16.msrb.mxu0 %v6389_v1  ;;  %v9635_v1 = vstv %s5296_s18  ;;  %v4998_v13 = vpop.f32.mrf.mxu1 }
 0x523   : >> { %5244 = vmatpush.bf16.msra.mxu1 %v6485_v4  ;;  %v5012_v11 = vpop.f32.mrf.mxu2 }
 0x524   : >> { %v5013_v43 = vadd.f32 %v5012_v11, %v9627_v45 }
 0x525   : >> { %5229 = vmatpush.bf16.msrb.mxu0 %v6373_v3 }
 0x527   : >> { %5245 = vmatpush.bf16.msra.mxu1 %v6469_v25 }
 0x529   : >> { %5230 = vmatpush.bf16.msrb.mxu0 %v6357_v27 }
 0x52b   : >> { %5246 = vmatpush.bf16.msra.mxu1 %v6453_v21  ;;  %v5066_v9 = vpop.f32.mrf.mxu2 }
 0x52d   : >> { %5231 = vmatpush.bf16.msrb.mxu0 %v6341_v19  ;;  %v5011_v19 = vadd.f32 %v5010_v58, %v9624_v24 }
 0x52e   : >> { %5247 = vmatmul.bf16.vlgmr.msra.gmra.mxu1 %v9014_v44  ;;  %v4970_v44 = vpop.f32.mrf.mxu3 }
 0x52f   : >> { %v4971_v41 = vadd.f32 %v4970_v44, %v4957_v50 }
 0x531   : >> { %5232 = vmatpush.bf16.msrb.mxu0 %v6325_v37  ;;  %v4982_v17 = vpop.f32.mrf.mxu0 }
 0x532   : >> { %v4983_v59 = vadd.f32 %v4982_v17, %v4969_v49 }
 0x534   : >> { %5233 = vmatmul.bf16.vlgmr.msrb.gmra.mxu0 %v9136_v12  ;;  %v7207_v12 = vld [vmem:[#allocation5 + $0x60c] sm:$0xf]  ;;  %v4997_v57 = vadd.f32 %v4996_v31, %v4983_v59 }
 0x535   : >> { %5285 = vmatpush.bf16.msra.mxu0 %v6885_v51  ;;  %v6837_v8 = vor.u32 %v7207_v12, %v6834_v54  ;;  %v5068_v51 = vpop.f32.mrf.mxu2 }
 0x536   : >> { %vm5297_vm0 = vcmp.ge.f32.partialorder %v4997_v57, 0.0  ;;  %v5306_v52 = vmul.f32 %v9635_v1, %v4997_v57  ;;  %v5024_v60 = vpop.f32.mrf.mxu3 }
 0x538   : >> { %v5314_v3 = vsel %vm5297_vm0, %v4997_v57, %v5306_v52 }
 0x539   : >> { %5286 = vmatpush.bf16.msra.mxu0 %v6869_v26  ;;  %v5322_v20 = vmul.f32 %v5314_v3, %v8317_v10  ;;  %v4984_v38 = vpop.f32.mrf.mxu0  ;;  %v5038_v48 = vpop.f32.mrf.mxu1 }
 0x53a   : >> { %v4985_v63 = vadd.f32 %v4984_v38, %v4971_v41 }
 0x53b   : >> { %5330 = vst [vmem:[#allocation2] sm:$0xff] %v5322_v20 }
 0x53c   : >> { %v4999_v47 = vadd.f32 %v4998_v13, %v4985_v63 }
 0x53d   : >> { %5287 = vmatpush.bf16.msra.mxu0 %v6853_v62  ;;  %v5136_v29 = vpop.f32.mrf.mxu2 }
 0x53e   : >> { %vm5301_vm2 = vcmp.ge.f32.partialorder %v4999_v47, 0.0  ;;  %v5310_v27 = vmul.f32 %v9635_v1, %v4999_v47  ;;  %v5026_v28 = vpop.f32.mrf.mxu3 }
 0x53f   : >> { %v5027_v61 = vadd.f32 %v5026_v28, %v5013_v43 }
 0x540   : >> { %v5318_v56 = vsel %vm5301_vm2, %v4999_v47, %v5310_v27 }
 0x541   : >> { %5288 = vmatpush.bf16.msra.mxu0 %v6837_v8  ;;  %v5326_v4 = vmul.f32 %v5318_v56, %v8317_v10  ;;  %v5040_v53 = vpop.f32.mrf.mxu1  ;;  %v9796_v56 = vld [vmem:[#allocation8_spill] sm:$0xff] }
 0x542   : >> { %v5041_v37 = vadd.f32 %v5040_v53, %v5027_v61 }
 0x543   : >> { %5334 = vst [vmem:[#allocation2 + $0x38] sm:$0xff] %v5326_v4 }
 0x544   : >> { %6889 = vmatmul.msk.bf16.vlgmr.msra.gmra.mxu0 %vm4899_vm6, %v9507_v7  ;;  %v5025_v7 = vadd.f32 %v5024_v60, %v5011_v19 }
 0x545   : >> { %v5138_v49 = vpop.f32.mrf.mxu2 }
 0x546   : >> { %v5039_v18 = vadd.f32 %v5038_v48, %v5025_v7  ;;  %v5080_v46 = vpop.f32.mrf.mxu3 }
 0x549   : >> { %v5094_v42 = vpop.f32.mrf.mxu1 }
 0x54d   : >> { %v5192_v52 = vpop.f32.mrf.mxu2 }
 0x54e   : >> { %v5082_v22 = vpop.f32.mrf.mxu3 }
 0x551   : >> { %v5052_v25 = vpop.f32.mrf.mxu0  ;;  %v5096_v26 = vpop.f32.mrf.mxu1 }
 0x552   : >> { %v5053_v6 = vadd.f32 %v5052_v25, %v5039_v18 }
 0x554   : >> { %v5067_v23 = vadd.f32 %v5066_v9, %v5053_v6 }
 0x555   : >> { %v5194_v28 = vpop.f32.mrf.mxu2 }
 0x556   : >> { %v5081_v0 = vadd.f32 %v5080_v46, %v5067_v23 }
 0x558   : >> { %v5095_v10 = vadd.f32 %v5094_v42, %v5081_v0 }
 0x559   : >> { %v5054_v16 = vpop.f32.mrf.mxu0 }
 0x55a   : >> { %vm5298_vm11 = vcmp.ge.f32.partialorder %v5095_v10, 0.0  ;;  %v5307_v2 = vmul.f32 %v9635_v1, %v5095_v10  ;;  %v5055_v21 = vadd.f32 %v5054_v16, %v5041_v37  ;;  %v5150_v59 = vpop.f32.mrf.mxu3 }
 0x55c   : >> { %v5315_v34 = vsel %vm5298_vm11, %v5095_v10, %v5307_v2  ;;  %v5069_v39 = vadd.f32 %v5068_v51, %v5055_v21 }
 0x55d   : >> { %v5323_v14 = vmul.f32 %v5315_v34, %v9795_v35  ;;  %v5220_v25 = vpop.f32.mrf.mxu2 }
 0x55e   : >> { %v5083_v15 = vadd.f32 %v5082_v22, %v5069_v39 }
 0x55f   : >> { %5331 = vst [vmem:[#allocation2 + $0x58] sm:$0xff] %v5323_v14 }
 0x560   : >> { %v5097_v36 = vadd.f32 %v5096_v26, %v5083_v15 }
 0x562   : >> { %vm5302_vm12 = vcmp.ge.f32.partialorder %v5097_v36, 0.0  ;;  %v5311_v33 = vmul.f32 %v9635_v1, %v5097_v36  ;;  %v5152_v38 = vpop.f32.mrf.mxu3 }
 0x564   : >> { %v5319_v31 = vsel %vm5302_vm12, %v5097_v36, %v5311_v33 }
 0x565   : >> { %v5327_v32 = vmul.f32 %v5319_v31, %v9795_v35  ;;  %v5222_v23 = vpop.f32.mrf.mxu2 }
 0x567   : >> { %5335 = vst [vmem:[#allocation2 + $0x28] sm:$0xff] %v5327_v32 }
 0x569   : >> { %v5122_v40 = vpop.f32.mrf.mxu1 }
 0x571   : >> { %v5108_v62 = vpop.f32.mrf.mxu0  ;;  %v5124_v17 = vpop.f32.mrf.mxu1 }
 0x572   : >> { %v5109_v30 = vadd.f32 %v5108_v62, %v9624_v24 }
 0x574   : >> { %v5123_v54 = vadd.f32 %v5122_v40, %v5109_v30 }
 0x576   : >> { %v5137_v8 = vadd.f32 %v5136_v29, %v5123_v54 }
 0x578   : >> { %v5151_v44 = vadd.f32 %v5150_v59, %v5137_v8 }
 0x579   : >> { %v5110_v12 = vpop.f32.mrf.mxu0 }
 0x57a   : >> { %v5111_v55 = vadd.f32 %v5110_v12, %v9627_v45  ;;  %v5206_v18 = vpop.f32.mrf.mxu3 }
 0x57b   : >> { %v5207_v46 = vadd.f32 %v5206_v18, %v9624_v24 }
 0x57c   : >> { %v5125_v5 = vadd.f32 %v5124_v17, %v5111_v55 }
 0x57d   : >> { %v5221_v43 = vadd.f32 %v5220_v25, %v5207_v46 }
 0x57e   : >> { %v5139_v41 = vadd.f32 %v5138_v49, %v5125_v5 }
 0x580   : >> { %v5153_v60 = vadd.f32 %v5152_v38, %v5139_v41 }
 0x582   : >> { %v5208_v6 = vpop.f32.mrf.mxu3 }
 0x583   : >> { %v5209_v37 = vadd.f32 %v5208_v6, %v9627_v45  ;;  %v9797_v45 = vld [vmem:[#allocation9_spill] sm:$0xff] }
 0x585   : >> { %v5223_v21 = vadd.f32 %v5222_v23, %v5209_v37 }
 0x58b   : >> { %v5178_v50 = vpop.f32.mrf.mxu1 }
 0x591   : >> { %v5164_v13 = vpop.f32.mrf.mxu0 }
 0x592   : >> { %v5165_v57 = vadd.f32 %v5164_v13, %v5151_v44  ;;  %v5276_v51 = vpop.f32.mrf.mxu2 }
 0x593   : >> { %v5180_v27 = vpop.f32.mrf.mxu1 }
 0x594   : >> { %v5179_v3 = vadd.f32 %v5178_v50, %v5165_v57 }
 0x596   : >> { %v5193_v20 = vadd.f32 %v5192_v52, %v5179_v3 }
 0x598   : >> { %vm5299_vm13 = vcmp.ge.f32.partialorder %v5193_v20, 0.0  ;;  %v5308_v63 = vmul.f32 %v9635_v1, %v5193_v20  ;;  %v5262_v10 = vpop.f32.mrf.mxu3 }
 0x599   : >> { %v5166_v47 = vpop.f32.mrf.mxu0 }
 0x59a   : >> { %v5316_v58 = vsel %vm5299_vm13, %v5193_v20, %v5308_v63  ;;  %v5167_v48 = vadd.f32 %v5166_v47, %v5153_v60  ;;  %v5278_v31 = vpop.f32.mrf.mxu2 }
 0x59b   : >> { %v5324_v4 = vmul.f32 %v5316_v58, %v9796_v56 }
 0x59c   : >> { %v5181_v11 = vadd.f32 %v5180_v27, %v5167_v48 }
 0x59d   : >> { %5332 = vst [vmem:[#allocation2 + $0x18] sm:$0xff] %v5324_v4 }
 0x59e   : >> { %v5195_v53 = vadd.f32 %v5194_v28, %v5181_v11 }
 0x5a0   : >> { %vm5303_vm14 = vcmp.ge.f32.partialorder %v5195_v53, 0.0  ;;  %v5312_v19 = vmul.f32 %v9635_v1, %v5195_v53  ;;  %v5264_v26 = vpop.f32.mrf.mxu3 }
 0x5a2   : >> { %v5320_v7 = vsel %vm5303_vm14, %v5195_v53, %v5312_v19 }
 0x5a3   : >> { %v5328_v9 = vmul.f32 %v5320_v7, %v9796_v56 }
 0x5a5   : >> { %5336 = vst [vmem:[#allocation2 + $0x48] sm:$0xff] %v5328_v9 }
 0x5ab   : >> { %v5248_v61 = vpop.f32.mrf.mxu1 }
 0x5b1   : >> { %v5234_v42 = vpop.f32.mrf.mxu0 }
 0x5b2   : >> { %v5235_v0 = vadd.f32 %v5234_v42, %v5221_v43 }
 0x5b3   : >> { %v5250_v39 = vpop.f32.mrf.mxu1 }
 0x5b4   : >> { %v5249_v16 = vadd.f32 %v5248_v61, %v5235_v0 }
 0x5b6   : >> { %v5263_v22 = vadd.f32 %v5262_v10, %v5249_v16 }
 0x5b8   : >> { %v5277_v35 = vadd.f32 %v5276_v51, %v5263_v22 }
 0x5b9   : >> { %v5236_v2 = vpop.f32.mrf.mxu0 }
 0x5ba   : >> { %v5237_v34 = vadd.f32 %v5236_v2, %v5223_v21 }
 0x5bc   : >> { %v5251_v14 = vadd.f32 %v5250_v39, %v5237_v34 }
 0x5be   : >> { %v5265_v36 = vadd.f32 %v5264_v26, %v5251_v14 }
 0x5c0   : >> { %v5279_v62 = vadd.f32 %v5278_v31, %v5265_v36 }
 0x5c1   : >> { %v5290_v24 = vpop.f32.mrf.mxu0 }
 0x5c2   : >> { %v5291_v15 = vadd.f32 %v5290_v24, %v5277_v35 }
 0x5c4   : >> { %vm5300_vm7 = vcmp.ge.f32.partialorder %v5291_v15, 0.0  ;;  %v5309_v33 = vmul.f32 %v9635_v1, %v5291_v15 }
 0x5c6   : >> { %v5317_v32 = vsel %vm5300_vm7, %v5291_v15, %v5309_v33 }
 0x5c7   : >> { %v5325_v29 = vmul.f32 %v5317_v32, %v9797_v45 }
 0x5c9   : >> { %5333 = vst [vmem:[#allocation2 + $0x50] sm:$0xff] %v5325_v29  ;;  %v5292_v40 = vpop.f32.mrf.mxu0 }
 0x5ca   : >> { %v5293_v30 = vadd.f32 %v5292_v40, %v5279_v62 }
 0x5cc   : >> { %vm5304_vm15 = vcmp.ge.f32.partialorder %v5293_v30, 0.0  ;;  %v5313_v54 = vmul.f32 %v9635_v1, %v5293_v30 }
 0x5cd   : >> { %5340 = sbr.rel (%p6890_p7) target bundleno = 1519 (0x5ef), region = 55 }
 0x5ce   : >> { %v5321_v49 = vsel %vm5304_vm15, %v5293_v30, %v5313_v54 }
 0x5cf   : >> { %v5329_v12 = vmul.f32 %v5321_v49, %v9797_v45 }
 0x5d1   : >> { %5337 = vst [vmem:[#allocation2 + $0x10] sm:$0xff] %v5329_v12 }
 0x5d2   : >> { %v5341_v17 = vld [vmem:[#allocation2 + $0x30] sm:$0xff]  ;;  %v5365_v8 = vld [vmem:[#allocation3 + $0x48] sm:$0xff]  ;;  %v5342_v55 = vld [vmem:[#allocation2] sm:$0xff] }
 0x5d3   : >> { %v5353_v59 = vmul.f32 0.2, %v5341_v17  ;;  %v5354_v5 = vmul.f32 0.2, %v5342_v55  ;;  %v5366_v44 = vld [vmem:[#allocation3] sm:$0xff]  ;;  %v5343_v13 = vld [vmem:[#allocation2 + $0x58] sm:$0xff] }
 0x5d4   : >> { %v5355_v57 = vmul.f32 0.2, %v5343_v13  ;;  %v5367_v50 = vld [vmem:[#allocation3 + $0x50] sm:$0xff]  ;;  %v5344_v52 = vld [vmem:[#allocation2 + $0x18] sm:$0xff]  ;;  %v5369_v63 = vld [vmem:[#allocation3 + $0x8] sm:$0xff] }
 0x5d5   : >> { %v5368_v41 = vld [vmem:[#allocation3 + $0x30] sm:$0xff]  ;;  %v5377_v3 = vadd.f32 %v5365_v8, %v5353_v59  ;;  %v5378_v1 = vadd.f32 %v5366_v44, %v5354_v5  ;;  %v5356_v20 = vmul.f32 0.2, %v5344_v52  ;;  %v5346_v60 = vld [vmem:[#allocation2 + $0x20] sm:$0xff]  ;;  %v5347_v56 = vld [vmem:[#allocation2 + $0x8] sm:$0xff] }
 0x5d6   : >> { %v5345_v38 = vld [vmem:[#allocation2 + $0x50] sm:$0xff]  ;;  %v5379_v47 = vadd.f32 %v5367_v50, %v5355_v57  ;;  %v5358_v48 = vmul.f32 0.2, %v5346_v60  ;;  %v5370_v27 = vld [vmem:[#allocation3 + $0x20] sm:$0xff]  ;;  %v5359_v11 = vmul.f32 0.2, %v5347_v56 }
 0x5d7   : >> { %v5357_v58 = vmul.f32 0.2, %v5345_v38  ;;  %5389 = vst [vmem:[#allocation3 + $0x48] sm:$0xff] %v5377_v3  ;;  %v5380_v4 = vadd.f32 %v5368_v41, %v5356_v20  ;;  %v5371_v28 = vld [vmem:[#allocation3 + $0x18] sm:$0xff]  ;;  %v5372_v19 = vld [vmem:[#allocation3 + $0x40] sm:$0xff]  ;;  %v5349_v25 = vld [vmem:[#allocation2 + $0x28] sm:$0xff] }
 0x5d8   : >> { %v5348_v53 = vld [vmem:[#allocation2 + $0x38] sm:$0xff]  ;;  %5390 = vst [vmem:[#allocation3] sm:$0xff] %v5378_v1  ;;  %v5382_v18 = vadd.f32 %v5370_v27, %v5358_v48  ;;  %v5350_v6 = vld [vmem:[#allocation2 + $0x48] sm:$0xff]  ;;  %v5383_v42 = vadd.f32 %v5371_v28, %v5359_v11  ;;  %v5361_v43 = vmul.f32 0.2, %v5349_v25  ;;  %v5351_v37 = vld [vmem:[#allocation2 + $0x10] sm:$0xff] }
 0x5d9   : >> { %v5381_v7 = vadd.f32 %v5369_v63, %v5357_v58  ;;  %v5360_v9 = vmul.f32 0.2, %v5348_v53  ;;  %v5373_v46 = vld [vmem:[#allocation3 + $0x38] sm:$0xff]  ;;  %5391 = vst [vmem:[#allocation3 + $0x50] sm:$0xff] %v5379_v47  ;;  %v5362_v23 = vmul.f32 0.2, %v5350_v6 }
 0x5da   : >> { %v5374_v61 = vld [vmem:[#allocation3 + $0x28] sm:$0xff]  ;;  %5392 = vst [vmem:[#allocation3 + $0x30] sm:$0xff] %v5380_v4  ;;  %v5375_v10 = vld [vmem:[#allocation3 + $0x58] sm:$0xff]  ;;  %v5352_v16 = vld [vmem:[#allocation2 + $0x40] sm:$0xff]  ;;  %v5385_v2 = vadd.f32 %v5373_v46, %v5361_v43  ;;  %v5363_v21 = vmul.f32 0.2, %v5351_v37 }
 0x5db   : >> { %v5384_v0 = vadd.f32 %v5372_v19, %v5360_v9  ;;  %5393 = vst [vmem:[#allocation3 + $0x8] sm:$0xff] %v5381_v7  ;;  %v5364_v51 = vmul.f32 0.2, %v5352_v16  ;;  %v5376_v22 = vld [vmem:[#allocation3 + $0x10] sm:$0xff]  ;;  %v5386_v34 = vadd.f32 %v5374_v61, %v5362_v23 }
 0x5dc   : >> { %5394 = vst [vmem:[#allocation3 + $0x20] sm:$0xff] %v5382_v18  ;;  %v5387_v39 = vadd.f32 %v5375_v10, %v5363_v21 }
 0x5dd   : >> { %5395 = vst [vmem:[#allocation3 + $0x18] sm:$0xff] %v5383_v42  ;;  %v5388_v35 = vadd.f32 %v5376_v22, %v5364_v51 }
 0x5de   : >> { %5396 = vst [vmem:[#allocation3 + $0x40] sm:$0xff] %v5384_v0 }
 0x5df   : >> { %5397 = vst [vmem:[#allocation3 + $0x38] sm:$0xff] %v5385_v2 }
 0x5e0   : >> { %5398 = vst [vmem:[#allocation3 + $0x28] sm:$0xff] %v5386_v34 }
 0x5e1   : >> { %5399 = vst [vmem:[#allocation3 + $0x58] sm:$0xff] %v5387_v39 }
 0x5e2   : >> { %5400 = vst [vmem:[#allocation3 + $0x10] sm:$0xff] %v5388_v35 }
 0x5e3   : >> { %5413 = vst [vmem:[#allocation2 + $0x30] sm:$0xff] %v5377_v3 }
 0x5e4   : >> { %5414 = vst [vmem:[#allocation2] sm:$0xff] %v5378_v1 }
 0x5e5   : >> { %5415 = vst [vmem:[#allocation2 + $0x58] sm:$0xff] %v5379_v47 }
 0x5e6   : >> { %5416 = vst [vmem:[#allocation2 + $0x18] sm:$0xff] %v5380_v4 }
 0x5e7   : >> { %5417 = vst [vmem:[#allocation2 + $0x50] sm:$0xff] %v5381_v7 }
 0x5e8   : >> { %5418 = vst [vmem:[#allocation2 + $0x20] sm:$0xff] %v5382_v18 }
 0x5e9   : >> { %5419 = vst [vmem:[#allocation2 + $0x8] sm:$0xff] %v5383_v42 }
 0x5ea   : >> { %5420 = vst [vmem:[#allocation2 + $0x38] sm:$0xff] %v5384_v0 }
 0x5eb   : >> { %5421 = vst [vmem:[#allocation2 + $0x28] sm:$0xff] %v5385_v2 }
 0x5ec   : >> { %5422 = vst [vmem:[#allocation2 + $0x48] sm:$0xff] %v5386_v34 }
 0x5ed   : >> { %5423 = vst [vmem:[#allocation2 + $0x10] sm:$0xff] %v5387_v39 }
 0x5ee   : >> { %5424 = vst [vmem:[#allocation2 + $0x40] sm:$0xff] %v5388_v35 }
 0x5ef PF: >> { %s307_s8 = sadd.s32 1, %s7301_s8  }
 0x5f0   : >> { %p304_p8 = scmp.ge.s32.totalorder %s307_s8, 15  }
 0x5f1   : > { %v5425_v14 = vld [vmem:[#allocation3 + $0x48] sm:$0xff] (%p304_p8)  ;;  %v5449_v26 = vld [vmem:[%s7380_s28] sm:$0xff] (%p304_p8)  ;;  %v5427_v31 = vld [vmem:[#allocation3 + $0x50] sm:$0xff] (%p304_p8) }
 0x5f2   : > { %306 = sbr.rel (!%p304_p8) target bundleno = 49 (0x31), region = 89  ;;  %v5426_v24 = vld [vmem:[#allocation3] sm:$0xff] (%p304_p8)  ;;  %v5437_v15 = vmul.f32 (%p304_p8), 0.2, %v5425_v14  ;;  %v5450_v33 = vld [vmem:[%s7380_s28 + $0x8] sm:$0xff] (%p304_p8)  ;;  %v5451_v45 = vld [vmem:[%s7380_s28 + $0x10] sm:$0xff] (%p304_p8) }
 0x5f3   : > { %v5438_v36 = vmul.f32 (%p304_p8), 0.2, %v5426_v24  ;;  %v5439_v32 = vmul.f32 (%p304_p8), 0.2, %v5427_v31  ;;  %v5428_v29 = vld [vmem:[#allocation3 + $0x30] sm:$0xff] (%p304_p8)  ;;  %v5452_v62 = vld [vmem:[%s7380_s28 + $0x18] sm:$0xff] (%p304_p8) }
 0x5f4   : > { %v5461_v40 = vadd.f32 (%p304_p8), %v5449_v26, %v5437_v15  ;;  %v5440_v54 = vmul.f32 (%p304_p8), 0.2, %v5428_v29  ;;  %v5429_v49 = vld [vmem:[#allocation3 + $0x8] sm:$0xff] (%p304_p8)  ;;  %v5453_v12 = vld [vmem:[%s7380_s28 + $0x20] sm:$0xff] (%p304_p8)  ;;  %v5431_v44 = vld [vmem:[#allocation3 + $0x18] sm:$0xff] (%p304_p8) }
 0x5f5   : > { %v5462_v30 = vadd.f32 (%p304_p8), %v5450_v33, %v5438_v36  ;;  %v5430_v17 = vld [vmem:[#allocation3 + $0x20] sm:$0xff] (%p304_p8)  ;;  %v5463_v8 = vadd.f32 (%p304_p8), %v5451_v45, %v5439_v32  ;;  %v5441_v55 = vmul.f32 (%p304_p8), 0.2, %v5429_v49  ;;  %v5454_v5 = vld [vmem:[%s7380_s28 + $0x28] sm:$0xff] (%p304_p8)  ;;  %v5443_v57 = vmul.f32 (%p304_p8), 0.2, %v5431_v44 }
 0x5f6   : > { %v5442_v59 = vmul.f32 (%p304_p8), 0.2, %v5430_v17  ;;  %5473 = vst [vmem:[%s7385_s7] sm:$0xff] (%p304_p8), %v5461_v40  ;;  %v5464_v13 = vadd.f32 (%p304_p8), %v5452_v62, %v5440_v54  ;;  %v5455_v50 = vld [vmem:[%s7380_s28 + $0x30] sm:$0xff] (%p304_p8)  ;;  %v5432_v52 = vld [vmem:[#allocation3 + $0x40] sm:$0xff] (%p304_p8)  ;;  %v5456_v41 = vld [vmem:[%s7380_s28 + $0x38] sm:$0xff] (%p304_p8) }
 0x5f7   : > { %5474 = vst [vmem:[%s7385_s7 + $0x8] sm:$0xff] %v5462_v30  ;;  %v5465_v3 = vadd.f32 %v5453_v12, %v5441_v55  ;;  %v5444_v20 = vmul.f32 0.2, %v5432_v52  ;;  %v5433_v38 = vld [vmem:[#allocation3 + $0x38] sm:$0xff]  ;;  %v5457_v63 = vld [vmem:[%s7380_s28 + $0x40] sm:$0xff]  ;;  %v5434_v60 = vld [vmem:[#allocation3 + $0x28] sm:$0xff]  ;;  %v5467_v47 = vadd.f32 %v5455_v50, %v5443_v57 }
 0x5f8   : > { %v5466_v1 = vadd.f32 %v5454_v5, %v5442_v59  ;;  %5475 = vst [vmem:[%s7385_s7 + $0x10] sm:$0xff] %v5463_v8  ;;  %v5445_v58 = vmul.f32 0.2, %v5433_v38  ;;  %v5446_v48 = vmul.f32 0.2, %v5434_v60  ;;  %v5458_v27 = vld [vmem:[%s7380_s28 + $0x48] sm:$0xff] }
 0x5f9   : > { %5476 = vst [vmem:[%s7385_s7 + $0x18] sm:$0xff] %v5464_v13  ;;  %v5468_v56 = vadd.f32 %v5456_v41, %v5444_v20  ;;  %v5435_v4 = vld [vmem:[#allocation3 + $0x58] sm:$0xff]  ;;  %v5459_v11 = vld [vmem:[%s7380_s28 + $0x50] sm:$0xff] }
 0x5fa   : > { %v5436_v28 = vld [vmem:[#allocation3 + $0x10] sm:$0xff]  ;;  %5477 = vst [vmem:[%s7385_s7 + $0x20] sm:$0xff] %v5465_v3  ;;  %v5469_v53 = vadd.f32 %v5457_v63, %v5445_v58  ;;  %v5447_v19 = vmul.f32 0.2, %v5435_v4  ;;  %v5460_v18 = vld [vmem:[%s7380_s28 + $0x58] sm:$0xff]  ;;  %v5470_v9 = vadd.f32 %v5458_v27, %v5446_v48 }
 0x5fb   : > { %v5448_v7 = vmul.f32 0.2, %v5436_v28  ;;  %5478 = vst [vmem:[%s7385_s7 + $0x28] sm:$0xff] %v5466_v1 }
 0x5fc   : > { %5479 = vst [vmem:[%s7385_s7 + $0x30] sm:$0xff] %v5467_v47  ;;  %v5471_v25 = vadd.f32 %v5459_v11, %v5447_v19 }
 0x5fd   : > { %5480 = vst [vmem:[%s7385_s7 + $0x38] sm:$0xff] %v5468_v56  ;;  %v5472_v46 = vadd.f32 %v5460_v18, %v5448_v7 }
 0x5fe   : > { %5481 = vst [vmem:[%s7385_s7 + $0x40] sm:$0xff] %v5469_v53 }
 0x5ff   : > { %5482 = vst [vmem:[%s7385_s7 + $0x48] sm:$0xff] %v5470_v9 }
 0x600   : > { %5483 = vst [vmem:[%s7385_s7 + $0x50] sm:$0xff] %v5471_v25 }
 0x601   : > { %5484 = vst [vmem:[%s7385_s7 + $0x58] sm:$0xff] %v5472_v46 }
 0x602 PF: > { %s16_s21 = sadd.s32 1, %s7297_s21  }
 0x603   : > { %p13_p9 = scmp.ge.s32.totalorder %s16_s21, 4  }
 0x605   :  { %15 = sbr.rel (!%p13_p9) target bundleno = 1 (0x1), region = 100 }

</bundles_post_ra>
